<compile_context>
chip_gen: v7x
topology: tpu7x:2x2x1
jax: 0.10.0
libtpu: 0.0.40
codegen_flags: <defaults>
</compile_context>

<pallas_src>
import numpy as np
import jax
import jax.numpy as jnp
from jax import lax
from jax.experimental import pallas as pl
from jax.experimental.pallas import tpu as pltpu


# ----------------------------------------------------------------------------
# In-kernel math helpers (operate on VMEM-resident values)
# ----------------------------------------------------------------------------

def _bf16(x):
    return x.astype(jnp.bfloat16)


def _mm(a, b):
    # bf16 MXU operands, f32 accumulation.
    return jnp.dot(_bf16(a), _bf16(b), preferred_element_type=jnp.float32)


def _mm_nt(a, b):
    # a @ b.T via dot_general contraction (no explicit transpose).
    return lax.dot_general(_bf16(a), _bf16(b), (((1,), (1,)), ((), ())),
                           preferred_element_type=jnp.float32)


def _ln(x, g, b, eps):
    mu = jnp.mean(x, axis=-1, keepdims=True)
    xc = x - mu
    var = jnp.mean(xc * xc, axis=-1, keepdims=True)
    return xc * lax.rsqrt(var + eps) * g + b


def _gelu_erf(x):
    # Exact erf-GELU (nn.GELU default). erf via Abramowitz-Stegun 7.1.26 polynomial
    # (|erf error| < 1.5e-7); the divide uses the EUP approximate reciprocal.
    z = x * 0.7071067811865476
    a = jnp.abs(z)
    t = pl.reciprocal(1.0 + 0.3275911 * a, approx=True)
    poly = t * (0.254829592 + t * (-0.284496736 + t * (1.421413741 +
             t * (-1.453152027 + t * 1.061405429))))
    erf_a = 1.0 - poly * jnp.exp(-a * a)
    erf_z = jnp.where(z >= 0.0, erf_a, -erf_a)
    return 0.5 * x * (1.0 + erf_z)


# ----------------------------------------------------------------------------
# Fully-fused whole-model kernel (all 3 stages, one batch element per grid step)
# ----------------------------------------------------------------------------
#
# vec slab rows (per stage, shape (Kv, 1, D), f32):
#   0 patch_b | 1 pe_g | 2 pe_b | 3 n1_g | 4 n1_b | 5 bq | 6 bk | 7 bv | 8 bo
#   9 n2_g | 10 n2_b | 11 peg_b | 12..20 peg_w (9 depthwise taps, (dh*3+dw)-major)
#   [21 sr_b | 22 sr_g | 23 sr_b2]   only when sr > 1

def _make_fused_kernel(cfgs):
    n_stage = len(cfgs)

    def kernel(*refs):
        ins, outs = refs[:-n_stage], refs[-n_stage:]
        it = iter(ins)

        xp0_ref = next(it)
        cur = xp0_ref[...]                     # stage-0 unfolded image patches (N0, p0*p0*3)

        for i, c in enumerate(cfgs):
            D = c["dim"]
            heads = c["heads"]
            dh = D // heads
            sr = c["sr"]
            hid = D * c["mlp"]
            scale = float(dh) ** -0.5

            if i == 0:
                pw_ref = next(it)              # (p*p*Cin, D) bf16
            else:
                usel_ref = next(it)            # (p*p, N_i, N_{i-1}) bf16 0/1 unfold selection
                pwt_ref = next(it)             # (p*p, D_{i-1}, D) bf16 patch-conv taps
            qkvo_ref = next(it)                # (4, D, D) bf16: [Wq, Wk, Wv, Wproj]
            if sr > 1:
                srw_ref = next(it)             # (sr*sr, D, D) bf16 sub-sample conv taps
                srsel_ref = next(it)           # (sr*sr, M, N) bf16 0/1 selection
            w1b_ref = next(it)                 # (D+1, hid)  bf16: fc1 weight + bias row
            w2b_ref = next(it)                 # (hid+1, D)  bf16: fc2 weight + bias row
            pegsel_ref = next(it)              # (9, N, N)   bf16 0/1 PEG neighbour selection
            vec_ref = next(it)                 # (Kv, 1, D)  f32  vector slab (see table above)

            # ---- PatchEmbed (non-overlapping conv as matmul / tap-matmuls) + LN(eps=1e-5)
            if i == 0:
                pe = _mm(cur, pw_ref[...])
            else:
                pe = _mm(_mm(usel_ref[0], cur), pwt_ref[0])
                for q in range(1, usel_ref.shape[0]):
                    pe = pe + _mm(_mm(usel_ref[q], cur), pwt_ref[q])
            x = _ln(pe + vec_ref[0], vec_ref[1], vec_ref[2], 1e-5)     # (N, D) tokens

            # ---- Block: x = x + GlobalSubSampleAttn(LN(x))
            h1 = _ln(x, vec_ref[3], vec_ref[4], 1e-6)
            if sr > 1:
                xs = _mm(_mm(srsel_ref[0], h1), srw_ref[0])
                for kk in range(1, sr * sr):
                    xs = xs + _mm(_mm(srsel_ref[kk], h1), srw_ref[kk])
                xs = _ln(xs + vec_ref[21], vec_ref[22], vec_ref[23], 1e-5)
            else:
                xs = h1

            q_all = _mm(h1, qkvo_ref[0]) + vec_ref[5]                  # (N, D)
            k_all = _mm(xs, qkvo_ref[1]) + vec_ref[6]                  # (M, D)
            v_all = _mm(xs, qkvo_ref[2]) + vec_ref[7]                  # (M, D)
            head_outs = []
            for h in range(heads):
                lo, hi = h * dh, (h + 1) * dh
                s = _mm_nt(q_all[:, lo:hi], k_all[:, lo:hi]) * scale   # (N, M)
                s = s - jnp.max(s, axis=-1, keepdims=True)
                prob = jnp.exp(s)
                prob = prob * pl.reciprocal(
                    jnp.sum(prob, axis=-1, keepdims=True), approx=True)
                head_outs.append(_mm(prob, v_all[:, lo:hi]))           # (N, dh)
            cat = head_outs[0] if heads == 1 else jnp.concatenate(head_outs, axis=-1)
            x = x + _mm(cat, qkvo_ref[3]) + vec_ref[8]                 # single output projection

            # ---- Block: x = x + MLP(LN(x)), exact erf-GELU
            h2 = _ln(x, vec_ref[9], vec_ref[10], 1e-6)
            w1b = w1b_ref[...]
            w2b = w2b_ref[...]
            m = _gelu_erf(_mm(h2, w1b[:D]) + w1b[D:D + 1].astype(jnp.float32))
            x = x + _mm(m, w2b[:hid]) + w2b[hid:hid + 1].astype(jnp.float32)

            # ---- PosConv PEG: depthwise 3x3 (zero pad 1) via 9 tiny selection matmuls
            conv = _mm(pegsel_ref[0], x) * vec_ref[12]
            for kk in range(1, 9):
                conv = conv + _mm(pegsel_ref[kk], x) * vec_ref[12 + kk]
            conv = conv + vec_ref[11]

            outs[i][...] = conv.astype(outs[i].dtype)   # saved feature = conv output (token layout)
            cur = conv + x                              # residual -> tokens for the next stage

    return kernel


def fused_forward(xp0, kparams, cfgs):
    """xp0: (B, N0, p0*p0*Cin) unfolded image patches.  Returns 3 token-layout PEG features."""
    B = xp0.shape[0]

    inputs = [xp0]
    for i, (pr, c) in enumerate(zip(kparams, cfgs)):
        if i == 0:
            inputs.append(pr["pw"])
        else:
            inputs += [pr["usel"], pr["pw_taps"]]
        inputs.append(pr["qkvo"])
        if c["sr"] > 1:
            inputs += [pr["srw"], pr["srsel"]]
        inputs += [pr["w1b"], pr["w2b"], pr["pegsel"], pr["vec"]]

    def wspec(a):
        nd = a.ndim
        return pl.BlockSpec(a.shape, lambda b, _n=nd: (0,) * _n)   # one DMA, reused per grid step

    in_specs = ([pl.BlockSpec((None,) + xp0.shape[1:], lambda b: (b, 0, 0))]
                + [wspec(a) for a in inputs[1:]])

    out_specs, out_shape = [], []
    for pr, c in zip(kparams, cfgs):
        n_i = pr["pegsel"].shape[1]
        out_specs.append(pl.BlockSpec((None, n_i, c["dim"]), lambda b: (b, 0, 0)))
        out_shape.append(jax.ShapeDtypeStruct((B, n_i, c["dim"]), jnp.float32))

    return pl.pallas_call(
        _make_fused_kernel(cfgs),
        grid=(B,),
        in_specs=in_specs,
        out_specs=tuple(out_specs),
        out_shape=tuple(out_shape),
        compiler_params=pltpu.CompilerParams(dimension_semantics=("parallel",)),
    )(*inputs)


# ----------------------------------------------------------------------------
# Host-side glue (one jax.jit): stage-0 patchify + NCHW transposes of the saved features
# ----------------------------------------------------------------------------

def _unfold(x_nhwc, p):
    # non-overlapping pxp patches, each flattened (kh, kw, c)-major (matches the weight row order)
    B, H, W, C = x_nhwc.shape
    Hp, Wp = H // p, W // p
    xp = x_nhwc.reshape(B, Hp, p, Wp, p, C).transpose(0, 1, 3, 2, 4, 5)
    return xp.reshape(B, Hp * Wp, p * p * C), Hp, Wp


def modified_pcpvt_forward(x_nchw, kparams, cfgs):
    """Returns [save_l0, save_l1, save_l2] — PEG conv outputs of stages 0..2 (NCHW)."""
    B = x_nchw.shape[0]
    x_nhwc = jnp.transpose(x_nchw, (0, 2, 3, 1))
    xp0, _, _ = _unfold(x_nhwc, cfgs[0]["patch"])
    feats = fused_forward(xp0, kparams, cfgs)
    saved = []
    side = x_nchw.shape[2]
    for f, c in zip(feats, cfgs):
        side = side // c["patch"]
        D = c["dim"]
        saved.append(jnp.transpose(f, (0, 2, 1)).reshape(B, D, side, side))
    return saved


# ----------------------------------------------------------------------------
# Selection matrices (precomputed 0/1 constants) for the conv-like ops
# ----------------------------------------------------------------------------

def _peg_selection(H, W):
    # sel[k=dh*3+dw, n, m] = 1 iff token m is the (dh-1, dw-1) neighbour of token n (zero pad).
    N = H * W
    sel = np.zeros((9, N, N), np.float32)
    for dh in range(3):
        for dw in range(3):
            k = dh * 3 + dw
            for i in range(H):
                for j in range(W):
                    ii, jj = i + dh - 1, j + dw - 1
                    if 0 <= ii < H and 0 <= jj < W:
                        sel[k, i * W + j, ii * W + jj] = 1.0
    return jnp.asarray(sel)


def _sr_selection(H, W, s):
    # sel[k=si*s+sj, m, n] = 1 iff token n = (a*s+si)*W + (b*s+sj) for output patch m = a*Ws+b.
    # Also reused as the inter-stage unfold selection (non-overlapping s x s patchify).
    Hs, Ws = H // s, W // s
    sel = np.zeros((s * s, Hs * Ws, H * W), np.float32)
    for si in range(s):
        for sj in range(s):
            k = si * s + sj
            for a in range(Hs):
                for b in range(Ws):
                    sel[k, a * Ws + b, (a * s + si) * W + (b * s + sj)] = 1.0
    return jnp.asarray(sel)


# ----------------------------------------------------------------------------
# Deterministic synthetic parameters, already packed into the kernel slabs
# (matrix slabs bf16, vector slab f32).  Synthetic model, not a checkpoint loader.
# ----------------------------------------------------------------------------

def init_params(key, img_size=32):
    cfgs = [
        dict(in_ch=3,  patch=4, dim=32,  heads=1, sr=4, mlp=4),
        dict(in_ch=32, patch=2, dim=64,  heads=2, sr=2, mlp=4),
        dict(in_ch=64, patch=2, dim=128, heads=4, sr=1, mlp=4),
    ]
    bf = jnp.bfloat16
    kparams = []
    side = img_size
    for i, c in enumerate(cfgs):
        prev_side = side
        side = side // c["patch"]
        H = W = side
        d, ic, p, s = c["dim"], c["in_ch"], c["patch"], c["sr"]
        hid = d * c["mlp"]
        k = jax.random.fold_in(key, i)
        ks = jax.random.split(k, 16)
        g = lambda kk, shape: 0.02 * jax.random.normal(kk, shape, dtype=jnp.float32)
        one = jnp.ones((1, 1, d), jnp.float32)
        zero = jnp.zeros((1, 1, d), jnp.float32)

        rows = [
            g(ks[0], (1, 1, d)),          # 0  patch-embed conv bias
            one, zero,                    # 1,2  patch-embed LN (eps 1e-5)
            one, zero,                    # 3,4  norm1 (eps 1e-6)
            g(ks[1], (1, 1, d)),          # 5  bq
            g(ks[2], (1, 1, d)),          # 6  bk
            g(ks[3], (1, 1, d)),          # 7  bv
            g(ks[4], (1, 1, d)),          # 8  bo (attention output proj bias)
            one, zero,                    # 9,10 norm2 (eps 1e-6)
            g(ks[5], (1, 1, d)),          # 11 PEG conv bias
            g(ks[6], (9, 1, d)),          # 12..20 PEG depthwise 3x3 taps, (dh*3+dw)-major
        ]
        if s > 1:
            rows += [g(ks[7], (1, 1, d)), one, zero]   # 21 sr conv bias, 22/23 sr LN (eps 1e-5)
        pr = dict(vec=jnp.concatenate(rows, axis=0))

        if i == 0:
            # patch-embed conv flattened (kh, kw, c_in)-major
            pr["pw"] = g(ks[8], (p * p * ic, d)).astype(bf)
        else:
            pr["usel"] = _sr_selection(prev_side, prev_side, p).astype(bf)
            pr["pw_taps"] = g(ks[8], (p * p, ic, d)).astype(bf)     # per-tap (C_prev, D)
        # full-width attention weights (JAX (in, out) layout): [Wq, Wk, Wv, Wproj]
        pr["qkvo"] = g(ks[9], (4, d, d)).astype(bf)
        if s > 1:
            pr["srw"] = g(ks[10], (s * s, d, d)).astype(bf)
            pr["srsel"] = _sr_selection(H, W, s).astype(bf)
        w1, b1 = g(ks[11], (d, hid)), g(ks[12], (1, hid))
        w2, b2 = g(ks[13], (hid, d)), g(ks[14], (1, d))
        pr["w1b"] = jnp.concatenate([w1, b1], axis=0).astype(bf)    # (D+1, hid)
        pr["w2b"] = jnp.concatenate([w2, b2], axis=0).astype(bf)    # (hid+1, D)
        pr["pegsel"] = _peg_selection(H, W).astype(bf)
        kparams.append(pr)
    return kparams, cfgs


# ----------------------------------------------------------------------------
# Pure-JAX reference (independent formulation: lax.conv for every conv-like op,
# standard head-reshape attention, f32 HIGHEST precision) — correctness self-check.
# Uses the SAME (bf16-rounded) weights as the kernel so only in-kernel numerics differ.
# ----------------------------------------------------------------------------

def _reference_forward(x_nchw, kparams, cfgs):
    hp = lax.Precision.HIGHEST
    f32 = jnp.float32

    def ln(x, g, b, eps):
        mu = jnp.mean(x, -1, keepdims=True)
        xc = x - mu
        return xc * lax.rsqrt(jnp.mean(xc * xc, -1, keepdims=True) + eps) * g + b

    B = x_nchw.shape[0]
    cur = jnp.transpose(x_nchw, (0, 2, 3, 1))
    saved = []
    for i, (pr, c) in enumerate(zip(kparams, cfgs)):
        p, s, heads, D = c["patch"], c["sr"], c["heads"], c["dim"]
        dh = D // heads
        hid = D * c["mlp"]
        vec = pr["vec"]                                     # (Kv, 1, D) f32
        xp, Hp, Wp = _unfold(cur, p)
        N = Hp * Wp
        if i == 0:
            wpatch = pr["pw"].astype(f32)
        else:
            wpatch = pr["pw_taps"].astype(f32).reshape(p * p * c["in_ch"], D)
        x = ln(jnp.matmul(xp, wpatch, precision=hp) + vec[0], vec[1], vec[2], 1e-5)

        h1 = ln(x, vec[3], vec[4], 1e-6)
        if s > 1:
            ker = pr["srw"].astype(f32).reshape(s, s, D, D)
            xs = lax.conv_general_dilated(h1.reshape(B, Hp, Wp, D), ker, (s, s), 'VALID',
                                          dimension_numbers=('NHWC', 'HWIO', 'NHWC'),
                                          precision=hp)
            xs = ln(xs.reshape(B, -1, D) + vec[21], vec[22], vec[23], 1e-5)
        else:
            xs = h1
        M = xs.shape[1]
        wq, wk, wv, wo = (pr["qkvo"][j].astype(f32) for j in range(4))
        q = (jnp.matmul(h1, wq, precision=hp) + vec[5]).reshape(B, N, heads, dh).transpose(0, 2, 1, 3)
        k = (jnp.matmul(xs, wk, precision=hp) + vec[6]).reshape(B, M, heads, dh).transpose(0, 2, 1, 3)
        v = (jnp.matmul(xs, wv, precision=hp) + vec[7]).reshape(B, M, heads, dh).transpose(0, 2, 1, 3)
        sc = jnp.einsum('bhnd,bhmd->bhnm', q, k, precision=hp) * (float(dh) ** -0.5)
        pa = jax.nn.softmax(sc, axis=-1)
        o = jnp.einsum('bhnm,bhmd->bhnd', pa, v, precision=hp)
        o = o.transpose(0, 2, 1, 3).reshape(B, N, D)
        x = x + jnp.matmul(o, wo, precision=hp) + vec[8]

        h2 = ln(x, vec[9], vec[10], 1e-6)
        w1 = pr["w1b"][:D].astype(f32); b1 = pr["w1b"][D:D + 1].astype(f32)
        w2 = pr["w2b"][:hid].astype(f32); b2 = pr["w2b"][hid:hid + 1].astype(f32)
        m = jax.nn.gelu(jnp.matmul(h2, w1, precision=hp) + b1, approximate=False)
        x = x + jnp.matmul(m, w2, precision=hp) + b2

        ker = vec[12:21].reshape(3, 3, 1, D)
        conv = lax.conv_general_dilated(x.reshape(B, Hp, Wp, D), ker, (1, 1), ((1, 1), (1, 1)),
                                        dimension_numbers=('NHWC', 'HWIO', 'NHWC'),
                                        feature_group_count=D, precision=hp)
        conv = conv.reshape(B, N, D) + vec[11]
        saved.append(jnp.transpose(conv, (0, 2, 1)).reshape(B, D, Hp, Wp))
        cur = (conv + x).reshape(B, Hp, Wp, D)
    return saved


if __name__ == "__main__":
    key = jax.random.PRNGKey(0)
    k_x, k_p = jax.random.split(key)
    x = jax.random.normal(k_x, (2, 3, 32, 32), dtype=jnp.float32)   # NCHW, like PyTorch
    kparams, cfgs = init_params(k_p, img_size=32)

    fwd = jax.jit(lambda xx, pp: modified_pcpvt_forward(xx, pp, cfgs))
    feats = fwd(x, kparams)
    jax.block_until_ready(feats)

    # expected saved-feature shapes (NCHW)
    assert feats[0].shape == (2, 32, 8, 8)
    assert feats[1].shape == (2, 64, 4, 4)
    assert feats[2].shape == (2, 128, 2, 2)

    # correctness self-check against an independent pure-JAX (f32, HIGHEST-precision) formulation.
    # Tolerance accounts for bf16 MXU operands + EUP approx reciprocal inside the kernel
    # (typical observed error ~1e-3 relative, ~10x headroom below the bound below).
    refs = _reference_forward(x, kparams, cfgs)
    for got, ref in zip(feats, refs):
        np.testing.assert_allclose(np.asarray(got), np.asarray(ref), rtol=2e-2, atol=1e-3)

    print("KERNEL_OK")
</pallas_src>

<mosaic_0001>
module attributes {stable_mosaic.version = 11 : i64} {
  func.func @kernel(%arg0: i32, %arg1: memref<1x64x48xf32, #tpu.memory_space<vmem>>, %arg2: memref<48x32xbf16, #tpu.memory_space<vmem>>, %arg3: memref<4x32x32xbf16, #tpu.memory_space<vmem>>, %arg4: memref<16x32x32xbf16, #tpu.memory_space<vmem>>, %arg5: memref<16x4x64xbf16, #tpu.memory_space<vmem>>, %arg6: memref<33x128xbf16, #tpu.memory_space<vmem>>, %arg7: memref<129x32xbf16, #tpu.memory_space<vmem>>, %arg8: memref<9x64x64xbf16, #tpu.memory_space<vmem>>, %arg9: memref<24x1x32xf32, #tpu.memory_space<vmem>>, %arg10: memref<4x16x64xbf16, #tpu.memory_space<vmem>>, %arg11: memref<4x32x64xbf16, #tpu.memory_space<vmem>>, %arg12: memref<4x64x64xbf16, #tpu.memory_space<vmem>>, %arg13: memref<4x64x64xbf16, #tpu.memory_space<vmem>>, %arg14: memref<4x4x16xbf16, #tpu.memory_space<vmem>>, %arg15: memref<65x256xbf16, #tpu.memory_space<vmem>>, %arg16: memref<257x64xbf16, #tpu.memory_space<vmem>>, %arg17: memref<9x16x16xbf16, #tpu.memory_space<vmem>>, %arg18: memref<24x1x64xf32, #tpu.memory_space<vmem>>, %arg19: memref<4x4x16xbf16, #tpu.memory_space<vmem>>, %arg20: memref<4x64x128xbf16, #tpu.memory_space<vmem>>, %arg21: memref<4x128x128xbf16, #tpu.memory_space<vmem>>, %arg22: memref<129x512xbf16, #tpu.memory_space<vmem>>, %arg23: memref<513x128xbf16, #tpu.memory_space<vmem>>, %arg24: memref<9x4x4xbf16, #tpu.memory_space<vmem>>, %arg25: memref<21x1x128xf32, #tpu.memory_space<vmem>>, %arg26: memref<1x64x32xf32, #tpu.memory_space<vmem>>, %arg27: memref<1x16x64xf32, #tpu.memory_space<vmem>>, %arg28: memref<1x4x128xf32, #tpu.memory_space<vmem>>) attributes {dimension_semantics = [#tpu.dimension_semantics<parallel>], iteration_bounds = array<i64: 2>, scalar_prefetch = 0 : i64, scratch_operands = 0 : i64, tpu.core_type = #tpu.core_type<tc>, window_params = [{transform_indices = @transform_0, window_bounds = array<i64: 1, 64, 48>}, {pipeline_mode = #tpu.pipeline_mode<synchronous>, transform_indices = @transform_1, window_bounds = array<i64: 48, 32>}, {pipeline_mode = #tpu.pipeline_mode<synchronous>, transform_indices = @transform_2, window_bounds = array<i64: 4, 32, 32>}, {pipeline_mode = #tpu.pipeline_mode<synchronous>, transform_indices = @transform_3, window_bounds = array<i64: 16, 32, 32>}, {pipeline_mode = #tpu.pipeline_mode<synchronous>, transform_indices = @transform_4, window_bounds = array<i64: 16, 4, 64>}, {pipeline_mode = #tpu.pipeline_mode<synchronous>, transform_indices = @transform_5, window_bounds = array<i64: 33, 128>}, {pipeline_mode = #tpu.pipeline_mode<synchronous>, transform_indices = @transform_6, window_bounds = array<i64: 129, 32>}, {pipeline_mode = #tpu.pipeline_mode<synchronous>, transform_indices = @transform_7, window_bounds = array<i64: 9, 64, 64>}, {pipeline_mode = #tpu.pipeline_mode<synchronous>, transform_indices = @transform_8, window_bounds = array<i64: 24, 1, 32>}, {pipeline_mode = #tpu.pipeline_mode<synchronous>, transform_indices = @transform_9, window_bounds = array<i64: 4, 16, 64>}, {pipeline_mode = #tpu.pipeline_mode<synchronous>, transform_indices = @transform_10, window_bounds = array<i64: 4, 32, 64>}, {pipeline_mode = #tpu.pipeline_mode<synchronous>, transform_indices = @transform_11, window_bounds = array<i64: 4, 64, 64>}, {pipeline_mode = #tpu.pipeline_mode<synchronous>, transform_indices = @transform_12, window_bounds = array<i64: 4, 64, 64>}, {pipeline_mode = #tpu.pipeline_mode<synchronous>, transform_indices = @transform_13, window_bounds = array<i64: 4, 4, 16>}, {pipeline_mode = #tpu.pipeline_mode<synchronous>, transform_indices = @transform_14, window_bounds = array<i64: 65, 256>}, {pipeline_mode = #tpu.pipeline_mode<synchronous>, transform_indices = @transform_15, window_bounds = array<i64: 257, 64>}, {pipeline_mode = #tpu.pipeline_mode<synchronous>, transform_indices = @transform_16, window_bounds = array<i64: 9, 16, 16>}, {pipeline_mode = #tpu.pipeline_mode<synchronous>, transform_indices = @transform_17, window_bounds = array<i64: 24, 1, 64>}, {pipeline_mode = #tpu.pipeline_mode<synchronous>, transform_indices = @transform_18, window_bounds = array<i64: 4, 4, 16>}, {pipeline_mode = #tpu.pipeline_mode<synchronous>, transform_indices = @transform_19, window_bounds = array<i64: 4, 64, 128>}, {pipeline_mode = #tpu.pipeline_mode<synchronous>, transform_indices = @transform_20, window_bounds = array<i64: 4, 128, 128>}, {pipeline_mode = #tpu.pipeline_mode<synchronous>, transform_indices = @transform_21, window_bounds = array<i64: 129, 512>}, {pipeline_mode = #tpu.pipeline_mode<synchronous>, transform_indices = @transform_22, window_bounds = array<i64: 513, 128>}, {pipeline_mode = #tpu.pipeline_mode<synchronous>, transform_indices = @transform_23, window_bounds = array<i64: 9, 4, 4>}, {pipeline_mode = #tpu.pipeline_mode<synchronous>, transform_indices = @transform_24, window_bounds = array<i64: 21, 1, 128>}, {transform_indices = @transform_25, window_bounds = array<i64: 1, 64, 32>}, {transform_indices = @transform_26, window_bounds = array<i64: 1, 16, 64>}, {transform_indices = @transform_27, window_bounds = array<i64: 1, 4, 128>}]} {
    %c0 = arith.constant 0 : index
    %c0_0 = arith.constant 0 : index
    %c0_1 = arith.constant 0 : index
    %0 = vector.load %arg1[%c0, %c0_0, %c0_1] : memref<1x64x48xf32, #tpu.memory_space<vmem>>, vector<1x64x48xf32>
    %1 = vector.shape_cast %0 : vector<1x64x48xf32> to vector<64x48xf32>
    %c0_2 = arith.constant 0 : index
    %c0_3 = arith.constant 0 : index
    %2 = vector.load %arg2[%c0_2, %c0_3] : memref<48x32xbf16, #tpu.memory_space<vmem>>, vector<48x32xbf16>
    %3 = arith.truncf %1 : vector<64x48xf32> to vector<64x48xbf16>
    %cst = arith.constant dense<0.000000e+00> : vector<64x32xf32>
    %4 = tpu.matmul %3, %2, %cst {dimension_numbers = #tpu.dot_dimension_numbers<[1], [0], [0], [1], [0, 0, 1, 1], [], []>} : vector<64x48xbf16>, vector<48x32xbf16>, vector<64x32xf32> -> vector<64x32xf32>
    %c0_4 = arith.constant 0 : index
    %c0_5 = arith.constant 0 : index
    %c0_6 = arith.constant 0 : index
    %5 = vector.load %arg9[%c0_4, %c0_5, %c0_6] : memref<24x1x32xf32, #tpu.memory_space<vmem>>, vector<1x1x32xf32>
    %6 = vector.shape_cast %5 : vector<1x1x32xf32> to vector<1x32xf32>
    %7 = vector.broadcast %6 : vector<1x32xf32> to vector<64x32xf32>
    %8 = arith.addf %4, %7 : vector<64x32xf32>
    %c1 = arith.constant 1 : index
    %c0_7 = arith.constant 0 : index
    %c0_8 = arith.constant 0 : index
    %9 = vector.load %arg9[%c1, %c0_7, %c0_8] : memref<24x1x32xf32, #tpu.memory_space<vmem>>, vector<1x1x32xf32>
    %10 = vector.shape_cast %9 : vector<1x1x32xf32> to vector<1x32xf32>
    %c2 = arith.constant 2 : index
    %c0_9 = arith.constant 0 : index
    %c0_10 = arith.constant 0 : index
    %11 = vector.load %arg9[%c2, %c0_9, %c0_10] : memref<24x1x32xf32, #tpu.memory_space<vmem>>, vector<1x1x32xf32>
    %12 = vector.shape_cast %11 : vector<1x1x32xf32> to vector<1x32xf32>
    %cst_11 = arith.constant dense<0.000000e+00> : vector<64xf32>
    %13 = vector.multi_reduction <add>, %8, %cst_11 [1] : vector<64x32xf32> to vector<64xf32>
    %14 = vector.shape_cast %13 : vector<64xf32> to vector<64x1xf32>
    %cst_12 = arith.constant 3.200000e+01 : f32
    %15 = vector.broadcast %cst_12 : f32 to vector<64x1xf32>
    %16 = arith.divf %14, %15 : vector<64x1xf32>
    %17 = vector.broadcast %16 : vector<64x1xf32> to vector<64x32xf32>
    %18 = arith.subf %8, %17 : vector<64x32xf32>
    %19 = arith.mulf %18, %18 : vector<64x32xf32>
    %cst_13 = arith.constant dense<0.000000e+00> : vector<64xf32>
    %20 = vector.multi_reduction <add>, %19, %cst_13 [1] : vector<64x32xf32> to vector<64xf32>
    %21 = vector.shape_cast %20 : vector<64xf32> to vector<64x1xf32>
    %cst_14 = arith.constant 3.200000e+01 : f32
    %22 = vector.broadcast %cst_14 : f32 to vector<64x1xf32>
    %23 = arith.divf %21, %22 : vector<64x1xf32>
    %cst_15 = arith.constant 9.99999974E-6 : f32
    %24 = vector.broadcast %cst_15 : f32 to vector<64x1xf32>
    %25 = arith.addf %23, %24 : vector<64x1xf32>
    %26 = math.rsqrt %25 : vector<64x1xf32>
    %27 = vector.broadcast %26 : vector<64x1xf32> to vector<64x32xf32>
    %28 = arith.mulf %18, %27 : vector<64x32xf32>
    %29 = vector.broadcast %10 : vector<1x32xf32> to vector<64x32xf32>
    %30 = arith.mulf %28, %29 : vector<64x32xf32>
    %31 = vector.broadcast %12 : vector<1x32xf32> to vector<64x32xf32>
    %32 = arith.addf %30, %31 : vector<64x32xf32>
    %c3 = arith.constant 3 : index
    %c0_16 = arith.constant 0 : index
    %c0_17 = arith.constant 0 : index
    %33 = vector.load %arg9[%c3, %c0_16, %c0_17] : memref<24x1x32xf32, #tpu.memory_space<vmem>>, vector<1x1x32xf32>
    %34 = vector.shape_cast %33 : vector<1x1x32xf32> to vector<1x32xf32>
    %c4 = arith.constant 4 : index
    %c0_18 = arith.constant 0 : index
    %c0_19 = arith.constant 0 : index
    %35 = vector.load %arg9[%c4, %c0_18, %c0_19] : memref<24x1x32xf32, #tpu.memory_space<vmem>>, vector<1x1x32xf32>
    %36 = vector.shape_cast %35 : vector<1x1x32xf32> to vector<1x32xf32>
    %cst_20 = arith.constant dense<0.000000e+00> : vector<64xf32>
    %37 = vector.multi_reduction <add>, %32, %cst_20 [1] : vector<64x32xf32> to vector<64xf32>
    %38 = vector.shape_cast %37 : vector<64xf32> to vector<64x1xf32>
    %cst_21 = arith.constant 3.200000e+01 : f32
    %39 = vector.broadcast %cst_21 : f32 to vector<64x1xf32>
    %40 = arith.divf %38, %39 : vector<64x1xf32>
    %41 = vector.broadcast %40 : vector<64x1xf32> to vector<64x32xf32>
    %42 = arith.subf %32, %41 : vector<64x32xf32>
    %43 = arith.mulf %42, %42 : vector<64x32xf32>
    %cst_22 = arith.constant dense<0.000000e+00> : vector<64xf32>
    %44 = vector.multi_reduction <add>, %43, %cst_22 [1] : vector<64x32xf32> to vector<64xf32>
    %45 = vector.shape_cast %44 : vector<64xf32> to vector<64x1xf32>
    %cst_23 = arith.constant 3.200000e+01 : f32
    %46 = vector.broadcast %cst_23 : f32 to vector<64x1xf32>
    %47 = arith.divf %45, %46 : vector<64x1xf32>
    %cst_24 = arith.constant 9.99999997E-7 : f32
    %48 = vector.broadcast %cst_24 : f32 to vector<64x1xf32>
    %49 = arith.addf %47, %48 : vector<64x1xf32>
    %50 = math.rsqrt %49 : vector<64x1xf32>
    %51 = vector.broadcast %50 : vector<64x1xf32> to vector<64x32xf32>
    %52 = arith.mulf %42, %51 : vector<64x32xf32>
    %53 = vector.broadcast %34 : vector<1x32xf32> to vector<64x32xf32>
    %54 = arith.mulf %52, %53 : vector<64x32xf32>
    %55 = vector.broadcast %36 : vector<1x32xf32> to vector<64x32xf32>
    %56 = arith.addf %54, %55 : vector<64x32xf32>
    %c0_25 = arith.constant 0 : index
    %c0_26 = arith.constant 0 : index
    %c0_27 = arith.constant 0 : index
    %57 = vector.load %arg5[%c0_25, %c0_26, %c0_27] : memref<16x4x64xbf16, #tpu.memory_space<vmem>>, vector<1x4x64xbf16>
    %58 = vector.shape_cast %57 : vector<1x4x64xbf16> to vector<4x64xbf16>
    %59 = arith.truncf %56 : vector<64x32xf32> to vector<64x32xbf16>
    %cst_28 = arith.constant dense<0.000000e+00> : vector<4x32xf32>
    %60 = tpu.matmul %58, %59, %cst_28 {dimension_numbers = #tpu.dot_dimension_numbers<[1], [0], [0], [1], [0, 0, 1, 1], [], []>} : vector<4x64xbf16>, vector<64x32xbf16>, vector<4x32xf32> -> vector<4x32xf32>
    %c0_29 = arith.constant 0 : index
    %c0_30 = arith.constant 0 : index
    %c0_31 = arith.constant 0 : index
    %61 = vector.load %arg4[%c0_29, %c0_30, %c0_31] : memref<16x32x32xbf16, #tpu.memory_space<vmem>>, vector<1x32x32xbf16>
    %62 = vector.shape_cast %61 : vector<1x32x32xbf16> to vector<32x32xbf16>
    %63 = arith.truncf %60 : vector<4x32xf32> to vector<4x32xbf16>
    %cst_32 = arith.constant dense<0.000000e+00> : vector<4x32xf32>
    %64 = tpu.matmul %63, %62, %cst_32 {dimension_numbers = #tpu.dot_dimension_numbers<[1], [0], [0], [1], [0, 0, 1, 1], [], []>} : vector<4x32xbf16>, vector<32x32xbf16>, vector<4x32xf32> -> vector<4x32xf32>
    %c1_33 = arith.constant 1 : index
    %c0_34 = arith.constant 0 : index
    %c0_35 = arith.constant 0 : index
    %65 = vector.load %arg5[%c1_33, %c0_34, %c0_35] : memref<16x4x64xbf16, #tpu.memory_space<vmem>>, vector<1x4x64xbf16>
    %66 = vector.shape_cast %65 : vector<1x4x64xbf16> to vector<4x64xbf16>
    %67 = arith.truncf %56 : vector<64x32xf32> to vector<64x32xbf16>
    %cst_36 = arith.constant dense<0.000000e+00> : vector<4x32xf32>
    %68 = tpu.matmul %66, %67, %cst_36 {dimension_numbers = #tpu.dot_dimension_numbers<[1], [0], [0], [1], [0, 0, 1, 1], [], []>} : vector<4x64xbf16>, vector<64x32xbf16>, vector<4x32xf32> -> vector<4x32xf32>
    %c1_37 = arith.constant 1 : index
    %c0_38 = arith.constant 0 : index
    %c0_39 = arith.constant 0 : index
    %69 = vector.load %arg4[%c1_37, %c0_38, %c0_39] : memref<16x32x32xbf16, #tpu.memory_space<vmem>>, vector<1x32x32xbf16>
    %70 = vector.shape_cast %69 : vector<1x32x32xbf16> to vector<32x32xbf16>
    %71 = arith.truncf %68 : vector<4x32xf32> to vector<4x32xbf16>
    %cst_40 = arith.constant dense<0.000000e+00> : vector<4x32xf32>
    %72 = tpu.matmul %71, %70, %cst_40 {dimension_numbers = #tpu.dot_dimension_numbers<[1], [0], [0], [1], [0, 0, 1, 1], [], []>} : vector<4x32xbf16>, vector<32x32xbf16>, vector<4x32xf32> -> vector<4x32xf32>
    %73 = arith.addf %64, %72 : vector<4x32xf32>
    %c2_41 = arith.constant 2 : index
    %c0_42 = arith.constant 0 : index
    %c0_43 = arith.constant 0 : index
    %74 = vector.load %arg5[%c2_41, %c0_42, %c0_43] : memref<16x4x64xbf16, #tpu.memory_space<vmem>>, vector<1x4x64xbf16>
    %75 = vector.shape_cast %74 : vector<1x4x64xbf16> to vector<4x64xbf16>
    %76 = arith.truncf %56 : vector<64x32xf32> to vector<64x32xbf16>
    %cst_44 = arith.constant dense<0.000000e+00> : vector<4x32xf32>
    %77 = tpu.matmul %75, %76, %cst_44 {dimension_numbers = #tpu.dot_dimension_numbers<[1], [0], [0], [1], [0, 0, 1, 1], [], []>} : vector<4x64xbf16>, vector<64x32xbf16>, vector<4x32xf32> -> vector<4x32xf32>
    %c2_45 = arith.constant 2 : index
    %c0_46 = arith.constant 0 : index
    %c0_47 = arith.constant 0 : index
    %78 = vector.load %arg4[%c2_45, %c0_46, %c0_47] : memref<16x32x32xbf16, #tpu.memory_space<vmem>>, vector<1x32x32xbf16>
    %79 = vector.shape_cast %78 : vector<1x32x32xbf16> to vector<32x32xbf16>
    %80 = arith.truncf %77 : vector<4x32xf32> to vector<4x32xbf16>
    %cst_48 = arith.constant dense<0.000000e+00> : vector<4x32xf32>
    %81 = tpu.matmul %80, %79, %cst_48 {dimension_numbers = #tpu.dot_dimension_numbers<[1], [0], [0], [1], [0, 0, 1, 1], [], []>} : vector<4x32xbf16>, vector<32x32xbf16>, vector<4x32xf32> -> vector<4x32xf32>
    %82 = arith.addf %73, %81 : vector<4x32xf32>
    %c3_49 = arith.constant 3 : index
    %c0_50 = arith.constant 0 : index
    %c0_51 = arith.constant 0 : index
    %83 = vector.load %arg5[%c3_49, %c0_50, %c0_51] : memref<16x4x64xbf16, #tpu.memory_space<vmem>>, vector<1x4x64xbf16>
    %84 = vector.shape_cast %83 : vector<1x4x64xbf16> to vector<4x64xbf16>
    %85 = arith.truncf %56 : vector<64x32xf32> to vector<64x32xbf16>
    %cst_52 = arith.constant dense<0.000000e+00> : vector<4x32xf32>
    %86 = tpu.matmul %84, %85, %cst_52 {dimension_numbers = #tpu.dot_dimension_numbers<[1], [0], [0], [1], [0, 0, 1, 1], [], []>} : vector<4x64xbf16>, vector<64x32xbf16>, vector<4x32xf32> -> vector<4x32xf32>
    %c3_53 = arith.constant 3 : index
    %c0_54 = arith.constant 0 : index
    %c0_55 = arith.constant 0 : index
    %87 = vector.load %arg4[%c3_53, %c0_54, %c0_55] : memref<16x32x32xbf16, #tpu.memory_space<vmem>>, vector<1x32x32xbf16>
    %88 = vector.shape_cast %87 : vector<1x32x32xbf16> to vector<32x32xbf16>
    %89 = arith.truncf %86 : vector<4x32xf32> to vector<4x32xbf16>
    %cst_56 = arith.constant dense<0.000000e+00> : vector<4x32xf32>
    %90 = tpu.matmul %89, %88, %cst_56 {dimension_numbers = #tpu.dot_dimension_numbers<[1], [0], [0], [1], [0, 0, 1, 1], [], []>} : vector<4x32xbf16>, vector<32x32xbf16>, vector<4x32xf32> -> vector<4x32xf32>
    %91 = arith.addf %82, %90 : vector<4x32xf32>
    %c4_57 = arith.constant 4 : index
    %c0_58 = arith.constant 0 : index
    %c0_59 = arith.constant 0 : index
    %92 = vector.load %arg5[%c4_57, %c0_58, %c0_59] : memref<16x4x64xbf16, #tpu.memory_space<vmem>>, vector<1x4x64xbf16>
    %93 = vector.shape_cast %92 : vector<1x4x64xbf16> to vector<4x64xbf16>
    %94 = arith.truncf %56 : vector<64x32xf32> to vector<64x32xbf16>
    %cst_60 = arith.constant dense<0.000000e+00> : vector<4x32xf32>
    %95 = tpu.matmul %93, %94, %cst_60 {dimension_numbers = #tpu.dot_dimension_numbers<[1], [0], [0], [1], [0, 0, 1, 1], [], []>} : vector<4x64xbf16>, vector<64x32xbf16>, vector<4x32xf32> -> vector<4x32xf32>
    %c4_61 = arith.constant 4 : index
    %c0_62 = arith.constant 0 : index
    %c0_63 = arith.constant 0 : index
    %96 = vector.load %arg4[%c4_61, %c0_62, %c0_63] : memref<16x32x32xbf16, #tpu.memory_space<vmem>>, vector<1x32x32xbf16>
    %97 = vector.shape_cast %96 : vector<1x32x32xbf16> to vector<32x32xbf16>
    %98 = arith.truncf %95 : vector<4x32xf32> to vector<4x32xbf16>
    %cst_64 = arith.constant dense<0.000000e+00> : vector<4x32xf32>
    %99 = tpu.matmul %98, %97, %cst_64 {dimension_numbers = #tpu.dot_dimension_numbers<[1], [0], [0], [1], [0, 0, 1, 1], [], []>} : vector<4x32xbf16>, vector<32x32xbf16>, vector<4x32xf32> -> vector<4x32xf32>
    %100 = arith.addf %91, %99 : vector<4x32xf32>
    %c5 = arith.constant 5 : index
    %c0_65 = arith.constant 0 : index
    %c0_66 = arith.constant 0 : index
    %101 = vector.load %arg5[%c5, %c0_65, %c0_66] : memref<16x4x64xbf16, #tpu.memory_space<vmem>>, vector<1x4x64xbf16>
    %102 = vector.shape_cast %101 : vector<1x4x64xbf16> to vector<4x64xbf16>
    %103 = arith.truncf %56 : vector<64x32xf32> to vector<64x32xbf16>
    %cst_67 = arith.constant dense<0.000000e+00> : vector<4x32xf32>
    %104 = tpu.matmul %102, %103, %cst_67 {dimension_numbers = #tpu.dot_dimension_numbers<[1], [0], [0], [1], [0, 0, 1, 1], [], []>} : vector<4x64xbf16>, vector<64x32xbf16>, vector<4x32xf32> -> vector<4x32xf32>
    %c5_68 = arith.constant 5 : index
    %c0_69 = arith.constant 0 : index
    %c0_70 = arith.constant 0 : index
    %105 = vector.load %arg4[%c5_68, %c0_69, %c0_70] : memref<16x32x32xbf16, #tpu.memory_space<vmem>>, vector<1x32x32xbf16>
    %106 = vector.shape_cast %105 : vector<1x32x32xbf16> to vector<32x32xbf16>
    %107 = arith.truncf %104 : vector<4x32xf32> to vector<4x32xbf16>
    %cst_71 = arith.constant dense<0.000000e+00> : vector<4x32xf32>
    %108 = tpu.matmul %107, %106, %cst_71 {dimension_numbers = #tpu.dot_dimension_numbers<[1], [0], [0], [1], [0, 0, 1, 1], [], []>} : vector<4x32xbf16>, vector<32x32xbf16>, vector<4x32xf32> -> vector<4x32xf32>
    %109 = arith.addf %100, %108 : vector<4x32xf32>
    %c6 = arith.constant 6 : index
    %c0_72 = arith.constant 0 : index
    %c0_73 = arith.constant 0 : index
    %110 = vector.load %arg5[%c6, %c0_72, %c0_73] : memref<16x4x64xbf16, #tpu.memory_space<vmem>>, vector<1x4x64xbf16>
    %111 = vector.shape_cast %110 : vector<1x4x64xbf16> to vector<4x64xbf16>
    %112 = arith.truncf %56 : vector<64x32xf32> to vector<64x32xbf16>
    %cst_74 = arith.constant dense<0.000000e+00> : vector<4x32xf32>
    %113 = tpu.matmul %111, %112, %cst_74 {dimension_numbers = #tpu.dot_dimension_numbers<[1], [0], [0], [1], [0, 0, 1, 1], [], []>} : vector<4x64xbf16>, vector<64x32xbf16>, vector<4x32xf32> -> vector<4x32xf32>
    %c6_75 = arith.constant 6 : index
    %c0_76 = arith.constant 0 : index
    %c0_77 = arith.constant 0 : index
    %114 = vector.load %arg4[%c6_75, %c0_76, %c0_77] : memref<16x32x32xbf16, #tpu.memory_space<vmem>>, vector<1x32x32xbf16>
    %115 = vector.shape_cast %114 : vector<1x32x32xbf16> to vector<32x32xbf16>
    %116 = arith.truncf %113 : vector<4x32xf32> to vector<4x32xbf16>
    %cst_78 = arith.constant dense<0.000000e+00> : vector<4x32xf32>
    %117 = tpu.matmul %116, %115, %cst_78 {dimension_numbers = #tpu.dot_dimension_numbers<[1], [0], [0], [1], [0, 0, 1, 1], [], []>} : vector<4x32xbf16>, vector<32x32xbf16>, vector<4x32xf32> -> vector<4x32xf32>
    %118 = arith.addf %109, %117 : vector<4x32xf32>
    %c7 = arith.constant 7 : index
    %c0_79 = arith.constant 0 : index
    %c0_80 = arith.constant 0 : index
    %119 = vector.load %arg5[%c7, %c0_79, %c0_80] : memref<16x4x64xbf16, #tpu.memory_space<vmem>>, vector<1x4x64xbf16>
    %120 = vector.shape_cast %119 : vector<1x4x64xbf16> to vector<4x64xbf16>
    %121 = arith.truncf %56 : vector<64x32xf32> to vector<64x32xbf16>
    %cst_81 = arith.constant dense<0.000000e+00> : vector<4x32xf32>
    %122 = tpu.matmul %120, %121, %cst_81 {dimension_numbers = #tpu.dot_dimension_numbers<[1], [0], [0], [1], [0, 0, 1, 1], [], []>} : vector<4x64xbf16>, vector<64x32xbf16>, vector<4x32xf32> -> vector<4x32xf32>
    %c7_82 = arith.constant 7 : index
    %c0_83 = arith.constant 0 : index
    %c0_84 = arith.constant 0 : index
    %123 = vector.load %arg4[%c7_82, %c0_83, %c0_84] : memref<16x32x32xbf16, #tpu.memory_space<vmem>>, vector<1x32x32xbf16>
    %124 = vector.shape_cast %123 : vector<1x32x32xbf16> to vector<32x32xbf16>
    %125 = arith.truncf %122 : vector<4x32xf32> to vector<4x32xbf16>
    %cst_85 = arith.constant dense<0.000000e+00> : vector<4x32xf32>
    %126 = tpu.matmul %125, %124, %cst_85 {dimension_numbers = #tpu.dot_dimension_numbers<[1], [0], [0], [1], [0, 0, 1, 1], [], []>} : vector<4x32xbf16>, vector<32x32xbf16>, vector<4x32xf32> -> vector<4x32xf32>
    %127 = arith.addf %118, %126 : vector<4x32xf32>
    %c8 = arith.constant 8 : index
    %c0_86 = arith.constant 0 : index
    %c0_87 = arith.constant 0 : index
    %128 = vector.load %arg5[%c8, %c0_86, %c0_87] : memref<16x4x64xbf16, #tpu.memory_space<vmem>>, vector<1x4x64xbf16>
    %129 = vector.shape_cast %128 : vector<1x4x64xbf16> to vector<4x64xbf16>
    %130 = arith.truncf %56 : vector<64x32xf32> to vector<64x32xbf16>
    %cst_88 = arith.constant dense<0.000000e+00> : vector<4x32xf32>
    %131 = tpu.matmul %129, %130, %cst_88 {dimension_numbers = #tpu.dot_dimension_numbers<[1], [0], [0], [1], [0, 0, 1, 1], [], []>} : vector<4x64xbf16>, vector<64x32xbf16>, vector<4x32xf32> -> vector<4x32xf32>
    %c8_89 = arith.constant 8 : index
    %c0_90 = arith.constant 0 : index
    %c0_91 = arith.constant 0 : index
    %132 = vector.load %arg4[%c8_89, %c0_90, %c0_91] : memref<16x32x32xbf16, #tpu.memory_space<vmem>>, vector<1x32x32xbf16>
    %133 = vector.shape_cast %132 : vector<1x32x32xbf16> to vector<32x32xbf16>
    %134 = arith.truncf %131 : vector<4x32xf32> to vector<4x32xbf16>
    %cst_92 = arith.constant dense<0.000000e+00> : vector<4x32xf32>
    %135 = tpu.matmul %134, %133, %cst_92 {dimension_numbers = #tpu.dot_dimension_numbers<[1], [0], [0], [1], [0, 0, 1, 1], [], []>} : vector<4x32xbf16>, vector<32x32xbf16>, vector<4x32xf32> -> vector<4x32xf32>
    %136 = arith.addf %127, %135 : vector<4x32xf32>
    %c9 = arith.constant 9 : index
    %c0_93 = arith.constant 0 : index
    %c0_94 = arith.constant 0 : index
    %137 = vector.load %arg5[%c9, %c0_93, %c0_94] : memref<16x4x64xbf16, #tpu.memory_space<vmem>>, vector<1x4x64xbf16>
    %138 = vector.shape_cast %137 : vector<1x4x64xbf16> to vector<4x64xbf16>
    %139 = arith.truncf %56 : vector<64x32xf32> to vector<64x32xbf16>
    %cst_95 = arith.constant dense<0.000000e+00> : vector<4x32xf32>
    %140 = tpu.matmul %138, %139, %cst_95 {dimension_numbers = #tpu.dot_dimension_numbers<[1], [0], [0], [1], [0, 0, 1, 1], [], []>} : vector<4x64xbf16>, vector<64x32xbf16>, vector<4x32xf32> -> vector<4x32xf32>
    %c9_96 = arith.constant 9 : index
    %c0_97 = arith.constant 0 : index
    %c0_98 = arith.constant 0 : index
    %141 = vector.load %arg4[%c9_96, %c0_97, %c0_98] : memref<16x32x32xbf16, #tpu.memory_space<vmem>>, vector<1x32x32xbf16>
    %142 = vector.shape_cast %141 : vector<1x32x32xbf16> to vector<32x32xbf16>
    %143 = arith.truncf %140 : vector<4x32xf32> to vector<4x32xbf16>
    %cst_99 = arith.constant dense<0.000000e+00> : vector<4x32xf32>
    %144 = tpu.matmul %143, %142, %cst_99 {dimension_numbers = #tpu.dot_dimension_numbers<[1], [0], [0], [1], [0, 0, 1, 1], [], []>} : vector<4x32xbf16>, vector<32x32xbf16>, vector<4x32xf32> -> vector<4x32xf32>
    %145 = arith.addf %136, %144 : vector<4x32xf32>
    %c10 = arith.constant 10 : index
    %c0_100 = arith.constant 0 : index
    %c0_101 = arith.constant 0 : index
    %146 = vector.load %arg5[%c10, %c0_100, %c0_101] : memref<16x4x64xbf16, #tpu.memory_space<vmem>>, vector<1x4x64xbf16>
    %147 = vector.shape_cast %146 : vector<1x4x64xbf16> to vector<4x64xbf16>
    %148 = arith.truncf %56 : vector<64x32xf32> to vector<64x32xbf16>
    %cst_102 = arith.constant dense<0.000000e+00> : vector<4x32xf32>
    %149 = tpu.matmul %147, %148, %cst_102 {dimension_numbers = #tpu.dot_dimension_numbers<[1], [0], [0], [1], [0, 0, 1, 1], [], []>} : vector<4x64xbf16>, vector<64x32xbf16>, vector<4x32xf32> -> vector<4x32xf32>
    %c10_103 = arith.constant 10 : index
    %c0_104 = arith.constant 0 : index
    %c0_105 = arith.constant 0 : index
    %150 = vector.load %arg4[%c10_103, %c0_104, %c0_105] : memref<16x32x32xbf16, #tpu.memory_space<vmem>>, vector<1x32x32xbf16>
    %151 = vector.shape_cast %150 : vector<1x32x32xbf16> to vector<32x32xbf16>
    %152 = arith.truncf %149 : vector<4x32xf32> to vector<4x32xbf16>
    %cst_106 = arith.constant dense<0.000000e+00> : vector<4x32xf32>
    %153 = tpu.matmul %152, %151, %cst_106 {dimension_numbers = #tpu.dot_dimension_numbers<[1], [0], [0], [1], [0, 0, 1, 1], [], []>} : vector<4x32xbf16>, vector<32x32xbf16>, vector<4x32xf32> -> vector<4x32xf32>
    %154 = arith.addf %145, %153 : vector<4x32xf32>
    %c11 = arith.constant 11 : index
    %c0_107 = arith.constant 0 : index
    %c0_108 = arith.constant 0 : index
    %155 = vector.load %arg5[%c11, %c0_107, %c0_108] : memref<16x4x64xbf16, #tpu.memory_space<vmem>>, vector<1x4x64xbf16>
    %156 = vector.shape_cast %155 : vector<1x4x64xbf16> to vector<4x64xbf16>
    %157 = arith.truncf %56 : vector<64x32xf32> to vector<64x32xbf16>
    %cst_109 = arith.constant dense<0.000000e+00> : vector<4x32xf32>
    %158 = tpu.matmul %156, %157, %cst_109 {dimension_numbers = #tpu.dot_dimension_numbers<[1], [0], [0], [1], [0, 0, 1, 1], [], []>} : vector<4x64xbf16>, vector<64x32xbf16>, vector<4x32xf32> -> vector<4x32xf32>
    %c11_110 = arith.constant 11 : index
    %c0_111 = arith.constant 0 : index
    %c0_112 = arith.constant 0 : index
    %159 = vector.load %arg4[%c11_110, %c0_111, %c0_112] : memref<16x32x32xbf16, #tpu.memory_space<vmem>>, vector<1x32x32xbf16>
    %160 = vector.shape_cast %159 : vector<1x32x32xbf16> to vector<32x32xbf16>
    %161 = arith.truncf %158 : vector<4x32xf32> to vector<4x32xbf16>
    %cst_113 = arith.constant dense<0.000000e+00> : vector<4x32xf32>
    %162 = tpu.matmul %161, %160, %cst_113 {dimension_numbers = #tpu.dot_dimension_numbers<[1], [0], [0], [1], [0, 0, 1, 1], [], []>} : vector<4x32xbf16>, vector<32x32xbf16>, vector<4x32xf32> -> vector<4x32xf32>
    %163 = arith.addf %154, %162 : vector<4x32xf32>
    %c12 = arith.constant 12 : index
    %c0_114 = arith.constant 0 : index
    %c0_115 = arith.constant 0 : index
    %164 = vector.load %arg5[%c12, %c0_114, %c0_115] : memref<16x4x64xbf16, #tpu.memory_space<vmem>>, vector<1x4x64xbf16>
    %165 = vector.shape_cast %164 : vector<1x4x64xbf16> to vector<4x64xbf16>
    %166 = arith.truncf %56 : vector<64x32xf32> to vector<64x32xbf16>
    %cst_116 = arith.constant dense<0.000000e+00> : vector<4x32xf32>
    %167 = tpu.matmul %165, %166, %cst_116 {dimension_numbers = #tpu.dot_dimension_numbers<[1], [0], [0], [1], [0, 0, 1, 1], [], []>} : vector<4x64xbf16>, vector<64x32xbf16>, vector<4x32xf32> -> vector<4x32xf32>
    %c12_117 = arith.constant 12 : index
    %c0_118 = arith.constant 0 : index
    %c0_119 = arith.constant 0 : index
    %168 = vector.load %arg4[%c12_117, %c0_118, %c0_119] : memref<16x32x32xbf16, #tpu.memory_space<vmem>>, vector<1x32x32xbf16>
    %169 = vector.shape_cast %168 : vector<1x32x32xbf16> to vector<32x32xbf16>
    %170 = arith.truncf %167 : vector<4x32xf32> to vector<4x32xbf16>
    %cst_120 = arith.constant dense<0.000000e+00> : vector<4x32xf32>
    %171 = tpu.matmul %170, %169, %cst_120 {dimension_numbers = #tpu.dot_dimension_numbers<[1], [0], [0], [1], [0, 0, 1, 1], [], []>} : vector<4x32xbf16>, vector<32x32xbf16>, vector<4x32xf32> -> vector<4x32xf32>
    %172 = arith.addf %163, %171 : vector<4x32xf32>
    %c13 = arith.constant 13 : index
    %c0_121 = arith.constant 0 : index
    %c0_122 = arith.constant 0 : index
    %173 = vector.load %arg5[%c13, %c0_121, %c0_122] : memref<16x4x64xbf16, #tpu.memory_space<vmem>>, vector<1x4x64xbf16>
    %174 = vector.shape_cast %173 : vector<1x4x64xbf16> to vector<4x64xbf16>
    %175 = arith.truncf %56 : vector<64x32xf32> to vector<64x32xbf16>
    %cst_123 = arith.constant dense<0.000000e+00> : vector<4x32xf32>
    %176 = tpu.matmul %174, %175, %cst_123 {dimension_numbers = #tpu.dot_dimension_numbers<[1], [0], [0], [1], [0, 0, 1, 1], [], []>} : vector<4x64xbf16>, vector<64x32xbf16>, vector<4x32xf32> -> vector<4x32xf32>
    %c13_124 = arith.constant 13 : index
    %c0_125 = arith.constant 0 : index
    %c0_126 = arith.constant 0 : index
    %177 = vector.load %arg4[%c13_124, %c0_125, %c0_126] : memref<16x32x32xbf16, #tpu.memory_space<vmem>>, vector<1x32x32xbf16>
    %178 = vector.shape_cast %177 : vector<1x32x32xbf16> to vector<32x32xbf16>
    %179 = arith.truncf %176 : vector<4x32xf32> to vector<4x32xbf16>
    %cst_127 = arith.constant dense<0.000000e+00> : vector<4x32xf32>
    %180 = tpu.matmul %179, %178, %cst_127 {dimension_numbers = #tpu.dot_dimension_numbers<[1], [0], [0], [1], [0, 0, 1, 1], [], []>} : vector<4x32xbf16>, vector<32x32xbf16>, vector<4x32xf32> -> vector<4x32xf32>
    %181 = arith.addf %172, %180 : vector<4x32xf32>
    %c14 = arith.constant 14 : index
    %c0_128 = arith.constant 0 : index
    %c0_129 = arith.constant 0 : index
    %182 = vector.load %arg5[%c14, %c0_128, %c0_129] : memref<16x4x64xbf16, #tpu.memory_space<vmem>>, vector<1x4x64xbf16>
    %183 = vector.shape_cast %182 : vector<1x4x64xbf16> to vector<4x64xbf16>
    %184 = arith.truncf %56 : vector<64x32xf32> to vector<64x32xbf16>
    %cst_130 = arith.constant dense<0.000000e+00> : vector<4x32xf32>
    %185 = tpu.matmul %183, %184, %cst_130 {dimension_numbers = #tpu.dot_dimension_numbers<[1], [0], [0], [1], [0, 0, 1, 1], [], []>} : vector<4x64xbf16>, vector<64x32xbf16>, vector<4x32xf32> -> vector<4x32xf32>
    %c14_131 = arith.constant 14 : index
    %c0_132 = arith.constant 0 : index
    %c0_133 = arith.constant 0 : index
    %186 = vector.load %arg4[%c14_131, %c0_132, %c0_133] : memref<16x32x32xbf16, #tpu.memory_space<vmem>>, vector<1x32x32xbf16>
    %187 = vector.shape_cast %186 : vector<1x32x32xbf16> to vector<32x32xbf16>
    %188 = arith.truncf %185 : vector<4x32xf32> to vector<4x32xbf16>
    %cst_134 = arith.constant dense<0.000000e+00> : vector<4x32xf32>
    %189 = tpu.matmul %188, %187, %cst_134 {dimension_numbers = #tpu.dot_dimension_numbers<[1], [0], [0], [1], [0, 0, 1, 1], [], []>} : vector<4x32xbf16>, vector<32x32xbf16>, vector<4x32xf32> -> vector<4x32xf32>
    %190 = arith.addf %181, %189 : vector<4x32xf32>
    %c15 = arith.constant 15 : index
    %c0_135 = arith.constant 0 : index
    %c0_136 = arith.constant 0 : index
    %191 = vector.load %arg5[%c15, %c0_135, %c0_136] : memref<16x4x64xbf16, #tpu.memory_space<vmem>>, vector<1x4x64xbf16>
    %192 = vector.shape_cast %191 : vector<1x4x64xbf16> to vector<4x64xbf16>
    %193 = arith.truncf %56 : vector<64x32xf32> to vector<64x32xbf16>
    %cst_137 = arith.constant dense<0.000000e+00> : vector<4x32xf32>
    %194 = tpu.matmul %192, %193, %cst_137 {dimension_numbers = #tpu.dot_dimension_numbers<[1], [0], [0], [1], [0, 0, 1, 1], [], []>} : vector<4x64xbf16>, vector<64x32xbf16>, vector<4x32xf32> -> vector<4x32xf32>
    %c15_138 = arith.constant 15 : index
    %c0_139 = arith.constant 0 : index
    %c0_140 = arith.constant 0 : index
    %195 = vector.load %arg4[%c15_138, %c0_139, %c0_140] : memref<16x32x32xbf16, #tpu.memory_space<vmem>>, vector<1x32x32xbf16>
    %196 = vector.shape_cast %195 : vector<1x32x32xbf16> to vector<32x32xbf16>
    %197 = arith.truncf %194 : vector<4x32xf32> to vector<4x32xbf16>
    %cst_141 = arith.constant dense<0.000000e+00> : vector<4x32xf32>
    %198 = tpu.matmul %197, %196, %cst_141 {dimension_numbers = #tpu.dot_dimension_numbers<[1], [0], [0], [1], [0, 0, 1, 1], [], []>} : vector<4x32xbf16>, vector<32x32xbf16>, vector<4x32xf32> -> vector<4x32xf32>
    %199 = arith.addf %190, %198 : vector<4x32xf32>
    %c21 = arith.constant 21 : index
    %c0_142 = arith.constant 0 : index
    %c0_143 = arith.constant 0 : index
    %200 = vector.load %arg9[%c21, %c0_142, %c0_143] : memref<24x1x32xf32, #tpu.memory_space<vmem>>, vector<1x1x32xf32>
    %201 = vector.shape_cast %200 : vector<1x1x32xf32> to vector<1x32xf32>
    %202 = vector.broadcast %201 : vector<1x32xf32> to vector<4x32xf32>
    %203 = arith.addf %199, %202 : vector<4x32xf32>
    %c22 = arith.constant 22 : index
    %c0_144 = arith.constant 0 : index
    %c0_145 = arith.constant 0 : index
    %204 = vector.load %arg9[%c22, %c0_144, %c0_145] : memref<24x1x32xf32, #tpu.memory_space<vmem>>, vector<1x1x32xf32>
    %205 = vector.shape_cast %204 : vector<1x1x32xf32> to vector<1x32xf32>
    %c23 = arith.constant 23 : index
    %c0_146 = arith.constant 0 : index
    %c0_147 = arith.constant 0 : index
    %206 = vector.load %arg9[%c23, %c0_146, %c0_147] : memref<24x1x32xf32, #tpu.memory_space<vmem>>, vector<1x1x32xf32>
    %207 = vector.shape_cast %206 : vector<1x1x32xf32> to vector<1x32xf32>
    %cst_148 = arith.constant dense<0.000000e+00> : vector<4xf32>
    %208 = vector.multi_reduction <add>, %203, %cst_148 [1] : vector<4x32xf32> to vector<4xf32>
    %209 = vector.shape_cast %208 : vector<4xf32> to vector<4x1xf32>
    %cst_149 = arith.constant 3.200000e+01 : f32
    %210 = vector.broadcast %cst_149 : f32 to vector<4x1xf32>
    %211 = arith.divf %209, %210 : vector<4x1xf32>
    %212 = vector.broadcast %211 : vector<4x1xf32> to vector<4x32xf32>
    %213 = arith.subf %203, %212 : vector<4x32xf32>
    %214 = arith.mulf %213, %213 : vector<4x32xf32>
    %cst_150 = arith.constant dense<0.000000e+00> : vector<4xf32>
    %215 = vector.multi_reduction <add>, %214, %cst_150 [1] : vector<4x32xf32> to vector<4xf32>
    %216 = vector.shape_cast %215 : vector<4xf32> to vector<4x1xf32>
    %cst_151 = arith.constant 3.200000e+01 : f32
    %217 = vector.broadcast %cst_151 : f32 to vector<4x1xf32>
    %218 = arith.divf %216, %217 : vector<4x1xf32>
    %cst_152 = arith.constant 9.99999974E-6 : f32
    %219 = vector.broadcast %cst_152 : f32 to vector<4x1xf32>
    %220 = arith.addf %218, %219 : vector<4x1xf32>
    %221 = math.rsqrt %220 : vector<4x1xf32>
    %222 = vector.broadcast %221 : vector<4x1xf32> to vector<4x32xf32>
    %223 = arith.mulf %213, %222 : vector<4x32xf32>
    %224 = vector.broadcast %205 : vector<1x32xf32> to vector<4x32xf32>
    %225 = arith.mulf %223, %224 : vector<4x32xf32>
    %226 = vector.broadcast %207 : vector<1x32xf32> to vector<4x32xf32>
    %227 = arith.addf %225, %226 : vector<4x32xf32>
    %c0_153 = arith.constant 0 : index
    %c0_154 = arith.constant 0 : index
    %c0_155 = arith.constant 0 : index
    %228 = vector.load %arg3[%c0_153, %c0_154, %c0_155] : memref<4x32x32xbf16, #tpu.memory_space<vmem>>, vector<1x32x32xbf16>
    %229 = vector.shape_cast %228 : vector<1x32x32xbf16> to vector<32x32xbf16>
    %230 = arith.truncf %56 : vector<64x32xf32> to vector<64x32xbf16>
    %cst_156 = arith.constant dense<0.000000e+00> : vector<64x32xf32>
    %231 = tpu.matmul %230, %229, %cst_156 {dimension_numbers = #tpu.dot_dimension_numbers<[1], [0], [0], [1], [0, 0, 1, 1], [], []>} : vector<64x32xbf16>, vector<32x32xbf16>, vector<64x32xf32> -> vector<64x32xf32>
    %c5_157 = arith.constant 5 : index
    %c0_158 = arith.constant 0 : index
    %c0_159 = arith.constant 0 : index
    %232 = vector.load %arg9[%c5_157, %c0_158, %c0_159] : memref<24x1x32xf32, #tpu.memory_space<vmem>>, vector<1x1x32xf32>
    %233 = vector.shape_cast %232 : vector<1x1x32xf32> to vector<1x32xf32>
    %234 = vector.broadcast %233 : vector<1x32xf32> to vector<64x32xf32>
    %235 = arith.addf %231, %234 : vector<64x32xf32>
    %c1_160 = arith.constant 1 : index
    %c0_161 = arith.constant 0 : index
    %c0_162 = arith.constant 0 : index
    %236 = vector.load %arg3[%c1_160, %c0_161, %c0_162] : memref<4x32x32xbf16, #tpu.memory_space<vmem>>, vector<1x32x32xbf16>
    %237 = vector.shape_cast %236 : vector<1x32x32xbf16> to vector<32x32xbf16>
    %238 = arith.truncf %227 : vector<4x32xf32> to vector<4x32xbf16>
    %cst_163 = arith.constant dense<0.000000e+00> : vector<4x32xf32>
    %239 = tpu.matmul %238, %237, %cst_163 {dimension_numbers = #tpu.dot_dimension_numbers<[1], [0], [0], [1], [0, 0, 1, 1], [], []>} : vector<4x32xbf16>, vector<32x32xbf16>, vector<4x32xf32> -> vector<4x32xf32>
    %c6_164 = arith.constant 6 : index
    %c0_165 = arith.constant 0 : index
    %c0_166 = arith.constant 0 : index
    %240 = vector.load %arg9[%c6_164, %c0_165, %c0_166] : memref<24x1x32xf32, #tpu.memory_space<vmem>>, vector<1x1x32xf32>
    %241 = vector.shape_cast %240 : vector<1x1x32xf32> to vector<1x32xf32>
    %242 = vector.broadcast %241 : vector<1x32xf32> to vector<4x32xf32>
    %243 = arith.addf %239, %242 : vector<4x32xf32>
    %c2_167 = arith.constant 2 : index
    %c0_168 = arith.constant 0 : index
    %c0_169 = arith.constant 0 : index
    %244 = vector.load %arg3[%c2_167, %c0_168, %c0_169] : memref<4x32x32xbf16, #tpu.memory_space<vmem>>, vector<1x32x32xbf16>
    %245 = vector.shape_cast %244 : vector<1x32x32xbf16> to vector<32x32xbf16>
    %246 = arith.truncf %227 : vector<4x32xf32> to vector<4x32xbf16>
    %cst_170 = arith.constant dense<0.000000e+00> : vector<4x32xf32>
    %247 = tpu.matmul %246, %245, %cst_170 {dimension_numbers = #tpu.dot_dimension_numbers<[1], [0], [0], [1], [0, 0, 1, 1], [], []>} : vector<4x32xbf16>, vector<32x32xbf16>, vector<4x32xf32> -> vector<4x32xf32>
    %c7_171 = arith.constant 7 : index
    %c0_172 = arith.constant 0 : index
    %c0_173 = arith.constant 0 : index
    %248 = vector.load %arg9[%c7_171, %c0_172, %c0_173] : memref<24x1x32xf32, #tpu.memory_space<vmem>>, vector<1x1x32xf32>
    %249 = vector.shape_cast %248 : vector<1x1x32xf32> to vector<1x32xf32>
    %250 = vector.broadcast %249 : vector<1x32xf32> to vector<4x32xf32>
    %251 = arith.addf %247, %250 : vector<4x32xf32>
    %252 = arith.truncf %235 : vector<64x32xf32> to vector<64x32xbf16>
    %253 = arith.truncf %243 : vector<4x32xf32> to vector<4x32xbf16>
    %cst_174 = arith.constant dense<0.000000e+00> : vector<64x4xf32>
    %254 = tpu.matmul %252, %253, %cst_174 {dimension_numbers = #tpu.dot_dimension_numbers<[1], [1], [0], [0], [0, 0, 1, 0], [], []>} : vector<64x32xbf16>, vector<4x32xbf16>, vector<64x4xf32> -> vector<64x4xf32>
    %cst_175 = arith.constant 0.176776692 : f32
    %255 = vector.broadcast %cst_175 : f32 to vector<64x4xf32>
    %256 = arith.mulf %254, %255 : vector<64x4xf32>
    %cst_176 = arith.constant dense<0xFF800000> : vector<64xf32>
    %257 = vector.multi_reduction <maximumf>, %256, %cst_176 [1] : vector<64x4xf32> to vector<64xf32>
    %258 = vector.shape_cast %257 : vector<64xf32> to vector<64x1xf32>
    %259 = vector.broadcast %258 : vector<64x1xf32> to vector<64x4xf32>
    %260 = arith.subf %256, %259 : vector<64x4xf32>
    %261 = math.exp %260 : vector<64x4xf32>
    %cst_177 = arith.constant dense<0.000000e+00> : vector<64xf32>
    %262 = vector.multi_reduction <add>, %261, %cst_177 [1] : vector<64x4xf32> to vector<64xf32>
    %263 = vector.shape_cast %262 : vector<64xf32> to vector<64x1xf32>
    %264 = tpu.reciprocal %263 {approx = true} : vector<64x1xf32> -> vector<64x1xf32>
    %265 = vector.broadcast %264 : vector<64x1xf32> to vector<64x4xf32>
    %266 = arith.mulf %261, %265 : vector<64x4xf32>
    %267 = arith.truncf %266 : vector<64x4xf32> to vector<64x4xbf16>
    %268 = arith.truncf %251 : vector<4x32xf32> to vector<4x32xbf16>
    %cst_178 = arith.constant dense<0.000000e+00> : vector<64x32xf32>
    %269 = tpu.matmul %267, %268, %cst_178 {dimension_numbers = #tpu.dot_dimension_numbers<[1], [0], [0], [1], [0, 0, 1, 1], [], []>} : vector<64x4xbf16>, vector<4x32xbf16>, vector<64x32xf32> -> vector<64x32xf32>
    %c3_179 = arith.constant 3 : index
    %c0_180 = arith.constant 0 : index
    %c0_181 = arith.constant 0 : index
    %270 = vector.load %arg3[%c3_179, %c0_180, %c0_181] : memref<4x32x32xbf16, #tpu.memory_space<vmem>>, vector<1x32x32xbf16>
    %271 = vector.shape_cast %270 : vector<1x32x32xbf16> to vector<32x32xbf16>
    %272 = arith.truncf %269 : vector<64x32xf32> to vector<64x32xbf16>
    %cst_182 = arith.constant dense<0.000000e+00> : vector<64x32xf32>
    %273 = tpu.matmul %272, %271, %cst_182 {dimension_numbers = #tpu.dot_dimension_numbers<[1], [0], [0], [1], [0, 0, 1, 1], [], []>} : vector<64x32xbf16>, vector<32x32xbf16>, vector<64x32xf32> -> vector<64x32xf32>
    %274 = arith.addf %32, %273 : vector<64x32xf32>
    %c8_183 = arith.constant 8 : index
    %c0_184 = arith.constant 0 : index
    %c0_185 = arith.constant 0 : index
    %275 = vector.load %arg9[%c8_183, %c0_184, %c0_185] : memref<24x1x32xf32, #tpu.memory_space<vmem>>, vector<1x1x32xf32>
    %276 = vector.shape_cast %275 : vector<1x1x32xf32> to vector<1x32xf32>
    %277 = vector.broadcast %276 : vector<1x32xf32> to vector<64x32xf32>
    %278 = arith.addf %274, %277 : vector<64x32xf32>
    %c9_186 = arith.constant 9 : index
    %c0_187 = arith.constant 0 : index
    %c0_188 = arith.constant 0 : index
    %279 = vector.load %arg9[%c9_186, %c0_187, %c0_188] : memref<24x1x32xf32, #tpu.memory_space<vmem>>, vector<1x1x32xf32>
    %280 = vector.shape_cast %279 : vector<1x1x32xf32> to vector<1x32xf32>
    %c10_189 = arith.constant 10 : index
    %c0_190 = arith.constant 0 : index
    %c0_191 = arith.constant 0 : index
    %281 = vector.load %arg9[%c10_189, %c0_190, %c0_191] : memref<24x1x32xf32, #tpu.memory_space<vmem>>, vector<1x1x32xf32>
    %282 = vector.shape_cast %281 : vector<1x1x32xf32> to vector<1x32xf32>
    %cst_192 = arith.constant dense<0.000000e+00> : vector<64xf32>
    %283 = vector.multi_reduction <add>, %278, %cst_192 [1] : vector<64x32xf32> to vector<64xf32>
    %284 = vector.shape_cast %283 : vector<64xf32> to vector<64x1xf32>
    %cst_193 = arith.constant 3.200000e+01 : f32
    %285 = vector.broadcast %cst_193 : f32 to vector<64x1xf32>
    %286 = arith.divf %284, %285 : vector<64x1xf32>
    %287 = vector.broadcast %286 : vector<64x1xf32> to vector<64x32xf32>
    %288 = arith.subf %278, %287 : vector<64x32xf32>
    %289 = arith.mulf %288, %288 : vector<64x32xf32>
    %cst_194 = arith.constant dense<0.000000e+00> : vector<64xf32>
    %290 = vector.multi_reduction <add>, %289, %cst_194 [1] : vector<64x32xf32> to vector<64xf32>
    %291 = vector.shape_cast %290 : vector<64xf32> to vector<64x1xf32>
    %cst_195 = arith.constant 3.200000e+01 : f32
    %292 = vector.broadcast %cst_195 : f32 to vector<64x1xf32>
    %293 = arith.divf %291, %292 : vector<64x1xf32>
    %cst_196 = arith.constant 9.99999997E-7 : f32
    %294 = vector.broadcast %cst_196 : f32 to vector<64x1xf32>
    %295 = arith.addf %293, %294 : vector<64x1xf32>
    %296 = math.rsqrt %295 : vector<64x1xf32>
    %297 = vector.broadcast %296 : vector<64x1xf32> to vector<64x32xf32>
    %298 = arith.mulf %288, %297 : vector<64x32xf32>
    %299 = vector.broadcast %280 : vector<1x32xf32> to vector<64x32xf32>
    %300 = arith.mulf %298, %299 : vector<64x32xf32>
    %301 = vector.broadcast %282 : vector<1x32xf32> to vector<64x32xf32>
    %302 = arith.addf %300, %301 : vector<64x32xf32>
    %c0_197 = arith.constant 0 : index
    %c0_198 = arith.constant 0 : index
    %303 = vector.load %arg6[%c0_197, %c0_198] : memref<33x128xbf16, #tpu.memory_space<vmem>>, vector<33x128xbf16>
    %c0_199 = arith.constant 0 : index
    %c0_200 = arith.constant 0 : index
    %304 = vector.load %arg7[%c0_199, %c0_200] : memref<129x32xbf16, #tpu.memory_space<vmem>>, vector<129x32xbf16>
    %305 = vector.extract_strided_slice %303 {offsets = [0, 0], sizes = [32, 128], strides = [1, 1]} : vector<33x128xbf16> to vector<32x128xbf16>
    %306 = arith.truncf %302 : vector<64x32xf32> to vector<64x32xbf16>
    %cst_201 = arith.constant dense<0.000000e+00> : vector<64x128xf32>
    %307 = tpu.matmul %306, %305, %cst_201 {dimension_numbers = #tpu.dot_dimension_numbers<[1], [0], [0], [1], [0, 0, 1, 1], [], []>} : vector<64x32xbf16>, vector<32x128xbf16>, vector<64x128xf32> -> vector<64x128xf32>
    %308 = vector.extract_strided_slice %303 {offsets = [32, 0], sizes = [1, 128], strides = [1, 1]} : vector<33x128xbf16> to vector<1x128xbf16>
    %309 = arith.extf %308 : vector<1x128xbf16> to vector<1x128xf32>
    %310 = vector.broadcast %309 : vector<1x128xf32> to vector<64x128xf32>
    %311 = arith.addf %307, %310 : vector<64x128xf32>
    %cst_202 = arith.constant 0.707106769 : f32
    %312 = vector.broadcast %cst_202 : f32 to vector<64x128xf32>
    %313 = arith.mulf %311, %312 : vector<64x128xf32>
    %314 = math.absf %313 : vector<64x128xf32>
    %cst_203 = arith.constant 0.327591091 : f32
    %315 = vector.broadcast %cst_203 : f32 to vector<64x128xf32>
    %316 = arith.mulf %315, %314 : vector<64x128xf32>
    %cst_204 = arith.constant 1.000000e+00 : f32
    %317 = vector.broadcast %cst_204 : f32 to vector<64x128xf32>
    %318 = arith.addf %317, %316 : vector<64x128xf32>
    %319 = tpu.reciprocal %318 {approx = true} : vector<64x128xf32> -> vector<64x128xf32>
    %cst_205 = arith.constant 1.06140542 : f32
    %320 = vector.broadcast %cst_205 : f32 to vector<64x128xf32>
    %321 = arith.mulf %319, %320 : vector<64x128xf32>
    %cst_206 = arith.constant -1.45315206 : f32
    %322 = vector.broadcast %cst_206 : f32 to vector<64x128xf32>
    %323 = arith.addf %322, %321 : vector<64x128xf32>
    %324 = arith.mulf %319, %323 : vector<64x128xf32>
    %cst_207 = arith.constant 1.42141378 : f32
    %325 = vector.broadcast %cst_207 : f32 to vector<64x128xf32>
    %326 = arith.addf %325, %324 : vector<64x128xf32>
    %327 = arith.mulf %319, %326 : vector<64x128xf32>
    %cst_208 = arith.constant -0.284496725 : f32
    %328 = vector.broadcast %cst_208 : f32 to vector<64x128xf32>
    %329 = arith.addf %328, %327 : vector<64x128xf32>
    %330 = arith.mulf %319, %329 : vector<64x128xf32>
    %cst_209 = arith.constant 0.254829586 : f32
    %331 = vector.broadcast %cst_209 : f32 to vector<64x128xf32>
    %332 = arith.addf %331, %330 : vector<64x128xf32>
    %333 = arith.mulf %319, %332 : vector<64x128xf32>
    %cst_210 = arith.constant 0.000000e+00 : f32
    %334 = vector.broadcast %cst_210 : f32 to vector<64x128xf32>
    %335 = arith.subf %334, %314 : vector<64x128xf32>
    %336 = arith.mulf %335, %314 : vector<64x128xf32>
    %337 = math.exp %336 : vector<64x128xf32>
    %338 = arith.mulf %333, %337 : vector<64x128xf32>
    %cst_211 = arith.constant 1.000000e+00 : f32
    %339 = vector.broadcast %cst_211 : f32 to vector<64x128xf32>
    %340 = arith.subf %339, %338 : vector<64x128xf32>
    %cst_212 = arith.constant 0.000000e+00 : f32
    %341 = vector.broadcast %cst_212 : f32 to vector<64x128xf32>
    %342 = arith.cmpf oge, %313, %341 : vector<64x128xf32>
    %cst_213 = arith.constant 0.000000e+00 : f32
    %343 = vector.broadcast %cst_213 : f32 to vector<64x128xf32>
    %344 = arith.subf %343, %340 : vector<64x128xf32>
    %345 = arith.select %342, %340, %344 : vector<64x128xi1>, vector<64x128xf32>
    %cst_214 = arith.constant 5.000000e-01 : f32
    %346 = vector.broadcast %cst_214 : f32 to vector<64x128xf32>
    %347 = arith.mulf %346, %311 : vector<64x128xf32>
    %cst_215 = arith.constant 1.000000e+00 : f32
    %348 = vector.broadcast %cst_215 : f32 to vector<64x128xf32>
    %349 = arith.addf %348, %345 : vector<64x128xf32>
    %350 = arith.mulf %347, %349 : vector<64x128xf32>
    %351 = vector.extract_strided_slice %304 {offsets = [0, 0], sizes = [128, 32], strides = [1, 1]} : vector<129x32xbf16> to vector<128x32xbf16>
    %352 = arith.truncf %350 : vector<64x128xf32> to vector<64x128xbf16>
    %cst_216 = arith.constant dense<0.000000e+00> : vector<64x32xf32>
    %353 = tpu.matmul %352, %351, %cst_216 {dimension_numbers = #tpu.dot_dimension_numbers<[1], [0], [0], [1], [0, 0, 1, 1], [], []>} : vector<64x128xbf16>, vector<128x32xbf16>, vector<64x32xf32> -> vector<64x32xf32>
    %354 = arith.addf %278, %353 : vector<64x32xf32>
    %355 = vector.extract_strided_slice %304 {offsets = [128, 0], sizes = [1, 32], strides = [1, 1]} : vector<129x32xbf16> to vector<1x32xbf16>
    %356 = arith.extf %355 : vector<1x32xbf16> to vector<1x32xf32>
    %357 = vector.broadcast %356 : vector<1x32xf32> to vector<64x32xf32>
    %358 = arith.addf %354, %357 : vector<64x32xf32>
    %c0_217 = arith.constant 0 : index
    %c0_218 = arith.constant 0 : index
    %c0_219 = arith.constant 0 : index
    %359 = vector.load %arg8[%c0_217, %c0_218, %c0_219] : memref<9x64x64xbf16, #tpu.memory_space<vmem>>, vector<1x64x64xbf16>
    %360 = vector.shape_cast %359 : vector<1x64x64xbf16> to vector<64x64xbf16>
    %361 = arith.truncf %358 : vector<64x32xf32> to vector<64x32xbf16>
    %cst_220 = arith.constant dense<0.000000e+00> : vector<64x32xf32>
    %362 = tpu.matmul %360, %361, %cst_220 {dimension_numbers = #tpu.dot_dimension_numbers<[1], [0], [0], [1], [0, 0, 1, 1], [], []>} : vector<64x64xbf16>, vector<64x32xbf16>, vector<64x32xf32> -> vector<64x32xf32>
    %c12_221 = arith.constant 12 : index
    %c0_222 = arith.constant 0 : index
    %c0_223 = arith.constant 0 : index
    %363 = vector.load %arg9[%c12_221, %c0_222, %c0_223] : memref<24x1x32xf32, #tpu.memory_space<vmem>>, vector<1x1x32xf32>
    %364 = vector.shape_cast %363 : vector<1x1x32xf32> to vector<1x32xf32>
    %365 = vector.broadcast %364 : vector<1x32xf32> to vector<64x32xf32>
    %366 = arith.mulf %362, %365 : vector<64x32xf32>
    %c1_224 = arith.constant 1 : index
    %c0_225 = arith.constant 0 : index
    %c0_226 = arith.constant 0 : index
    %367 = vector.load %arg8[%c1_224, %c0_225, %c0_226] : memref<9x64x64xbf16, #tpu.memory_space<vmem>>, vector<1x64x64xbf16>
    %368 = vector.shape_cast %367 : vector<1x64x64xbf16> to vector<64x64xbf16>
    %369 = arith.truncf %358 : vector<64x32xf32> to vector<64x32xbf16>
    %cst_227 = arith.constant dense<0.000000e+00> : vector<64x32xf32>
    %370 = tpu.matmul %368, %369, %cst_227 {dimension_numbers = #tpu.dot_dimension_numbers<[1], [0], [0], [1], [0, 0, 1, 1], [], []>} : vector<64x64xbf16>, vector<64x32xbf16>, vector<64x32xf32> -> vector<64x32xf32>
    %c13_228 = arith.constant 13 : index
    %c0_229 = arith.constant 0 : index
    %c0_230 = arith.constant 0 : index
    %371 = vector.load %arg9[%c13_228, %c0_229, %c0_230] : memref<24x1x32xf32, #tpu.memory_space<vmem>>, vector<1x1x32xf32>
    %372 = vector.shape_cast %371 : vector<1x1x32xf32> to vector<1x32xf32>
    %373 = vector.broadcast %372 : vector<1x32xf32> to vector<64x32xf32>
    %374 = arith.mulf %370, %373 : vector<64x32xf32>
    %375 = arith.addf %366, %374 : vector<64x32xf32>
    %c2_231 = arith.constant 2 : index
    %c0_232 = arith.constant 0 : index
    %c0_233 = arith.constant 0 : index
    %376 = vector.load %arg8[%c2_231, %c0_232, %c0_233] : memref<9x64x64xbf16, #tpu.memory_space<vmem>>, vector<1x64x64xbf16>
    %377 = vector.shape_cast %376 : vector<1x64x64xbf16> to vector<64x64xbf16>
    %378 = arith.truncf %358 : vector<64x32xf32> to vector<64x32xbf16>
    %cst_234 = arith.constant dense<0.000000e+00> : vector<64x32xf32>
    %379 = tpu.matmul %377, %378, %cst_234 {dimension_numbers = #tpu.dot_dimension_numbers<[1], [0], [0], [1], [0, 0, 1, 1], [], []>} : vector<64x64xbf16>, vector<64x32xbf16>, vector<64x32xf32> -> vector<64x32xf32>
    %c14_235 = arith.constant 14 : index
    %c0_236 = arith.constant 0 : index
    %c0_237 = arith.constant 0 : index
    %380 = vector.load %arg9[%c14_235, %c0_236, %c0_237] : memref<24x1x32xf32, #tpu.memory_space<vmem>>, vector<1x1x32xf32>
    %381 = vector.shape_cast %380 : vector<1x1x32xf32> to vector<1x32xf32>
    %382 = vector.broadcast %381 : vector<1x32xf32> to vector<64x32xf32>
    %383 = arith.mulf %379, %382 : vector<64x32xf32>
    %384 = arith.addf %375, %383 : vector<64x32xf32>
    %c3_238 = arith.constant 3 : index
    %c0_239 = arith.constant 0 : index
    %c0_240 = arith.constant 0 : index
    %385 = vector.load %arg8[%c3_238, %c0_239, %c0_240] : memref<9x64x64xbf16, #tpu.memory_space<vmem>>, vector<1x64x64xbf16>
    %386 = vector.shape_cast %385 : vector<1x64x64xbf16> to vector<64x64xbf16>
    %387 = arith.truncf %358 : vector<64x32xf32> to vector<64x32xbf16>
    %cst_241 = arith.constant dense<0.000000e+00> : vector<64x32xf32>
    %388 = tpu.matmul %386, %387, %cst_241 {dimension_numbers = #tpu.dot_dimension_numbers<[1], [0], [0], [1], [0, 0, 1, 1], [], []>} : vector<64x64xbf16>, vector<64x32xbf16>, vector<64x32xf32> -> vector<64x32xf32>
    %c15_242 = arith.constant 15 : index
    %c0_243 = arith.constant 0 : index
    %c0_244 = arith.constant 0 : index
    %389 = vector.load %arg9[%c15_242, %c0_243, %c0_244] : memref<24x1x32xf32, #tpu.memory_space<vmem>>, vector<1x1x32xf32>
    %390 = vector.shape_cast %389 : vector<1x1x32xf32> to vector<1x32xf32>
    %391 = vector.broadcast %390 : vector<1x32xf32> to vector<64x32xf32>
    %392 = arith.mulf %388, %391 : vector<64x32xf32>
    %393 = arith.addf %384, %392 : vector<64x32xf32>
    %c4_245 = arith.constant 4 : index
    %c0_246 = arith.constant 0 : index
    %c0_247 = arith.constant 0 : index
    %394 = vector.load %arg8[%c4_245, %c0_246, %c0_247] : memref<9x64x64xbf16, #tpu.memory_space<vmem>>, vector<1x64x64xbf16>
    %395 = vector.shape_cast %394 : vector<1x64x64xbf16> to vector<64x64xbf16>
    %396 = arith.truncf %358 : vector<64x32xf32> to vector<64x32xbf16>
    %cst_248 = arith.constant dense<0.000000e+00> : vector<64x32xf32>
    %397 = tpu.matmul %395, %396, %cst_248 {dimension_numbers = #tpu.dot_dimension_numbers<[1], [0], [0], [1], [0, 0, 1, 1], [], []>} : vector<64x64xbf16>, vector<64x32xbf16>, vector<64x32xf32> -> vector<64x32xf32>
    %c16 = arith.constant 16 : index
    %c0_249 = arith.constant 0 : index
    %c0_250 = arith.constant 0 : index
    %398 = vector.load %arg9[%c16, %c0_249, %c0_250] : memref<24x1x32xf32, #tpu.memory_space<vmem>>, vector<1x1x32xf32>
    %399 = vector.shape_cast %398 : vector<1x1x32xf32> to vector<1x32xf32>
    %400 = vector.broadcast %399 : vector<1x32xf32> to vector<64x32xf32>
    %401 = arith.mulf %397, %400 : vector<64x32xf32>
    %402 = arith.addf %393, %401 : vector<64x32xf32>
    %c5_251 = arith.constant 5 : index
    %c0_252 = arith.constant 0 : index
    %c0_253 = arith.constant 0 : index
    %403 = vector.load %arg8[%c5_251, %c0_252, %c0_253] : memref<9x64x64xbf16, #tpu.memory_space<vmem>>, vector<1x64x64xbf16>
    %404 = vector.shape_cast %403 : vector<1x64x64xbf16> to vector<64x64xbf16>
    %405 = arith.truncf %358 : vector<64x32xf32> to vector<64x32xbf16>
    %cst_254 = arith.constant dense<0.000000e+00> : vector<64x32xf32>
    %406 = tpu.matmul %404, %405, %cst_254 {dimension_numbers = #tpu.dot_dimension_numbers<[1], [0], [0], [1], [0, 0, 1, 1], [], []>} : vector<64x64xbf16>, vector<64x32xbf16>, vector<64x32xf32> -> vector<64x32xf32>
    %c17 = arith.constant 17 : index
    %c0_255 = arith.constant 0 : index
    %c0_256 = arith.constant 0 : index
    %407 = vector.load %arg9[%c17, %c0_255, %c0_256] : memref<24x1x32xf32, #tpu.memory_space<vmem>>, vector<1x1x32xf32>
    %408 = vector.shape_cast %407 : vector<1x1x32xf32> to vector<1x32xf32>
    %409 = vector.broadcast %408 : vector<1x32xf32> to vector<64x32xf32>
    %410 = arith.mulf %406, %409 : vector<64x32xf32>
    %411 = arith.addf %402, %410 : vector<64x32xf32>
    %c6_257 = arith.constant 6 : index
    %c0_258 = arith.constant 0 : index
    %c0_259 = arith.constant 0 : index
    %412 = vector.load %arg8[%c6_257, %c0_258, %c0_259] : memref<9x64x64xbf16, #tpu.memory_space<vmem>>, vector<1x64x64xbf16>
    %413 = vector.shape_cast %412 : vector<1x64x64xbf16> to vector<64x64xbf16>
    %414 = arith.truncf %358 : vector<64x32xf32> to vector<64x32xbf16>
    %cst_260 = arith.constant dense<0.000000e+00> : vector<64x32xf32>
    %415 = tpu.matmul %413, %414, %cst_260 {dimension_numbers = #tpu.dot_dimension_numbers<[1], [0], [0], [1], [0, 0, 1, 1], [], []>} : vector<64x64xbf16>, vector<64x32xbf16>, vector<64x32xf32> -> vector<64x32xf32>
    %c18 = arith.constant 18 : index
    %c0_261 = arith.constant 0 : index
    %c0_262 = arith.constant 0 : index
    %416 = vector.load %arg9[%c18, %c0_261, %c0_262] : memref<24x1x32xf32, #tpu.memory_space<vmem>>, vector<1x1x32xf32>
    %417 = vector.shape_cast %416 : vector<1x1x32xf32> to vector<1x32xf32>
    %418 = vector.broadcast %417 : vector<1x32xf32> to vector<64x32xf32>
    %419 = arith.mulf %415, %418 : vector<64x32xf32>
    %420 = arith.addf %411, %419 : vector<64x32xf32>
    %c7_263 = arith.constant 7 : index
    %c0_264 = arith.constant 0 : index
    %c0_265 = arith.constant 0 : index
    %421 = vector.load %arg8[%c7_263, %c0_264, %c0_265] : memref<9x64x64xbf16, #tpu.memory_space<vmem>>, vector<1x64x64xbf16>
    %422 = vector.shape_cast %421 : vector<1x64x64xbf16> to vector<64x64xbf16>
    %423 = arith.truncf %358 : vector<64x32xf32> to vector<64x32xbf16>
    %cst_266 = arith.constant dense<0.000000e+00> : vector<64x32xf32>
    %424 = tpu.matmul %422, %423, %cst_266 {dimension_numbers = #tpu.dot_dimension_numbers<[1], [0], [0], [1], [0, 0, 1, 1], [], []>} : vector<64x64xbf16>, vector<64x32xbf16>, vector<64x32xf32> -> vector<64x32xf32>
    %c19 = arith.constant 19 : index
    %c0_267 = arith.constant 0 : index
    %c0_268 = arith.constant 0 : index
    %425 = vector.load %arg9[%c19, %c0_267, %c0_268] : memref<24x1x32xf32, #tpu.memory_space<vmem>>, vector<1x1x32xf32>
    %426 = vector.shape_cast %425 : vector<1x1x32xf32> to vector<1x32xf32>
    %427 = vector.broadcast %426 : vector<1x32xf32> to vector<64x32xf32>
    %428 = arith.mulf %424, %427 : vector<64x32xf32>
    %429 = arith.addf %420, %428 : vector<64x32xf32>
    %c8_269 = arith.constant 8 : index
    %c0_270 = arith.constant 0 : index
    %c0_271 = arith.constant 0 : index
    %430 = vector.load %arg8[%c8_269, %c0_270, %c0_271] : memref<9x64x64xbf16, #tpu.memory_space<vmem>>, vector<1x64x64xbf16>
    %431 = vector.shape_cast %430 : vector<1x64x64xbf16> to vector<64x64xbf16>
    %432 = arith.truncf %358 : vector<64x32xf32> to vector<64x32xbf16>
    %cst_272 = arith.constant dense<0.000000e+00> : vector<64x32xf32>
    %433 = tpu.matmul %431, %432, %cst_272 {dimension_numbers = #tpu.dot_dimension_numbers<[1], [0], [0], [1], [0, 0, 1, 1], [], []>} : vector<64x64xbf16>, vector<64x32xbf16>, vector<64x32xf32> -> vector<64x32xf32>
    %c20 = arith.constant 20 : index
    %c0_273 = arith.constant 0 : index
    %c0_274 = arith.constant 0 : index
    %434 = vector.load %arg9[%c20, %c0_273, %c0_274] : memref<24x1x32xf32, #tpu.memory_space<vmem>>, vector<1x1x32xf32>
    %435 = vector.shape_cast %434 : vector<1x1x32xf32> to vector<1x32xf32>
    %436 = vector.broadcast %435 : vector<1x32xf32> to vector<64x32xf32>
    %437 = arith.mulf %433, %436 : vector<64x32xf32>
    %438 = arith.addf %429, %437 : vector<64x32xf32>
    %c11_275 = arith.constant 11 : index
    %c0_276 = arith.constant 0 : index
    %c0_277 = arith.constant 0 : index
    %439 = vector.load %arg9[%c11_275, %c0_276, %c0_277] : memref<24x1x32xf32, #tpu.memory_space<vmem>>, vector<1x1x32xf32>
    %440 = vector.shape_cast %439 : vector<1x1x32xf32> to vector<1x32xf32>
    %441 = vector.broadcast %440 : vector<1x32xf32> to vector<64x32xf32>
    %442 = arith.addf %438, %441 : vector<64x32xf32>
    %c0_278 = arith.constant 0 : index
    %c0_279 = arith.constant 0 : index
    %c0_280 = arith.constant 0 : index
    %443 = vector.load %arg26[%c0_278, %c0_279, %c0_280] : memref<1x64x32xf32, #tpu.memory_space<vmem>>, vector<1x64x32xf32>
    %444 = vector.shape_cast %443 : vector<1x64x32xf32> to vector<64x32xf32>
    %445 = vector.shape_cast %442 : vector<64x32xf32> to vector<1x64x32xf32>
    tpu.vector_store %arg26[%c0_278, %c0_279, %c0_280], %445 {strides = array<i32>} : memref<1x64x32xf32, #tpu.memory_space<vmem>>, vector<1x64x32xf32>,
    %446 = arith.addf %442, %358 : vector<64x32xf32>
    %c0_281 = arith.constant 0 : index
    %c0_282 = arith.constant 0 : index
    %c0_283 = arith.constant 0 : index
    %447 = vector.load %arg10[%c0_281, %c0_282, %c0_283] : memref<4x16x64xbf16, #tpu.memory_space<vmem>>, vector<1x16x64xbf16>
    %448 = vector.shape_cast %447 : vector<1x16x64xbf16> to vector<16x64xbf16>
    %449 = arith.truncf %446 : vector<64x32xf32> to vector<64x32xbf16>
    %cst_284 = arith.constant dense<0.000000e+00> : vector<16x32xf32>
    %450 = tpu.matmul %448, %449, %cst_284 {dimension_numbers = #tpu.dot_dimension_numbers<[1], [0], [0], [1], [0, 0, 1, 1], [], []>} : vector<16x64xbf16>, vector<64x32xbf16>, vector<16x32xf32> -> vector<16x32xf32>
    %c0_285 = arith.constant 0 : index
    %c0_286 = arith.constant 0 : index
    %c0_287 = arith.constant 0 : index
    %451 = vector.load %arg11[%c0_285, %c0_286, %c0_287] : memref<4x32x64xbf16, #tpu.memory_space<vmem>>, vector<1x32x64xbf16>
    %452 = vector.shape_cast %451 : vector<1x32x64xbf16> to vector<32x64xbf16>
    %453 = arith.truncf %450 : vector<16x32xf32> to vector<16x32xbf16>
    %cst_288 = arith.constant dense<0.000000e+00> : vector<16x64xf32>
    %454 = tpu.matmul %453, %452, %cst_288 {dimension_numbers = #tpu.dot_dimension_numbers<[1], [0], [0], [1], [0, 0, 1, 1], [], []>} : vector<16x32xbf16>, vector<32x64xbf16>, vector<16x64xf32> -> vector<16x64xf32>
    %c1_289 = arith.constant 1 : index
    %c0_290 = arith.constant 0 : index
    %c0_291 = arith.constant 0 : index
    %455 = vector.load %arg10[%c1_289, %c0_290, %c0_291] : memref<4x16x64xbf16, #tpu.memory_space<vmem>>, vector<1x16x64xbf16>
    %456 = vector.shape_cast %455 : vector<1x16x64xbf16> to vector<16x64xbf16>
    %457 = arith.truncf %446 : vector<64x32xf32> to vector<64x32xbf16>
    %cst_292 = arith.constant dense<0.000000e+00> : vector<16x32xf32>
    %458 = tpu.matmul %456, %457, %cst_292 {dimension_numbers = #tpu.dot_dimension_numbers<[1], [0], [0], [1], [0, 0, 1, 1], [], []>} : vector<16x64xbf16>, vector<64x32xbf16>, vector<16x32xf32> -> vector<16x32xf32>
    %c1_293 = arith.constant 1 : index
    %c0_294 = arith.constant 0 : index
    %c0_295 = arith.constant 0 : index
    %459 = vector.load %arg11[%c1_293, %c0_294, %c0_295] : memref<4x32x64xbf16, #tpu.memory_space<vmem>>, vector<1x32x64xbf16>
    %460 = vector.shape_cast %459 : vector<1x32x64xbf16> to vector<32x64xbf16>
    %461 = arith.truncf %458 : vector<16x32xf32> to vector<16x32xbf16>
    %cst_296 = arith.constant dense<0.000000e+00> : vector<16x64xf32>
    %462 = tpu.matmul %461, %460, %cst_296 {dimension_numbers = #tpu.dot_dimension_numbers<[1], [0], [0], [1], [0, 0, 1, 1], [], []>} : vector<16x32xbf16>, vector<32x64xbf16>, vector<16x64xf32> -> vector<16x64xf32>
    %463 = arith.addf %454, %462 : vector<16x64xf32>
    %c2_297 = arith.constant 2 : index
    %c0_298 = arith.constant 0 : index
    %c0_299 = arith.constant 0 : index
    %464 = vector.load %arg10[%c2_297, %c0_298, %c0_299] : memref<4x16x64xbf16, #tpu.memory_space<vmem>>, vector<1x16x64xbf16>
    %465 = vector.shape_cast %464 : vector<1x16x64xbf16> to vector<16x64xbf16>
    %466 = arith.truncf %446 : vector<64x32xf32> to vector<64x32xbf16>
    %cst_300 = arith.constant dense<0.000000e+00> : vector<16x32xf32>
    %467 = tpu.matmul %465, %466, %cst_300 {dimension_numbers = #tpu.dot_dimension_numbers<[1], [0], [0], [1], [0, 0, 1, 1], [], []>} : vector<16x64xbf16>, vector<64x32xbf16>, vector<16x32xf32> -> vector<16x32xf32>
    %c2_301 = arith.constant 2 : index
    %c0_302 = arith.constant 0 : index
    %c0_303 = arith.constant 0 : index
    %468 = vector.load %arg11[%c2_301, %c0_302, %c0_303] : memref<4x32x64xbf16, #tpu.memory_space<vmem>>, vector<1x32x64xbf16>
    %469 = vector.shape_cast %468 : vector<1x32x64xbf16> to vector<32x64xbf16>
    %470 = arith.truncf %467 : vector<16x32xf32> to vector<16x32xbf16>
    %cst_304 = arith.constant dense<0.000000e+00> : vector<16x64xf32>
    %471 = tpu.matmul %470, %469, %cst_304 {dimension_numbers = #tpu.dot_dimension_numbers<[1], [0], [0], [1], [0, 0, 1, 1], [], []>} : vector<16x32xbf16>, vector<32x64xbf16>, vector<16x64xf32> -> vector<16x64xf32>
    %472 = arith.addf %463, %471 : vector<16x64xf32>
    %c3_305 = arith.constant 3 : index
    %c0_306 = arith.constant 0 : index
    %c0_307 = arith.constant 0 : index
    %473 = vector.load %arg10[%c3_305, %c0_306, %c0_307] : memref<4x16x64xbf16, #tpu.memory_space<vmem>>, vector<1x16x64xbf16>
    %474 = vector.shape_cast %473 : vector<1x16x64xbf16> to vector<16x64xbf16>
    %475 = arith.truncf %446 : vector<64x32xf32> to vector<64x32xbf16>
    %cst_308 = arith.constant dense<0.000000e+00> : vector<16x32xf32>
    %476 = tpu.matmul %474, %475, %cst_308 {dimension_numbers = #tpu.dot_dimension_numbers<[1], [0], [0], [1], [0, 0, 1, 1], [], []>} : vector<16x64xbf16>, vector<64x32xbf16>, vector<16x32xf32> -> vector<16x32xf32>
    %c3_309 = arith.constant 3 : index
    %c0_310 = arith.constant 0 : index
    %c0_311 = arith.constant 0 : index
    %477 = vector.load %arg11[%c3_309, %c0_310, %c0_311] : memref<4x32x64xbf16, #tpu.memory_space<vmem>>, vector<1x32x64xbf16>
    %478 = vector.shape_cast %477 : vector<1x32x64xbf16> to vector<32x64xbf16>
    %479 = arith.truncf %476 : vector<16x32xf32> to vector<16x32xbf16>
    %cst_312 = arith.constant dense<0.000000e+00> : vector<16x64xf32>
    %480 = tpu.matmul %479, %478, %cst_312 {dimension_numbers = #tpu.dot_dimension_numbers<[1], [0], [0], [1], [0, 0, 1, 1], [], []>} : vector<16x32xbf16>, vector<32x64xbf16>, vector<16x64xf32> -> vector<16x64xf32>
    %481 = arith.addf %472, %480 : vector<16x64xf32>
    %c0_313 = arith.constant 0 : index
    %c0_314 = arith.constant 0 : index
    %c0_315 = arith.constant 0 : index
    %482 = vector.load %arg18[%c0_313, %c0_314, %c0_315] : memref<24x1x64xf32, #tpu.memory_space<vmem>>, vector<1x1x64xf32>
    %483 = vector.shape_cast %482 : vector<1x1x64xf32> to vector<1x64xf32>
    %484 = vector.broadcast %483 : vector<1x64xf32> to vector<16x64xf32>
    %485 = arith.addf %481, %484 : vector<16x64xf32>
    %c1_316 = arith.constant 1 : index
    %c0_317 = arith.constant 0 : index
    %c0_318 = arith.constant 0 : index
    %486 = vector.load %arg18[%c1_316, %c0_317, %c0_318] : memref<24x1x64xf32, #tpu.memory_space<vmem>>, vector<1x1x64xf32>
    %487 = vector.shape_cast %486 : vector<1x1x64xf32> to vector<1x64xf32>
    %c2_319 = arith.constant 2 : index
    %c0_320 = arith.constant 0 : index
    %c0_321 = arith.constant 0 : index
    %488 = vector.load %arg18[%c2_319, %c0_320, %c0_321] : memref<24x1x64xf32, #tpu.memory_space<vmem>>, vector<1x1x64xf32>
    %489 = vector.shape_cast %488 : vector<1x1x64xf32> to vector<1x64xf32>
    %cst_322 = arith.constant dense<0.000000e+00> : vector<16xf32>
    %490 = vector.multi_reduction <add>, %485, %cst_322 [1] : vector<16x64xf32> to vector<16xf32>
    %491 = vector.shape_cast %490 : vector<16xf32> to vector<16x1xf32>
    %cst_323 = arith.constant 6.400000e+01 : f32
    %492 = vector.broadcast %cst_323 : f32 to vector<16x1xf32>
    %493 = arith.divf %491, %492 : vector<16x1xf32>
    %494 = vector.broadcast %493 : vector<16x1xf32> to vector<16x64xf32>
    %495 = arith.subf %485, %494 : vector<16x64xf32>
    %496 = arith.mulf %495, %495 : vector<16x64xf32>
    %cst_324 = arith.constant dense<0.000000e+00> : vector<16xf32>
    %497 = vector.multi_reduction <add>, %496, %cst_324 [1] : vector<16x64xf32> to vector<16xf32>
    %498 = vector.shape_cast %497 : vector<16xf32> to vector<16x1xf32>
    %cst_325 = arith.constant 6.400000e+01 : f32
    %499 = vector.broadcast %cst_325 : f32 to vector<16x1xf32>
    %500 = arith.divf %498, %499 : vector<16x1xf32>
    %cst_326 = arith.constant 9.99999974E-6 : f32
    %501 = vector.broadcast %cst_326 : f32 to vector<16x1xf32>
    %502 = arith.addf %500, %501 : vector<16x1xf32>
    %503 = math.rsqrt %502 : vector<16x1xf32>
    %504 = vector.broadcast %503 : vector<16x1xf32> to vector<16x64xf32>
    %505 = arith.mulf %495, %504 : vector<16x64xf32>
    %506 = vector.broadcast %487 : vector<1x64xf32> to vector<16x64xf32>
    %507 = arith.mulf %505, %506 : vector<16x64xf32>
    %508 = vector.broadcast %489 : vector<1x64xf32> to vector<16x64xf32>
    %509 = arith.addf %507, %508 : vector<16x64xf32>
    %c3_327 = arith.constant 3 : index
    %c0_328 = arith.constant 0 : index
    %c0_329 = arith.constant 0 : index
    %510 = vector.load %arg18[%c3_327, %c0_328, %c0_329] : memref<24x1x64xf32, #tpu.memory_space<vmem>>, vector<1x1x64xf32>
    %511 = vector.shape_cast %510 : vector<1x1x64xf32> to vector<1x64xf32>
    %c4_330 = arith.constant 4 : index
    %c0_331 = arith.constant 0 : index
    %c0_332 = arith.constant 0 : index
    %512 = vector.load %arg18[%c4_330, %c0_331, %c0_332] : memref<24x1x64xf32, #tpu.memory_space<vmem>>, vector<1x1x64xf32>
    %513 = vector.shape_cast %512 : vector<1x1x64xf32> to vector<1x64xf32>
    %cst_333 = arith.constant dense<0.000000e+00> : vector<16xf32>
    %514 = vector.multi_reduction <add>, %509, %cst_333 [1] : vector<16x64xf32> to vector<16xf32>
    %515 = vector.shape_cast %514 : vector<16xf32> to vector<16x1xf32>
    %cst_334 = arith.constant 6.400000e+01 : f32
    %516 = vector.broadcast %cst_334 : f32 to vector<16x1xf32>
    %517 = arith.divf %515, %516 : vector<16x1xf32>
    %518 = vector.broadcast %517 : vector<16x1xf32> to vector<16x64xf32>
    %519 = arith.subf %509, %518 : vector<16x64xf32>
    %520 = arith.mulf %519, %519 : vector<16x64xf32>
    %cst_335 = arith.constant dense<0.000000e+00> : vector<16xf32>
    %521 = vector.multi_reduction <add>, %520, %cst_335 [1] : vector<16x64xf32> to vector<16xf32>
    %522 = vector.shape_cast %521 : vector<16xf32> to vector<16x1xf32>
    %cst_336 = arith.constant 6.400000e+01 : f32
    %523 = vector.broadcast %cst_336 : f32 to vector<16x1xf32>
    %524 = arith.divf %522, %523 : vector<16x1xf32>
    %cst_337 = arith.constant 9.99999997E-7 : f32
    %525 = vector.broadcast %cst_337 : f32 to vector<16x1xf32>
    %526 = arith.addf %524, %525 : vector<16x1xf32>
    %527 = math.rsqrt %526 : vector<16x1xf32>
    %528 = vector.broadcast %527 : vector<16x1xf32> to vector<16x64xf32>
    %529 = arith.mulf %519, %528 : vector<16x64xf32>
    %530 = vector.broadcast %511 : vector<1x64xf32> to vector<16x64xf32>
    %531 = arith.mulf %529, %530 : vector<16x64xf32>
    %532 = vector.broadcast %513 : vector<1x64xf32> to vector<16x64xf32>
    %533 = arith.addf %531, %532 : vector<16x64xf32>
    %c0_338 = arith.constant 0 : index
    %c0_339 = arith.constant 0 : index
    %c0_340 = arith.constant 0 : index
    %534 = vector.load %arg14[%c0_338, %c0_339, %c0_340] : memref<4x4x16xbf16, #tpu.memory_space<vmem>>, vector<1x4x16xbf16>
    %535 = vector.shape_cast %534 : vector<1x4x16xbf16> to vector<4x16xbf16>
    %536 = arith.truncf %533 : vector<16x64xf32> to vector<16x64xbf16>
    %cst_341 = arith.constant dense<0.000000e+00> : vector<4x64xf32>
    %537 = tpu.matmul %535, %536, %cst_341 {dimension_numbers = #tpu.dot_dimension_numbers<[1], [0], [0], [1], [0, 0, 1, 1], [], []>} : vector<4x16xbf16>, vector<16x64xbf16>, vector<4x64xf32> -> vector<4x64xf32>
    %c0_342 = arith.constant 0 : index
    %c0_343 = arith.constant 0 : index
    %c0_344 = arith.constant 0 : index
    %538 = vector.load %arg13[%c0_342, %c0_343, %c0_344] : memref<4x64x64xbf16, #tpu.memory_space<vmem>>, vector<1x64x64xbf16>
    %539 = vector.shape_cast %538 : vector<1x64x64xbf16> to vector<64x64xbf16>
    %540 = arith.truncf %537 : vector<4x64xf32> to vector<4x64xbf16>
    %cst_345 = arith.constant dense<0.000000e+00> : vector<4x64xf32>
    %541 = tpu.matmul %540, %539, %cst_345 {dimension_numbers = #tpu.dot_dimension_numbers<[1], [0], [0], [1], [0, 0, 1, 1], [], []>} : vector<4x64xbf16>, vector<64x64xbf16>, vector<4x64xf32> -> vector<4x64xf32>
    %c1_346 = arith.constant 1 : index
    %c0_347 = arith.constant 0 : index
    %c0_348 = arith.constant 0 : index
    %542 = vector.load %arg14[%c1_346, %c0_347, %c0_348] : memref<4x4x16xbf16, #tpu.memory_space<vmem>>, vector<1x4x16xbf16>
    %543 = vector.shape_cast %542 : vector<1x4x16xbf16> to vector<4x16xbf16>
    %544 = arith.truncf %533 : vector<16x64xf32> to vector<16x64xbf16>
    %cst_349 = arith.constant dense<0.000000e+00> : vector<4x64xf32>
    %545 = tpu.matmul %543, %544, %cst_349 {dimension_numbers = #tpu.dot_dimension_numbers<[1], [0], [0], [1], [0, 0, 1, 1], [], []>} : vector<4x16xbf16>, vector<16x64xbf16>, vector<4x64xf32> -> vector<4x64xf32>
    %c1_350 = arith.constant 1 : index
    %c0_351 = arith.constant 0 : index
    %c0_352 = arith.constant 0 : index
    %546 = vector.load %arg13[%c1_350, %c0_351, %c0_352] : memref<4x64x64xbf16, #tpu.memory_space<vmem>>, vector<1x64x64xbf16>
    %547 = vector.shape_cast %546 : vector<1x64x64xbf16> to vector<64x64xbf16>
    %548 = arith.truncf %545 : vector<4x64xf32> to vector<4x64xbf16>
    %cst_353 = arith.constant dense<0.000000e+00> : vector<4x64xf32>
    %549 = tpu.matmul %548, %547, %cst_353 {dimension_numbers = #tpu.dot_dimension_numbers<[1], [0], [0], [1], [0, 0, 1, 1], [], []>} : vector<4x64xbf16>, vector<64x64xbf16>, vector<4x64xf32> -> vector<4x64xf32>
    %550 = arith.addf %541, %549 : vector<4x64xf32>
    %c2_354 = arith.constant 2 : index
    %c0_355 = arith.constant 0 : index
    %c0_356 = arith.constant 0 : index
    %551 = vector.load %arg14[%c2_354, %c0_355, %c0_356] : memref<4x4x16xbf16, #tpu.memory_space<vmem>>, vector<1x4x16xbf16>
    %552 = vector.shape_cast %551 : vector<1x4x16xbf16> to vector<4x16xbf16>
    %553 = arith.truncf %533 : vector<16x64xf32> to vector<16x64xbf16>
    %cst_357 = arith.constant dense<0.000000e+00> : vector<4x64xf32>
    %554 = tpu.matmul %552, %553, %cst_357 {dimension_numbers = #tpu.dot_dimension_numbers<[1], [0], [0], [1], [0, 0, 1, 1], [], []>} : vector<4x16xbf16>, vector<16x64xbf16>, vector<4x64xf32> -> vector<4x64xf32>
    %c2_358 = arith.constant 2 : index
    %c0_359 = arith.constant 0 : index
    %c0_360 = arith.constant 0 : index
    %555 = vector.load %arg13[%c2_358, %c0_359, %c0_360] : memref<4x64x64xbf16, #tpu.memory_space<vmem>>, vector<1x64x64xbf16>
    %556 = vector.shape_cast %555 : vector<1x64x64xbf16> to vector<64x64xbf16>
    %557 = arith.truncf %554 : vector<4x64xf32> to vector<4x64xbf16>
    %cst_361 = arith.constant dense<0.000000e+00> : vector<4x64xf32>
    %558 = tpu.matmul %557, %556, %cst_361 {dimension_numbers = #tpu.dot_dimension_numbers<[1], [0], [0], [1], [0, 0, 1, 1], [], []>} : vector<4x64xbf16>, vector<64x64xbf16>, vector<4x64xf32> -> vector<4x64xf32>
    %559 = arith.addf %550, %558 : vector<4x64xf32>
    %c3_362 = arith.constant 3 : index
    %c0_363 = arith.constant 0 : index
    %c0_364 = arith.constant 0 : index
    %560 = vector.load %arg14[%c3_362, %c0_363, %c0_364] : memref<4x4x16xbf16, #tpu.memory_space<vmem>>, vector<1x4x16xbf16>
    %561 = vector.shape_cast %560 : vector<1x4x16xbf16> to vector<4x16xbf16>
    %562 = arith.truncf %533 : vector<16x64xf32> to vector<16x64xbf16>
    %cst_365 = arith.constant dense<0.000000e+00> : vector<4x64xf32>
    %563 = tpu.matmul %561, %562, %cst_365 {dimension_numbers = #tpu.dot_dimension_numbers<[1], [0], [0], [1], [0, 0, 1, 1], [], []>} : vector<4x16xbf16>, vector<16x64xbf16>, vector<4x64xf32> -> vector<4x64xf32>
    %c3_366 = arith.constant 3 : index
    %c0_367 = arith.constant 0 : index
    %c0_368 = arith.constant 0 : index
    %564 = vector.load %arg13[%c3_366, %c0_367, %c0_368] : memref<4x64x64xbf16, #tpu.memory_space<vmem>>, vector<1x64x64xbf16>
    %565 = vector.shape_cast %564 : vector<1x64x64xbf16> to vector<64x64xbf16>
    %566 = arith.truncf %563 : vector<4x64xf32> to vector<4x64xbf16>
    %cst_369 = arith.constant dense<0.000000e+00> : vector<4x64xf32>
    %567 = tpu.matmul %566, %565, %cst_369 {dimension_numbers = #tpu.dot_dimension_numbers<[1], [0], [0], [1], [0, 0, 1, 1], [], []>} : vector<4x64xbf16>, vector<64x64xbf16>, vector<4x64xf32> -> vector<4x64xf32>
    %568 = arith.addf %559, %567 : vector<4x64xf32>
    %c21_370 = arith.constant 21 : index
    %c0_371 = arith.constant 0 : index
    %c0_372 = arith.constant 0 : index
    %569 = vector.load %arg18[%c21_370, %c0_371, %c0_372] : memref<24x1x64xf32, #tpu.memory_space<vmem>>, vector<1x1x64xf32>
    %570 = vector.shape_cast %569 : vector<1x1x64xf32> to vector<1x64xf32>
    %571 = vector.broadcast %570 : vector<1x64xf32> to vector<4x64xf32>
    %572 = arith.addf %568, %571 : vector<4x64xf32>
    %c22_373 = arith.constant 22 : index
    %c0_374 = arith.constant 0 : index
    %c0_375 = arith.constant 0 : index
    %573 = vector.load %arg18[%c22_373, %c0_374, %c0_375] : memref<24x1x64xf32, #tpu.memory_space<vmem>>, vector<1x1x64xf32>
    %574 = vector.shape_cast %573 : vector<1x1x64xf32> to vector<1x64xf32>
    %c23_376 = arith.constant 23 : index
    %c0_377 = arith.constant 0 : index
    %c0_378 = arith.constant 0 : index
    %575 = vector.load %arg18[%c23_376, %c0_377, %c0_378] : memref<24x1x64xf32, #tpu.memory_space<vmem>>, vector<1x1x64xf32>
    %576 = vector.shape_cast %575 : vector<1x1x64xf32> to vector<1x64xf32>
    %cst_379 = arith.constant dense<0.000000e+00> : vector<4xf32>
    %577 = vector.multi_reduction <add>, %572, %cst_379 [1] : vector<4x64xf32> to vector<4xf32>
    %578 = vector.shape_cast %577 : vector<4xf32> to vector<4x1xf32>
    %cst_380 = arith.constant 6.400000e+01 : f32
    %579 = vector.broadcast %cst_380 : f32 to vector<4x1xf32>
    %580 = arith.divf %578, %579 : vector<4x1xf32>
    %581 = vector.broadcast %580 : vector<4x1xf32> to vector<4x64xf32>
    %582 = arith.subf %572, %581 : vector<4x64xf32>
    %583 = arith.mulf %582, %582 : vector<4x64xf32>
    %cst_381 = arith.constant dense<0.000000e+00> : vector<4xf32>
    %584 = vector.multi_reduction <add>, %583, %cst_381 [1] : vector<4x64xf32> to vector<4xf32>
    %585 = vector.shape_cast %584 : vector<4xf32> to vector<4x1xf32>
    %cst_382 = arith.constant 6.400000e+01 : f32
    %586 = vector.broadcast %cst_382 : f32 to vector<4x1xf32>
    %587 = arith.divf %585, %586 : vector<4x1xf32>
    %cst_383 = arith.constant 9.99999974E-6 : f32
    %588 = vector.broadcast %cst_383 : f32 to vector<4x1xf32>
    %589 = arith.addf %587, %588 : vector<4x1xf32>
    %590 = math.rsqrt %589 : vector<4x1xf32>
    %591 = vector.broadcast %590 : vector<4x1xf32> to vector<4x64xf32>
    %592 = arith.mulf %582, %591 : vector<4x64xf32>
    %593 = vector.broadcast %574 : vector<1x64xf32> to vector<4x64xf32>
    %594 = arith.mulf %592, %593 : vector<4x64xf32>
    %595 = vector.broadcast %576 : vector<1x64xf32> to vector<4x64xf32>
    %596 = arith.addf %594, %595 : vector<4x64xf32>
    %c0_384 = arith.constant 0 : index
    %c0_385 = arith.constant 0 : index
    %c0_386 = arith.constant 0 : index
    %597 = vector.load %arg12[%c0_384, %c0_385, %c0_386] : memref<4x64x64xbf16, #tpu.memory_space<vmem>>, vector<1x64x64xbf16>
    %598 = vector.shape_cast %597 : vector<1x64x64xbf16> to vector<64x64xbf16>
    %599 = arith.truncf %533 : vector<16x64xf32> to vector<16x64xbf16>
    %cst_387 = arith.constant dense<0.000000e+00> : vector<16x64xf32>
    %600 = tpu.matmul %599, %598, %cst_387 {dimension_numbers = #tpu.dot_dimension_numbers<[1], [0], [0], [1], [0, 0, 1, 1], [], []>} : vector<16x64xbf16>, vector<64x64xbf16>, vector<16x64xf32> -> vector<16x64xf32>
    %c5_388 = arith.constant 5 : index
    %c0_389 = arith.constant 0 : index
    %c0_390 = arith.constant 0 : index
    %601 = vector.load %arg18[%c5_388, %c0_389, %c0_390] : memref<24x1x64xf32, #tpu.memory_space<vmem>>, vector<1x1x64xf32>
    %602 = vector.shape_cast %601 : vector<1x1x64xf32> to vector<1x64xf32>
    %603 = vector.broadcast %602 : vector<1x64xf32> to vector<16x64xf32>
    %604 = arith.addf %600, %603 : vector<16x64xf32>
    %c1_391 = arith.constant 1 : index
    %c0_392 = arith.constant 0 : index
    %c0_393 = arith.constant 0 : index
    %605 = vector.load %arg12[%c1_391, %c0_392, %c0_393] : memref<4x64x64xbf16, #tpu.memory_space<vmem>>, vector<1x64x64xbf16>
    %606 = vector.shape_cast %605 : vector<1x64x64xbf16> to vector<64x64xbf16>
    %607 = arith.truncf %596 : vector<4x64xf32> to vector<4x64xbf16>
    %cst_394 = arith.constant dense<0.000000e+00> : vector<4x64xf32>
    %608 = tpu.matmul %607, %606, %cst_394 {dimension_numbers = #tpu.dot_dimension_numbers<[1], [0], [0], [1], [0, 0, 1, 1], [], []>} : vector<4x64xbf16>, vector<64x64xbf16>, vector<4x64xf32> -> vector<4x64xf32>
    %c6_395 = arith.constant 6 : index
    %c0_396 = arith.constant 0 : index
    %c0_397 = arith.constant 0 : index
    %609 = vector.load %arg18[%c6_395, %c0_396, %c0_397] : memref<24x1x64xf32, #tpu.memory_space<vmem>>, vector<1x1x64xf32>
    %610 = vector.shape_cast %609 : vector<1x1x64xf32> to vector<1x64xf32>
    %611 = vector.broadcast %610 : vector<1x64xf32> to vector<4x64xf32>
    %612 = arith.addf %608, %611 : vector<4x64xf32>
    %c2_398 = arith.constant 2 : index
    %c0_399 = arith.constant 0 : index
    %c0_400 = arith.constant 0 : index
    %613 = vector.load %arg12[%c2_398, %c0_399, %c0_400] : memref<4x64x64xbf16, #tpu.memory_space<vmem>>, vector<1x64x64xbf16>
    %614 = vector.shape_cast %613 : vector<1x64x64xbf16> to vector<64x64xbf16>
    %615 = arith.truncf %596 : vector<4x64xf32> to vector<4x64xbf16>
    %cst_401 = arith.constant dense<0.000000e+00> : vector<4x64xf32>
    %616 = tpu.matmul %615, %614, %cst_401 {dimension_numbers = #tpu.dot_dimension_numbers<[1], [0], [0], [1], [0, 0, 1, 1], [], []>} : vector<4x64xbf16>, vector<64x64xbf16>, vector<4x64xf32> -> vector<4x64xf32>
    %c7_402 = arith.constant 7 : index
    %c0_403 = arith.constant 0 : index
    %c0_404 = arith.constant 0 : index
    %617 = vector.load %arg18[%c7_402, %c0_403, %c0_404] : memref<24x1x64xf32, #tpu.memory_space<vmem>>, vector<1x1x64xf32>
    %618 = vector.shape_cast %617 : vector<1x1x64xf32> to vector<1x64xf32>
    %619 = vector.broadcast %618 : vector<1x64xf32> to vector<4x64xf32>
    %620 = arith.addf %616, %619 : vector<4x64xf32>
    %621 = vector.extract_strided_slice %604 {offsets = [0, 0], sizes = [16, 32], strides = [1, 1]} : vector<16x64xf32> to vector<16x32xf32>
    %622 = vector.extract_strided_slice %612 {offsets = [0, 0], sizes = [4, 32], strides = [1, 1]} : vector<4x64xf32> to vector<4x32xf32>
    %623 = arith.truncf %621 : vector<16x32xf32> to vector<16x32xbf16>
    %624 = arith.truncf %622 : vector<4x32xf32> to vector<4x32xbf16>
    %cst_405 = arith.constant dense<0.000000e+00> : vector<16x4xf32>
    %625 = tpu.matmul %623, %624, %cst_405 {dimension_numbers = #tpu.dot_dimension_numbers<[1], [1], [0], [0], [0, 0, 1, 0], [], []>} : vector<16x32xbf16>, vector<4x32xbf16>, vector<16x4xf32> -> vector<16x4xf32>
    %cst_406 = arith.constant 0.176776692 : f32
    %626 = vector.broadcast %cst_406 : f32 to vector<16x4xf32>
    %627 = arith.mulf %625, %626 : vector<16x4xf32>
    %cst_407 = arith.constant dense<0xFF800000> : vector<16xf32>
    %628 = vector.multi_reduction <maximumf>, %627, %cst_407 [1] : vector<16x4xf32> to vector<16xf32>
    %629 = vector.shape_cast %628 : vector<16xf32> to vector<16x1xf32>
    %630 = vector.broadcast %629 : vector<16x1xf32> to vector<16x4xf32>
    %631 = arith.subf %627, %630 : vector<16x4xf32>
    %632 = math.exp %631 : vector<16x4xf32>
    %cst_408 = arith.constant dense<0.000000e+00> : vector<16xf32>
    %633 = vector.multi_reduction <add>, %632, %cst_408 [1] : vector<16x4xf32> to vector<16xf32>
    %634 = vector.shape_cast %633 : vector<16xf32> to vector<16x1xf32>
    %635 = tpu.reciprocal %634 {approx = true} : vector<16x1xf32> -> vector<16x1xf32>
    %636 = vector.broadcast %635 : vector<16x1xf32> to vector<16x4xf32>
    %637 = arith.mulf %632, %636 : vector<16x4xf32>
    %638 = vector.extract_strided_slice %620 {offsets = [0, 0], sizes = [4, 32], strides = [1, 1]} : vector<4x64xf32> to vector<4x32xf32>
    %639 = arith.truncf %637 : vector<16x4xf32> to vector<16x4xbf16>
    %640 = arith.truncf %638 : vector<4x32xf32> to vector<4x32xbf16>
    %cst_409 = arith.constant dense<0.000000e+00> : vector<16x32xf32>
    %641 = tpu.matmul %639, %640, %cst_409 {dimension_numbers = #tpu.dot_dimension_numbers<[1], [0], [0], [1], [0, 0, 1, 1], [], []>} : vector<16x4xbf16>, vector<4x32xbf16>, vector<16x32xf32> -> vector<16x32xf32>
    %642 = vector.extract_strided_slice %604 {offsets = [0, 32], sizes = [16, 32], strides = [1, 1]} : vector<16x64xf32> to vector<16x32xf32>
    %643 = vector.extract_strided_slice %612 {offsets = [0, 32], sizes = [4, 32], strides = [1, 1]} : vector<4x64xf32> to vector<4x32xf32>
    %644 = arith.truncf %642 : vector<16x32xf32> to vector<16x32xbf16>
    %645 = arith.truncf %643 : vector<4x32xf32> to vector<4x32xbf16>
    %cst_410 = arith.constant dense<0.000000e+00> : vector<16x4xf32>
    %646 = tpu.matmul %644, %645, %cst_410 {dimension_numbers = #tpu.dot_dimension_numbers<[1], [1], [0], [0], [0, 0, 1, 0], [], []>} : vector<16x32xbf16>, vector<4x32xbf16>, vector<16x4xf32> -> vector<16x4xf32>
    %cst_411 = arith.constant 0.176776692 : f32
    %647 = vector.broadcast %cst_411 : f32 to vector<16x4xf32>
    %648 = arith.mulf %646, %647 : vector<16x4xf32>
    %cst_412 = arith.constant dense<0xFF800000> : vector<16xf32>
    %649 = vector.multi_reduction <maximumf>, %648, %cst_412 [1] : vector<16x4xf32> to vector<16xf32>
    %650 = vector.shape_cast %649 : vector<16xf32> to vector<16x1xf32>
    %651 = vector.broadcast %650 : vector<16x1xf32> to vector<16x4xf32>
    %652 = arith.subf %648, %651 : vector<16x4xf32>
    %653 = math.exp %652 : vector<16x4xf32>
    %cst_413 = arith.constant dense<0.000000e+00> : vector<16xf32>
    %654 = vector.multi_reduction <add>, %653, %cst_413 [1] : vector<16x4xf32> to vector<16xf32>
    %655 = vector.shape_cast %654 : vector<16xf32> to vector<16x1xf32>
    %656 = tpu.reciprocal %655 {approx = true} : vector<16x1xf32> -> vector<16x1xf32>
    %657 = vector.broadcast %656 : vector<16x1xf32> to vector<16x4xf32>
    %658 = arith.mulf %653, %657 : vector<16x4xf32>
    %659 = vector.extract_strided_slice %620 {offsets = [0, 32], sizes = [4, 32], strides = [1, 1]} : vector<4x64xf32> to vector<4x32xf32>
    %660 = arith.truncf %658 : vector<16x4xf32> to vector<16x4xbf16>
    %661 = arith.truncf %659 : vector<4x32xf32> to vector<4x32xbf16>
    %cst_414 = arith.constant dense<0.000000e+00> : vector<16x32xf32>
    %662 = tpu.matmul %660, %661, %cst_414 {dimension_numbers = #tpu.dot_dimension_numbers<[1], [0], [0], [1], [0, 0, 1, 1], [], []>} : vector<16x4xbf16>, vector<4x32xbf16>, vector<16x32xf32> -> vector<16x32xf32>
    %663 = tpu.concatenate %641, %662 in 1 : vector<16x32xf32>, vector<16x32xf32> -> vector<16x64xf32>
    %c3_415 = arith.constant 3 : index
    %c0_416 = arith.constant 0 : index
    %c0_417 = arith.constant 0 : index
    %664 = vector.load %arg12[%c3_415, %c0_416, %c0_417] : memref<4x64x64xbf16, #tpu.memory_space<vmem>>, vector<1x64x64xbf16>
    %665 = vector.shape_cast %664 : vector<1x64x64xbf16> to vector<64x64xbf16>
    %666 = arith.truncf %663 : vector<16x64xf32> to vector<16x64xbf16>
    %cst_418 = arith.constant dense<0.000000e+00> : vector<16x64xf32>
    %667 = tpu.matmul %666, %665, %cst_418 {dimension_numbers = #tpu.dot_dimension_numbers<[1], [0], [0], [1], [0, 0, 1, 1], [], []>} : vector<16x64xbf16>, vector<64x64xbf16>, vector<16x64xf32> -> vector<16x64xf32>
    %668 = arith.addf %509, %667 : vector<16x64xf32>
    %c8_419 = arith.constant 8 : index
    %c0_420 = arith.constant 0 : index
    %c0_421 = arith.constant 0 : index
    %669 = vector.load %arg18[%c8_419, %c0_420, %c0_421] : memref<24x1x64xf32, #tpu.memory_space<vmem>>, vector<1x1x64xf32>
    %670 = vector.shape_cast %669 : vector<1x1x64xf32> to vector<1x64xf32>
    %671 = vector.broadcast %670 : vector<1x64xf32> to vector<16x64xf32>
    %672 = arith.addf %668, %671 : vector<16x64xf32>
    %c9_422 = arith.constant 9 : index
    %c0_423 = arith.constant 0 : index
    %c0_424 = arith.constant 0 : index
    %673 = vector.load %arg18[%c9_422, %c0_423, %c0_424] : memref<24x1x64xf32, #tpu.memory_space<vmem>>, vector<1x1x64xf32>
    %674 = vector.shape_cast %673 : vector<1x1x64xf32> to vector<1x64xf32>
    %c10_425 = arith.constant 10 : index
    %c0_426 = arith.constant 0 : index
    %c0_427 = arith.constant 0 : index
    %675 = vector.load %arg18[%c10_425, %c0_426, %c0_427] : memref<24x1x64xf32, #tpu.memory_space<vmem>>, vector<1x1x64xf32>
    %676 = vector.shape_cast %675 : vector<1x1x64xf32> to vector<1x64xf32>
    %cst_428 = arith.constant dense<0.000000e+00> : vector<16xf32>
    %677 = vector.multi_reduction <add>, %672, %cst_428 [1] : vector<16x64xf32> to vector<16xf32>
    %678 = vector.shape_cast %677 : vector<16xf32> to vector<16x1xf32>
    %cst_429 = arith.constant 6.400000e+01 : f32
    %679 = vector.broadcast %cst_429 : f32 to vector<16x1xf32>
    %680 = arith.divf %678, %679 : vector<16x1xf32>
    %681 = vector.broadcast %680 : vector<16x1xf32> to vector<16x64xf32>
    %682 = arith.subf %672, %681 : vector<16x64xf32>
    %683 = arith.mulf %682, %682 : vector<16x64xf32>
    %cst_430 = arith.constant dense<0.000000e+00> : vector<16xf32>
    %684 = vector.multi_reduction <add>, %683, %cst_430 [1] : vector<16x64xf32> to vector<16xf32>
    %685 = vector.shape_cast %684 : vector<16xf32> to vector<16x1xf32>
    %cst_431 = arith.constant 6.400000e+01 : f32
    %686 = vector.broadcast %cst_431 : f32 to vector<16x1xf32>
    %687 = arith.divf %685, %686 : vector<16x1xf32>
    %cst_432 = arith.constant 9.99999997E-7 : f32
    %688 = vector.broadcast %cst_432 : f32 to vector<16x1xf32>
    %689 = arith.addf %687, %688 : vector<16x1xf32>
    %690 = math.rsqrt %689 : vector<16x1xf32>
    %691 = vector.broadcast %690 : vector<16x1xf32> to vector<16x64xf32>
    %692 = arith.mulf %682, %691 : vector<16x64xf32>
    %693 = vector.broadcast %674 : vector<1x64xf32> to vector<16x64xf32>
    %694 = arith.mulf %692, %693 : vector<16x64xf32>
    %695 = vector.broadcast %676 : vector<1x64xf32> to vector<16x64xf32>
    %696 = arith.addf %694, %695 : vector<16x64xf32>
    %c0_433 = arith.constant 0 : index
    %c0_434 = arith.constant 0 : index
    %697 = vector.load %arg15[%c0_433, %c0_434] : memref<65x256xbf16, #tpu.memory_space<vmem>>, vector<65x256xbf16>
    %c0_435 = arith.constant 0 : index
    %c0_436 = arith.constant 0 : index
    %698 = vector.load %arg16[%c0_435, %c0_436] : memref<257x64xbf16, #tpu.memory_space<vmem>>, vector<257x64xbf16>
    %699 = vector.extract_strided_slice %697 {offsets = [0, 0], sizes = [64, 256], strides = [1, 1]} : vector<65x256xbf16> to vector<64x256xbf16>
    %700 = arith.truncf %696 : vector<16x64xf32> to vector<16x64xbf16>
    %cst_437 = arith.constant dense<0.000000e+00> : vector<16x256xf32>
    %701 = tpu.matmul %700, %699, %cst_437 {dimension_numbers = #tpu.dot_dimension_numbers<[1], [0], [0], [1], [0, 0, 1, 1], [], []>} : vector<16x64xbf16>, vector<64x256xbf16>, vector<16x256xf32> -> vector<16x256xf32>
    %702 = vector.extract_strided_slice %697 {offsets = [64, 0], sizes = [1, 256], strides = [1, 1]} : vector<65x256xbf16> to vector<1x256xbf16>
    %703 = arith.extf %702 : vector<1x256xbf16> to vector<1x256xf32>
    %704 = vector.broadcast %703 : vector<1x256xf32> to vector<16x256xf32>
    %705 = arith.addf %701, %704 : vector<16x256xf32>
    %cst_438 = arith.constant 0.707106769 : f32
    %706 = vector.broadcast %cst_438 : f32 to vector<16x256xf32>
    %707 = arith.mulf %705, %706 : vector<16x256xf32>
    %708 = math.absf %707 : vector<16x256xf32>
    %cst_439 = arith.constant 0.327591091 : f32
    %709 = vector.broadcast %cst_439 : f32 to vector<16x256xf32>
    %710 = arith.mulf %709, %708 : vector<16x256xf32>
    %cst_440 = arith.constant 1.000000e+00 : f32
    %711 = vector.broadcast %cst_440 : f32 to vector<16x256xf32>
    %712 = arith.addf %711, %710 : vector<16x256xf32>
    %713 = tpu.reciprocal %712 {approx = true} : vector<16x256xf32> -> vector<16x256xf32>
    %cst_441 = arith.constant 1.06140542 : f32
    %714 = vector.broadcast %cst_441 : f32 to vector<16x256xf32>
    %715 = arith.mulf %713, %714 : vector<16x256xf32>
    %cst_442 = arith.constant -1.45315206 : f32
    %716 = vector.broadcast %cst_442 : f32 to vector<16x256xf32>
    %717 = arith.addf %716, %715 : vector<16x256xf32>
    %718 = arith.mulf %713, %717 : vector<16x256xf32>
    %cst_443 = arith.constant 1.42141378 : f32
    %719 = vector.broadcast %cst_443 : f32 to vector<16x256xf32>
    %720 = arith.addf %719, %718 : vector<16x256xf32>
    %721 = arith.mulf %713, %720 : vector<16x256xf32>
    %cst_444 = arith.constant -0.284496725 : f32
    %722 = vector.broadcast %cst_444 : f32 to vector<16x256xf32>
    %723 = arith.addf %722, %721 : vector<16x256xf32>
    %724 = arith.mulf %713, %723 : vector<16x256xf32>
    %cst_445 = arith.constant 0.254829586 : f32
    %725 = vector.broadcast %cst_445 : f32 to vector<16x256xf32>
    %726 = arith.addf %725, %724 : vector<16x256xf32>
    %727 = arith.mulf %713, %726 : vector<16x256xf32>
    %cst_446 = arith.constant 0.000000e+00 : f32
    %728 = vector.broadcast %cst_446 : f32 to vector<16x256xf32>
    %729 = arith.subf %728, %708 : vector<16x256xf32>
    %730 = arith.mulf %729, %708 : vector<16x256xf32>
    %731 = math.exp %730 : vector<16x256xf32>
    %732 = arith.mulf %727, %731 : vector<16x256xf32>
    %cst_447 = arith.constant 1.000000e+00 : f32
    %733 = vector.broadcast %cst_447 : f32 to vector<16x256xf32>
    %734 = arith.subf %733, %732 : vector<16x256xf32>
    %cst_448 = arith.constant 0.000000e+00 : f32
    %735 = vector.broadcast %cst_448 : f32 to vector<16x256xf32>
    %736 = arith.cmpf oge, %707, %735 : vector<16x256xf32>
    %cst_449 = arith.constant 0.000000e+00 : f32
    %737 = vector.broadcast %cst_449 : f32 to vector<16x256xf32>
    %738 = arith.subf %737, %734 : vector<16x256xf32>
    %739 = arith.select %736, %734, %738 : vector<16x256xi1>, vector<16x256xf32>
    %cst_450 = arith.constant 5.000000e-01 : f32
    %740 = vector.broadcast %cst_450 : f32 to vector<16x256xf32>
    %741 = arith.mulf %740, %705 : vector<16x256xf32>
    %cst_451 = arith.constant 1.000000e+00 : f32
    %742 = vector.broadcast %cst_451 : f32 to vector<16x256xf32>
    %743 = arith.addf %742, %739 : vector<16x256xf32>
    %744 = arith.mulf %741, %743 : vector<16x256xf32>
    %745 = vector.extract_strided_slice %698 {offsets = [0, 0], sizes = [256, 64], strides = [1, 1]} : vector<257x64xbf16> to vector<256x64xbf16>
    %746 = arith.truncf %744 : vector<16x256xf32> to vector<16x256xbf16>
    %cst_452 = arith.constant dense<0.000000e+00> : vector<16x64xf32>
    %747 = tpu.matmul %746, %745, %cst_452 {dimension_numbers = #tpu.dot_dimension_numbers<[1], [0], [0], [1], [0, 0, 1, 1], [], []>} : vector<16x256xbf16>, vector<256x64xbf16>, vector<16x64xf32> -> vector<16x64xf32>
    %748 = arith.addf %672, %747 : vector<16x64xf32>
    %749 = vector.extract_strided_slice %698 {offsets = [256, 0], sizes = [1, 64], strides = [1, 1]} : vector<257x64xbf16> to vector<1x64xbf16>
    %750 = arith.extf %749 : vector<1x64xbf16> to vector<1x64xf32>
    %751 = vector.broadcast %750 : vector<1x64xf32> to vector<16x64xf32>
    %752 = arith.addf %748, %751 : vector<16x64xf32>
    %c0_453 = arith.constant 0 : index
    %c0_454 = arith.constant 0 : index
    %c0_455 = arith.constant 0 : index
    %753 = vector.load %arg17[%c0_453, %c0_454, %c0_455] : memref<9x16x16xbf16, #tpu.memory_space<vmem>>, vector<1x16x16xbf16>
    %754 = vector.shape_cast %753 : vector<1x16x16xbf16> to vector<16x16xbf16>
    %755 = arith.truncf %752 : vector<16x64xf32> to vector<16x64xbf16>
    %cst_456 = arith.constant dense<0.000000e+00> : vector<16x64xf32>
    %756 = tpu.matmul %754, %755, %cst_456 {dimension_numbers = #tpu.dot_dimension_numbers<[1], [0], [0], [1], [0, 0, 1, 1], [], []>} : vector<16x16xbf16>, vector<16x64xbf16>, vector<16x64xf32> -> vector<16x64xf32>
    %c12_457 = arith.constant 12 : index
    %c0_458 = arith.constant 0 : index
    %c0_459 = arith.constant 0 : index
    %757 = vector.load %arg18[%c12_457, %c0_458, %c0_459] : memref<24x1x64xf32, #tpu.memory_space<vmem>>, vector<1x1x64xf32>
    %758 = vector.shape_cast %757 : vector<1x1x64xf32> to vector<1x64xf32>
    %759 = vector.broadcast %758 : vector<1x64xf32> to vector<16x64xf32>
    %760 = arith.mulf %756, %759 : vector<16x64xf32>
    %c1_460 = arith.constant 1 : index
    %c0_461 = arith.constant 0 : index
    %c0_462 = arith.constant 0 : index
    %761 = vector.load %arg17[%c1_460, %c0_461, %c0_462] : memref<9x16x16xbf16, #tpu.memory_space<vmem>>, vector<1x16x16xbf16>
    %762 = vector.shape_cast %761 : vector<1x16x16xbf16> to vector<16x16xbf16>
    %763 = arith.truncf %752 : vector<16x64xf32> to vector<16x64xbf16>
    %cst_463 = arith.constant dense<0.000000e+00> : vector<16x64xf32>
    %764 = tpu.matmul %762, %763, %cst_463 {dimension_numbers = #tpu.dot_dimension_numbers<[1], [0], [0], [1], [0, 0, 1, 1], [], []>} : vector<16x16xbf16>, vector<16x64xbf16>, vector<16x64xf32> -> vector<16x64xf32>
    %c13_464 = arith.constant 13 : index
    %c0_465 = arith.constant 0 : index
    %c0_466 = arith.constant 0 : index
    %765 = vector.load %arg18[%c13_464, %c0_465, %c0_466] : memref<24x1x64xf32, #tpu.memory_space<vmem>>, vector<1x1x64xf32>
    %766 = vector.shape_cast %765 : vector<1x1x64xf32> to vector<1x64xf32>
    %767 = vector.broadcast %766 : vector<1x64xf32> to vector<16x64xf32>
    %768 = arith.mulf %764, %767 : vector<16x64xf32>
    %769 = arith.addf %760, %768 : vector<16x64xf32>
    %c2_467 = arith.constant 2 : index
    %c0_468 = arith.constant 0 : index
    %c0_469 = arith.constant 0 : index
    %770 = vector.load %arg17[%c2_467, %c0_468, %c0_469] : memref<9x16x16xbf16, #tpu.memory_space<vmem>>, vector<1x16x16xbf16>
    %771 = vector.shape_cast %770 : vector<1x16x16xbf16> to vector<16x16xbf16>
    %772 = arith.truncf %752 : vector<16x64xf32> to vector<16x64xbf16>
    %cst_470 = arith.constant dense<0.000000e+00> : vector<16x64xf32>
    %773 = tpu.matmul %771, %772, %cst_470 {dimension_numbers = #tpu.dot_dimension_numbers<[1], [0], [0], [1], [0, 0, 1, 1], [], []>} : vector<16x16xbf16>, vector<16x64xbf16>, vector<16x64xf32> -> vector<16x64xf32>
    %c14_471 = arith.constant 14 : index
    %c0_472 = arith.constant 0 : index
    %c0_473 = arith.constant 0 : index
    %774 = vector.load %arg18[%c14_471, %c0_472, %c0_473] : memref<24x1x64xf32, #tpu.memory_space<vmem>>, vector<1x1x64xf32>
    %775 = vector.shape_cast %774 : vector<1x1x64xf32> to vector<1x64xf32>
    %776 = vector.broadcast %775 : vector<1x64xf32> to vector<16x64xf32>
    %777 = arith.mulf %773, %776 : vector<16x64xf32>
    %778 = arith.addf %769, %777 : vector<16x64xf32>
    %c3_474 = arith.constant 3 : index
    %c0_475 = arith.constant 0 : index
    %c0_476 = arith.constant 0 : index
    %779 = vector.load %arg17[%c3_474, %c0_475, %c0_476] : memref<9x16x16xbf16, #tpu.memory_space<vmem>>, vector<1x16x16xbf16>
    %780 = vector.shape_cast %779 : vector<1x16x16xbf16> to vector<16x16xbf16>
    %781 = arith.truncf %752 : vector<16x64xf32> to vector<16x64xbf16>
    %cst_477 = arith.constant dense<0.000000e+00> : vector<16x64xf32>
    %782 = tpu.matmul %780, %781, %cst_477 {dimension_numbers = #tpu.dot_dimension_numbers<[1], [0], [0], [1], [0, 0, 1, 1], [], []>} : vector<16x16xbf16>, vector<16x64xbf16>, vector<16x64xf32> -> vector<16x64xf32>
    %c15_478 = arith.constant 15 : index
    %c0_479 = arith.constant 0 : index
    %c0_480 = arith.constant 0 : index
    %783 = vector.load %arg18[%c15_478, %c0_479, %c0_480] : memref<24x1x64xf32, #tpu.memory_space<vmem>>, vector<1x1x64xf32>
    %784 = vector.shape_cast %783 : vector<1x1x64xf32> to vector<1x64xf32>
    %785 = vector.broadcast %784 : vector<1x64xf32> to vector<16x64xf32>
    %786 = arith.mulf %782, %785 : vector<16x64xf32>
    %787 = arith.addf %778, %786 : vector<16x64xf32>
    %c4_481 = arith.constant 4 : index
    %c0_482 = arith.constant 0 : index
    %c0_483 = arith.constant 0 : index
    %788 = vector.load %arg17[%c4_481, %c0_482, %c0_483] : memref<9x16x16xbf16, #tpu.memory_space<vmem>>, vector<1x16x16xbf16>
    %789 = vector.shape_cast %788 : vector<1x16x16xbf16> to vector<16x16xbf16>
    %790 = arith.truncf %752 : vector<16x64xf32> to vector<16x64xbf16>
    %cst_484 = arith.constant dense<0.000000e+00> : vector<16x64xf32>
    %791 = tpu.matmul %789, %790, %cst_484 {dimension_numbers = #tpu.dot_dimension_numbers<[1], [0], [0], [1], [0, 0, 1, 1], [], []>} : vector<16x16xbf16>, vector<16x64xbf16>, vector<16x64xf32> -> vector<16x64xf32>
    %c16_485 = arith.constant 16 : index
    %c0_486 = arith.constant 0 : index
    %c0_487 = arith.constant 0 : index
    %792 = vector.load %arg18[%c16_485, %c0_486, %c0_487] : memref<24x1x64xf32, #tpu.memory_space<vmem>>, vector<1x1x64xf32>
    %793 = vector.shape_cast %792 : vector<1x1x64xf32> to vector<1x64xf32>
    %794 = vector.broadcast %793 : vector<1x64xf32> to vector<16x64xf32>
    %795 = arith.mulf %791, %794 : vector<16x64xf32>
    %796 = arith.addf %787, %795 : vector<16x64xf32>
    %c5_488 = arith.constant 5 : index
    %c0_489 = arith.constant 0 : index
    %c0_490 = arith.constant 0 : index
    %797 = vector.load %arg17[%c5_488, %c0_489, %c0_490] : memref<9x16x16xbf16, #tpu.memory_space<vmem>>, vector<1x16x16xbf16>
    %798 = vector.shape_cast %797 : vector<1x16x16xbf16> to vector<16x16xbf16>
    %799 = arith.truncf %752 : vector<16x64xf32> to vector<16x64xbf16>
    %cst_491 = arith.constant dense<0.000000e+00> : vector<16x64xf32>
    %800 = tpu.matmul %798, %799, %cst_491 {dimension_numbers = #tpu.dot_dimension_numbers<[1], [0], [0], [1], [0, 0, 1, 1], [], []>} : vector<16x16xbf16>, vector<16x64xbf16>, vector<16x64xf32> -> vector<16x64xf32>
    %c17_492 = arith.constant 17 : index
    %c0_493 = arith.constant 0 : index
    %c0_494 = arith.constant 0 : index
    %801 = vector.load %arg18[%c17_492, %c0_493, %c0_494] : memref<24x1x64xf32, #tpu.memory_space<vmem>>, vector<1x1x64xf32>
    %802 = vector.shape_cast %801 : vector<1x1x64xf32> to vector<1x64xf32>
    %803 = vector.broadcast %802 : vector<1x64xf32> to vector<16x64xf32>
    %804 = arith.mulf %800, %803 : vector<16x64xf32>
    %805 = arith.addf %796, %804 : vector<16x64xf32>
    %c6_495 = arith.constant 6 : index
    %c0_496 = arith.constant 0 : index
    %c0_497 = arith.constant 0 : index
    %806 = vector.load %arg17[%c6_495, %c0_496, %c0_497] : memref<9x16x16xbf16, #tpu.memory_space<vmem>>, vector<1x16x16xbf16>
    %807 = vector.shape_cast %806 : vector<1x16x16xbf16> to vector<16x16xbf16>
    %808 = arith.truncf %752 : vector<16x64xf32> to vector<16x64xbf16>
    %cst_498 = arith.constant dense<0.000000e+00> : vector<16x64xf32>
    %809 = tpu.matmul %807, %808, %cst_498 {dimension_numbers = #tpu.dot_dimension_numbers<[1], [0], [0], [1], [0, 0, 1, 1], [], []>} : vector<16x16xbf16>, vector<16x64xbf16>, vector<16x64xf32> -> vector<16x64xf32>
    %c18_499 = arith.constant 18 : index
    %c0_500 = arith.constant 0 : index
    %c0_501 = arith.constant 0 : index
    %810 = vector.load %arg18[%c18_499, %c0_500, %c0_501] : memref<24x1x64xf32, #tpu.memory_space<vmem>>, vector<1x1x64xf32>
    %811 = vector.shape_cast %810 : vector<1x1x64xf32> to vector<1x64xf32>
    %812 = vector.broadcast %811 : vector<1x64xf32> to vector<16x64xf32>
    %813 = arith.mulf %809, %812 : vector<16x64xf32>
    %814 = arith.addf %805, %813 : vector<16x64xf32>
    %c7_502 = arith.constant 7 : index
    %c0_503 = arith.constant 0 : index
    %c0_504 = arith.constant 0 : index
    %815 = vector.load %arg17[%c7_502, %c0_503, %c0_504] : memref<9x16x16xbf16, #tpu.memory_space<vmem>>, vector<1x16x16xbf16>
    %816 = vector.shape_cast %815 : vector<1x16x16xbf16> to vector<16x16xbf16>
    %817 = arith.truncf %752 : vector<16x64xf32> to vector<16x64xbf16>
    %cst_505 = arith.constant dense<0.000000e+00> : vector<16x64xf32>
    %818 = tpu.matmul %816, %817, %cst_505 {dimension_numbers = #tpu.dot_dimension_numbers<[1], [0], [0], [1], [0, 0, 1, 1], [], []>} : vector<16x16xbf16>, vector<16x64xbf16>, vector<16x64xf32> -> vector<16x64xf32>
    %c19_506 = arith.constant 19 : index
    %c0_507 = arith.constant 0 : index
    %c0_508 = arith.constant 0 : index
    %819 = vector.load %arg18[%c19_506, %c0_507, %c0_508] : memref<24x1x64xf32, #tpu.memory_space<vmem>>, vector<1x1x64xf32>
    %820 = vector.shape_cast %819 : vector<1x1x64xf32> to vector<1x64xf32>
    %821 = vector.broadcast %820 : vector<1x64xf32> to vector<16x64xf32>
    %822 = arith.mulf %818, %821 : vector<16x64xf32>
    %823 = arith.addf %814, %822 : vector<16x64xf32>
    %c8_509 = arith.constant 8 : index
    %c0_510 = arith.constant 0 : index
    %c0_511 = arith.constant 0 : index
    %824 = vector.load %arg17[%c8_509, %c0_510, %c0_511] : memref<9x16x16xbf16, #tpu.memory_space<vmem>>, vector<1x16x16xbf16>
    %825 = vector.shape_cast %824 : vector<1x16x16xbf16> to vector<16x16xbf16>
    %826 = arith.truncf %752 : vector<16x64xf32> to vector<16x64xbf16>
    %cst_512 = arith.constant dense<0.000000e+00> : vector<16x64xf32>
    %827 = tpu.matmul %825, %826, %cst_512 {dimension_numbers = #tpu.dot_dimension_numbers<[1], [0], [0], [1], [0, 0, 1, 1], [], []>} : vector<16x16xbf16>, vector<16x64xbf16>, vector<16x64xf32> -> vector<16x64xf32>
    %c20_513 = arith.constant 20 : index
    %c0_514 = arith.constant 0 : index
    %c0_515 = arith.constant 0 : index
    %828 = vector.load %arg18[%c20_513, %c0_514, %c0_515] : memref<24x1x64xf32, #tpu.memory_space<vmem>>, vector<1x1x64xf32>
    %829 = vector.shape_cast %828 : vector<1x1x64xf32> to vector<1x64xf32>
    %830 = vector.broadcast %829 : vector<1x64xf32> to vector<16x64xf32>
    %831 = arith.mulf %827, %830 : vector<16x64xf32>
    %832 = arith.addf %823, %831 : vector<16x64xf32>
    %c11_516 = arith.constant 11 : index
    %c0_517 = arith.constant 0 : index
    %c0_518 = arith.constant 0 : index
    %833 = vector.load %arg18[%c11_516, %c0_517, %c0_518] : memref<24x1x64xf32, #tpu.memory_space<vmem>>, vector<1x1x64xf32>
    %834 = vector.shape_cast %833 : vector<1x1x64xf32> to vector<1x64xf32>
    %835 = vector.broadcast %834 : vector<1x64xf32> to vector<16x64xf32>
    %836 = arith.addf %832, %835 : vector<16x64xf32>
    %c0_519 = arith.constant 0 : index
    %c0_520 = arith.constant 0 : index
    %c0_521 = arith.constant 0 : index
    %837 = vector.load %arg27[%c0_519, %c0_520, %c0_521] : memref<1x16x64xf32, #tpu.memory_space<vmem>>, vector<1x16x64xf32>
    %838 = vector.shape_cast %837 : vector<1x16x64xf32> to vector<16x64xf32>
    %839 = vector.shape_cast %836 : vector<16x64xf32> to vector<1x16x64xf32>
    tpu.vector_store %arg27[%c0_519, %c0_520, %c0_521], %839 {strides = array<i32>} : memref<1x16x64xf32, #tpu.memory_space<vmem>>, vector<1x16x64xf32>,
    %840 = arith.addf %836, %752 : vector<16x64xf32>
    %c0_522 = arith.constant 0 : index
    %c0_523 = arith.constant 0 : index
    %c0_524 = arith.constant 0 : index
    %841 = vector.load %arg19[%c0_522, %c0_523, %c0_524] : memref<4x4x16xbf16, #tpu.memory_space<vmem>>, vector<1x4x16xbf16>
    %842 = vector.shape_cast %841 : vector<1x4x16xbf16> to vector<4x16xbf16>
    %843 = arith.truncf %840 : vector<16x64xf32> to vector<16x64xbf16>
    %cst_525 = arith.constant dense<0.000000e+00> : vector<4x64xf32>
    %844 = tpu.matmul %842, %843, %cst_525 {dimension_numbers = #tpu.dot_dimension_numbers<[1], [0], [0], [1], [0, 0, 1, 1], [], []>} : vector<4x16xbf16>, vector<16x64xbf16>, vector<4x64xf32> -> vector<4x64xf32>
    %c0_526 = arith.constant 0 : index
    %c0_527 = arith.constant 0 : index
    %c0_528 = arith.constant 0 : index
    %845 = vector.load %arg20[%c0_526, %c0_527, %c0_528] : memref<4x64x128xbf16, #tpu.memory_space<vmem>>, vector<1x64x128xbf16>
    %846 = vector.shape_cast %845 : vector<1x64x128xbf16> to vector<64x128xbf16>
    %847 = arith.truncf %844 : vector<4x64xf32> to vector<4x64xbf16>
    %cst_529 = arith.constant dense<0.000000e+00> : vector<4x128xf32>
    %848 = tpu.matmul %847, %846, %cst_529 {dimension_numbers = #tpu.dot_dimension_numbers<[1], [0], [0], [1], [0, 0, 1, 1], [], []>} : vector<4x64xbf16>, vector<64x128xbf16>, vector<4x128xf32> -> vector<4x128xf32>
    %c1_530 = arith.constant 1 : index
    %c0_531 = arith.constant 0 : index
    %c0_532 = arith.constant 0 : index
    %849 = vector.load %arg19[%c1_530, %c0_531, %c0_532] : memref<4x4x16xbf16, #tpu.memory_space<vmem>>, vector<1x4x16xbf16>
    %850 = vector.shape_cast %849 : vector<1x4x16xbf16> to vector<4x16xbf16>
    %851 = arith.truncf %840 : vector<16x64xf32> to vector<16x64xbf16>
    %cst_533 = arith.constant dense<0.000000e+00> : vector<4x64xf32>
    %852 = tpu.matmul %850, %851, %cst_533 {dimension_numbers = #tpu.dot_dimension_numbers<[1], [0], [0], [1], [0, 0, 1, 1], [], []>} : vector<4x16xbf16>, vector<16x64xbf16>, vector<4x64xf32> -> vector<4x64xf32>
    %c1_534 = arith.constant 1 : index
    %c0_535 = arith.constant 0 : index
    %c0_536 = arith.constant 0 : index
    %853 = vector.load %arg20[%c1_534, %c0_535, %c0_536] : memref<4x64x128xbf16, #tpu.memory_space<vmem>>, vector<1x64x128xbf16>
    %854 = vector.shape_cast %853 : vector<1x64x128xbf16> to vector<64x128xbf16>
    %855 = arith.truncf %852 : vector<4x64xf32> to vector<4x64xbf16>
    %cst_537 = arith.constant dense<0.000000e+00> : vector<4x128xf32>
    %856 = tpu.matmul %855, %854, %cst_537 {dimension_numbers = #tpu.dot_dimension_numbers<[1], [0], [0], [1], [0, 0, 1, 1], [], []>} : vector<4x64xbf16>, vector<64x128xbf16>, vector<4x128xf32> -> vector<4x128xf32>
    %857 = arith.addf %848, %856 : vector<4x128xf32>
    %c2_538 = arith.constant 2 : index
    %c0_539 = arith.constant 0 : index
    %c0_540 = arith.constant 0 : index
    %858 = vector.load %arg19[%c2_538, %c0_539, %c0_540] : memref<4x4x16xbf16, #tpu.memory_space<vmem>>, vector<1x4x16xbf16>
    %859 = vector.shape_cast %858 : vector<1x4x16xbf16> to vector<4x16xbf16>
    %860 = arith.truncf %840 : vector<16x64xf32> to vector<16x64xbf16>
    %cst_541 = arith.constant dense<0.000000e+00> : vector<4x64xf32>
    %861 = tpu.matmul %859, %860, %cst_541 {dimension_numbers = #tpu.dot_dimension_numbers<[1], [0], [0], [1], [0, 0, 1, 1], [], []>} : vector<4x16xbf16>, vector<16x64xbf16>, vector<4x64xf32> -> vector<4x64xf32>
    %c2_542 = arith.constant 2 : index
    %c0_543 = arith.constant 0 : index
    %c0_544 = arith.constant 0 : index
    %862 = vector.load %arg20[%c2_542, %c0_543, %c0_544] : memref<4x64x128xbf16, #tpu.memory_space<vmem>>, vector<1x64x128xbf16>
    %863 = vector.shape_cast %862 : vector<1x64x128xbf16> to vector<64x128xbf16>
    %864 = arith.truncf %861 : vector<4x64xf32> to vector<4x64xbf16>
    %cst_545 = arith.constant dense<0.000000e+00> : vector<4x128xf32>
    %865 = tpu.matmul %864, %863, %cst_545 {dimension_numbers = #tpu.dot_dimension_numbers<[1], [0], [0], [1], [0, 0, 1, 1], [], []>} : vector<4x64xbf16>, vector<64x128xbf16>, vector<4x128xf32> -> vector<4x128xf32>
    %866 = arith.addf %857, %865 : vector<4x128xf32>
    %c3_546 = arith.constant 3 : index
    %c0_547 = arith.constant 0 : index
    %c0_548 = arith.constant 0 : index
    %867 = vector.load %arg19[%c3_546, %c0_547, %c0_548] : memref<4x4x16xbf16, #tpu.memory_space<vmem>>, vector<1x4x16xbf16>
    %868 = vector.shape_cast %867 : vector<1x4x16xbf16> to vector<4x16xbf16>
    %869 = arith.truncf %840 : vector<16x64xf32> to vector<16x64xbf16>
    %cst_549 = arith.constant dense<0.000000e+00> : vector<4x64xf32>
    %870 = tpu.matmul %868, %869, %cst_549 {dimension_numbers = #tpu.dot_dimension_numbers<[1], [0], [0], [1], [0, 0, 1, 1], [], []>} : vector<4x16xbf16>, vector<16x64xbf16>, vector<4x64xf32> -> vector<4x64xf32>
    %c3_550 = arith.constant 3 : index
    %c0_551 = arith.constant 0 : index
    %c0_552 = arith.constant 0 : index
    %871 = vector.load %arg20[%c3_550, %c0_551, %c0_552] : memref<4x64x128xbf16, #tpu.memory_space<vmem>>, vector<1x64x128xbf16>
    %872 = vector.shape_cast %871 : vector<1x64x128xbf16> to vector<64x128xbf16>
    %873 = arith.truncf %870 : vector<4x64xf32> to vector<4x64xbf16>
    %cst_553 = arith.constant dense<0.000000e+00> : vector<4x128xf32>
    %874 = tpu.matmul %873, %872, %cst_553 {dimension_numbers = #tpu.dot_dimension_numbers<[1], [0], [0], [1], [0, 0, 1, 1], [], []>} : vector<4x64xbf16>, vector<64x128xbf16>, vector<4x128xf32> -> vector<4x128xf32>
    %875 = arith.addf %866, %874 : vector<4x128xf32>
    %c0_554 = arith.constant 0 : index
    %c0_555 = arith.constant 0 : index
    %c0_556 = arith.constant 0 : index
    %876 = vector.load %arg25[%c0_554, %c0_555, %c0_556] : memref<21x1x128xf32, #tpu.memory_space<vmem>>, vector<1x1x128xf32>
    %877 = vector.shape_cast %876 : vector<1x1x128xf32> to vector<1x128xf32>
    %878 = vector.broadcast %877 : vector<1x128xf32> to vector<4x128xf32>
    %879 = arith.addf %875, %878 : vector<4x128xf32>
    %c1_557 = arith.constant 1 : index
    %c0_558 = arith.constant 0 : index
    %c0_559 = arith.constant 0 : index
    %880 = vector.load %arg25[%c1_557, %c0_558, %c0_559] : memref<21x1x128xf32, #tpu.memory_space<vmem>>, vector<1x1x128xf32>
    %881 = vector.shape_cast %880 : vector<1x1x128xf32> to vector<1x128xf32>
    %c2_560 = arith.constant 2 : index
    %c0_561 = arith.constant 0 : index
    %c0_562 = arith.constant 0 : index
    %882 = vector.load %arg25[%c2_560, %c0_561, %c0_562] : memref<21x1x128xf32, #tpu.memory_space<vmem>>, vector<1x1x128xf32>
    %883 = vector.shape_cast %882 : vector<1x1x128xf32> to vector<1x128xf32>
    %cst_563 = arith.constant dense<0.000000e+00> : vector<4xf32>
    %884 = vector.multi_reduction <add>, %879, %cst_563 [1] : vector<4x128xf32> to vector<4xf32>
    %885 = vector.shape_cast %884 : vector<4xf32> to vector<4x1xf32>
    %cst_564 = arith.constant 1.280000e+02 : f32
    %886 = vector.broadcast %cst_564 : f32 to vector<4x1xf32>
    %887 = arith.divf %885, %886 : vector<4x1xf32>
    %888 = vector.broadcast %887 : vector<4x1xf32> to vector<4x128xf32>
    %889 = arith.subf %879, %888 : vector<4x128xf32>
    %890 = arith.mulf %889, %889 : vector<4x128xf32>
    %cst_565 = arith.constant dense<0.000000e+00> : vector<4xf32>
    %891 = vector.multi_reduction <add>, %890, %cst_565 [1] : vector<4x128xf32> to vector<4xf32>
    %892 = vector.shape_cast %891 : vector<4xf32> to vector<4x1xf32>
    %cst_566 = arith.constant 1.280000e+02 : f32
    %893 = vector.broadcast %cst_566 : f32 to vector<4x1xf32>
    %894 = arith.divf %892, %893 : vector<4x1xf32>
    %cst_567 = arith.constant 9.99999974E-6 : f32
    %895 = vector.broadcast %cst_567 : f32 to vector<4x1xf32>
    %896 = arith.addf %894, %895 : vector<4x1xf32>
    %897 = math.rsqrt %896 : vector<4x1xf32>
    %898 = vector.broadcast %897 : vector<4x1xf32> to vector<4x128xf32>
    %899 = arith.mulf %889, %898 : vector<4x128xf32>
    %900 = vector.broadcast %881 : vector<1x128xf32> to vector<4x128xf32>
    %901 = arith.mulf %899, %900 : vector<4x128xf32>
    %902 = vector.broadcast %883 : vector<1x128xf32> to vector<4x128xf32>
    %903 = arith.addf %901, %902 : vector<4x128xf32>
    %c3_568 = arith.constant 3 : index
    %c0_569 = arith.constant 0 : index
    %c0_570 = arith.constant 0 : index
    %904 = vector.load %arg25[%c3_568, %c0_569, %c0_570] : memref<21x1x128xf32, #tpu.memory_space<vmem>>, vector<1x1x128xf32>
    %905 = vector.shape_cast %904 : vector<1x1x128xf32> to vector<1x128xf32>
    %c4_571 = arith.constant 4 : index
    %c0_572 = arith.constant 0 : index
    %c0_573 = arith.constant 0 : index
    %906 = vector.load %arg25[%c4_571, %c0_572, %c0_573] : memref<21x1x128xf32, #tpu.memory_space<vmem>>, vector<1x1x128xf32>
    %907 = vector.shape_cast %906 : vector<1x1x128xf32> to vector<1x128xf32>
    %cst_574 = arith.constant dense<0.000000e+00> : vector<4xf32>
    %908 = vector.multi_reduction <add>, %903, %cst_574 [1] : vector<4x128xf32> to vector<4xf32>
    %909 = vector.shape_cast %908 : vector<4xf32> to vector<4x1xf32>
    %cst_575 = arith.constant 1.280000e+02 : f32
    %910 = vector.broadcast %cst_575 : f32 to vector<4x1xf32>
    %911 = arith.divf %909, %910 : vector<4x1xf32>
    %912 = vector.broadcast %911 : vector<4x1xf32> to vector<4x128xf32>
    %913 = arith.subf %903, %912 : vector<4x128xf32>
    %914 = arith.mulf %913, %913 : vector<4x128xf32>
    %cst_576 = arith.constant dense<0.000000e+00> : vector<4xf32>
    %915 = vector.multi_reduction <add>, %914, %cst_576 [1] : vector<4x128xf32> to vector<4xf32>
    %916 = vector.shape_cast %915 : vector<4xf32> to vector<4x1xf32>
    %cst_577 = arith.constant 1.280000e+02 : f32
    %917 = vector.broadcast %cst_577 : f32 to vector<4x1xf32>
    %918 = arith.divf %916, %917 : vector<4x1xf32>
    %cst_578 = arith.constant 9.99999997E-7 : f32
    %919 = vector.broadcast %cst_578 : f32 to vector<4x1xf32>
    %920 = arith.addf %918, %919 : vector<4x1xf32>
    %921 = math.rsqrt %920 : vector<4x1xf32>
    %922 = vector.broadcast %921 : vector<4x1xf32> to vector<4x128xf32>
    %923 = arith.mulf %913, %922 : vector<4x128xf32>
    %924 = vector.broadcast %905 : vector<1x128xf32> to vector<4x128xf32>
    %925 = arith.mulf %923, %924 : vector<4x128xf32>
    %926 = vector.broadcast %907 : vector<1x128xf32> to vector<4x128xf32>
    %927 = arith.addf %925, %926 : vector<4x128xf32>
    %c0_579 = arith.constant 0 : index
    %c0_580 = arith.constant 0 : index
    %c0_581 = arith.constant 0 : index
    %928 = vector.load %arg21[%c0_579, %c0_580, %c0_581] : memref<4x128x128xbf16, #tpu.memory_space<vmem>>, vector<1x128x128xbf16>
    %929 = vector.shape_cast %928 : vector<1x128x128xbf16> to vector<128x128xbf16>
    %930 = arith.truncf %927 : vector<4x128xf32> to vector<4x128xbf16>
    %cst_582 = arith.constant dense<0.000000e+00> : vector<4x128xf32>
    %931 = tpu.matmul %930, %929, %cst_582 {dimension_numbers = #tpu.dot_dimension_numbers<[1], [0], [0], [1], [0, 0, 1, 1], [], []>} : vector<4x128xbf16>, vector<128x128xbf16>, vector<4x128xf32> -> vector<4x128xf32>
    %c5_583 = arith.constant 5 : index
    %c0_584 = arith.constant 0 : index
    %c0_585 = arith.constant 0 : index
    %932 = vector.load %arg25[%c5_583, %c0_584, %c0_585] : memref<21x1x128xf32, #tpu.memory_space<vmem>>, vector<1x1x128xf32>
    %933 = vector.shape_cast %932 : vector<1x1x128xf32> to vector<1x128xf32>
    %934 = vector.broadcast %933 : vector<1x128xf32> to vector<4x128xf32>
    %935 = arith.addf %931, %934 : vector<4x128xf32>
    %c1_586 = arith.constant 1 : index
    %c0_587 = arith.constant 0 : index
    %c0_588 = arith.constant 0 : index
    %936 = vector.load %arg21[%c1_586, %c0_587, %c0_588] : memref<4x128x128xbf16, #tpu.memory_space<vmem>>, vector<1x128x128xbf16>
    %937 = vector.shape_cast %936 : vector<1x128x128xbf16> to vector<128x128xbf16>
    %938 = arith.truncf %927 : vector<4x128xf32> to vector<4x128xbf16>
    %cst_589 = arith.constant dense<0.000000e+00> : vector<4x128xf32>
    %939 = tpu.matmul %938, %937, %cst_589 {dimension_numbers = #tpu.dot_dimension_numbers<[1], [0], [0], [1], [0, 0, 1, 1], [], []>} : vector<4x128xbf16>, vector<128x128xbf16>, vector<4x128xf32> -> vector<4x128xf32>
    %c6_590 = arith.constant 6 : index
    %c0_591 = arith.constant 0 : index
    %c0_592 = arith.constant 0 : index
    %940 = vector.load %arg25[%c6_590, %c0_591, %c0_592] : memref<21x1x128xf32, #tpu.memory_space<vmem>>, vector<1x1x128xf32>
    %941 = vector.shape_cast %940 : vector<1x1x128xf32> to vector<1x128xf32>
    %942 = vector.broadcast %941 : vector<1x128xf32> to vector<4x128xf32>
    %943 = arith.addf %939, %942 : vector<4x128xf32>
    %c2_593 = arith.constant 2 : index
    %c0_594 = arith.constant 0 : index
    %c0_595 = arith.constant 0 : index
    %944 = vector.load %arg21[%c2_593, %c0_594, %c0_595] : memref<4x128x128xbf16, #tpu.memory_space<vmem>>, vector<1x128x128xbf16>
    %945 = vector.shape_cast %944 : vector<1x128x128xbf16> to vector<128x128xbf16>
    %946 = arith.truncf %927 : vector<4x128xf32> to vector<4x128xbf16>
    %cst_596 = arith.constant dense<0.000000e+00> : vector<4x128xf32>
    %947 = tpu.matmul %946, %945, %cst_596 {dimension_numbers = #tpu.dot_dimension_numbers<[1], [0], [0], [1], [0, 0, 1, 1], [], []>} : vector<4x128xbf16>, vector<128x128xbf16>, vector<4x128xf32> -> vector<4x128xf32>
    %c7_597 = arith.constant 7 : index
    %c0_598 = arith.constant 0 : index
    %c0_599 = arith.constant 0 : index
    %948 = vector.load %arg25[%c7_597, %c0_598, %c0_599] : memref<21x1x128xf32, #tpu.memory_space<vmem>>, vector<1x1x128xf32>
    %949 = vector.shape_cast %948 : vector<1x1x128xf32> to vector<1x128xf32>
    %950 = vector.broadcast %949 : vector<1x128xf32> to vector<4x128xf32>
    %951 = arith.addf %947, %950 : vector<4x128xf32>
    %952 = vector.extract_strided_slice %935 {offsets = [0, 0], sizes = [4, 32], strides = [1, 1]} : vector<4x128xf32> to vector<4x32xf32>
    %953 = vector.extract_strided_slice %943 {offsets = [0, 0], sizes = [4, 32], strides = [1, 1]} : vector<4x128xf32> to vector<4x32xf32>
    %954 = arith.truncf %952 : vector<4x32xf32> to vector<4x32xbf16>
    %955 = arith.truncf %953 : vector<4x32xf32> to vector<4x32xbf16>
    %cst_600 = arith.constant dense<0.000000e+00> : vector<4x4xf32>
    %956 = tpu.matmul %954, %955, %cst_600 {dimension_numbers = #tpu.dot_dimension_numbers<[1], [1], [0], [0], [0, 0, 1, 0], [], []>} : vector<4x32xbf16>, vector<4x32xbf16>, vector<4x4xf32> -> vector<4x4xf32>
    %cst_601 = arith.constant 0.176776692 : f32
    %957 = vector.broadcast %cst_601 : f32 to vector<4x4xf32>
    %958 = arith.mulf %956, %957 : vector<4x4xf32>
    %cst_602 = arith.constant dense<0xFF800000> : vector<4xf32>
    %959 = vector.multi_reduction <maximumf>, %958, %cst_602 [1] : vector<4x4xf32> to vector<4xf32>
    %960 = vector.shape_cast %959 : vector<4xf32> to vector<4x1xf32>
    %961 = vector.broadcast %960 : vector<4x1xf32> to vector<4x4xf32>
    %962 = arith.subf %958, %961 : vector<4x4xf32>
    %963 = math.exp %962 : vector<4x4xf32>
    %cst_603 = arith.constant dense<0.000000e+00> : vector<4xf32>
    %964 = vector.multi_reduction <add>, %963, %cst_603 [1] : vector<4x4xf32> to vector<4xf32>
    %965 = vector.shape_cast %964 : vector<4xf32> to vector<4x1xf32>
    %966 = tpu.reciprocal %965 {approx = true} : vector<4x1xf32> -> vector<4x1xf32>
    %967 = vector.broadcast %966 : vector<4x1xf32> to vector<4x4xf32>
    %968 = arith.mulf %963, %967 : vector<4x4xf32>
    %969 = vector.extract_strided_slice %951 {offsets = [0, 0], sizes = [4, 32], strides = [1, 1]} : vector<4x128xf32> to vector<4x32xf32>
    %970 = arith.truncf %968 : vector<4x4xf32> to vector<4x4xbf16>
    %971 = arith.truncf %969 : vector<4x32xf32> to vector<4x32xbf16>
    %cst_604 = arith.constant dense<0.000000e+00> : vector<4x32xf32>
    %972 = tpu.matmul %970, %971, %cst_604 {dimension_numbers = #tpu.dot_dimension_numbers<[1], [0], [0], [1], [0, 0, 1, 1], [], []>} : vector<4x4xbf16>, vector<4x32xbf16>, vector<4x32xf32> -> vector<4x32xf32>
    %973 = vector.extract_strided_slice %935 {offsets = [0, 32], sizes = [4, 32], strides = [1, 1]} : vector<4x128xf32> to vector<4x32xf32>
    %974 = vector.extract_strided_slice %943 {offsets = [0, 32], sizes = [4, 32], strides = [1, 1]} : vector<4x128xf32> to vector<4x32xf32>
    %975 = arith.truncf %973 : vector<4x32xf32> to vector<4x32xbf16>
    %976 = arith.truncf %974 : vector<4x32xf32> to vector<4x32xbf16>
    %cst_605 = arith.constant dense<0.000000e+00> : vector<4x4xf32>
    %977 = tpu.matmul %975, %976, %cst_605 {dimension_numbers = #tpu.dot_dimension_numbers<[1], [1], [0], [0], [0, 0, 1, 0], [], []>} : vector<4x32xbf16>, vector<4x32xbf16>, vector<4x4xf32> -> vector<4x4xf32>
    %cst_606 = arith.constant 0.176776692 : f32
    %978 = vector.broadcast %cst_606 : f32 to vector<4x4xf32>
    %979 = arith.mulf %977, %978 : vector<4x4xf32>
    %cst_607 = arith.constant dense<0xFF800000> : vector<4xf32>
    %980 = vector.multi_reduction <maximumf>, %979, %cst_607 [1] : vector<4x4xf32> to vector<4xf32>
    %981 = vector.shape_cast %980 : vector<4xf32> to vector<4x1xf32>
    %982 = vector.broadcast %981 : vector<4x1xf32> to vector<4x4xf32>
    %983 = arith.subf %979, %982 : vector<4x4xf32>
    %984 = math.exp %983 : vector<4x4xf32>
    %cst_608 = arith.constant dense<0.000000e+00> : vector<4xf32>
    %985 = vector.multi_reduction <add>, %984, %cst_608 [1] : vector<4x4xf32> to vector<4xf32>
    %986 = vector.shape_cast %985 : vector<4xf32> to vector<4x1xf32>
    %987 = tpu.reciprocal %986 {approx = true} : vector<4x1xf32> -> vector<4x1xf32>
    %988 = vector.broadcast %987 : vector<4x1xf32> to vector<4x4xf32>
    %989 = arith.mulf %984, %988 : vector<4x4xf32>
    %990 = vector.extract_strided_slice %951 {offsets = [0, 32], sizes = [4, 32], strides = [1, 1]} : vector<4x128xf32> to vector<4x32xf32>
    %991 = arith.truncf %989 : vector<4x4xf32> to vector<4x4xbf16>
    %992 = arith.truncf %990 : vector<4x32xf32> to vector<4x32xbf16>
    %cst_609 = arith.constant dense<0.000000e+00> : vector<4x32xf32>
    %993 = tpu.matmul %991, %992, %cst_609 {dimension_numbers = #tpu.dot_dimension_numbers<[1], [0], [0], [1], [0, 0, 1, 1], [], []>} : vector<4x4xbf16>, vector<4x32xbf16>, vector<4x32xf32> -> vector<4x32xf32>
    %994 = vector.extract_strided_slice %935 {offsets = [0, 64], sizes = [4, 32], strides = [1, 1]} : vector<4x128xf32> to vector<4x32xf32>
    %995 = vector.extract_strided_slice %943 {offsets = [0, 64], sizes = [4, 32], strides = [1, 1]} : vector<4x128xf32> to vector<4x32xf32>
    %996 = arith.truncf %994 : vector<4x32xf32> to vector<4x32xbf16>
    %997 = arith.truncf %995 : vector<4x32xf32> to vector<4x32xbf16>
    %cst_610 = arith.constant dense<0.000000e+00> : vector<4x4xf32>
    %998 = tpu.matmul %996, %997, %cst_610 {dimension_numbers = #tpu.dot_dimension_numbers<[1], [1], [0], [0], [0, 0, 1, 0], [], []>} : vector<4x32xbf16>, vector<4x32xbf16>, vector<4x4xf32> -> vector<4x4xf32>
    %cst_611 = arith.constant 0.176776692 : f32
    %999 = vector.broadcast %cst_611 : f32 to vector<4x4xf32>
    %1000 = arith.mulf %998, %999 : vector<4x4xf32>
    %cst_612 = arith.constant dense<0xFF800000> : vector<4xf32>
    %1001 = vector.multi_reduction <maximumf>, %1000, %cst_612 [1] : vector<4x4xf32> to vector<4xf32>
    %1002 = vector.shape_cast %1001 : vector<4xf32> to vector<4x1xf32>
    %1003 = vector.broadcast %1002 : vector<4x1xf32> to vector<4x4xf32>
    %1004 = arith.subf %1000, %1003 : vector<4x4xf32>
    %1005 = math.exp %1004 : vector<4x4xf32>
    %cst_613 = arith.constant dense<0.000000e+00> : vector<4xf32>
    %1006 = vector.multi_reduction <add>, %1005, %cst_613 [1] : vector<4x4xf32> to vector<4xf32>
    %1007 = vector.shape_cast %1006 : vector<4xf32> to vector<4x1xf32>
    %1008 = tpu.reciprocal %1007 {approx = true} : vector<4x1xf32> -> vector<4x1xf32>
    %1009 = vector.broadcast %1008 : vector<4x1xf32> to vector<4x4xf32>
    %1010 = arith.mulf %1005, %1009 : vector<4x4xf32>
    %1011 = vector.extract_strided_slice %951 {offsets = [0, 64], sizes = [4, 32], strides = [1, 1]} : vector<4x128xf32> to vector<4x32xf32>
    %1012 = arith.truncf %1010 : vector<4x4xf32> to vector<4x4xbf16>
    %1013 = arith.truncf %1011 : vector<4x32xf32> to vector<4x32xbf16>
    %cst_614 = arith.constant dense<0.000000e+00> : vector<4x32xf32>
    %1014 = tpu.matmul %1012, %1013, %cst_614 {dimension_numbers = #tpu.dot_dimension_numbers<[1], [0], [0], [1], [0, 0, 1, 1], [], []>} : vector<4x4xbf16>, vector<4x32xbf16>, vector<4x32xf32> -> vector<4x32xf32>
    %1015 = vector.extract_strided_slice %935 {offsets = [0, 96], sizes = [4, 32], strides = [1, 1]} : vector<4x128xf32> to vector<4x32xf32>
    %1016 = vector.extract_strided_slice %943 {offsets = [0, 96], sizes = [4, 32], strides = [1, 1]} : vector<4x128xf32> to vector<4x32xf32>
    %1017 = arith.truncf %1015 : vector<4x32xf32> to vector<4x32xbf16>
    %1018 = arith.truncf %1016 : vector<4x32xf32> to vector<4x32xbf16>
    %cst_615 = arith.constant dense<0.000000e+00> : vector<4x4xf32>
    %1019 = tpu.matmul %1017, %1018, %cst_615 {dimension_numbers = #tpu.dot_dimension_numbers<[1], [1], [0], [0], [0, 0, 1, 0], [], []>} : vector<4x32xbf16>, vector<4x32xbf16>, vector<4x4xf32> -> vector<4x4xf32>
    %cst_616 = arith.constant 0.176776692 : f32
    %1020 = vector.broadcast %cst_616 : f32 to vector<4x4xf32>
    %1021 = arith.mulf %1019, %1020 : vector<4x4xf32>
    %cst_617 = arith.constant dense<0xFF800000> : vector<4xf32>
    %1022 = vector.multi_reduction <maximumf>, %1021, %cst_617 [1] : vector<4x4xf32> to vector<4xf32>
    %1023 = vector.shape_cast %1022 : vector<4xf32> to vector<4x1xf32>
    %1024 = vector.broadcast %1023 : vector<4x1xf32> to vector<4x4xf32>
    %1025 = arith.subf %1021, %1024 : vector<4x4xf32>
    %1026 = math.exp %1025 : vector<4x4xf32>
    %cst_618 = arith.constant dense<0.000000e+00> : vector<4xf32>
    %1027 = vector.multi_reduction <add>, %1026, %cst_618 [1] : vector<4x4xf32> to vector<4xf32>
    %1028 = vector.shape_cast %1027 : vector<4xf32> to vector<4x1xf32>
    %1029 = tpu.reciprocal %1028 {approx = true} : vector<4x1xf32> -> vector<4x1xf32>
    %1030 = vector.broadcast %1029 : vector<4x1xf32> to vector<4x4xf32>
    %1031 = arith.mulf %1026, %1030 : vector<4x4xf32>
    %1032 = vector.extract_strided_slice %951 {offsets = [0, 96], sizes = [4, 32], strides = [1, 1]} : vector<4x128xf32> to vector<4x32xf32>
    %1033 = arith.truncf %1031 : vector<4x4xf32> to vector<4x4xbf16>
    %1034 = arith.truncf %1032 : vector<4x32xf32> to vector<4x32xbf16>
    %cst_619 = arith.constant dense<0.000000e+00> : vector<4x32xf32>
    %1035 = tpu.matmul %1033, %1034, %cst_619 {dimension_numbers = #tpu.dot_dimension_numbers<[1], [0], [0], [1], [0, 0, 1, 1], [], []>} : vector<4x4xbf16>, vector<4x32xbf16>, vector<4x32xf32> -> vector<4x32xf32>
    %1036 = tpu.concatenate %972, %993, %1014, %1035 in 1 : vector<4x32xf32>, vector<4x32xf32>, vector<4x32xf32>, vector<4x32xf32> -> vector<4x128xf32>
    %c3_620 = arith.constant 3 : index
    %c0_621 = arith.constant 0 : index
    %c0_622 = arith.constant 0 : index
    %1037 = vector.load %arg21[%c3_620, %c0_621, %c0_622] : memref<4x128x128xbf16, #tpu.memory_space<vmem>>, vector<1x128x128xbf16>
    %1038 = vector.shape_cast %1037 : vector<1x128x128xbf16> to vector<128x128xbf16>
    %1039 = arith.truncf %1036 : vector<4x128xf32> to vector<4x128xbf16>
    %cst_623 = arith.constant dense<0.000000e+00> : vector<4x128xf32>
    %1040 = tpu.matmul %1039, %1038, %cst_623 {dimension_numbers = #tpu.dot_dimension_numbers<[1], [0], [0], [1], [0, 0, 1, 1], [], []>} : vector<4x128xbf16>, vector<128x128xbf16>, vector<4x128xf32> -> vector<4x128xf32>
    %1041 = arith.addf %903, %1040 : vector<4x128xf32>
    %c8_624 = arith.constant 8 : index
    %c0_625 = arith.constant 0 : index
    %c0_626 = arith.constant 0 : index
    %1042 = vector.load %arg25[%c8_624, %c0_625, %c0_626] : memref<21x1x128xf32, #tpu.memory_space<vmem>>, vector<1x1x128xf32>
    %1043 = vector.shape_cast %1042 : vector<1x1x128xf32> to vector<1x128xf32>
    %1044 = vector.broadcast %1043 : vector<1x128xf32> to vector<4x128xf32>
    %1045 = arith.addf %1041, %1044 : vector<4x128xf32>
    %c9_627 = arith.constant 9 : index
    %c0_628 = arith.constant 0 : index
    %c0_629 = arith.constant 0 : index
    %1046 = vector.load %arg25[%c9_627, %c0_628, %c0_629] : memref<21x1x128xf32, #tpu.memory_space<vmem>>, vector<1x1x128xf32>
    %1047 = vector.shape_cast %1046 : vector<1x1x128xf32> to vector<1x128xf32>
    %c10_630 = arith.constant 10 : index
    %c0_631 = arith.constant 0 : index
    %c0_632 = arith.constant 0 : index
    %1048 = vector.load %arg25[%c10_630, %c0_631, %c0_632] : memref<21x1x128xf32, #tpu.memory_space<vmem>>, vector<1x1x128xf32>
    %1049 = vector.shape_cast %1048 : vector<1x1x128xf32> to vector<1x128xf32>
    %cst_633 = arith.constant dense<0.000000e+00> : vector<4xf32>
    %1050 = vector.multi_reduction <add>, %1045, %cst_633 [1] : vector<4x128xf32> to vector<4xf32>
    %1051 = vector.shape_cast %1050 : vector<4xf32> to vector<4x1xf32>
    %cst_634 = arith.constant 1.280000e+02 : f32
    %1052 = vector.broadcast %cst_634 : f32 to vector<4x1xf32>
    %1053 = arith.divf %1051, %1052 : vector<4x1xf32>
    %1054 = vector.broadcast %1053 : vector<4x1xf32> to vector<4x128xf32>
    %1055 = arith.subf %1045, %1054 : vector<4x128xf32>
    %1056 = arith.mulf %1055, %1055 : vector<4x128xf32>
    %cst_635 = arith.constant dense<0.000000e+00> : vector<4xf32>
    %1057 = vector.multi_reduction <add>, %1056, %cst_635 [1] : vector<4x128xf32> to vector<4xf32>
    %1058 = vector.shape_cast %1057 : vector<4xf32> to vector<4x1xf32>
    %cst_636 = arith.constant 1.280000e+02 : f32
    %1059 = vector.broadcast %cst_636 : f32 to vector<4x1xf32>
    %1060 = arith.divf %1058, %1059 : vector<4x1xf32>
    %cst_637 = arith.constant 9.99999997E-7 : f32
    %1061 = vector.broadcast %cst_637 : f32 to vector<4x1xf32>
    %1062 = arith.addf %1060, %1061 : vector<4x1xf32>
    %1063 = math.rsqrt %1062 : vector<4x1xf32>
    %1064 = vector.broadcast %1063 : vector<4x1xf32> to vector<4x128xf32>
    %1065 = arith.mulf %1055, %1064 : vector<4x128xf32>
    %1066 = vector.broadcast %1047 : vector<1x128xf32> to vector<4x128xf32>
    %1067 = arith.mulf %1065, %1066 : vector<4x128xf32>
    %1068 = vector.broadcast %1049 : vector<1x128xf32> to vector<4x128xf32>
    %1069 = arith.addf %1067, %1068 : vector<4x128xf32>
    %c0_638 = arith.constant 0 : index
    %c0_639 = arith.constant 0 : index
    %1070 = vector.load %arg22[%c0_638, %c0_639] : memref<129x512xbf16, #tpu.memory_space<vmem>>, vector<129x512xbf16>
    %c0_640 = arith.constant 0 : index
    %c0_641 = arith.constant 0 : index
    %1071 = vector.load %arg23[%c0_640, %c0_641] : memref<513x128xbf16, #tpu.memory_space<vmem>>, vector<513x128xbf16>
    %1072 = vector.extract_strided_slice %1070 {offsets = [0, 0], sizes = [128, 512], strides = [1, 1]} : vector<129x512xbf16> to vector<128x512xbf16>
    %1073 = arith.truncf %1069 : vector<4x128xf32> to vector<4x128xbf16>
    %cst_642 = arith.constant dense<0.000000e+00> : vector<4x512xf32>
    %1074 = tpu.matmul %1073, %1072, %cst_642 {dimension_numbers = #tpu.dot_dimension_numbers<[1], [0], [0], [1], [0, 0, 1, 1], [], []>} : vector<4x128xbf16>, vector<128x512xbf16>, vector<4x512xf32> -> vector<4x512xf32>
    %1075 = vector.extract_strided_slice %1070 {offsets = [128, 0], sizes = [1, 512], strides = [1, 1]} : vector<129x512xbf16> to vector<1x512xbf16>
    %1076 = arith.extf %1075 : vector<1x512xbf16> to vector<1x512xf32>
    %1077 = vector.broadcast %1076 : vector<1x512xf32> to vector<4x512xf32>
    %1078 = arith.addf %1074, %1077 : vector<4x512xf32>
    %cst_643 = arith.constant 0.707106769 : f32
    %1079 = vector.broadcast %cst_643 : f32 to vector<4x512xf32>
    %1080 = arith.mulf %1078, %1079 : vector<4x512xf32>
    %1081 = math.absf %1080 : vector<4x512xf32>
    %cst_644 = arith.constant 0.327591091 : f32
    %1082 = vector.broadcast %cst_644 : f32 to vector<4x512xf32>
    %1083 = arith.mulf %1082, %1081 : vector<4x512xf32>
    %cst_645 = arith.constant 1.000000e+00 : f32
    %1084 = vector.broadcast %cst_645 : f32 to vector<4x512xf32>
    %1085 = arith.addf %1084, %1083 : vector<4x512xf32>
    %1086 = tpu.reciprocal %1085 {approx = true} : vector<4x512xf32> -> vector<4x512xf32>
    %cst_646 = arith.constant 1.06140542 : f32
    %1087 = vector.broadcast %cst_646 : f32 to vector<4x512xf32>
    %1088 = arith.mulf %1086, %1087 : vector<4x512xf32>
    %cst_647 = arith.constant -1.45315206 : f32
    %1089 = vector.broadcast %cst_647 : f32 to vector<4x512xf32>
    %1090 = arith.addf %1089, %1088 : vector<4x512xf32>
    %1091 = arith.mulf %1086, %1090 : vector<4x512xf32>
    %cst_648 = arith.constant 1.42141378 : f32
    %1092 = vector.broadcast %cst_648 : f32 to vector<4x512xf32>
    %1093 = arith.addf %1092, %1091 : vector<4x512xf32>
    %1094 = arith.mulf %1086, %1093 : vector<4x512xf32>
    %cst_649 = arith.constant -0.284496725 : f32
    %1095 = vector.broadcast %cst_649 : f32 to vector<4x512xf32>
    %1096 = arith.addf %1095, %1094 : vector<4x512xf32>
    %1097 = arith.mulf %1086, %1096 : vector<4x512xf32>
    %cst_650 = arith.constant 0.254829586 : f32
    %1098 = vector.broadcast %cst_650 : f32 to vector<4x512xf32>
    %1099 = arith.addf %1098, %1097 : vector<4x512xf32>
    %1100 = arith.mulf %1086, %1099 : vector<4x512xf32>
    %cst_651 = arith.constant 0.000000e+00 : f32
    %1101 = vector.broadcast %cst_651 : f32 to vector<4x512xf32>
    %1102 = arith.subf %1101, %1081 : vector<4x512xf32>
    %1103 = arith.mulf %1102, %1081 : vector<4x512xf32>
    %1104 = math.exp %1103 : vector<4x512xf32>
    %1105 = arith.mulf %1100, %1104 : vector<4x512xf32>
    %cst_652 = arith.constant 1.000000e+00 : f32
    %1106 = vector.broadcast %cst_652 : f32 to vector<4x512xf32>
    %1107 = arith.subf %1106, %1105 : vector<4x512xf32>
    %cst_653 = arith.constant 0.000000e+00 : f32
    %1108 = vector.broadcast %cst_653 : f32 to vector<4x512xf32>
    %1109 = arith.cmpf oge, %1080, %1108 : vector<4x512xf32>
    %cst_654 = arith.constant 0.000000e+00 : f32
    %1110 = vector.broadcast %cst_654 : f32 to vector<4x512xf32>
    %1111 = arith.subf %1110, %1107 : vector<4x512xf32>
    %1112 = arith.select %1109, %1107, %1111 : vector<4x512xi1>, vector<4x512xf32>
    %cst_655 = arith.constant 5.000000e-01 : f32
    %1113 = vector.broadcast %cst_655 : f32 to vector<4x512xf32>
    %1114 = arith.mulf %1113, %1078 : vector<4x512xf32>
    %cst_656 = arith.constant 1.000000e+00 : f32
    %1115 = vector.broadcast %cst_656 : f32 to vector<4x512xf32>
    %1116 = arith.addf %1115, %1112 : vector<4x512xf32>
    %1117 = arith.mulf %1114, %1116 : vector<4x512xf32>
    %1118 = vector.extract_strided_slice %1071 {offsets = [0, 0], sizes = [512, 128], strides = [1, 1]} : vector<513x128xbf16> to vector<512x128xbf16>
    %1119 = arith.truncf %1117 : vector<4x512xf32> to vector<4x512xbf16>
    %cst_657 = arith.constant dense<0.000000e+00> : vector<4x128xf32>
    %1120 = tpu.matmul %1119, %1118, %cst_657 {dimension_numbers = #tpu.dot_dimension_numbers<[1], [0], [0], [1], [0, 0, 1, 1], [], []>} : vector<4x512xbf16>, vector<512x128xbf16>, vector<4x128xf32> -> vector<4x128xf32>
    %1121 = arith.addf %1045, %1120 : vector<4x128xf32>
    %1122 = vector.extract_strided_slice %1071 {offsets = [512, 0], sizes = [1, 128], strides = [1, 1]} : vector<513x128xbf16> to vector<1x128xbf16>
    %1123 = arith.extf %1122 : vector<1x128xbf16> to vector<1x128xf32>
    %1124 = vector.broadcast %1123 : vector<1x128xf32> to vector<4x128xf32>
    %1125 = arith.addf %1121, %1124 : vector<4x128xf32>
    %c0_658 = arith.constant 0 : index
    %c0_659 = arith.constant 0 : index
    %c0_660 = arith.constant 0 : index
    %1126 = vector.load %arg24[%c0_658, %c0_659, %c0_660] : memref<9x4x4xbf16, #tpu.memory_space<vmem>>, vector<1x4x4xbf16>
    %1127 = vector.shape_cast %1126 : vector<1x4x4xbf16> to vector<4x4xbf16>
    %1128 = arith.truncf %1125 : vector<4x128xf32> to vector<4x128xbf16>
    %cst_661 = arith.constant dense<0.000000e+00> : vector<4x128xf32>
    %1129 = tpu.matmul %1127, %1128, %cst_661 {dimension_numbers = #tpu.dot_dimension_numbers<[1], [0], [0], [1], [0, 0, 1, 1], [], []>} : vector<4x4xbf16>, vector<4x128xbf16>, vector<4x128xf32> -> vector<4x128xf32>
    %c12_662 = arith.constant 12 : index
    %c0_663 = arith.constant 0 : index
    %c0_664 = arith.constant 0 : index
    %1130 = vector.load %arg25[%c12_662, %c0_663, %c0_664] : memref<21x1x128xf32, #tpu.memory_space<vmem>>, vector<1x1x128xf32>
    %1131 = vector.shape_cast %1130 : vector<1x1x128xf32> to vector<1x128xf32>
    %1132 = vector.broadcast %1131 : vector<1x128xf32> to vector<4x128xf32>
    %1133 = arith.mulf %1129, %1132 : vector<4x128xf32>
    %c1_665 = arith.constant 1 : index
    %c0_666 = arith.constant 0 : index
    %c0_667 = arith.constant 0 : index
    %1134 = vector.load %arg24[%c1_665, %c0_666, %c0_667] : memref<9x4x4xbf16, #tpu.memory_space<vmem>>, vector<1x4x4xbf16>
    %1135 = vector.shape_cast %1134 : vector<1x4x4xbf16> to vector<4x4xbf16>
    %1136 = arith.truncf %1125 : vector<4x128xf32> to vector<4x128xbf16>
    %cst_668 = arith.constant dense<0.000000e+00> : vector<4x128xf32>
    %1137 = tpu.matmul %1135, %1136, %cst_668 {dimension_numbers = #tpu.dot_dimension_numbers<[1], [0], [0], [1], [0, 0, 1, 1], [], []>} : vector<4x4xbf16>, vector<4x128xbf16>, vector<4x128xf32> -> vector<4x128xf32>
    %c13_669 = arith.constant 13 : index
    %c0_670 = arith.constant 0 : index
    %c0_671 = arith.constant 0 : index
    %1138 = vector.load %arg25[%c13_669, %c0_670, %c0_671] : memref<21x1x128xf32, #tpu.memory_space<vmem>>, vector<1x1x128xf32>
    %1139 = vector.shape_cast %1138 : vector<1x1x128xf32> to vector<1x128xf32>
    %1140 = vector.broadcast %1139 : vector<1x128xf32> to vector<4x128xf32>
    %1141 = arith.mulf %1137, %1140 : vector<4x128xf32>
    %1142 = arith.addf %1133, %1141 : vector<4x128xf32>
    %c2_672 = arith.constant 2 : index
    %c0_673 = arith.constant 0 : index
    %c0_674 = arith.constant 0 : index
    %1143 = vector.load %arg24[%c2_672, %c0_673, %c0_674] : memref<9x4x4xbf16, #tpu.memory_space<vmem>>, vector<1x4x4xbf16>
    %1144 = vector.shape_cast %1143 : vector<1x4x4xbf16> to vector<4x4xbf16>
    %1145 = arith.truncf %1125 : vector<4x128xf32> to vector<4x128xbf16>
    %cst_675 = arith.constant dense<0.000000e+00> : vector<4x128xf32>
    %1146 = tpu.matmul %1144, %1145, %cst_675 {dimension_numbers = #tpu.dot_dimension_numbers<[1], [0], [0], [1], [0, 0, 1, 1], [], []>} : vector<4x4xbf16>, vector<4x128xbf16>, vector<4x128xf32> -> vector<4x128xf32>
    %c14_676 = arith.constant 14 : index
    %c0_677 = arith.constant 0 : index
    %c0_678 = arith.constant 0 : index
    %1147 = vector.load %arg25[%c14_676, %c0_677, %c0_678] : memref<21x1x128xf32, #tpu.memory_space<vmem>>, vector<1x1x128xf32>
    %1148 = vector.shape_cast %1147 : vector<1x1x128xf32> to vector<1x128xf32>
    %1149 = vector.broadcast %1148 : vector<1x128xf32> to vector<4x128xf32>
    %1150 = arith.mulf %1146, %1149 : vector<4x128xf32>
    %1151 = arith.addf %1142, %1150 : vector<4x128xf32>
    %c3_679 = arith.constant 3 : index
    %c0_680 = arith.constant 0 : index
    %c0_681 = arith.constant 0 : index
    %1152 = vector.load %arg24[%c3_679, %c0_680, %c0_681] : memref<9x4x4xbf16, #tpu.memory_space<vmem>>, vector<1x4x4xbf16>
    %1153 = vector.shape_cast %1152 : vector<1x4x4xbf16> to vector<4x4xbf16>
    %1154 = arith.truncf %1125 : vector<4x128xf32> to vector<4x128xbf16>
    %cst_682 = arith.constant dense<0.000000e+00> : vector<4x128xf32>
    %1155 = tpu.matmul %1153, %1154, %cst_682 {dimension_numbers = #tpu.dot_dimension_numbers<[1], [0], [0], [1], [0, 0, 1, 1], [], []>} : vector<4x4xbf16>, vector<4x128xbf16>, vector<4x128xf32> -> vector<4x128xf32>
    %c15_683 = arith.constant 15 : index
    %c0_684 = arith.constant 0 : index
    %c0_685 = arith.constant 0 : index
    %1156 = vector.load %arg25[%c15_683, %c0_684, %c0_685] : memref<21x1x128xf32, #tpu.memory_space<vmem>>, vector<1x1x128xf32>
    %1157 = vector.shape_cast %1156 : vector<1x1x128xf32> to vector<1x128xf32>
    %1158 = vector.broadcast %1157 : vector<1x128xf32> to vector<4x128xf32>
    %1159 = arith.mulf %1155, %1158 : vector<4x128xf32>
    %1160 = arith.addf %1151, %1159 : vector<4x128xf32>
    %c4_686 = arith.constant 4 : index
    %c0_687 = arith.constant 0 : index
    %c0_688 = arith.constant 0 : index
    %1161 = vector.load %arg24[%c4_686, %c0_687, %c0_688] : memref<9x4x4xbf16, #tpu.memory_space<vmem>>, vector<1x4x4xbf16>
    %1162 = vector.shape_cast %1161 : vector<1x4x4xbf16> to vector<4x4xbf16>
    %1163 = arith.truncf %1125 : vector<4x128xf32> to vector<4x128xbf16>
    %cst_689 = arith.constant dense<0.000000e+00> : vector<4x128xf32>
    %1164 = tpu.matmul %1162, %1163, %cst_689 {dimension_numbers = #tpu.dot_dimension_numbers<[1], [0], [0], [1], [0, 0, 1, 1], [], []>} : vector<4x4xbf16>, vector<4x128xbf16>, vector<4x128xf32> -> vector<4x128xf32>
    %c16_690 = arith.constant 16 : index
    %c0_691 = arith.constant 0 : index
    %c0_692 = arith.constant 0 : index
    %1165 = vector.load %arg25[%c16_690, %c0_691, %c0_692] : memref<21x1x128xf32, #tpu.memory_space<vmem>>, vector<1x1x128xf32>
    %1166 = vector.shape_cast %1165 : vector<1x1x128xf32> to vector<1x128xf32>
    %1167 = vector.broadcast %1166 : vector<1x128xf32> to vector<4x128xf32>
    %1168 = arith.mulf %1164, %1167 : vector<4x128xf32>
    %1169 = arith.addf %1160, %1168 : vector<4x128xf32>
    %c5_693 = arith.constant 5 : index
    %c0_694 = arith.constant 0 : index
    %c0_695 = arith.constant 0 : index
    %1170 = vector.load %arg24[%c5_693, %c0_694, %c0_695] : memref<9x4x4xbf16, #tpu.memory_space<vmem>>, vector<1x4x4xbf16>
    %1171 = vector.shape_cast %1170 : vector<1x4x4xbf16> to vector<4x4xbf16>
    %1172 = arith.truncf %1125 : vector<4x128xf32> to vector<4x128xbf16>
    %cst_696 = arith.constant dense<0.000000e+00> : vector<4x128xf32>
    %1173 = tpu.matmul %1171, %1172, %cst_696 {dimension_numbers = #tpu.dot_dimension_numbers<[1], [0], [0], [1], [0, 0, 1, 1], [], []>} : vector<4x4xbf16>, vector<4x128xbf16>, vector<4x128xf32> -> vector<4x128xf32>
    %c17_697 = arith.constant 17 : index
    %c0_698 = arith.constant 0 : index
    %c0_699 = arith.constant 0 : index
    %1174 = vector.load %arg25[%c17_697, %c0_698, %c0_699] : memref<21x1x128xf32, #tpu.memory_space<vmem>>, vector<1x1x128xf32>
    %1175 = vector.shape_cast %1174 : vector<1x1x128xf32> to vector<1x128xf32>
    %1176 = vector.broadcast %1175 : vector<1x128xf32> to vector<4x128xf32>
    %1177 = arith.mulf %1173, %1176 : vector<4x128xf32>
    %1178 = arith.addf %1169, %1177 : vector<4x128xf32>
    %c6_700 = arith.constant 6 : index
    %c0_701 = arith.constant 0 : index
    %c0_702 = arith.constant 0 : index
    %1179 = vector.load %arg24[%c6_700, %c0_701, %c0_702] : memref<9x4x4xbf16, #tpu.memory_space<vmem>>, vector<1x4x4xbf16>
    %1180 = vector.shape_cast %1179 : vector<1x4x4xbf16> to vector<4x4xbf16>
    %1181 = arith.truncf %1125 : vector<4x128xf32> to vector<4x128xbf16>
    %cst_703 = arith.constant dense<0.000000e+00> : vector<4x128xf32>
    %1182 = tpu.matmul %1180, %1181, %cst_703 {dimension_numbers = #tpu.dot_dimension_numbers<[1], [0], [0], [1], [0, 0, 1, 1], [], []>} : vector<4x4xbf16>, vector<4x128xbf16>, vector<4x128xf32> -> vector<4x128xf32>
    %c18_704 = arith.constant 18 : index
    %c0_705 = arith.constant 0 : index
    %c0_706 = arith.constant 0 : index
    %1183 = vector.load %arg25[%c18_704, %c0_705, %c0_706] : memref<21x1x128xf32, #tpu.memory_space<vmem>>, vector<1x1x128xf32>
    %1184 = vector.shape_cast %1183 : vector<1x1x128xf32> to vector<1x128xf32>
    %1185 = vector.broadcast %1184 : vector<1x128xf32> to vector<4x128xf32>
    %1186 = arith.mulf %1182, %1185 : vector<4x128xf32>
    %1187 = arith.addf %1178, %1186 : vector<4x128xf32>
    %c7_707 = arith.constant 7 : index
    %c0_708 = arith.constant 0 : index
    %c0_709 = arith.constant 0 : index
    %1188 = vector.load %arg24[%c7_707, %c0_708, %c0_709] : memref<9x4x4xbf16, #tpu.memory_space<vmem>>, vector<1x4x4xbf16>
    %1189 = vector.shape_cast %1188 : vector<1x4x4xbf16> to vector<4x4xbf16>
    %1190 = arith.truncf %1125 : vector<4x128xf32> to vector<4x128xbf16>
    %cst_710 = arith.constant dense<0.000000e+00> : vector<4x128xf32>
    %1191 = tpu.matmul %1189, %1190, %cst_710 {dimension_numbers = #tpu.dot_dimension_numbers<[1], [0], [0], [1], [0, 0, 1, 1], [], []>} : vector<4x4xbf16>, vector<4x128xbf16>, vector<4x128xf32> -> vector<4x128xf32>
    %c19_711 = arith.constant 19 : index
    %c0_712 = arith.constant 0 : index
    %c0_713 = arith.constant 0 : index
    %1192 = vector.load %arg25[%c19_711, %c0_712, %c0_713] : memref<21x1x128xf32, #tpu.memory_space<vmem>>, vector<1x1x128xf32>
    %1193 = vector.shape_cast %1192 : vector<1x1x128xf32> to vector<1x128xf32>
    %1194 = vector.broadcast %1193 : vector<1x128xf32> to vector<4x128xf32>
    %1195 = arith.mulf %1191, %1194 : vector<4x128xf32>
    %1196 = arith.addf %1187, %1195 : vector<4x128xf32>
    %c8_714 = arith.constant 8 : index
    %c0_715 = arith.constant 0 : index
    %c0_716 = arith.constant 0 : index
    %1197 = vector.load %arg24[%c8_714, %c0_715, %c0_716] : memref<9x4x4xbf16, #tpu.memory_space<vmem>>, vector<1x4x4xbf16>
    %1198 = vector.shape_cast %1197 : vector<1x4x4xbf16> to vector<4x4xbf16>
    %1199 = arith.truncf %1125 : vector<4x128xf32> to vector<4x128xbf16>
    %cst_717 = arith.constant dense<0.000000e+00> : vector<4x128xf32>
    %1200 = tpu.matmul %1198, %1199, %cst_717 {dimension_numbers = #tpu.dot_dimension_numbers<[1], [0], [0], [1], [0, 0, 1, 1], [], []>} : vector<4x4xbf16>, vector<4x128xbf16>, vector<4x128xf32> -> vector<4x128xf32>
    %c20_718 = arith.constant 20 : index
    %c0_719 = arith.constant 0 : index
    %c0_720 = arith.constant 0 : index
    %1201 = vector.load %arg25[%c20_718, %c0_719, %c0_720] : memref<21x1x128xf32, #tpu.memory_space<vmem>>, vector<1x1x128xf32>
    %1202 = vector.shape_cast %1201 : vector<1x1x128xf32> to vector<1x128xf32>
    %1203 = vector.broadcast %1202 : vector<1x128xf32> to vector<4x128xf32>
    %1204 = arith.mulf %1200, %1203 : vector<4x128xf32>
    %1205 = arith.addf %1196, %1204 : vector<4x128xf32>
    %c11_721 = arith.constant 11 : index
    %c0_722 = arith.constant 0 : index
    %c0_723 = arith.constant 0 : index
    %1206 = vector.load %arg25[%c11_721, %c0_722, %c0_723] : memref<21x1x128xf32, #tpu.memory_space<vmem>>, vector<1x1x128xf32>
    %1207 = vector.shape_cast %1206 : vector<1x1x128xf32> to vector<1x128xf32>
    %1208 = vector.broadcast %1207 : vector<1x128xf32> to vector<4x128xf32>
    %1209 = arith.addf %1205, %1208 : vector<4x128xf32>
    %c0_724 = arith.constant 0 : index
    %c0_725 = arith.constant 0 : index
    %c0_726 = arith.constant 0 : index
    %1210 = vector.load %arg28[%c0_724, %c0_725, %c0_726] : memref<1x4x128xf32, #tpu.memory_space<vmem>>, vector<1x4x128xf32>
    %1211 = vector.shape_cast %1210 : vector<1x4x128xf32> to vector<4x128xf32>
    %1212 = vector.shape_cast %1209 : vector<4x128xf32> to vector<1x4x128xf32>
    tpu.vector_store %arg28[%c0_724, %c0_725, %c0_726], %1212 {strides = array<i32>} : memref<1x4x128xf32, #tpu.memory_space<vmem>>, vector<1x4x128xf32>,
    return
  }
  func.func @transform_0(%arg0: i32) -> (i32, i32, i32) {
    %c0_i32 = arith.constant 0 : i32
    %c0_i32_0 = arith.constant 0 : i32
    %c0_i32_1 = arith.constant 0 : i32
    return %arg0, %c0_i32, %c0_i32_0 : i32, i32, i32
  }
  func.func @transform_1(%arg0: i32) -> (i32, i32) {
    %c0_i32 = arith.constant 0 : i32
    %c0_i32_0 = arith.constant 0 : i32
    %c0_i32_1 = arith.constant 0 : i32
    return %c0_i32, %c0_i32_0 : i32, i32
  }
  func.func @transform_2(%arg0: i32) -> (i32, i32, i32) {
    %c0_i32 = arith.constant 0 : i32
    %c0_i32_0 = arith.constant 0 : i32
    %c0_i32_1 = arith.constant 0 : i32
    %c0_i32_2 = arith.constant 0 : i32
    return %c0_i32, %c0_i32_0, %c0_i32_1 : i32, i32, i32
  }
  func.func @transform_3(%arg0: i32) -> (i32, i32, i32) {
    %c0_i32 = arith.constant 0 : i32
    %c0_i32_0 = arith.constant 0 : i32
    %c0_i32_1 = arith.constant 0 : i32
    %c0_i32_2 = arith.constant 0 : i32
    return %c0_i32, %c0_i32_0, %c0_i32_1 : i32, i32, i32
  }
  func.func @transform_4(%arg0: i32) -> (i32, i32, i32) {
    %c0_i32 = arith.constant 0 : i32
    %c0_i32_0 = arith.constant 0 : i32
    %c0_i32_1 = arith.constant 0 : i32
    %c0_i32_2 = arith.constant 0 : i32
    return %c0_i32, %c0_i32_0, %c0_i32_1 : i32, i32, i32
  }
  func.func @transform_5(%arg0: i32) -> (i32, i32) {
    %c0_i32 = arith.constant 0 : i32
    %c0_i32_0 = arith.constant 0 : i32
    %c0_i32_1 = arith.constant 0 : i32
    return %c0_i32, %c0_i32_0 : i32, i32
  }
  func.func @transform_6(%arg0: i32) -> (i32, i32) {
    %c0_i32 = arith.constant 0 : i32
    %c0_i32_0 = arith.constant 0 : i32
    %c0_i32_1 = arith.constant 0 : i32
    return %c0_i32, %c0_i32_0 : i32, i32
  }
  func.func @transform_7(%arg0: i32) -> (i32, i32, i32) {
    %c0_i32 = arith.constant 0 : i32
    %c0_i32_0 = arith.constant 0 : i32
    %c0_i32_1 = arith.constant 0 : i32
    %c0_i32_2 = arith.constant 0 : i32
    return %c0_i32, %c0_i32_0, %c0_i32_1 : i32, i32, i32
  }
  func.func @transform_8(%arg0: i32) -> (i32, i32, i32) {
    %c0_i32 = arith.constant 0 : i32
    %c0_i32_0 = arith.constant 0 : i32
    %c0_i32_1 = arith.constant 0 : i32
    %c0_i32_2 = arith.constant 0 : i32
    return %c0_i32, %c0_i32_0, %c0_i32_1 : i32, i32, i32
  }
  func.func @transform_9(%arg0: i32) -> (i32, i32, i32) {
    %c0_i32 = arith.constant 0 : i32
    %c0_i32_0 = arith.constant 0 : i32
    %c0_i32_1 = arith.constant 0 : i32
    %c0_i32_2 = arith.constant 0 : i32
    return %c0_i32, %c0_i32_0, %c0_i32_1 : i32, i32, i32
  }
  func.func @transform_10(%arg0: i32) -> (i32, i32, i32) {
    %c0_i32 = arith.constant 0 : i32
    %c0_i32_0 = arith.constant 0 : i32
    %c0_i32_1 = arith.constant 0 : i32
    %c0_i32_2 = arith.constant 0 : i32
    return %c0_i32, %c0_i32_0, %c0_i32_1 : i32, i32, i32
  }
  func.func @transform_11(%arg0: i32) -> (i32, i32, i32) {
    %c0_i32 = arith.constant 0 : i32
    %c0_i32_0 = arith.constant 0 : i32
    %c0_i32_1 = arith.constant 0 : i32
    %c0_i32_2 = arith.constant 0 : i32
    return %c0_i32, %c0_i32_0, %c0_i32_1 : i32, i32, i32
  }
  func.func @transform_12(%arg0: i32) -> (i32, i32, i32) {
    %c0_i32 = arith.constant 0 : i32
    %c0_i32_0 = arith.constant 0 : i32
    %c0_i32_1 = arith.constant 0 : i32
    %c0_i32_2 = arith.constant 0 : i32
    return %c0_i32, %c0_i32_0, %c0_i32_1 : i32, i32, i32
  }
  func.func @transform_13(%arg0: i32) -> (i32, i32, i32) {
    %c0_i32 = arith.constant 0 : i32
    %c0_i32_0 = arith.constant 0 : i32
    %c0_i32_1 = arith.constant 0 : i32
    %c0_i32_2 = arith.constant 0 : i32
    return %c0_i32, %c0_i32_0, %c0_i32_1 : i32, i32, i32
  }
  func.func @transform_14(%arg0: i32) -> (i32, i32) {
    %c0_i32 = arith.constant 0 : i32
    %c0_i32_0 = arith.constant 0 : i32
    %c0_i32_1 = arith.constant 0 : i32
    return %c0_i32, %c0_i32_0 : i32, i32
  }
  func.func @transform_15(%arg0: i32) -> (i32, i32) {
    %c0_i32 = arith.constant 0 : i32
    %c0_i32_0 = arith.constant 0 : i32
    %c0_i32_1 = arith.constant 0 : i32
    return %c0_i32, %c0_i32_0 : i32, i32
  }
  func.func @transform_16(%arg0: i32) -> (i32, i32, i32) {
    %c0_i32 = arith.constant 0 : i32
    %c0_i32_0 = arith.constant 0 : i32
    %c0_i32_1 = arith.constant 0 : i32
    %c0_i32_2 = arith.constant 0 : i32
    return %c0_i32, %c0_i32_0, %c0_i32_1 : i32, i32, i32
  }
  func.func @transform_17(%arg0: i32) -> (i32, i32, i32) {
    %c0_i32 = arith.constant 0 : i32
    %c0_i32_0 = arith.constant 0 : i32
    %c0_i32_1 = arith.constant 0 : i32
    %c0_i32_2 = arith.constant 0 : i32
    return %c0_i32, %c0_i32_0, %c0_i32_1 : i32, i32, i32
  }
  func.func @transform_18(%arg0: i32) -> (i32, i32, i32) {
    %c0_i32 = arith.constant 0 : i32
    %c0_i32_0 = arith.constant 0 : i32
    %c0_i32_1 = arith.constant 0 : i32
    %c0_i32_2 = arith.constant 0 : i32
    return %c0_i32, %c0_i32_0, %c0_i32_1 : i32, i32, i32
  }
  func.func @transform_19(%arg0: i32) -> (i32, i32, i32) {
    %c0_i32 = arith.constant 0 : i32
    %c0_i32_0 = arith.constant 0 : i32
    %c0_i32_1 = arith.constant 0 : i32
    %c0_i32_2 = arith.constant 0 : i32
    return %c0_i32, %c0_i32_0, %c0_i32_1 : i32, i32, i32
  }
  func.func @transform_20(%arg0: i32) -> (i32, i32, i32) {
    %c0_i32 = arith.constant 0 : i32
    %c0_i32_0 = arith.constant 0 : i32
    %c0_i32_1 = arith.constant 0 : i32
    %c0_i32_2 = arith.constant 0 : i32
    return %c0_i32, %c0_i32_0, %c0_i32_1 : i32, i32, i32
  }
  func.func @transform_21(%arg0: i32) -> (i32, i32) {
    %c0_i32 = arith.constant 0 : i32
    %c0_i32_0 = arith.constant 0 : i32
    %c0_i32_1 = arith.constant 0 : i32
    return %c0_i32, %c0_i32_0 : i32, i32
  }
  func.func @transform_22(%arg0: i32) -> (i32, i32) {
    %c0_i32 = arith.constant 0 : i32
    %c0_i32_0 = arith.constant 0 : i32
    %c0_i32_1 = arith.constant 0 : i32
    return %c0_i32, %c0_i32_0 : i32, i32
  }
  func.func @transform_23(%arg0: i32) -> (i32, i32, i32) {
    %c0_i32 = arith.constant 0 : i32
    %c0_i32_0 = arith.constant 0 : i32
    %c0_i32_1 = arith.constant 0 : i32
    %c0_i32_2 = arith.constant 0 : i32
    return %c0_i32, %c0_i32_0, %c0_i32_1 : i32, i32, i32
  }
  func.func @transform_24(%arg0: i32) -> (i32, i32, i32) {
    %c0_i32 = arith.constant 0 : i32
    %c0_i32_0 = arith.constant 0 : i32
    %c0_i32_1 = arith.constant 0 : i32
    %c0_i32_2 = arith.constant 0 : i32
    return %c0_i32, %c0_i32_0, %c0_i32_1 : i32, i32, i32
  }
  func.func @transform_25(%arg0: i32) -> (i32, i32, i32) {
    %c0_i32 = arith.constant 0 : i32
    %c0_i32_0 = arith.constant 0 : i32
    %c0_i32_1 = arith.constant 0 : i32
    return %arg0, %c0_i32, %c0_i32_0 : i32, i32, i32
  }
  func.func @transform_26(%arg0: i32) -> (i32, i32, i32) {
    %c0_i32 = arith.constant 0 : i32
    %c0_i32_0 = arith.constant 0 : i32
    %c0_i32_1 = arith.constant 0 : i32
    return %arg0, %c0_i32, %c0_i32_0 : i32, i32, i32
  }
  func.func @transform_27(%arg0: i32) -> (i32, i32, i32) {
    %c0_i32 = arith.constant 0 : i32
    %c0_i32_0 = arith.constant 0 : i32
    %c0_i32_1 = arith.constant 0 : i32
    return %arg0, %c0_i32, %c0_i32_0 : i32, i32, i32
  }
}

</mosaic_0001>

<bundles_post_ra>
// kernel: _lambda_.1
= control target key start
LH: loop header
LB: loop body
LE: loop exit
PB: predicated region body
PF: predicated region fallthrough
CT: control target
= control target key end

     0   :  { %s17238_s0 = inlined_call_operand.vmem [shape: f32[2,64,48], index: 0, kind: input, shape index: {}]   ;;  %s17239_s1 = inlined_call_operand.vmem [shape: bf16[48,32], index: 1, kind: input, shape index: {}]   ;;  %s17240_s2 = inlined_call_operand.vmem [shape: bf16[4,32,32], index: 2, kind: input, shape index: {}]   ;;  %s17241_s3 = inlined_call_operand.vmem [shape: bf16[16,32,32], index: 3, kind: input, shape index: {}]   ;;  %s17242_s4 = inlined_call_operand.vmem [shape: bf16[16,4,64], index: 4, kind: input, shape index: {}]   ;;  %s17243_s5 = inlined_call_operand.vmem [shape: bf16[33,128], index: 5, kind: input, shape index: {}]   ;;  %s17244_s6 = inlined_call_operand.vmem [shape: bf16[129,32], index: 6, kind: input, shape index: {}]   ;;  %s17245_s7 = inlined_call_operand.vmem [shape: bf16[9,64,64], index: 7, kind: input, shape index: {}]   ;;  %s17246_s8 = inlined_call_operand.vmem [shape: f32[24,1,32], index: 8, kind: input, shape index: {}]   ;;  %s17247_s9 = inlined_call_operand.vmem [shape: bf16[4,16,64], index: 9, kind: input, shape index: {}]   ;;  %s17248_s10 = inlined_call_operand.vmem [shape: bf16[4,32,64], index: 10, kind: input, shape index: {}]   ;;  %s17249_s11 = inlined_call_operand.vmem [shape: bf16[4,64,64], index: 11, kind: input, shape index: {}]   ;;  %s17250_s12 = inlined_call_operand.vmem [shape: bf16[4,64,64], index: 12, kind: input, shape index: {}]   ;;  %s17251_s13 = inlined_call_operand.vmem [shape: bf16[4,4,16], index: 13, kind: input, shape index: {}]   ;;  %s17252_s14 = inlined_call_operand.vmem [shape: bf16[65,256], index: 14, kind: input, shape index: {}]   ;;  %s17253_s15 = inlined_call_operand.vmem [shape: bf16[257,64], index: 15, kind: input, shape index: {}]   ;;  %s17254_s16 = inlined_call_operand.vmem [shape: bf16[9,16,16], index: 16, kind: input, shape index: {}]   ;;  %s17255_s17 = inlined_call_operand.vmem [shape: f32[24,1,64], index: 17, kind: input, shape index: {}]   ;;  %s17256_s18 = inlined_call_operand.vmem [shape: bf16[4,4,16], index: 18, kind: input, shape index: {}]   ;;  %s17257_s19 = inlined_call_operand.vmem [shape: bf16[4,64,128], index: 19, kind: input, shape index: {}]   ;;  %s17258_s20 = inlined_call_operand.vmem [shape: bf16[4,128,128], index: 20, kind: input, shape index: {}]   ;;  %s17259_s21 = inlined_call_operand.vmem [shape: bf16[129,512], index: 21, kind: input, shape index: {}]   ;;  %s17260_s22 = inlined_call_operand.vmem [shape: bf16[513,128], index: 22, kind: input, shape index: {}]   ;;  %s17261_s23 = inlined_call_operand.vmem [shape: bf16[9,4,4], index: 23, kind: input, shape index: {}]   ;;  %s17262_s24 = inlined_call_operand.vmem [shape: f32[21,1,128], index: 24, kind: input, shape index: {}]   ;;  %s17263_s25 = inlined_call_operand.hbm [shape: f32[2,64,32], index: 25, kind: output, shape index: {0}]   ;;  %s17264_s26 = inlined_call_operand.hbm [shape: f32[2,16,64], index: 26, kind: output, shape index: {1}]   ;;  %s17265_s27 = inlined_call_operand.hbm [shape: f32[2,4,128], index: 27, kind: output, shape index: {2}]  }
   0x1   :  { %17299 = sst [smem:[#allocation14_spill]] %s17238_s0 }
   0x2   :  { %17300 = sst [smem:[#allocation15_spill]] %s17239_s1 }
   0x3   :  { %17301 = sst [smem:[#allocation16_spill]] %s17240_s2 }
   0x4   :  { %17302 = sst [smem:[#allocation17_spill]] %s17241_s3 }
   0x5   :  { %17303 = sst [smem:[#allocation18_spill]] %s17242_s4 }
   0x6   :  { %17304 = sst [smem:[#allocation19_spill]] %s17243_s5 }
   0x7   :  { %17305 = sst [smem:[#allocation20_spill]] %s17244_s6 }
   0x8   :  { %17306 = sst [smem:[#allocation21_spill]] %s17245_s7 }
   0x9   :  { %17307 = sst [smem:[#allocation22_spill]] %s17246_s8 }
   0xa   :  { %17308 = sst [smem:[#allocation23_spill]] %s17247_s9 }
   0xb   :  { %17309 = sst [smem:[#allocation24_spill]] %s17248_s10 }
   0xc   :  { %17310 = sst [smem:[#allocation25_spill]] %s17249_s11 }
   0xd   :  { %17311 = sst [smem:[#allocation26_spill]] %s17250_s12 }
   0xe   :  { %17312 = sst [smem:[#allocation27_spill]] %s17251_s13 }
   0xf   :  { %17313 = sst [smem:[#allocation28_spill]] %s17252_s14 }
  0x10   :  { %17314 = sst [smem:[#allocation29_spill]] %s17253_s15 }
  0x11   :  { %33 = vsyncpa [#allocation3], 0 }
  0x12   :  { %35 = vsyncpa [#allocation3 + $0x1], 0 }
  0x13   :  { %36 = vsyncpa [#allocation5], 0 }
  0x14   :  { %38 = vsyncpa [#allocation5 + $0x1], 0  ;;  %s14440_s7 = smov 0   ;;  %s14442_s4 = smov 0  }
  0x15   :  { %s14444_s8 = smov 0   ;;  %s14446_s30 = smov 0  }
  0x16 LB: > { %17315 = sst [smem:[#allocation9_spill]] %s14275_s7  ;;  %s14461_s9 = sadd.s32 4294967295, %s14287_s30   ;;  %s14287_s30 = sphi %s14446_s30, %s17346_s30   ;;  %s14283_s8 = sphi %s14444_s8, %s17348_s8   ;;  %s14279_s4 = sphi %s14442_s4, %s17350_s4   ;;  %s14275_s7 = sphi %s14440_s7, %s17349_s7  }
  0x17   : > { %17316 = sst [smem:[#allocation10_spill]] %s14283_s8  ;;  %s17277_s5 = sadd.s32 4294967294, %s14287_s30  }
  0x18   : > { %s14465_s28 = sadd.s32 1, %s14287_s30   ;;  %s581_s0 = sadd.s32 1, %s14283_s8 }
  0x19   : > { %17317 = sst [smem:[#allocation11_spill]] %s14465_s28  ;;  %s578_s10 = ssub.s32 %s14287_s30, %s14465_s28 }
  0x1a   : > { %p591_p0 = scmp.ne.s32.totalorder %s14283_s8, %s14279_s4  ;;  %p579_p1 = scmp.eq.s32.totalorder %s578_s10, 0 }
  0x1b   : > { %p592_p2 = scmp.eq.s32.totalorder %s14461_s9, 1  ;;  %p597_p3 = scmp.ne.s32.totalorder %s14279_s4, %s14275_s7 }
  0x1c   : > { %p598_p4 = scmp.eq.s32.totalorder %s17277_s5, 1  ;;  %p11072_p7 = scmp.ge.s32.totalorder %s14287_s30, 1 }
  0x1d   : > { %s14478_s29 = scalar_select %p579_p1, %s14283_s8, %s581_s0  }
  0x1e   : > { %p14480_p5 = por %p592_p2, %p591_p0  ;;  %p14484_p6 = por %p598_p4, %p597_p3 }
  0x1f   : > { %17318 = sst [smem:[#allocation12_spill]] %s14478_s29  ;;  %p748_p8 = scmp.lt.s32.totalorder %s14287_s30, 3 }
  0x20   : > { %s17320_s6 = scalar_select %p14484_p6, 1, 0 }
  0x21   : > { %p749_p9 = pnand %p11072_p7, %p748_p8 }
  0x22   : > { %17321 = sst [smem:[#allocation13_spill]] %s17320_s6  ;;  %s17322_s3 = sld [smem:[#allocation15_spill]] (!%p749_p9)  ;;  %vm879_vm0 = vcmask (!%p749_p9), 392192   ;;  %vm961_vm1 = vcmask (!%p749_p9), 261120   ;;  %vm14290_vm2 = vmmov (!%p749_p9), 0   ;;  %vm1236_vm3 = vcmask (!%p749_p9), 523264  }
  0x23   : > { %752 = sbr.rel (%p749_p9) target bundleno = 16019 (0x3e93), region = 120  ;;  %p830_p10 = scmp.lt.s32.totalorder (!%p749_p9), %s14461_s9, 1  ;;  %vm2957_vm4 = vcmask (!%p749_p9), 257024   ;;  %vm3419_vm5 = vcmask (!%p749_p9), 1041408   ;;  %vm3313_vm6 = vcmask (!%p749_p9), 31744   ;;  %vm5975_vm15 = vcmask (!%p749_p9), 130048  }
  0x24   : > { %s17323_s11 = sld [smem:[#allocation14_spill]] (!%p749_p9)  ;;  %s17325_s29 = sld [smem:[#allocation18_spill]] (!%p749_p9) }
  0x25   : > { %s17324_s5 = sld [smem:[#allocation22_spill]] (!%p749_p9)  ;;  %s17331_s0 = sld [smem:[#allocation20_spill]] (!%p749_p9) }
  0x26   : > { %s17335_s13 = sld [smem:[#allocation27_spill]] (!%p749_p9)  ;;  %s17336_s12 = sld [smem:[#allocation26_spill]] (!%p749_p9) }
  0x27   : > { %s17292_s7 = smov (!%p749_p9), 96   ;;  %s17294_s10 = smov (!%p749_p9), 32  }
  0x28   : > { %v13669_v0 = vld [vmem:[%s17322_s3] sm:$0xff] (!%p749_p9)   ;;  %v13670_v1 = vld [vmem:[%s17322_s3 + $0x8] sm:$0xff] (!%p749_p9)   ;;  %v13671_v2 = vld [vmem:[%s17322_s3 + $0x10] sm:$0xff] (!%p749_p9)   ;;  %s17339_s14 = sld [smem:[#allocation28_spill]] (!%p749_p9)  ;;  %s17340_s15 = sld [smem:[#allocation29_spill]] (!%p749_p9) }
  0x29   : > { %12499 = vmatprep.subr.bf16.mxu0 (!%p749_p9), %v13669_v0 }
  0x2a   : > { %s831_s8 = scalar_select %p830_p10, %s14461_s9, 1  ;;  %12500 = vmatpush3.bf16.msra.mxu0 %v13669_v0 }
  0x2b   : > { %12501 = vmatprep.subr.bf16.mxu0 %v13670_v1  ;;  %v11078_v15 = vld [vmem:[%s17324_s5] ss:$0 sm:$0xff] }
  0x2c   : > { %s11973_s28 = sshll.u32 %s831_s8, 6  ;;  %s17327_s8 = sld [smem:[#allocation16_spill]] }
  0x2d   : > { %s834_s2 = scalar_lea.vmem %s17323_s11, %s11973_s28  ;;  %s17342_s11 = smov 64  }
  0x2e   : > { %v836_v3 = vld [vmem:[%s834_s2] sm:$0xff]  ;;  %v837_v4 = vld [vmem:[%s834_s2 + $0x8] sm:$0xff]  ;;  %12502 = vmatpush3.bf16.msra.mxu0 %v13670_v1  ;;  %v838_v6 = vld [vmem:[%s834_s2 + $0x10] sm:$0xff] }
  0x2f   : > { %v850_v5 = vpack.c.bf16 %v837_v4, %v836_v3  ;;  %v839_v7 = vld [vmem:[%s834_s2 + $0x18] sm:$0xff]  ;;  %12503 = vmatprep.subr.bf16.mxu0 %v13671_v2  ;;  %v840_v8 = vld [vmem:[%s834_s2 + $0x20] sm:$0xff]  ;;  %v841_v9 = vld [vmem:[%s834_s2 + $0x28] sm:$0xff] }
  0x30   : > { %v851_v10 = vpack.c.bf16 %v839_v7, %v838_v6  ;;  %v852_v11 = vpack.c.bf16 %v841_v9, %v840_v8  ;;  %v842_v12 = vld [vmem:[%s834_s2 + $0x30] sm:$0xff]  ;;  %v843_v13 = vld [vmem:[%s834_s2 + $0x38] sm:$0xff]  ;;  %s17326_s2 = sld [smem:[#allocation17_spill]] }
  0x31   : > { %12505 = vmatprep.mubr.msk.bf16.mxu0 %vm879_vm0, %v850_v5  ;;  %v853_v14 = vpack.c.bf16 %v843_v13, %v842_v12 }
  0x32   : > { %12504 = vmatpush3.bf16.msra.mxu0 %v13671_v2  ;;  %s17328_s3 = smov %s17327_s8 }
  0x35   : > { %12506 = vmatmul.mubr.msk.bf16.vlgmr.msra.gmra.mrb[0].mxu0 %vm879_vm0, %v851_v10 }
  0x36   : > { %12509 = vmatprep.mubr.msk.bf16.mxu0 %vm879_vm0, %v852_v11 }
  0x3d   : > { %12510 = vmatmul.mubr.msk.bf16.gmra.mrb[4].mxu0 %vm879_vm0, %v853_v14  ;;  %vm6476_vm0 = vcmask 519168  }
 0x108   : > { %v12507_v16 = vpop.f32.mrb[0].mxu0 }
 0x109   : > { %v926_v17 = vpop.f32.mrb[1].mxu0  ;;  %v935_v18 = vadd.f32 %v12507_v16, %v11078_v15 }
 0x10a   : > { %v12508_v19 = vpop.f32.mrb[2].mxu0  ;;  %v927_v20 = vadd.f32 %v11078_v15, %v926_v17 }
 0x10b   : > { %v929_v21 = vpop.f32.mrb[3].mxu0  ;;  %v968_v22 = vsel %vm961_vm1, %v935_v18, 0.0  ;;  %v938_v23 = vadd.f32 %v12508_v19, %v11078_v15 }
 0x10c   : > { %969 = vadd.xlane.f32.xlu1 %v968_v22  ;;  %v962_v24 = vsel %vm961_vm1, %v927_v20, 0.0  ;;  %v930_v25 = vadd.f32 %v11078_v15, %v929_v21 }
 0x10d   : > { %963 = vadd.xlane.f32.xlu0 %v962_v24  ;;  %v971_v26 = vsel %vm961_vm1, %v938_v23, 0.0 }
 0x10e   : > { %v965_v28 = vsel %vm961_vm1, %v930_v25, 0.0 }
 0x110   : > { %972 = vadd.xlane.f32.xlu1 %v971_v26  ;;  %v12511_v27 = vpop.f32.mrb[4].mxu0 }
 0x111   : > { %v942_v29 = vpop.f32.mrb[5].mxu0  ;;  %966 = vadd.xlane.f32.xlu0 %v965_v28  ;;  %v951_v33 = vadd.f32 %v12511_v27, %v11078_v15 }
 0x112   : > { %v943_v30 = vadd.f32 %v11078_v15, %v942_v29  ;;  %v12512_v31 = vpop.f32.mrb[6].mxu0 }
 0x113   : > { %v945_v32 = vpop.f32.mrb[7].mxu0  ;;  %v954_v36 = vadd.f32 %v12512_v31, %v11078_v15  ;;  %v980_v38 = vsel %vm961_vm1, %v951_v33, 0.0 }
 0x114   : > { %v946_v34 = vadd.f32 %v11078_v15, %v945_v32  ;;  %v974_v35 = vsel %vm961_vm1, %v943_v30, 0.0 }
 0x115   : > { %975 = vadd.xlane.f32.xlu0 %v974_v35  ;;  %v983_v39 = vsel %vm961_vm1, %v954_v36, 0.0 }
 0x116   : > { %v977_v37 = vsel %vm961_vm1, %v946_v34, 0.0 }
 0x117   : > { %978 = vadd.xlane.f32.xlu1 %v977_v37 }
 0x119   : > { %981 = vadd.xlane.f32.xlu0 %v980_v38  ;;  %v11088_v38 = vld [vmem:[%s17324_s5 + $0x1] ss:$0 sm:$0xff] }
 0x11b   : > { %984 = vadd.xlane.f32.xlu1 %v983_v39 }
 0x199   : > { %v970_v40 = vpop.xlane.xlu1 %969 }
 0x19a   : > { %v989_v41 = vmul.f32 0.03125, %v970_v40  ;;  %v964_v42 = vpop.xlane.xlu0 %963 }
 0x19b   : > { %v987_v43 = vmul.f32 0.03125, %v964_v42  ;;  %v11089_v42 = vld [vmem:[%s17324_s5 + $0x2] ss:$0 sm:$0xff] }
 0x19c   : > { %v14519_v44 = vsub.f32 %v935_v18, %v989_v41 }
 0x19d   : > { %v14521_v45 = vsub.f32 %v927_v20, %v987_v43  ;;  %v973_v46 = vpop.xlane.xlu1 %972 }
 0x19e   : > { %v990_v47 = vmul.f32 0.03125, %v973_v46  ;;  %v967_v48 = vpop.xlane.xlu0 %966  ;;  %v1005_v54 = vmul.f32 %v14519_v44, %v14519_v44 }
 0x19f   : > { %v988_v49 = vmul.f32 0.03125, %v967_v48  ;;  %v1003_v50 = vmul.f32 %v14521_v45, %v14521_v45 }
 0x1a0   : > { %v14525_v51 = vsub.f32 %v938_v23, %v990_v47  ;;  %v1017_v62 = vsel %vm961_vm1, %v1005_v54, 0.0 }
 0x1a1   : > { %v14527_v52 = vsub.f32 %v930_v25, %v988_v49  ;;  %v1011_v53 = vsel %vm961_vm1, %v1003_v50, 0.0 }
 0x1a2   : > { %1012 = vadd.xlane.f32.xlu0 %v1011_v53  ;;  %v976_v55 = vpop.xlane.xlu0 %975  ;;  %v1006_v59 = vmul.f32 %v14525_v51, %v14525_v51 }
 0x1a3   : > { %v991_v56 = vmul.f32 0.03125, %v976_v55  ;;  %v1004_v57 = vmul.f32 %v14527_v52, %v14527_v52 }
 0x1a4   : > { %v979_v58 = vpop.xlane.xlu1 %978  ;;  %v1020_v5 = vsel %vm961_vm1, %v1006_v59, 0.0 }
 0x1a5   : > { %v14536_v60 = vsub.f32 %v943_v30, %v991_v56  ;;  %v992_v61 = vmul.f32 0.03125, %v979_v58  ;;  %v1014_v63 = vsel %vm961_vm1, %v1004_v57, 0.0 }
 0x1a6   : > { %1018 = vadd.xlane.f32.xlu0 %v1017_v62  ;;  %1015 = vadd.xlane.f32.xlu1 %v1014_v63  ;;  %v982_v0 = vpop.xlane.xlu0 %981 }
 0x1a7   : > { %v14540_v1 = vsub.f32 %v946_v34, %v992_v61  ;;  %v993_v2 = vmul.f32 0.03125, %v982_v0  ;;  %v1007_v3 = vmul.f32 %v14536_v60, %v14536_v60 }
 0x1a8   : > { %v985_v4 = vpop.xlane.xlu1 %984 }
 0x1a9   : > { %v14545_v6 = vsub.f32 %v951_v33, %v993_v2  ;;  %v994_v7 = vmul.f32 0.03125, %v985_v4  ;;  %v1023_v8 = vsel %vm961_vm1, %v1007_v3, 0.0  ;;  %v1008_v9 = vmul.f32 %v14540_v1, %v14540_v1 }
 0x1aa   : > { %1021 = vadd.xlane.f32.xlu1 %v1020_v5  ;;  %1024 = vadd.xlane.f32.xlu0 %v1023_v8 }
 0x1ab   : > { %v14550_v10 = vsub.f32 %v954_v36, %v994_v7  ;;  %v1009_v11 = vmul.f32 %v14545_v6, %v14545_v6  ;;  %v1026_v12 = vsel %vm961_vm1, %v1008_v9, 0.0 }
 0x1ad   : > { %v1029_v13 = vsel %vm961_vm1, %v1009_v11, 0.0  ;;  %v1010_v14 = vmul.f32 %v14550_v10, %v14550_v10 }
 0x1ae   : > { %1027 = vadd.xlane.f32.xlu1 %v1026_v12  ;;  %1030 = vadd.xlane.f32.xlu0 %v1029_v13 }
 0x1af   : > { %v1032_v15 = vsel %vm961_vm1, %v1010_v14, 0.0 }
 0x1b2   : > { %1033 = vadd.xlane.f32.xlu1 %v1032_v15 }
 0x22f   : > { %v1013_v16 = vpop.xlane.xlu0 %1012 }
 0x230   : > { %v1035_v17 = vmul.f32 0.03125, %v1013_v16 }
 0x232   : > { %v1043_v18 = vadd.f32 1e-05, %v1035_v17 }
 0x233   : > { %v1016_v19 = vpop.xlane.xlu1 %1015  ;;  %v1019_v20 = vpop.xlane.xlu0 %1018 }
 0x234   : > { %13967 = vrsqrt.f32 %v1043_v18  ;;  %v1036_v21 = vmul.f32 0.03125, %v1016_v19  ;;  %v1037_v22 = vmul.f32 0.03125, %v1019_v20 }
 0x236   : > { %v1044_v23 = vadd.f32 1e-05, %v1036_v21  ;;  %v1045_v24 = vadd.f32 1e-05, %v1037_v22 }
 0x237   : > { %v1022_v25 = vpop.xlane.xlu1 %1021  ;;  %v1025_v26 = vpop.xlane.xlu0 %1024 }
 0x238   : > { %13969 = vrsqrt.f32 %v1044_v23  ;;  %v1038_v27 = vmul.f32 0.03125, %v1022_v25  ;;  %v1039_v28 = vmul.f32 0.03125, %v1025_v26 }
 0x239   : > { %13971 = vrsqrt.f32 %v1045_v24 }
 0x23a   : > { %v1046_v29 = vadd.f32 1e-05, %v1038_v27  ;;  %v1047_v30 = vadd.f32 1e-05, %v1039_v28 }
 0x23b   : > { %v1028_v31 = vpop.xlane.xlu1 %1027  ;;  %v1031_v32 = vpop.xlane.xlu0 %1030 }
 0x23c   : > { %13973 = vrsqrt.f32 %v1046_v29  ;;  %v1040_v33 = vmul.f32 0.03125, %v1028_v31  ;;  %v1041_v34 = vmul.f32 0.03125, %v1031_v32 }
 0x23d   : > { %13975 = vrsqrt.f32 %v1047_v30 }
 0x23e   : > { %v13968_v35 = vpop.eup %13967  ;;  %v1048_v36 = vadd.f32 1e-05, %v1040_v33  ;;  %v1049_v37 = vadd.f32 1e-05, %v1041_v34 }
 0x23f   : > { %v1034_v39 = vpop.xlane.xlu1 %1033  ;;  %v1059_v40 = vmul.f32 %v13968_v35, %v14521_v45 }
 0x240   : > { %13977 = vrsqrt.f32 %v1048_v36  ;;  %v1042_v41 = vmul.f32 0.03125, %v1034_v39 }
 0x241   : > { %13979 = vrsqrt.f32 %v1049_v37  ;;  %v1073_v43 = vmul.f32 %v11088_v38, %v1059_v40 }
 0x242   : > { %v13970_v46 = vpop.eup %13969  ;;  %v1050_v47 = vadd.f32 1e-05, %v1042_v41 }
 0x243   : > { %v13972_v48 = vpop.eup %13971  ;;  %v14566_v49 = vadd.f32 %v11089_v42, %v1073_v43  ;;  %v1060_v50 = vmul.f32 %v13970_v46, %v14527_v52 }
 0x244   : > { %13981 = vrsqrt.f32 %v1050_v47  ;;  %v1061_v53 = vmul.f32 %v13972_v48, %v14519_v44 }
 0x245   : > { %v1099_v45 = vsel %vm961_vm1, %v14566_v49, 0.0  ;;  %v1074_v54 = vmul.f32 %v11088_v38, %v1060_v50 }
 0x246   : > { %v13974_v55 = vpop.eup %13973  ;;  %1100 = vadd.xlane.f32.xlu0 %v1099_v45  ;;  %v1075_v56 = vmul.f32 %v11088_v38, %v1061_v53 }
 0x247   : > { %v13976_v57 = vpop.eup %13975  ;;  %v14572_v58 = vadd.f32 %v11089_v42, %v1074_v54  ;;  %v1062_v59 = vmul.f32 %v13974_v55, %v14525_v51 }
 0x248   : > { %v14575_v61 = vadd.f32 %v11089_v42, %v1075_v56  ;;  %v1063_v62 = vmul.f32 %v13976_v57, %v14536_v60 }
 0x249   : > { %v1102_v52 = vsel %vm961_vm1, %v14572_v58, 0.0  ;;  %v1076_v44 = vmul.f32 %v11088_v38, %v1062_v59 }
 0x24a   : > { %v13978_v63 = vpop.eup %13977  ;;  %1103 = vadd.xlane.f32.xlu1 %v1102_v52  ;;  %v1105_v0 = vsel %vm961_vm1, %v14575_v61, 0.0  ;;  %v1077_v2 = vmul.f32 %v11088_v38, %v1063_v62 }
 0x24b   : > { %v13980_v3 = vpop.eup %13979  ;;  %1106 = vadd.xlane.f32.xlu0 %v1105_v0  ;;  %v14582_v4 = vadd.f32 %v11089_v42, %v1076_v44  ;;  %v1064_v51 = vmul.f32 %v13978_v63, %v14540_v1  ;;  %v14289_v63 = vmov 0.0  }
 0x24c   : > { %v14585_v5 = vadd.f32 %v11089_v42, %v1077_v2  ;;  %v1065_v60 = vmul.f32 %v13980_v3, %v14545_v6  ;;  %12513 = vmatprep.subr.bf16.mxu1 %v14289_v63  ;;  %12525 = vmatprep.subr.bf16.mxu0 %v14289_v63 }
 0x24d   : > { %v1108_v7 = vsel %vm961_vm1, %v14582_v4, 0.0  ;;  %v1078_v8 = vmul.f32 %v11088_v38, %v1064_v51  ;;  %12533 = vmatprep.mubr.msk.bf16.mxu0 %vm14290_vm2, %v14289_v63  ;;  %12521 = vmatprep.mubr.msk.bf16.mxu1 %vm14290_vm2, %v14289_v63 }
 0x24e   : > { %v13982_v9 = vpop.eup %13981  ;;  %1109 = vadd.xlane.f32.xlu1 %v1108_v7  ;;  %v1111_v11 = vsel %vm961_vm1, %v14585_v5, 0.0  ;;  %v1079_v12 = vmul.f32 %v11088_v38, %v1065_v60 }
 0x24f   : > { %1112 = vadd.xlane.f32.xlu0 %v1111_v11  ;;  %v14592_v13 = vadd.f32 %v11089_v42, %v1078_v8  ;;  %v1066_v14 = vmul.f32 %v13982_v9, %v14550_v10 }
 0x250   : > { %v14595_v1 = vadd.f32 %v11089_v42, %v1079_v12 }
 0x251   : > { %v1114_v6 = vsel %vm961_vm1, %v14592_v13, 0.0  ;;  %v1080_v15 = vmul.f32 %v11088_v38, %v1066_v14 }
 0x252   : > { %1115 = vadd.xlane.f32.xlu1 %v1114_v6  ;;  %v1117_v16 = vsel %vm961_vm1, %v14595_v1, 0.0 }
 0x253   : > { %1118 = vadd.xlane.f32.xlu0 %v1117_v16  ;;  %v14601_v17 = vadd.f32 %v11089_v42, %v1080_v15 }
 0x255   : > { %v1120_v18 = vsel %vm961_vm1, %v14601_v17, 0.0 }
 0x256   : > { %1121 = vadd.xlane.f32.xlu1 %v1120_v18 }
 0x2d3   : > { %v1101_v19 = vpop.xlane.xlu0 %1100 }
 0x2d4   : > { %v1123_v20 = vmul.f32 0.03125, %v1101_v19 }
 0x2d6   : > { %v14606_v10 = vsub.f32 %v14566_v49, %v1123_v20 }
 0x2d7   : > { %v1104_v21 = vpop.xlane.xlu1 %1103 }
 0x2d8   : > { %v1124_v22 = vmul.f32 0.03125, %v1104_v21  ;;  %v1107_v23 = vpop.xlane.xlu0 %1106  ;;  %v1139_v24 = vmul.f32 %v14606_v10, %v14606_v10 }
 0x2d9   : > { %v1125_v25 = vmul.f32 0.03125, %v1107_v23 }
 0x2da   : > { %v14611_v26 = vsub.f32 %v14572_v58, %v1124_v22  ;;  %v1147_v27 = vsel %vm961_vm1, %v1139_v24, 0.0 }
 0x2db   : > { %v14615_v28 = vsub.f32 %v14575_v61, %v1125_v25  ;;  %v1110_v29 = vpop.xlane.xlu1 %1109  ;;  %1148 = vadd.xlane.f32.xlu0 %v1147_v27 }
 0x2dc   : > { %v1126_v30 = vmul.f32 0.03125, %v1110_v29  ;;  %v1113_v31 = vpop.xlane.xlu0 %1112  ;;  %v1140_v32 = vmul.f32 %v14611_v26, %v14611_v26 }
 0x2dd   : > { %v1127_v33 = vmul.f32 0.03125, %v1113_v31  ;;  %v1141_v34 = vmul.f32 %v14615_v28, %v14615_v28 }
 0x2de   : > { %v14622_v35 = vsub.f32 %v14582_v4, %v1126_v30  ;;  %v1150_v36 = vsel %vm961_vm1, %v1140_v32, 0.0  ;;  %v11092_v30 = vld [vmem:[%s17324_s5 + $0x3] ss:$0 sm:$0xff] }
 0x2df   : > { %v14626_v37 = vsub.f32 %v14585_v5, %v1127_v33  ;;  %1151 = vadd.xlane.f32.xlu1 %v1150_v36  ;;  %v1116_v38 = vpop.xlane.xlu1 %1115  ;;  %v1153_v39 = vsel %vm961_vm1, %v1141_v34, 0.0 }
 0x2e0   : > { %v1128_v40 = vmul.f32 0.03125, %v1116_v38  ;;  %1154 = vadd.xlane.f32.xlu0 %v1153_v39  ;;  %v1119_v41 = vpop.xlane.xlu0 %1118  ;;  %v1142_v42 = vmul.f32 %v14622_v35, %v14622_v35  ;;  %v11093_v39 = vld [vmem:[%s17324_s5 + $0x4] ss:$0 sm:$0xff] }
 0x2e1   : > { %v1129_v43 = vmul.f32 0.03125, %v1119_v41  ;;  %v1143_v46 = vmul.f32 %v14626_v37, %v14626_v37 }
 0x2e2   : > { %v14634_v47 = vsub.f32 %v14592_v13, %v1128_v40  ;;  %v1156_v48 = vsel %vm961_vm1, %v1142_v42, 0.0 }
 0x2e3   : > { %v14638_v50 = vsub.f32 %v14595_v1, %v1129_v43  ;;  %1157 = vadd.xlane.f32.xlu1 %v1156_v48  ;;  %v1122_v53 = vpop.xlane.xlu1 %1121  ;;  %v1159_v45 = vsel %vm961_vm1, %v1143_v46, 0.0 }
 0x2e4   : > { %v1130_v54 = vmul.f32 0.03125, %v1122_v53  ;;  %1160 = vadd.xlane.f32.xlu0 %v1159_v45  ;;  %v1144_v55 = vmul.f32 %v14634_v47, %v14634_v47 }
 0x2e5   : > { %v1145_v56 = vmul.f32 %v14638_v50, %v14638_v50 }
 0x2e6   : > { %v14646_v57 = vsub.f32 %v14601_v17, %v1130_v54  ;;  %v1162_v59 = vsel %vm961_vm1, %v1144_v55, 0.0 }
 0x2e7   : > { %1163 = vadd.xlane.f32.xlu1 %v1162_v59  ;;  %v1165_v62 = vsel %vm961_vm1, %v1145_v56, 0.0 }
 0x2e8   : > { %1166 = vadd.xlane.f32.xlu0 %v1165_v62  ;;  %v1146_v52 = vmul.f32 %v14646_v57, %v14646_v57 }
 0x2ea   : > { %v1168_v44 = vsel %vm961_vm1, %v1146_v52, 0.0 }
 0x2eb   : > { %1169 = vadd.xlane.f32.xlu1 %v1168_v44 }
 0x368   : > { %v1149_v0 = vpop.xlane.xlu0 %1148 }
 0x369   : > { %v1171_v2 = vmul.f32 0.03125, %v1149_v0 }
 0x36b   : > { %v1179_v3 = vadd.f32 1e-06, %v1171_v2 }
 0x36c   : > { %v1152_v51 = vpop.xlane.xlu1 %1151 }
 0x36d   : > { %13983 = vrsqrt.f32 %v1179_v3  ;;  %v1172_v60 = vmul.f32 0.03125, %v1152_v51  ;;  %v1155_v7 = vpop.xlane.xlu0 %1154 }
 0x36e   : > { %v1173_v8 = vmul.f32 0.03125, %v1155_v7 }
 0x36f   : > { %v1180_v9 = vadd.f32 1e-06, %v1172_v60 }
 0x370   : > { %v1181_v11 = vadd.f32 1e-06, %v1173_v8  ;;  %v1158_v12 = vpop.xlane.xlu1 %1157 }
 0x371   : > { %13985 = vrsqrt.f32 %v1180_v9  ;;  %v1174_v14 = vmul.f32 0.03125, %v1158_v12  ;;  %v1161_v6 = vpop.xlane.xlu0 %1160  ;;  %v11095_v9 = vld [vmem:[%s17325_s29 + $0x2] sm:$0x3]  ;;  %v13672_v12 = vld [vmem:[%s17326_s2 + $0x10] sm:$0xff]  }
 0x372   : > { %13987 = vrsqrt.f32 %v1181_v11  ;;  %v1175_v15 = vmul.f32 0.03125, %v1161_v6  ;;  %v1231_v11 = vld [vmem:[%s17325_s29] sm:$0x3]  ;;  %v11107_v6 = vld [vmem:[%s17325_s29 + $0x4] sm:$0x3] }
 0x373   : > { %v1182_v16 = vadd.f32 1e-06, %v1174_v14  ;;  %v13673_v14 = vld [vmem:[%s17326_s2 + $0x18] sm:$0xff]  }
 0x374   : > { %v1183_v18 = vadd.f32 1e-06, %v1175_v15  ;;  %v1164_v19 = vpop.xlane.xlu1 %1163 }
 0x375   : > { %13989 = vrsqrt.f32 %v1182_v16  ;;  %v1176_v20 = vmul.f32 0.03125, %v1164_v19  ;;  %v1167_v21 = vpop.xlane.xlu0 %1166  ;;  %v13674_v16 = vld [vmem:[%s17326_s2] sm:$0xff]  }
 0x376   : > { %13991 = vrsqrt.f32 %v1183_v18  ;;  %v1177_v22 = vmul.f32 0.03125, %v1167_v21 }
 0x377   : > { %v13984_v23 = vpop.eup %13983  ;;  %v1184_v24 = vadd.f32 1e-06, %v1176_v20 }
 0x378   : > { %v1195_v25 = vmul.f32 %v13984_v23, %v14606_v10  ;;  %v1185_v27 = vadd.f32 1e-06, %v1177_v22  ;;  %v1170_v29 = vpop.xlane.xlu1 %1169 }
 0x379   : > { %13993 = vrsqrt.f32 %v1184_v24  ;;  %v1178_v31 = vmul.f32 0.03125, %v1170_v29 }
 0x37a   : > { %13995 = vrsqrt.f32 %v1185_v27  ;;  %v1209_v36 = vmul.f32 %v11092_v30, %v1195_v25  ;;  %v13675_v27 = vld [vmem:[%s17326_s2 + $0x8] sm:$0xff]  }
 0x37b   : > { %v13986_v32 = vpop.eup %13985  ;;  %v1186_v33 = vadd.f32 1e-06, %v1178_v31  ;;  %v13677_v31 = vld [vmem:[%s17326_s2 + $0x28] sm:$0xff]  }
 0x37c   : > { %v13988_v34 = vpop.eup %13987  ;;  %v1196_v38 = vmul.f32 %v13986_v32, %v14611_v26  ;;  %v1223_v43 = vadd.f32 %v11093_v39, %v1209_v36 }
 0x37d   : > { %v1197_v10 = vmul.f32 %v13988_v34, %v14615_v28  ;;  %13997 = vrsqrt.f32 %v1186_v33 }
 0x37e   : > { %v1210_v40 = vmul.f32 %v11092_v30, %v1196_v38 }
 0x37f   : > { %v13990_v41 = vpop.eup %13989  ;;  %v1211_v48 = vmul.f32 %v11092_v30, %v1197_v10  ;;  %v13678_v10 = vld [vmem:[%s17326_s2 + $0x30] sm:$0xff]  }
 0x380   : > { %v13992_v42 = vpop.eup %13991  ;;  %v1224_v46 = vadd.f32 %v11093_v39, %v1210_v40  ;;  %v1198_v53 = vmul.f32 %v13990_v41, %v14622_v35  ;;  %v13679_v40 = vld [vmem:[%s17326_s2 + $0x38] sm:$0xff]  }
 0x381   : > { %v1199_v45 = vmul.f32 %v13992_v42, %v14626_v37  ;;  %v1225_v62 = vadd.f32 %v11093_v39, %v1211_v48 }
 0x382   : > { %v14670_v54 = vpack.c.bf16 %v1224_v46, %v1223_v43  ;;  %v1212_v26 = vmul.f32 %v11092_v30, %v1198_v53 }
 0x383   : > { %v13994_v55 = vpop.eup %13993  ;;  %v1213_v56 = vmul.f32 %v11092_v30, %v1199_v45 }
 0x384   : > { %v13996_v59 = vpop.eup %13995  ;;  %v1226_v52 = vadd.f32 %v11093_v39, %v1212_v26  ;;  %v1200_v28 = vmul.f32 %v13994_v55, %v14634_v47  ;;  %12514 = vmatpush3.bf16.msra.mxu1 %v14670_v54  ;;  %12526 = vmatpush3.bf16.msra.mxu0 %v14670_v54 }
 0x385   : > { %v1201_v44 = vmul.f32 %v13996_v59, %v14638_v50  ;;  %12515 = vmatprep.subr.bf16.mxu1 %v14289_v63  ;;  %12527 = vmatprep.subr.bf16.mxu0 %v14289_v63  ;;  %v1227_v2 = vadd.f32 %v11093_v39, %v1213_v56 }
 0x386   : > { %v14678_v35 = vpack.c.bf16 %v1226_v52, %v1225_v62  ;;  %v1214_v37 = vmul.f32 %v11092_v30, %v1200_v28 }
 0x387   : > { %v13998_v0 = vpop.eup %13997  ;;  %v1215_v51 = vmul.f32 %v11092_v30, %v1201_v44 }
 0x388   : > { %v1228_v3 = vadd.f32 %v11093_v39, %v1214_v37  ;;  %v1202_v60 = vmul.f32 %v13998_v0, %v14646_v57  ;;  %12516 = vmatpush3.bf16.msra.mxu1 %v14678_v35  ;;  %12528 = vmatpush3.bf16.msra.mxu0 %v14678_v35 }
 0x389   : > { %12517 = vmatprep.subr.bf16.mxu1 %v14289_v63  ;;  %12529 = vmatprep.subr.bf16.mxu0 %v14289_v63  ;;  %v1229_v7 = vadd.f32 %v11093_v39, %v1215_v51  ;;  %v11125_v51 = vld [vmem:[%s17325_s29 + $0x8] sm:$0x3] }
 0x38a   : > { %v14685_v47 = vpack.c.bf16 %v1228_v3, %v1227_v2  ;;  %v1216_v50 = vmul.f32 %v11092_v30, %v1202_v60  ;;  %v13676_v30 = vld [vmem:[%s17326_s2 + $0x20] sm:$0xff]  }
 0x38b   : > { %v13680_v60 = vld [vmem:[%s17326_s2 + $0x40] sm:$0xff]  }
 0x38c   : > { %v1230_v8 = vadd.f32 %v11093_v39, %v1216_v50  ;;  %12518 = vmatpush3.bf16.msra.mxu1 %v14685_v47  ;;  %12530 = vmatpush3.bf16.msra.mxu0 %v14685_v47  ;;  %v11116_v39 = vld [vmem:[%s17325_s29 + $0x6] sm:$0x3]  ;;  %v13681_v50 = vld [vmem:[%s17326_s2 + $0x48] sm:$0xff]  }
 0x38d   : > { %12519 = vmatprep.subr.bf16.mxu1 %v14289_v63  ;;  %12531 = vmatprep.subr.bf16.mxu0 %v14289_v63 }
 0x38e   : > { %v14691_v57 = vpack.c.bf16 %v1230_v8, %v1229_v7 }
 0x390   : > { %12520 = vmatpush3.bf16.msra.mxu1 %v14691_v57  ;;  %12532 = vmatpush3.bf16.msra.mxu0 %v14691_v57 }
 0x391   : > { %12553 = vmatprep.subr.bf16.mxu0 %v14289_v63  ;;  %12537 = vmatprep.subr.bf16.mxu1 %v14289_v63 }
 0x393   : > { %12534 = vmatmul.mubr.msk.bf16.vlgmr.msra.gmra.mrb[8].mxu0 %vm1236_vm3, %v11095_v9  ;;  %12522 = vmatmul.mubr.msk.bf16.vlgmr.msra.gmra.mrb[0].mxu1 %vm1236_vm3, %v1231_v11 }
 0x394   : > { %12554 = vmatpush3.bf16.msra.mxu0 %v14670_v54  ;;  %12561 = vmatprep.mubr.msk.bf16.mxu0 %vm14290_vm2, %v14289_v63 }
 0x395   : > { %12555 = vmatprep.subr.bf16.mxu0 %v14289_v63  ;;  %12538 = vmatpush3.bf16.msra.mxu1 %v13672_v12 }
 0x396   : > { %12539 = vmatprep.subr.bf16.mxu1 %v14289_v63  ;;  %12541 = vmatprep.mubr.msk.bf16.mxu1 %vm14290_vm2, %v14289_v63 }
 0x398   : > { %12556 = vmatpush3.bf16.msra.mxu0 %v14678_v35 }
 0x399   : > { %12557 = vmatprep.subr.bf16.mxu0 %v14289_v63  ;;  %12540 = vmatpush3.bf16.msra.mxu1 %v13673_v14 }
 0x39a   : > { %12545 = vmatprep.subr.bf16.mxu1 %v14289_v63 }
 0x39c   : > { %12558 = vmatpush3.bf16.msra.mxu0 %v14685_v47 }
 0x39d   : > { %12559 = vmatprep.subr.bf16.mxu0 %v14289_v63 }
 0x3a0   : > { %12560 = vmatpush3.bf16.msra.mxu0 %v14691_v57 }
 0x3a1   : > { %12585 = vmatprep.subr.bf16.mxu0 %v14289_v63 }
 0x3a3   : > { %12562 = vmatmul.mubr.msk.bf16.vlgmr.msra.gmra.mrb[12].mxu0 %vm1236_vm3, %v11107_v6 }
 0x3a4   : > { %12589 = vmatprep.mubr.msk.bf16.mxu0 %vm14290_vm2, %v14289_v63  ;;  %12586 = vmatpush3.bf16.msra.mxu0 %v13678_v10 }
 0x3a5   : > { %12587 = vmatprep.subr.bf16.mxu0 %v14289_v63 }
 0x3a8   : > { %12588 = vmatpush3.bf16.msra.mxu0 %v13679_v40 }
 0x3a9   : > { %12593 = vmatprep.subr.bf16.mxu0 %v14289_v63 }
 0x466   : > { %v1324_v15 = vpop.f32.mrb[8].mxu0  ;;  %v1274_v18 = vpop.f32.mrb[0].mxu1 }
 0x467   : > { %v1335_v19 = vpack.c.bf16 %v1324_v15, %v1324_v15  ;;  %v12535_v20 = vpop.f32.mrb[9].mxu0  ;;  %v12523_v21 = vpop.f32.mrb[1].mxu1  ;;  %v1284_v29 = vpack.c.bf16 %v1274_v18, %v1274_v18 }
 0x468   : > { %v1327_v22 = vpop.f32.mrb[10].mxu0  ;;  %v1277_v23 = vpop.f32.mrb[2].mxu1  ;;  %v13682_v20 = vld [vmem:[%s17326_s2 + $0x50] sm:$0xff]   ;;  %v13683_v21 = vld [vmem:[%s17326_s2 + $0x58] sm:$0xff]  }
 0x469   : > { %v12536_v24 = vpop.f32.mrb[11].mxu0  ;;  %12542 = vmatmul.mubr.msk.bf16.vlgmr.msra.gmra.mrb[4].mxu1 %vm961_vm1, %v1335_v19  ;;  %v12524_v25 = vpop.f32.mrb[3].mxu1  ;;  %v11134_v19 = vld [vmem:[%s17325_s29 + $0xa] sm:$0x3] }
 0x46a   : > { %12546 = vmatpush3.bf16.msra.mxu1 %v13674_v16  ;;  %12549 = vmatprep.mubr.msk.bf16.mxu1 %vm14290_vm2, %v14289_v63 }
 0x46b   : > { %12547 = vmatprep.subr.bf16.mxu1 %v14289_v63 }
 0x46e   : > { %12548 = vmatpush3.bf16.msra.mxu1 %v13675_v27 }
 0x46f   : > { %12565 = vmatprep.subr.bf16.mxu1 %v14289_v63 }
 0x471   : > { %12550 = vmatmul.mubr.msk.bf16.vlgmr.msra.gmra.mrb[8].mxu1 %vm961_vm1, %v1284_v29 }
 0x472   : > { %12566 = vmatpush3.bf16.msra.mxu1 %v13676_v30  ;;  %12569 = vmatprep.mubr.msk.bf16.mxu1 %vm14290_vm2, %v14289_v63 }
 0x473   : > { %12567 = vmatprep.subr.bf16.mxu1 %v14289_v63 }
 0x476   : > { %12568 = vmatpush3.bf16.msra.mxu1 %v13677_v31  ;;  %v1485_v32 = vpop.f32.mrb[12].mxu0 }
 0x477   : > { %v1496_v33 = vpack.c.bf16 %v1485_v32, %v1485_v32  ;;  %v12563_v34 = vpop.f32.mrb[13].mxu0  ;;  %12573 = vmatprep.subr.bf16.mxu1 %v14289_v63 }
 0x478   : > { %v1488_v36 = vpop.f32.mrb[14].mxu0  ;;  %v11143_v34 = vld [vmem:[%s17325_s29 + $0xc] sm:$0x3] }
 0x479   : > { %v12564_v38 = vpop.f32.mrb[15].mxu0  ;;  %12570 = vmatmul.mubr.msk.bf16.vlgmr.msra.gmra.mrb[12].mxu1 %vm961_vm1, %v1496_v33  ;;  %v13684_v36 = vld [vmem:[%s17326_s2 + $0x60] sm:$0xff]  }
 0x47a   : > { %12574 = vmatpush3.bf16.msra.mxu1 %v14670_v54  ;;  %12581 = vmatprep.mubr.msk.bf16.mxu1 %vm14290_vm2, %v14289_v63  ;;  %v13685_v38 = vld [vmem:[%s17326_s2 + $0x68] sm:$0xff]  }
 0x47b   : > { %12575 = vmatprep.subr.bf16.mxu1 %v14289_v63 }
 0x47e   : > { %12576 = vmatpush3.bf16.msra.mxu1 %v14678_v35 }
 0x47f   : > { %12577 = vmatprep.subr.bf16.mxu1 %v14289_v63 }
 0x482   : > { %12578 = vmatpush3.bf16.msra.mxu1 %v14685_v47 }
 0x483   : > { %12579 = vmatprep.subr.bf16.mxu1 %v14289_v63 }
 0x486   : > { %12580 = vmatpush3.bf16.msra.mxu1 %v14691_v57 }
 0x487   : > { %12605 = vmatprep.subr.bf16.mxu1 %v14289_v63 }
 0x489   : > { %12582 = vmatmul.mubr.msk.bf16.vlgmr.msra.gmra.mrb[16].mxu1 %vm1236_vm3, %v11116_v39 }
 0x48a   : > { %12609 = vmatprep.mubr.msk.bf16.mxu1 %vm14290_vm2, %v14289_v63  ;;  %12606 = vmatpush3.bf16.msra.mxu1 %v13680_v60  ;;  %v11161_v60 = vld [vmem:[%s17325_s29 + $0x10] sm:$0x3] }
 0x48b   : > { %12607 = vmatprep.subr.bf16.mxu1 %v14289_v63 }
 0x48e   : > { %12608 = vmatpush3.bf16.msra.mxu1 %v13681_v50  ;;  %v13688_v50 = vld [vmem:[%s17326_s2 + $0x80] sm:$0xff]  }
 0x48f   : > { %12613 = vmatprep.subr.bf16.mxu1 %v14289_v63 }
 0x53c   : > { %v1385_v41 = vpop.f32.mrb[4].mxu1 }
 0x53d   : > { %v12543_v42 = vpop.f32.mrb[5].mxu1 }
 0x53e   : > { %v1388_v43 = vpop.f32.mrb[6].mxu1 }
 0x53f   : > { %v12544_v46 = vpop.f32.mrb[7].mxu1 }
 0x544   : > { %v1440_v48 = vpop.f32.mrb[8].mxu1 }
 0x545   : > { %v1441_v53 = vadd.f32 %v1440_v48, %v1385_v41  ;;  %v12551_v45 = vpop.f32.mrb[9].mxu1 }
 0x546   : > { %v1443_v26 = vpop.f32.mrb[10].mxu1 }
 0x547   : > { %v12552_v55 = vpop.f32.mrb[11].mxu1  ;;  %v11152_v26 = vld [vmem:[%s17325_s29 + $0xe] sm:$0x3] }
 0x548   : > { %v13686_v55 = vld [vmem:[%s17326_s2 + $0x70] sm:$0xff]  }
 0x54c   : > { %v1546_v56 = vpop.f32.mrb[12].mxu1 }
 0x54d   : > { %v12571_v59 = vpop.f32.mrb[13].mxu1  ;;  %v1552_v62 = vadd.f32 %v1546_v56, %v1441_v53  ;;  %v13687_v56 = vld [vmem:[%s17326_s2 + $0x78] sm:$0xff]  }
 0x54e   : > { %v1549_v52 = vpop.f32.mrb[14].mxu1 }
 0x54f   : > { %v12572_v28 = vpop.f32.mrb[15].mxu1 }
 0x55c   : > { %v1592_v44 = vpop.f32.mrb[16].mxu1 }
 0x55d   : > { %v1603_v37 = vpack.c.bf16 %v1592_v44, %v1592_v44  ;;  %v12583_v0 = vpop.f32.mrb[17].mxu1 }
 0x55e   : > { %v1595_v2 = vpop.f32.mrb[18].mxu1 }
 0x55f   : > { %v12584_v3 = vpop.f32.mrb[19].mxu1  ;;  %12590 = vmatmul.mubr.msk.bf16.vlgmr.msra.gmra.mrb[16].mxu0 %vm961_vm1, %v1603_v37 }
 0x560   : > { %12594 = vmatpush3.bf16.msra.mxu0 %v14670_v54  ;;  %12601 = vmatprep.mubr.msk.bf16.mxu0 %vm14290_vm2, %v14289_v63 }
 0x561   : > { %12595 = vmatprep.subr.bf16.mxu0 %v14289_v63 }
 0x564   : > { %12596 = vmatpush3.bf16.msra.mxu0 %v14678_v35 }
 0x565   : > { %12597 = vmatprep.subr.bf16.mxu0 %v14289_v63 }
 0x568   : > { %12598 = vmatpush3.bf16.msra.mxu0 %v14685_v47 }
 0x569   : > { %12599 = vmatprep.subr.bf16.mxu0 %v14289_v63 }
 0x56c   : > { %12600 = vmatpush3.bf16.msra.mxu0 %v14691_v57 }
 0x56d   : > { %12625 = vmatprep.subr.bf16.mxu0 %v14289_v63 }
 0x56f   : > { %12602 = vmatmul.mubr.msk.bf16.vlgmr.msra.gmra.mrb[20].mxu0 %vm1236_vm3, %v11125_v51 }
 0x570   : > { %12629 = vmatprep.mubr.msk.bf16.mxu0 %vm14290_vm2, %v14289_v63  ;;  %12626 = vmatpush3.bf16.msra.mxu0 %v13682_v20  ;;  %v11170_v20 = vld [vmem:[%s17325_s29 + $0x12] sm:$0x3] }
 0x571   : > { %12627 = vmatprep.subr.bf16.mxu0 %v14289_v63 }
 0x574   : > { %12628 = vmatpush3.bf16.msra.mxu0 %v13683_v21  ;;  %v13690_v21 = vld [vmem:[%s17326_s2 + $0x90] sm:$0xff]  }
 0x575   : > { %12633 = vmatprep.subr.bf16.mxu0 %v14289_v63 }
 0x632   : > { %v1653_v7 = vpop.f32.mrb[16].mxu0 }
 0x633   : > { %v1659_v8 = vadd.f32 %v1653_v7, %v1552_v62  ;;  %v12591_v9 = vpop.f32.mrb[17].mxu0  ;;  %v13689_v7 = vld [vmem:[%s17326_s2 + $0x88] sm:$0xff]  }
 0x634   : > { %v1656_v11 = vpop.f32.mrb[18].mxu0 }
 0x635   : > { %v12592_v12 = vpop.f32.mrb[19].mxu0 }
 0x642   : > { %v1699_v14 = vpop.f32.mrb[20].mxu0 }
 0x643   : > { %v1710_v6 = vpack.c.bf16 %v1699_v14, %v1699_v14  ;;  %v12603_v15 = vpop.f32.mrb[21].mxu0 }
 0x644   : > { %v1702_v16 = vpop.f32.mrb[22].mxu0 }
 0x645   : > { %v12604_v18 = vpop.f32.mrb[23].mxu0  ;;  %12610 = vmatmul.mubr.msk.bf16.vlgmr.msra.gmra.mrb[20].mxu1 %vm961_vm1, %v1710_v6 }
 0x646   : > { %12614 = vmatpush3.bf16.msra.mxu1 %v14670_v54  ;;  %12621 = vmatprep.mubr.msk.bf16.mxu1 %vm14290_vm2, %v14289_v63 }
 0x647   : > { %12615 = vmatprep.subr.bf16.mxu1 %v14289_v63 }
 0x64a   : > { %12616 = vmatpush3.bf16.msra.mxu1 %v14678_v35 }
 0x64b   : > { %12617 = vmatprep.subr.bf16.mxu1 %v14289_v63 }
 0x64e   : > { %12618 = vmatpush3.bf16.msra.mxu1 %v14685_v47 }
 0x64f   : > { %12619 = vmatprep.subr.bf16.mxu1 %v14289_v63 }
 0x652   : > { %12620 = vmatpush3.bf16.msra.mxu1 %v14691_v57 }
 0x653   : > { %12645 = vmatprep.subr.bf16.mxu1 %v14289_v63 }
 0x655   : > { %12622 = vmatmul.mubr.msk.bf16.vlgmr.msra.gmra.mrb[24].mxu1 %vm1236_vm3, %v11134_v19 }
 0x656   : > { %12649 = vmatprep.mubr.msk.bf16.mxu1 %vm14290_vm2, %v14289_v63  ;;  %12646 = vmatpush3.bf16.msra.mxu1 %v13684_v36  ;;  %v11179_v36 = vld [vmem:[%s17325_s29 + $0x14] sm:$0x3] }
 0x657   : > { %12647 = vmatprep.subr.bf16.mxu1 %v14289_v63 }
 0x65a   : > { %12648 = vmatpush3.bf16.msra.mxu1 %v13685_v38  ;;  %v13692_v38 = vld [vmem:[%s17326_s2 + $0xa0] sm:$0xff]  }
 0x65b   : > { %12653 = vmatprep.subr.bf16.mxu1 %v14289_v63 }
 0x718   : > { %v1760_v22 = vpop.f32.mrb[20].mxu1 }
 0x719   : > { %v1766_v23 = vadd.f32 %v1760_v22, %v1659_v8  ;;  %v12611_v24 = vpop.f32.mrb[21].mxu1  ;;  %v13691_v22 = vld [vmem:[%s17326_s2 + $0x98] sm:$0xff]  }
 0x71a   : > { %v1763_v25 = vpop.f32.mrb[22].mxu1 }
 0x71b   : > { %v12612_v27 = vpop.f32.mrb[23].mxu1 }
 0x728   : > { %v1806_v29 = vpop.f32.mrb[24].mxu1 }
 0x729   : > { %v1817_v30 = vpack.c.bf16 %v1806_v29, %v1806_v29  ;;  %v12623_v31 = vpop.f32.mrb[25].mxu1 }
 0x72a   : > { %v1809_v32 = vpop.f32.mrb[26].mxu1 }
 0x72b   : > { %v12624_v33 = vpop.f32.mrb[27].mxu1  ;;  %12630 = vmatmul.mubr.msk.bf16.vlgmr.msra.gmra.mrb[24].mxu0 %vm961_vm1, %v1817_v30 }
 0x72c   : > { %12634 = vmatpush3.bf16.msra.mxu0 %v14670_v54  ;;  %12641 = vmatprep.mubr.msk.bf16.mxu0 %vm14290_vm2, %v14289_v63 }
 0x72d   : > { %12635 = vmatprep.subr.bf16.mxu0 %v14289_v63 }
 0x730   : > { %12636 = vmatpush3.bf16.msra.mxu0 %v14678_v35 }
 0x731   : > { %12637 = vmatprep.subr.bf16.mxu0 %v14289_v63 }
 0x734   : > { %12638 = vmatpush3.bf16.msra.mxu0 %v14685_v47 }
 0x735   : > { %12639 = vmatprep.subr.bf16.mxu0 %v14289_v63 }
 0x738   : > { %12640 = vmatpush3.bf16.msra.mxu0 %v14691_v57 }
 0x739   : > { %12665 = vmatprep.subr.bf16.mxu0 %v14289_v63 }
 0x73b   : > { %12642 = vmatmul.mubr.msk.bf16.vlgmr.msra.gmra.mrb[28].mxu0 %vm1236_vm3, %v11143_v34 }
 0x73c   : > { %12669 = vmatprep.mubr.msk.bf16.mxu0 %vm14290_vm2, %v14289_v63  ;;  %12666 = vmatpush3.bf16.msra.mxu0 %v13686_v55  ;;  %v11188_v55 = vld [vmem:[%s17325_s29 + $0x16] sm:$0x3] }
 0x73d   : > { %12667 = vmatprep.subr.bf16.mxu0 %v14289_v63 }
 0x740   : > { %12668 = vmatpush3.bf16.msra.mxu0 %v13687_v56  ;;  %v13694_v56 = vld [vmem:[%s17326_s2 + $0xb0] sm:$0xff]  }
 0x741   : > { %12673 = vmatprep.subr.bf16.mxu0 %v14289_v63 }
 0x7fe   : > { %v1867_v39 = vpop.f32.mrb[24].mxu0 }
 0x7ff   : > { %v1873_v10 = vadd.f32 %v1867_v39, %v1766_v23  ;;  %v12631_v40 = vpop.f32.mrb[25].mxu0  ;;  %v13693_v39 = vld [vmem:[%s17326_s2 + $0xa8] sm:$0xff]  }
 0x800   : > { %v1870_v41 = vpop.f32.mrb[26].mxu0 }
 0x801   : > { %v12632_v42 = vpop.f32.mrb[27].mxu0 }
 0x80e   : > { %v1913_v43 = vpop.f32.mrb[28].mxu0 }
 0x80f   : > { %v1924_v46 = vpack.c.bf16 %v1913_v43, %v1913_v43  ;;  %v12643_v48 = vpop.f32.mrb[29].mxu0 }
 0x810   : > { %v1916_v53 = vpop.f32.mrb[30].mxu0 }
 0x811   : > { %v12644_v45 = vpop.f32.mrb[31].mxu0  ;;  %12650 = vmatmul.mubr.msk.bf16.vlgmr.msra.gmra.mrb[28].mxu1 %vm961_vm1, %v1924_v46 }
 0x812   : > { %12654 = vmatpush3.bf16.msra.mxu1 %v14670_v54  ;;  %12661 = vmatprep.mubr.msk.bf16.mxu1 %vm14290_vm2, %v14289_v63 }
 0x813   : > { %12655 = vmatprep.subr.bf16.mxu1 %v14289_v63 }
 0x816   : > { %12656 = vmatpush3.bf16.msra.mxu1 %v14678_v35 }
 0x817   : > { %12657 = vmatprep.subr.bf16.mxu1 %v14289_v63 }
 0x81a   : > { %12658 = vmatpush3.bf16.msra.mxu1 %v14685_v47 }
 0x81b   : > { %12659 = vmatprep.subr.bf16.mxu1 %v14289_v63 }
 0x81e   : > { %12660 = vmatpush3.bf16.msra.mxu1 %v14691_v57 }
 0x81f   : > { %12685 = vmatprep.subr.bf16.mxu1 %v14289_v63 }
 0x821   : > { %12662 = vmatmul.mubr.msk.bf16.vlgmr.msra.gmra.mrb[32].mxu1 %vm1236_vm3, %v11152_v26 }
 0x822   : > { %12689 = vmatprep.mubr.msk.bf16.mxu1 %vm14290_vm2, %v14289_v63  ;;  %12686 = vmatpush3.bf16.msra.mxu1 %v13688_v50  ;;  %v11197_v50 = vld [vmem:[%s17325_s29 + $0x18] sm:$0x3] }
 0x823   : > { %12687 = vmatprep.subr.bf16.mxu1 %v14289_v63 }
 0x826   : > { %12688 = vmatpush3.bf16.msra.mxu1 %v13689_v7  ;;  %v13696_v7 = vld [vmem:[%s17326_s2 + $0xc0] sm:$0xff]  }
 0x827   : > { %12693 = vmatprep.subr.bf16.mxu1 %v14289_v63 }
 0x8e4   : > { %v1974_v59 = vpop.f32.mrb[28].mxu1 }
 0x8e5   : > { %v1980_v62 = vadd.f32 %v1974_v59, %v1873_v10  ;;  %v12651_v52 = vpop.f32.mrb[29].mxu1  ;;  %v13695_v59 = vld [vmem:[%s17326_s2 + $0xb8] sm:$0xff]  }
 0x8e6   : > { %v1977_v28 = vpop.f32.mrb[30].mxu1 }
 0x8e7   : > { %v12652_v44 = vpop.f32.mrb[31].mxu1 }
 0x8f4   : > { %v2020_v37 = vpop.f32.mrb[32].mxu1 }
 0x8f5   : > { %v2031_v0 = vpack.c.bf16 %v2020_v37, %v2020_v37  ;;  %v12663_v2 = vpop.f32.mrb[33].mxu1 }
 0x8f6   : > { %v2023_v3 = vpop.f32.mrb[34].mxu1 }
 0x8f7   : > { %v12664_v51 = vpop.f32.mrb[35].mxu1  ;;  %12670 = vmatmul.mubr.msk.bf16.vlgmr.msra.gmra.mrb[32].mxu0 %vm961_vm1, %v2031_v0 }
 0x8f8   : > { %12674 = vmatpush3.bf16.msra.mxu0 %v14670_v54  ;;  %12681 = vmatprep.mubr.msk.bf16.mxu0 %vm14290_vm2, %v14289_v63 }
 0x8f9   : > { %12675 = vmatprep.subr.bf16.mxu0 %v14289_v63 }
 0x8fc   : > { %12676 = vmatpush3.bf16.msra.mxu0 %v14678_v35 }
 0x8fd   : > { %12677 = vmatprep.subr.bf16.mxu0 %v14289_v63 }
 0x900   : > { %12678 = vmatpush3.bf16.msra.mxu0 %v14685_v47 }
 0x901   : > { %12679 = vmatprep.subr.bf16.mxu0 %v14289_v63 }
 0x904   : > { %12680 = vmatpush3.bf16.msra.mxu0 %v14691_v57 }
 0x905   : > { %12705 = vmatprep.subr.bf16.mxu0 %v14289_v63 }
 0x907   : > { %12682 = vmatmul.mubr.msk.bf16.vlgmr.msra.gmra.mrb[36].mxu0 %vm1236_vm3, %v11161_v60 }
 0x908   : > { %12709 = vmatprep.mubr.msk.bf16.mxu0 %vm14290_vm2, %v14289_v63  ;;  %12706 = vmatpush3.bf16.msra.mxu0 %v13690_v21  ;;  %v11206_v21 = vld [vmem:[%s17325_s29 + $0x1a] sm:$0x3] }
 0x909   : > { %12707 = vmatprep.subr.bf16.mxu0 %v14289_v63 }
 0x90c   : > { %12708 = vmatpush3.bf16.msra.mxu0 %v13691_v22  ;;  %v13698_v22 = vld [vmem:[%s17326_s2 + $0xd0] sm:$0xff]  }
 0x90d   : > { %12713 = vmatprep.subr.bf16.mxu0 %v14289_v63 }
 0x9ca   : > { %v2081_v8 = vpop.f32.mrb[32].mxu0 }
 0x9cb   : > { %v2087_v9 = vadd.f32 %v2081_v8, %v1980_v62  ;;  %v12671_v11 = vpop.f32.mrb[33].mxu0  ;;  %v13697_v8 = vld [vmem:[%s17326_s2 + $0xc8] sm:$0xff]  }
 0x9cc   : > { %v2084_v12 = vpop.f32.mrb[34].mxu0 }
 0x9cd   : > { %v12672_v14 = vpop.f32.mrb[35].mxu0 }
 0x9da   : > { %v2127_v6 = vpop.f32.mrb[36].mxu0 }
 0x9db   : > { %v2138_v15 = vpack.c.bf16 %v2127_v6, %v2127_v6  ;;  %v12683_v16 = vpop.f32.mrb[37].mxu0 }
 0x9dc   : > { %v2130_v18 = vpop.f32.mrb[38].mxu0 }
 0x9dd   : > { %v12684_v19 = vpop.f32.mrb[39].mxu0  ;;  %12690 = vmatmul.mubr.msk.bf16.vlgmr.msra.gmra.mrb[36].mxu1 %vm961_vm1, %v2138_v15 }
 0x9de   : > { %12694 = vmatpush3.bf16.msra.mxu1 %v14670_v54  ;;  %12701 = vmatprep.mubr.msk.bf16.mxu1 %vm14290_vm2, %v14289_v63 }
 0x9df   : > { %12695 = vmatprep.subr.bf16.mxu1 %v14289_v63 }
 0x9e2   : > { %12696 = vmatpush3.bf16.msra.mxu1 %v14678_v35 }
 0x9e3   : > { %12697 = vmatprep.subr.bf16.mxu1 %v14289_v63 }
 0x9e6   : > { %12698 = vmatpush3.bf16.msra.mxu1 %v14685_v47 }
 0x9e7   : > { %12699 = vmatprep.subr.bf16.mxu1 %v14289_v63 }
 0x9ea   : > { %12700 = vmatpush3.bf16.msra.mxu1 %v14691_v57 }
 0x9eb   : > { %12725 = vmatprep.subr.bf16.mxu1 %v14289_v63 }
 0x9ed   : > { %12702 = vmatmul.mubr.msk.bf16.vlgmr.msra.gmra.mrb[40].mxu1 %vm1236_vm3, %v11170_v20 }
 0x9ee   : > { %12729 = vmatprep.mubr.msk.bf16.mxu1 %vm14290_vm2, %v14289_v63  ;;  %12726 = vmatpush3.bf16.msra.mxu1 %v13692_v38  ;;  %v11215_v38 = vld [vmem:[%s17325_s29 + $0x1c] sm:$0x3] }
 0x9ef   : > { %12727 = vmatprep.subr.bf16.mxu1 %v14289_v63 }
 0x9f2   : > { %12728 = vmatpush3.bf16.msra.mxu1 %v13693_v39  ;;  %v13700_v39 = vld [vmem:[%s17326_s2 + $0xe0] sm:$0xff]  }
 0x9f3   : > { %12733 = vmatprep.subr.bf16.mxu1 %v14289_v63 }
 0xab0   : > { %v2188_v23 = vpop.f32.mrb[36].mxu1 }
 0xab1   : > { %v2194_v24 = vadd.f32 %v2188_v23, %v2087_v9  ;;  %v12691_v25 = vpop.f32.mrb[37].mxu1  ;;  %v13699_v23 = vld [vmem:[%s17326_s2 + $0xd8] sm:$0xff]  }
 0xab2   : > { %v2191_v27 = vpop.f32.mrb[38].mxu1 }
 0xab3   : > { %v12692_v29 = vpop.f32.mrb[39].mxu1 }
 0xac0   : > { %v2234_v30 = vpop.f32.mrb[40].mxu1 }
 0xac1   : > { %v2245_v31 = vpack.c.bf16 %v2234_v30, %v2234_v30  ;;  %v12703_v32 = vpop.f32.mrb[41].mxu1 }
 0xac2   : > { %v2237_v33 = vpop.f32.mrb[42].mxu1 }
 0xac3   : > { %v12704_v34 = vpop.f32.mrb[43].mxu1  ;;  %12710 = vmatmul.mubr.msk.bf16.vlgmr.msra.gmra.mrb[40].mxu0 %vm961_vm1, %v2245_v31 }
 0xac4   : > { %12714 = vmatpush3.bf16.msra.mxu0 %v14670_v54  ;;  %12721 = vmatprep.mubr.msk.bf16.mxu0 %vm14290_vm2, %v14289_v63 }
 0xac5   : > { %12715 = vmatprep.subr.bf16.mxu0 %v14289_v63 }
 0xac8   : > { %12716 = vmatpush3.bf16.msra.mxu0 %v14678_v35 }
 0xac9   : > { %12717 = vmatprep.subr.bf16.mxu0 %v14289_v63 }
 0xacc   : > { %12718 = vmatpush3.bf16.msra.mxu0 %v14685_v47 }
 0xacd   : > { %12719 = vmatprep.subr.bf16.mxu0 %v14289_v63 }
 0xad0   : > { %12720 = vmatpush3.bf16.msra.mxu0 %v14691_v57 }
 0xad1   : > { %12745 = vmatprep.subr.bf16.mxu0 %v14289_v63 }
 0xad3   : > { %12722 = vmatmul.mubr.msk.bf16.vlgmr.msra.gmra.mrb[44].mxu0 %vm1236_vm3, %v11179_v36 }
 0xad4   : > { %12749 = vmatprep.mubr.msk.bf16.mxu0 %vm14290_vm2, %v14289_v63  ;;  %12746 = vmatpush3.bf16.msra.mxu0 %v13694_v56  ;;  %v11224_v56 = vld [vmem:[%s17325_s29 + $0x1e] sm:$0x3]  ;;  %s15763_s29 = sand.u32 1, %s14279_s4  }
 0xad5   : > { %12747 = vmatprep.subr.bf16.mxu0 %v14289_v63 }
 0xad8   : > { %12748 = vmatpush3.bf16.msra.mxu0 %v13695_v59  ;;  %v13702_v59 = vld [vmem:[%s17326_s2 + $0xf0] sm:$0xff]  }
 0xad9   : > { %12753 = vmatprep.subr.bf16.mxu0 %v14289_v63 }
 0xb96   : > { %v2295_v10 = vpop.f32.mrb[40].mxu0 }
 0xb97   : > { %v2301_v40 = vadd.f32 %v2295_v10, %v2194_v24  ;;  %v12711_v41 = vpop.f32.mrb[41].mxu0  ;;  %v13701_v10 = vld [vmem:[%s17326_s2 + $0xe8] sm:$0xff]  }
 0xb98   : > { %v2298_v42 = vpop.f32.mrb[42].mxu0 }
 0xb99   : > { %v12712_v43 = vpop.f32.mrb[43].mxu0 }
 0xba6   : > { %v2341_v46 = vpop.f32.mrb[44].mxu0 }
 0xba7   : > { %v2352_v48 = vpack.c.bf16 %v2341_v46, %v2341_v46  ;;  %v12723_v53 = vpop.f32.mrb[45].mxu0 }
 0xba8   : > { %v2344_v45 = vpop.f32.mrb[46].mxu0 }
 0xba9   : > { %v12724_v26 = vpop.f32.mrb[47].mxu0  ;;  %12730 = vmatmul.mubr.msk.bf16.vlgmr.msra.gmra.mrb[44].mxu1 %vm961_vm1, %v2352_v48 }
 0xbaa   : > { %12734 = vmatpush3.bf16.msra.mxu1 %v14670_v54  ;;  %12741 = vmatprep.mubr.msk.bf16.mxu1 %vm14290_vm2, %v14289_v63 }
 0xbab   : > { %12735 = vmatprep.subr.bf16.mxu1 %v14289_v63 }
 0xbae   : > { %12736 = vmatpush3.bf16.msra.mxu1 %v14678_v35 }
 0xbaf   : > { %12737 = vmatprep.subr.bf16.mxu1 %v14289_v63 }
 0xbb2   : > { %12738 = vmatpush3.bf16.msra.mxu1 %v14685_v47 }
 0xbb3   : > { %12739 = vmatprep.subr.bf16.mxu1 %v14289_v63 }
 0xbb6   : > { %12740 = vmatpush3.bf16.msra.mxu1 %v14691_v57 }
 0xbb7   : > { %12765 = vmatprep.subr.bf16.mxu1 %v14289_v63 }
 0xbb9   : > { %12742 = vmatmul.mubr.msk.bf16.vlgmr.msra.gmra.mrb[48].mxu1 %vm1236_vm3, %v11188_v55 }
 0xbba   : > { %12769 = vmatprep.mubr.msk.bf16.mxu1 %vm14290_vm2, %v14289_v63  ;;  %12766 = vmatpush3.bf16.msra.mxu1 %v13696_v7 }
 0xbbb   : > { %12767 = vmatprep.subr.bf16.mxu1 %v14289_v63 }
 0xbbe   : > { %12768 = vmatpush3.bf16.msra.mxu1 %v13697_v8 }
 0xbbf   : > { %12773 = vmatprep.subr.bf16.mxu1 %v14289_v63 }
 0xc7c   : > { %v2402_v62 = vpop.f32.mrb[44].mxu1 }
 0xc7d   : > { %v2408_v52 = vadd.f32 %v2402_v62, %v2301_v40  ;;  %v12731_v28 = vpop.f32.mrb[45].mxu1  ;;  %v13703_v62 = vld [vmem:[%s17326_s2 + $0xf8] sm:$0xff]   ;;  %s17332_s2 = sld [smem:[#allocation21_spill]] }
 0xc7e   : > { %v2405_v44 = vpop.f32.mrb[46].mxu1 }
 0xc7f   : > { %v12732_v37 = vpop.f32.mrb[47].mxu1 }
 0xc8c   : > { %v2448_v0 = vpop.f32.mrb[48].mxu1 }
 0xc8d   : > { %v2459_v2 = vpack.c.bf16 %v2448_v0, %v2448_v0  ;;  %v12743_v3 = vpop.f32.mrb[49].mxu1 }
 0xc8e   : > { %v2451_v51 = vpop.f32.mrb[50].mxu1 }
 0xc8f   : > { %v12744_v60 = vpop.f32.mrb[51].mxu1  ;;  %12750 = vmatmul.mubr.msk.bf16.vlgmr.msra.gmra.mrb[48].mxu0 %vm961_vm1, %v2459_v2 }
 0xc90   : > { %12754 = vmatpush3.bf16.msra.mxu0 %v14670_v54  ;;  %12761 = vmatprep.mubr.msk.bf16.mxu0 %vm14290_vm2, %v14289_v63 }
 0xc91   : > { %12755 = vmatprep.subr.bf16.mxu0 %v14289_v63 }
 0xc94   : > { %12756 = vmatpush3.bf16.msra.mxu0 %v14678_v35 }
 0xc95   : > { %12757 = vmatprep.subr.bf16.mxu0 %v14289_v63 }
 0xc98   : > { %12758 = vmatpush3.bf16.msra.mxu0 %v14685_v47 }
 0xc99   : > { %12759 = vmatprep.subr.bf16.mxu0 %v14289_v63 }
 0xc9c   : > { %12760 = vmatpush3.bf16.msra.mxu0 %v14691_v57 }
 0xc9d   : > { %12785 = vmatprep.subr.bf16.mxu0 %v14289_v63 }
 0xc9f   : > { %12762 = vmatmul.mubr.msk.bf16.vlgmr.msra.gmra.mrb[52].mxu0 %vm1236_vm3, %v11197_v50  ;;  %v13705_v50 = vld [vmem:[%s17328_s3 + $0x8] sm:$0xff]  }
 0xca0   : > { %12789 = vmatprep.mubr.msk.bf16.mxu0 %vm14290_vm2, %v14289_v63  ;;  %12786 = vmatpush3.bf16.msra.mxu0 %v13698_v22 }
 0xca1   : > { %12787 = vmatprep.subr.bf16.mxu0 %v14289_v63 }
 0xca4   : > { %12788 = vmatpush3.bf16.msra.mxu0 %v13699_v23 }
 0xca5   : > { %12793 = vmatprep.subr.bf16.mxu0 %v14289_v63 }
 0xd62   : > { %v2509_v9 = vpop.f32.mrb[48].mxu0 }
 0xd63   : > { %v2515_v11 = vadd.f32 %v2509_v9, %v2408_v52  ;;  %v12751_v12 = vpop.f32.mrb[49].mxu0  ;;  %v13704_v52 = vld [vmem:[%s17327_s8] sm:$0xff]   ;;  %s17329_s8 = sld [smem:[#allocation19_spill]] }
 0xd64   : > { %v2512_v14 = vpop.f32.mrb[50].mxu0 }
 0xd65   : > { %v12752_v6 = vpop.f32.mrb[51].mxu0 }
 0xd69   : > { %s17330_s28 = smov %s17329_s8 }
 0xd72   : > { %v2555_v15 = vpop.f32.mrb[52].mxu0 }
 0xd73   : > { %v2566_v16 = vpack.c.bf16 %v2555_v15, %v2555_v15  ;;  %v12763_v18 = vpop.f32.mrb[53].mxu0 }
 0xd74   : > { %v2558_v19 = vpop.f32.mrb[54].mxu0 }
 0xd75   : > { %v12764_v20 = vpop.f32.mrb[55].mxu0  ;;  %12770 = vmatmul.mubr.msk.bf16.vlgmr.msra.gmra.mrb[52].mxu1 %vm961_vm1, %v2566_v16 }
 0xd76   : > { %12774 = vmatpush3.bf16.msra.mxu1 %v14670_v54  ;;  %12781 = vmatprep.mubr.msk.bf16.mxu1 %vm14290_vm2, %v14289_v63 }
 0xd77   : > { %12775 = vmatprep.subr.bf16.mxu1 %v14289_v63 }
 0xd7a   : > { %12776 = vmatpush3.bf16.msra.mxu1 %v14678_v35 }
 0xd7b   : > { %12777 = vmatprep.subr.bf16.mxu1 %v14289_v63 }
 0xd7e   : > { %12778 = vmatpush3.bf16.msra.mxu1 %v14685_v47 }
 0xd7f   : > { %12779 = vmatprep.subr.bf16.mxu1 %v14289_v63 }
 0xd82   : > { %12780 = vmatpush3.bf16.msra.mxu1 %v14691_v57 }
 0xd83   : > { %12805 = vmatprep.subr.bf16.mxu1 %v14289_v63 }
 0xd85   : > { %12782 = vmatmul.mubr.msk.bf16.vlgmr.msra.gmra.mrb[56].mxu1 %vm1236_vm3, %v11206_v21 }
 0xd86   : > { %12809 = vmatprep.mubr.msk.bf16.mxu1 %vm14290_vm2, %v14289_v63  ;;  %12806 = vmatpush3.bf16.msra.mxu1 %v13700_v39 }
 0xd87   : > { %12807 = vmatprep.subr.bf16.mxu1 %v14289_v63 }
 0xd8a   : > { %12808 = vmatpush3.bf16.msra.mxu1 %v13701_v10 }
 0xd8b   : > { %12813 = vmatprep.subr.bf16.mxu1 %v14289_v63 }
 0xe48   : > { %v2616_v24 = vpop.f32.mrb[52].mxu1 }
 0xe49   : > { %v2622_v25 = vadd.f32 %v2616_v24, %v2515_v11  ;;  %v12771_v27 = vpop.f32.mrb[53].mxu1  ;;  %v11234_v11 = vld [vmem:[%s17324_s5 + $0x15] ss:$0 sm:$0xff] }
 0xe4a   : > { %v2619_v29 = vpop.f32.mrb[54].mxu1 }
 0xe4b   : > { %v12772_v30 = vpop.f32.mrb[55].mxu1 }
 0xe58   : > { %v2662_v31 = vpop.f32.mrb[56].mxu1 }
 0xe59   : > { %v2673_v32 = vpack.c.bf16 %v2662_v31, %v2662_v31  ;;  %v12783_v33 = vpop.f32.mrb[57].mxu1 }
 0xe5a   : > { %v2665_v34 = vpop.f32.mrb[58].mxu1 }
 0xe5b   : > { %v12784_v36 = vpop.f32.mrb[59].mxu1  ;;  %12790 = vmatmul.mubr.msk.bf16.vlgmr.msra.gmra.mrb[56].mxu0 %vm961_vm1, %v2673_v32 }
 0xe5c   : > { %12794 = vmatpush3.bf16.msra.mxu0 %v14670_v54  ;;  %12801 = vmatprep.mubr.msk.bf16.mxu0 %vm14290_vm2, %v14289_v63 }
 0xe5d   : > { %12795 = vmatprep.subr.bf16.mxu0 %v14289_v63 }
 0xe60   : > { %12796 = vmatpush3.bf16.msra.mxu0 %v14678_v35 }
 0xe61   : > { %12797 = vmatprep.subr.bf16.mxu0 %v14289_v63 }
 0xe64   : > { %12798 = vmatpush3.bf16.msra.mxu0 %v14685_v47 }
 0xe65   : > { %12799 = vmatprep.subr.bf16.mxu0 %v14289_v63 }
 0xe68   : > { %12800 = vmatpush3.bf16.msra.mxu0 %v14691_v57 }
 0xe69   : > { %12825 = vmatprep.subr.bf16.mxu0 %v14289_v63 }
 0xe6b   : > { %12802 = vmatmul.mubr.msk.bf16.vlgmr.msra.gmra.mrb[60].mxu0 %vm1236_vm3, %v11215_v38 }
 0xe6c   : > { %12829 = vmatprep.mubr.msk.bf16.mxu0 %vm14290_vm2, %v14289_v63  ;;  %12826 = vmatpush3.bf16.msra.mxu0 %v13702_v59 }
 0xe6d   : > { %12827 = vmatprep.subr.bf16.mxu0 %v14289_v63 }
 0xe70   : > { %12828 = vmatpush3.bf16.msra.mxu0 %v13703_v62  ;;  %v11238_v62 = vld [vmem:[%s17324_s5 + $0x17] ss:$0 sm:$0xff] }
 0xe71   : > { %12833 = vmatprep.subr.bf16.mxu0 %v13704_v52 }
 0xf2e   : > { %v2723_v40 = vpop.f32.mrb[56].mxu0 }
 0xf2f   : > { %v2729_v41 = vadd.f32 %v2723_v40, %v2622_v25  ;;  %v12791_v42 = vpop.f32.mrb[57].mxu0 }
 0xf30   : > { %v2726_v43 = vpop.f32.mrb[58].mxu0 }
 0xf31   : > { %v12792_v46 = vpop.f32.mrb[59].mxu0 }
 0xf32   : > { %v13706_v46 = vld [vmem:[%s17328_s3 + $0x10] sm:$0xff]  }
 0xf3e   : > { %v2769_v48 = vpop.f32.mrb[60].mxu0 }
 0xf3f   : > { %v2780_v53 = vpack.c.bf16 %v2769_v48, %v2769_v48  ;;  %v12803_v45 = vpop.f32.mrb[61].mxu0  ;;  %v13707_v48 = vld [vmem:[%s17328_s3 + $0x18] sm:$0xff]  }
 0xf40   : > { %v2772_v26 = vpop.f32.mrb[62].mxu0 }
 0xf41   : > { %v12804_v55 = vpop.f32.mrb[63].mxu0  ;;  %12810 = vmatmul.mubr.msk.bf16.vlgmr.msra.gmra.mrb[60].mxu1 %vm961_vm1, %v2780_v53 }
 0xf42   : > { %12814 = vmatpush3.bf16.msra.mxu1 %v14670_v54  ;;  %12821 = vmatprep.mubr.msk.bf16.mxu1 %vm14290_vm2, %v14289_v63 }
 0xf43   : > { %12815 = vmatprep.subr.bf16.mxu1 %v14289_v63 }
 0xf46   : > { %12816 = vmatpush3.bf16.msra.mxu1 %v14678_v35 }
 0xf47   : > { %12817 = vmatprep.subr.bf16.mxu1 %v14289_v63 }
 0xf4a   : > { %12818 = vmatpush3.bf16.msra.mxu1 %v14685_v47 }
 0xf4b   : > { %12819 = vmatprep.subr.bf16.mxu1 %v14289_v63 }
 0xf4e   : > { %12820 = vmatpush3.bf16.msra.mxu1 %v14691_v57 }
 0xf4f   : > { %12845 = vmatprep.subr.bf16.mxu1 %v14289_v63 }
 0xf51   : > { %12822 = vmatmul.mubr.msk.bf16.vlgmr.msra.gmra.mrb[64].mxu1 %vm1236_vm3, %v11224_v56  ;;  %v11237_v56 = vld [vmem:[%s17324_s5 + $0x16] ss:$0 sm:$0xff] }
 0xf52   : > { %12849 = vmatprep.mubr.msk.bf16.mxu1 %vm14290_vm2, %v14289_v63  ;;  %12846 = vmatpush3.bf16.msra.mxu1 %v13706_v46 }
 0xf53   : > { %12847 = vmatprep.subr.bf16.mxu1 %v14289_v63 }
 0xf56   : > { %12848 = vmatpush3.bf16.msra.mxu1 %v13707_v48 }
 0xf57   : > { %12853 = vmatprep.subr.bf16.mxu1 %v14289_v63 }
0x1014   : > { %v2830_v28 = vpop.f32.mrb[60].mxu1 }
0x1015   : > { %v2836_v44 = vadd.f32 %v2830_v28, %v2729_v41  ;;  %v12811_v37 = vpop.f32.mrb[61].mxu1 }
0x1016   : > { %v2833_v0 = vpop.f32.mrb[62].mxu1 }
0x1017   : > { %v12812_v2 = vpop.f32.mrb[63].mxu1  ;;  %v13709_v0 = vld [vmem:[%s17328_s3 + $0x28] sm:$0xff]  }
0x1018   : > { %v11252_v2 = vld [vmem:[%s17324_s5 + $0x6] ss:$0 sm:$0xff] }
0x1024   : > { %v2876_v3 = vpop.f32.mrb[64].mxu1 }
0x1025   : > { %v2887_v51 = vpack.c.bf16 %v2876_v3, %v2876_v3  ;;  %v12823_v60 = vpop.f32.mrb[65].mxu1 }
0x1026   : > { %v2879_v7 = vpop.f32.mrb[66].mxu1 }
0x1027   : > { %v12824_v8 = vpop.f32.mrb[67].mxu1  ;;  %12830 = vmatmul.mubr.msk.bf16.vlgmr.msra.gmra.mrb[64].mxu0 %vm961_vm1, %v2887_v51 }
0x1028   : > { %12834 = vmatpush3.bf16.msra.mxu0 %v13704_v52  ;;  %12837 = vmatprep.mubr.msk.bf16.mxu0 %vm961_vm1, %v14670_v54 }
0x1029   : > { %12835 = vmatprep.subr.bf16.mxu0 %v13705_v50 }
0x102c   : > { %12836 = vmatpush3.bf16.msra.mxu0 %v13705_v50 }
0x102f   : > { %12838 = vmatmul.mubr.msk.bf16.vlgmr.msra.gmra.mrb[68].mxu0 %vm961_vm1, %v14678_v35  ;;  %v11240_v35 = vld [vmem:[%s17324_s5 + $0x5] ss:$0 sm:$0xff] }
0x1030   : > { %12841 = vmatprep.mubr.msk.bf16.mxu0 %vm961_vm1, %v14685_v47 }
0x1037   : > { %12842 = vmatmul.mubr.msk.bf16.gmra.mrb[72].mxu0 %vm961_vm1, %v14691_v57 }
0x10fa   : > { %v2937_v9 = vpop.f32.mrb[64].mxu0 }
0x10fb   : > { %v2943_v12 = vadd.f32 %v2937_v9, %v2836_v44  ;;  %v12831_v14 = vpop.f32.mrb[65].mxu0  ;;  %v13708_v44 = vld [vmem:[%s17328_s3 + $0x20] sm:$0xff]  }
0x10fc   : > { %v2940_v6 = vpop.f32.mrb[66].mxu0 }
0x10fd   : > { %v12832_v54 = vpop.f32.mrb[67].mxu0  ;;  %v2952_v15 = vadd.f32 %v11234_v11, %v2943_v12  ;;  %v11261_v11 = vld [vmem:[%s17324_s5 + $0x7] ss:$0 sm:$0xff] }
0x10ff   : > { %v2958_v16 = vsel %vm2957_vm4, %v2952_v15, 0.0 }
0x1100   : > { %2959 = vadd.xlane.f32.xlu0 %v2958_v16 }
0x1102   : > { %v12839_v47 = vpop.f32.mrb[68].mxu0 }
0x1103   : > { %v15099_v57 = vadd.f32 %v12839_v47, %v11240_v35  ;;  %v3055_v18 = vpop.f32.mrb[69].mxu0 }
0x1104   : > { %v12840_v19 = vpop.f32.mrb[70].mxu0  ;;  %v3056_v22 = vadd.f32 %v11240_v35, %v3055_v18 }
0x1105   : > { %v15101_v20 = vadd.f32 %v12840_v19, %v11240_v35  ;;  %v3058_v21 = vpop.f32.mrb[71].mxu0 }
0x1106   : > { %v3059_v23 = vadd.f32 %v11240_v35, %v3058_v21 }
0x1107   : > { %v3221_v24 = vpack.c.bf16 %v15101_v20, %v15099_v57 }
0x1108   : > { %v3220_v25 = vpack.c.bf16 %v3059_v23, %v3056_v22 }
0x110a   : > { %v12843_v27 = vpop.f32.mrb[72].mxu0  ;;  %12863 = vmatprep.mubr.msk.bf16.mxu0 %vm961_vm1, %v3220_v25 }
0x110b   : > { %v15106_v29 = vadd.f32 %v12843_v27, %v11240_v35  ;;  %v3071_v30 = vpop.f32.mrb[73].mxu0 }
0x110c   : > { %v3072_v31 = vadd.f32 %v11240_v35, %v3071_v30  ;;  %v12844_v32 = vpop.f32.mrb[74].mxu0 }
0x110d   : > { %v3083_v33 = vadd.f32 %v12844_v32, %v11240_v35  ;;  %v3074_v34 = vpop.f32.mrb[75].mxu0 }
0x110e   : > { %v3075_v36 = vadd.f32 %v11240_v35, %v3074_v34 }
0x110f   : > { %v3223_v38 = vpack.c.bf16 %v3083_v33, %v15106_v29 }
0x1110   : > { %v3222_v39 = vpack.c.bf16 %v3075_v36, %v3072_v31 }
0x118d   : > { %v2960_v10 = vpop.xlane.xlu0 %2959 }
0x118e   : > { %v2961_v40 = vmul.f32 0.03125, %v2960_v10 }
0x1190   : > { %v2962_v41 = vsub.f32 %v2952_v15, %v2961_v40 }
0x1192   : > { %v2963_v42 = vmul.f32 %v2962_v41, %v2962_v41 }
0x1194   : > { %v2964_v43 = vsel %vm2957_vm4, %v2963_v42, 0.0 }
0x1195   : > { %2965 = vadd.xlane.f32.xlu1 %v2964_v43 }
0x1222   : > { %v2966_v53 = vpop.xlane.xlu1 %2965 }
0x1223   : > { %v2967_v45 = vmul.f32 0.03125, %v2966_v53 }
0x1225   : > { %v2968_v26 = vadd.f32 1e-05, %v2967_v45 }
0x1227   : > { %13999 = vrsqrt.f32 %v2968_v26 }
0x1231   : > { %v14000_v55 = vpop.eup %13999 }
0x1232   : > { %v2970_v59 = vmul.f32 %v14000_v55, %v2962_v41 }
0x1234   : > { %v2977_v52 = vmul.f32 %v11237_v56, %v2970_v59 }
0x1236   : > { %v2984_v28 = vadd.f32 %v11238_v62, %v2977_v52 }
0x1238   : > { %v3091_v37 = vpack.c.bf16 %v2984_v28, %v2984_v28 }
0x123a   : > { %12850 = vmatmul.mubr.msk.bf16.vlgmr.msra.gmra.mrb[68].mxu1 %vm961_vm1, %v3091_v37 }
0x123b   : > { %12854 = vmatpush3.bf16.msra.mxu1 %v13708_v44  ;;  %12857 = vmatprep.mubr.msk.bf16.mxu1 %vm14290_vm2, %v14289_v63 }
0x123c   : > { %12855 = vmatprep.subr.bf16.mxu1 %v14289_v63 }
0x123f   : > { %12856 = vmatpush3.bf16.msra.mxu1 %v13709_v0 }
0x1242   : > { %12858 = vmatmul.mubr.msk.bf16.vlgmr.msra.gmra.mrb[72].mxu1 %vm961_vm1, %v3091_v37 }
0x130d   : > { %v3149_v3 = vpop.f32.mrb[68].mxu1 }
0x130e   : > { %v3150_v51 = vadd.f32 %v11252_v2, %v3149_v3  ;;  %v12851_v60 = vpop.f32.mrb[69].mxu1 }
0x130f   : > { %v3152_v50 = vpop.f32.mrb[70].mxu1 }
0x1310   : > { %v3224_v7 = vpack.c.bf16 %v3150_v51, %v3150_v51  ;;  %v12852_v8 = vpop.f32.mrb[71].mxu1 }
0x1312   : > { %v3238_v9 = vsel %vm961_vm1, %v3224_v7, 0  ;;  %13605 = vmatprep.subr.msk.bf16.mxu0 %vm961_vm1, %v3224_v7 }
0x1313   : > { %12862 = vmatpush3.bf16.xpose.msra.mxu0 %v3238_v9 }
0x1315   : > { %v3214_v12 = vpop.f32.mrb[72].mxu1 }
0x1316   : > { %v3215_v14 = vadd.f32 %v11261_v11, %v3214_v12  ;;  %v12859_v6 = vpop.f32.mrb[73].mxu1 }
0x1317   : > { %v3217_v54 = vpop.f32.mrb[74].mxu1 }
0x1318   : > { %v3406_v15 = vpack.c.bf16 %v3215_v14, %v3215_v14  ;;  %v12860_v16 = vpop.f32.mrb[75].mxu1 }
0x131a   : > { %v3421_v35 = vsel %vm3419_vm5, %v3406_v15, 0  ;;  %12864 = vmatmul.mubr.msk.bf16.vlgmr.msra.gmra.mrb[76].mxu0 %vm961_vm1, %v3221_v24  ;;  %13606 = vmatprep.subr.msk.bf16.mxu1 %vm3419_vm5, %v3406_v15 }
0x131b   : > { %12867 = vmatprep.mubr.msk.bf16.mxu0 %vm961_vm1, %v3222_v39  ;;  %12872 = vmatpush3.bf16.msra.mxu1 %v3421_v35 }
0x1322   : > { %12868 = vmatmul.mubr.msk.bf16.gmra.mrb[80].mxu0 %vm961_vm1, %v3223_v38 }
0x13ed   : > { %v12865_v47 = vpop.f32.mrb[76].mxu0 }
0x13ee   : > { %v3274_v18 = vpop.f32.mrb[77].mxu0  ;;  %v3307_v23 = vmul.f32 0.17677669, %v12865_v47 }
0x13ef   : > { %v3305_v19 = vmul.f32 0.17677669, %v3274_v18  ;;  %v12866_v21 = vpop.f32.mrb[78].mxu0 }
0x13f0   : > { %v3277_v22 = vpop.f32.mrb[79].mxu0  ;;  %v3308_v57 = vmul.f32 0.17677669, %v12866_v21  ;;  %v3320_v29 = vsel %vm3313_vm6, %v3307_v23, -inf }
0x13f1   : > { %v3306_v25 = vmul.f32 0.17677669, %v3277_v22  ;;  %v3314_v27 = vsel %vm3313_vm6, %v3305_v19, -inf }
0x13f2   : > { %3315 = vmax.xlane.f32.xlu0 %v3314_v27  ;;  %v3323_v33 = vsel %vm3313_vm6, %v3308_v57, -inf }
0x13f3   : > { %v3317_v20 = vsel %vm3313_vm6, %v3306_v25, -inf }
0x13f4   : > { %3318 = vmax.xlane.f32.xlu1 %v3317_v20  ;;  %v13710_v20 = vld [vmem:[%s17328_s3 + $0x30] sm:$0xff]  }
0x13f5   : > { %v12869_v24 = vpop.f32.mrb[80].mxu0  ;;  %12881 = vmatprep.subr.bf16.mxu0 %v13710_v20 }
0x13f6   : > { %3321 = vmax.xlane.f32.xlu0 %v3320_v29  ;;  %v3290_v30 = vpop.f32.mrb[81].mxu0  ;;  %v3311_v36 = vmul.f32 0.17677669, %v12869_v24  ;;  %12882 = vmatpush3.bf16.msra.mxu0 %v13710_v20 }
0x13f7   : > { %v3309_v31 = vmul.f32 0.17677669, %v3290_v30  ;;  %v12870_v32 = vpop.f32.mrb[82].mxu0 }
0x13f8   : > { %3324 = vmax.xlane.f32.xlu1 %v3323_v33  ;;  %v3293_v34 = vpop.f32.mrb[83].mxu0  ;;  %v3312_v10 = vmul.f32 0.17677669, %v12870_v32  ;;  %v3332_v41 = vsel %vm3313_vm6, %v3311_v36, -inf }
0x13f9   : > { %v3310_v38 = vmul.f32 0.17677669, %v3293_v34  ;;  %v3326_v39 = vsel %vm3313_vm6, %v3309_v31, -inf }
0x13fa   : > { %3327 = vmax.xlane.f32.xlu0 %v3326_v39  ;;  %v3335_v42 = vsel %vm3313_vm6, %v3312_v10, -inf }
0x13fb   : > { %v3329_v40 = vsel %vm3313_vm6, %v3310_v38, -inf }
0x13fc   : > { %3330 = vmax.xlane.f32.xlu1 %v3329_v40 }
0x13fe   : > { %3333 = vmax.xlane.f32.xlu0 %v3332_v41 }
0x1400   : > { %3336 = vmax.xlane.f32.xlu1 %v3335_v42 }
0x147f   : > { %v3316_v43 = vpop.xlane.xlu0 %3315 }
0x1480   : > { %v3338_v46 = vsub.f32 %v3305_v19, %v3316_v43 }
0x1481   : > { %v3319_v48 = vpop.xlane.xlu1 %3318 }
0x1482   : > { %v3346_v53 = vmul.f32 1.442695, %v3338_v46  ;;  %v3339_v45 = vsub.f32 %v3306_v25, %v3319_v48 }
0x1483   : > { %v3322_v26 = vpop.xlane.xlu0 %3321 }
0x1484   : > { %14001 = vpow2.f32 %v3346_v53  ;;  %v3348_v55 = vmul.f32 1.442695, %v3339_v45  ;;  %v3340_v56 = vsub.f32 %v3307_v23, %v3322_v26 }
0x1485   : > { %v3325_v59 = vpop.xlane.xlu1 %3324 }
0x1486   : > { %14003 = vpow2.f32 %v3348_v55  ;;  %v3350_v62 = vmul.f32 1.442695, %v3340_v56  ;;  %v3341_v52 = vsub.f32 %v3308_v57, %v3325_v59 }
0x1487   : > { %v3328_v28 = vpop.xlane.xlu0 %3327 }
0x1488   : > { %14005 = vpow2.f32 %v3350_v62  ;;  %v3352_v44 = vmul.f32 1.442695, %v3341_v52  ;;  %v3342_v37 = vsub.f32 %v3309_v31, %v3328_v28 }
0x1489   : > { %v3331_v0 = vpop.xlane.xlu1 %3330 }
0x148a   : > { %14007 = vpow2.f32 %v3352_v44  ;;  %v3354_v2 = vmul.f32 1.442695, %v3342_v37  ;;  %v3343_v3 = vsub.f32 %v3310_v38, %v3331_v0  ;;  %v13711_v0 = vld [vmem:[%s17328_s3 + $0x38] sm:$0xff]   ;;  %s17333_s3 = sld [smem:[#allocation23_spill]] }
0x148b   : > { %v3334_v51 = vpop.xlane.xlu0 %3333  ;;  %12883 = vmatprep.subr.bf16.mxu0 %v13711_v0 }
0x148c   : > { %14009 = vpow2.f32 %v3354_v2  ;;  %v3356_v60 = vmul.f32 1.442695, %v3343_v3  ;;  %v3344_v50 = vsub.f32 %v3311_v36, %v3334_v51  ;;  %12884 = vmatpush3.bf16.msra.mxu0 %v13711_v0 }
0x148d   : > { %v3337_v7 = vpop.xlane.xlu1 %3336 }
0x148e   : > { %v14002_v8 = vpop.eup %14001  ;;  %14011 = vpow2.f32 %v3356_v60  ;;  %v3358_v9 = vmul.f32 1.442695, %v3344_v50  ;;  %v3345_v11 = vsub.f32 %v3312_v10, %v3337_v7 }
0x148f   : > { %v3362_v12 = vsel %vm3313_vm6, %v14002_v8, 0.0 }
0x1490   : > { %v14004_v14 = vpop.eup %14003  ;;  %14013 = vpow2.f32 %v3358_v9  ;;  %v3360_v6 = vmul.f32 1.442695, %v3345_v11  ;;  %3363 = vadd.xlane.f32.xlu0 %v3362_v12 }
0x1491   : > { %v3365_v54 = vsel %vm3313_vm6, %v14004_v14, 0.0 }
0x1492   : > { %v14006_v15 = vpop.eup %14005  ;;  %14015 = vpow2.f32 %v3360_v6  ;;  %3366 = vadd.xlane.f32.xlu1 %v3365_v54 }
0x1493   : > { %v3368_v16 = vsel %vm3313_vm6, %v14006_v15, 0.0 }
0x1494   : > { %v14008_v35 = vpop.eup %14007  ;;  %3369 = vadd.xlane.f32.xlu0 %v3368_v16 }
0x1495   : > { %v3371_v47 = vsel %vm3313_vm6, %v14008_v35, 0.0 }
0x1496   : > { %v14010_v18 = vpop.eup %14009  ;;  %3372 = vadd.xlane.f32.xlu1 %v3371_v47 }
0x1497   : > { %v3374_v19 = vsel %vm3313_vm6, %v14010_v18, 0.0 }
0x1498   : > { %v14012_v21 = vpop.eup %14011  ;;  %3375 = vadd.xlane.f32.xlu0 %v3374_v19 }
0x1499   : > { %v3377_v22 = vsel %vm3313_vm6, %v14012_v21, 0.0 }
0x149a   : > { %v14014_v23 = vpop.eup %14013  ;;  %3378 = vadd.xlane.f32.xlu1 %v3377_v22 }
0x149b   : > { %v3380_v25 = vsel %vm3313_vm6, %v14014_v23, 0.0 }
0x149c   : > { %v14016_v27 = vpop.eup %14015  ;;  %3381 = vadd.xlane.f32.xlu0 %v3380_v25 }
0x149d   : > { %v3383_v57 = vsel %vm3313_vm6, %v14016_v27, 0.0 }
0x149e   : > { %3384 = vadd.xlane.f32.xlu1 %v3383_v57 }
0x151d   : > { %v3364_v24 = vpop.xlane.xlu0 %3363 }
0x151e   : > { %14017 = vrcp.f32 %v3364_v24 }
0x151f   : > { %v3367_v29 = vpop.xlane.xlu1 %3366 }
0x1520   : > { %14019 = vrcp.f32 %v3367_v29 }
0x1521   : > { %v3370_v30 = vpop.xlane.xlu0 %3369 }
0x1522   : > { %14021 = vrcp.f32 %v3370_v30 }
0x1523   : > { %v3373_v31 = vpop.xlane.xlu1 %3372 }
0x1524   : > { %14023 = vrcp.f32 %v3373_v31 }
0x1525   : > { %v3376_v32 = vpop.xlane.xlu0 %3375 }
0x1526   : > { %14025 = vrcp.f32 %v3376_v32 }
0x1527   : > { %v3379_v33 = vpop.xlane.xlu1 %3378 }
0x1528   : > { %v14018_v34 = vpop.eup %14017  ;;  %14027 = vrcp.f32 %v3379_v33 }
0x1529   : > { %v3382_v36 = vpop.xlane.xlu0 %3381  ;;  %v3394_v10 = vmul.f32 %v14018_v34, %v14002_v8 }
0x152a   : > { %v14020_v38 = vpop.eup %14019  ;;  %14029 = vrcp.f32 %v3382_v36 }
0x152b   : > { %v3385_v39 = vpop.xlane.xlu1 %3384  ;;  %v3395_v40 = vmul.f32 %v14020_v38, %v14004_v14 }
0x152c   : > { %v14022_v41 = vpop.eup %14021  ;;  %14031 = vrcp.f32 %v3385_v39 }
0x152d   : > { %v3402_v42 = vpack.c.bf16 %v3395_v40, %v3394_v10  ;;  %v3396_v46 = vmul.f32 %v14022_v41, %v14006_v15  ;;  %v11284_v15 = vld [vmem:[%s17324_s5 + $0x8] ss:$0 sm:$0xff] }
0x152e   : > { %v14024_v43 = vpop.eup %14023 }
0x152f   : > { %v3397_v48 = vmul.f32 %v14024_v43, %v14008_v35  ;;  %12873 = vmatprep.mubr.msk.bf16.mxu1 %vm3313_vm6, %v3402_v42 }
0x1530   : > { %v14026_v53 = vpop.eup %14025 }
0x1531   : > { %v3403_v45 = vpack.c.bf16 %v3397_v48, %v3396_v46  ;;  %v3398_v55 = vmul.f32 %v14026_v53, %v14010_v18 }
0x1532   : > { %v14028_v26 = vpop.eup %14027 }
0x1533   : > { %12874 = vmatmul.mubr.msk.bf16.vlgmr.msra.gmra.mrb[76].mxu1 %vm3313_vm6, %v3403_v45  ;;  %v3399_v56 = vmul.f32 %v14028_v26, %v14012_v21 }
0x1534   : > { %v14030_v59 = vpop.eup %14029 }
0x1535   : > { %v3404_v62 = vpack.c.bf16 %v3399_v56, %v3398_v55  ;;  %v3400_v28 = vmul.f32 %v14030_v59, %v14014_v23 }
0x1536   : > { %v14032_v52 = vpop.eup %14031 }
0x1537   : > { %12877 = vmatprep.mubr.msk.bf16.mxu1 %vm3313_vm6, %v3404_v62  ;;  %v3401_v44 = vmul.f32 %v14032_v52, %v14016_v27 }
0x1539   : > { %v3405_v37 = vpack.c.bf16 %v3401_v44, %v3400_v28 }
0x153b   : > { %12878 = vmatmul.mubr.msk.bf16.gmra.mrb[80].mxu1 %vm3313_vm6, %v3405_v37 }
0x1606   : > { %v12875_v2 = vpop.f32.mrb[76].mxu1 }
0x1607   : > { %v3457_v3 = vpop.f32.mrb[77].mxu1 }
0x1608   : > { %v12876_v51 = vpop.f32.mrb[78].mxu1 }
0x1609   : > { %v3494_v60 = vpack.c.bf16 %v12876_v51, %v12875_v2  ;;  %v3460_v50 = vpop.f32.mrb[79].mxu1 }
0x160a   : > { %v3493_v7 = vpack.c.bf16 %v3460_v50, %v3457_v3 }
0x160c   : > { %12885 = vmatprep.mubr.msk.bf16.mxu0 %vm961_vm1, %v3493_v7 }
0x160d   : > { %12886 = vmatmul.mubr.msk.bf16.vlgmr.msra.gmra.mrb[84].mxu0 %vm961_vm1, %v3494_v60 }
0x160e   : > { %v12879_v8 = vpop.f32.mrb[80].mxu1 }
0x160f   : > { %v3473_v9 = vpop.f32.mrb[81].mxu1 }
0x1610   : > { %v12880_v11 = vpop.f32.mrb[82].mxu1 }
0x1611   : > { %v3496_v12 = vpack.c.bf16 %v12880_v11, %v12879_v8  ;;  %v3476_v14 = vpop.f32.mrb[83].mxu1 }
0x1612   : > { %v3495_v6 = vpack.c.bf16 %v3476_v14, %v3473_v9 }
0x1614   : > { %12889 = vmatprep.mubr.msk.bf16.mxu0 %vm961_vm1, %v3495_v6 }
0x1615   : > { %12890 = vmatmul.mubr.msk.bf16.gmra.mrb[88].mxu0 %vm961_vm1, %v3496_v12 }
0x16e0   : > { %v12887_v54 = vpop.f32.mrb[84].mxu0 }
0x16e1   : > { %v3555_v16 = vpop.f32.mrb[85].mxu0  ;;  %v3588_v35 = vadd.f32 %v12887_v54, %v14575_v61 }
0x16e2   : > { %v3586_v47 = vadd.f32 %v3555_v16, %v14566_v49  ;;  %v12888_v18 = vpop.f32.mrb[86].mxu0 }
0x16e3   : > { %v3558_v19 = vpop.f32.mrb[87].mxu0  ;;  %v3589_v22 = vadd.f32 %v12888_v18, %v14582_v4  ;;  %v15190_v25 = vadd.f32 %v11284_v15, %v3588_v35 }
0x16e4   : > { %v15186_v21 = vadd.f32 %v11284_v15, %v3586_v47  ;;  %v3587_v23 = vadd.f32 %v3558_v19, %v14572_v58 }
0x16e5   : > { %v15196_v20 = vadd.f32 %v11284_v15, %v3589_v22  ;;  %v3620_v30 = vsel %vm961_vm1, %v15190_v25, 0.0 }
0x16e6   : > { %v15192_v27 = vadd.f32 %v11284_v15, %v3587_v23  ;;  %v3614_v57 = vsel %vm961_vm1, %v15186_v21, 0.0 }
0x16e7   : > { %3615 = vadd.xlane.f32.xlu0 %v3614_v57  ;;  %v3623_v36 = vsel %vm961_vm1, %v15196_v20, 0.0 }
0x16e8   : > { %v12891_v61 = vpop.f32.mrb[88].mxu0  ;;  %v3617_v49 = vsel %vm961_vm1, %v15192_v27, 0.0 }
0x16e9   : > { %3618 = vadd.xlane.f32.xlu1 %v3617_v49  ;;  %v3571_v24 = vpop.f32.mrb[89].mxu0  ;;  %v3592_v4 = vadd.f32 %v12891_v61, %v14595_v1  ;;  %v13712_v61 = vld [vmem:[%s17329_s8] sm:$0xff]   ;;  %v13713_v49 = vld [vmem:[%s17330_s28 + $0x8] sm:$0xff]   ;;  %s11073_s8 = sshll.u32 %s15763_s29, 6 }
0x16ea   : > { %v3590_v58 = vadd.f32 %v3571_v24, %v14585_v5  ;;  %v12892_v29 = vpop.f32.mrb[90].mxu0  ;;  %12893 = vmatprep.subr.bf16.mxu1 %v13712_v61 }
0x16eb   : > { %3621 = vadd.xlane.f32.xlu0 %v3620_v30  ;;  %v3574_v31 = vpop.f32.mrb[91].mxu0  ;;  %v3593_v33 = vadd.f32 %v12892_v29, %v14601_v17  ;;  %v15210_v38 = vadd.f32 %v11284_v15, %v3592_v4  ;;  %12894 = vmatpush3.bf16.msra.mxu1 %v13712_v61 }
0x16ec   : > { %v15204_v32 = vadd.f32 %v11284_v15, %v3590_v58  ;;  %v3591_v34 = vadd.f32 %v3574_v31, %v14592_v13  ;;  %12895 = vmatprep.subr.bf16.mxu1 %v13713_v49 }
0x16ed   : > { %3624 = vadd.xlane.f32.xlu1 %v3623_v36  ;;  %v15216_v39 = vadd.f32 %v11284_v15, %v3593_v33  ;;  %v3632_v13 = vsel %vm961_vm1, %v15210_v38, 0.0 }
0x16ee   : > { %v15212_v1 = vadd.f32 %v11284_v15, %v3591_v34  ;;  %v3626_v5 = vsel %vm961_vm1, %v15204_v32, 0.0 }
0x16ef   : > { %3627 = vadd.xlane.f32.xlu0 %v3626_v5  ;;  %v3635_v17 = vsel %vm961_vm1, %v15216_v39, 0.0  ;;  %12896 = vmatpush3.bf16.msra.mxu1 %v13713_v49 }
0x16f0   : > { %v3629_v10 = vsel %vm961_vm1, %v15212_v1, 0.0 }
0x16f1   : > { %3630 = vadd.xlane.f32.xlu1 %v3629_v10 }
0x16f3   : > { %3633 = vadd.xlane.f32.xlu0 %v3632_v13 }
0x16f5   : > { %3636 = vadd.xlane.f32.xlu1 %v3635_v17 }
0x1774   : > { %v3616_v40 = vpop.xlane.xlu0 %3615 }
0x1775   : > { %v3638_v41 = vmul.f32 0.03125, %v3616_v40 }
0x1776   : > { %v3619_v42 = vpop.xlane.xlu1 %3618 }
0x1777   : > { %v15225_v43 = vsub.f32 %v15186_v21, %v3638_v41  ;;  %v3639_v46 = vmul.f32 0.03125, %v3619_v42 }
0x1778   : > { %v3622_v48 = vpop.xlane.xlu0 %3621 }
0x1779   : > { %v15228_v53 = vsub.f32 %v15192_v27, %v3639_v46  ;;  %v3640_v45 = vmul.f32 0.03125, %v3622_v48  ;;  %v3654_v26 = vmul.f32 %v15225_v43, %v15225_v43 }
0x177a   : > { %v3625_v55 = vpop.xlane.xlu1 %3624 }
0x177b   : > { %v15233_v56 = vsub.f32 %v15190_v25, %v3640_v45  ;;  %v3641_v59 = vmul.f32 0.03125, %v3625_v55  ;;  %v3662_v62 = vsel %vm961_vm1, %v3654_v26, 0.0  ;;  %v3655_v52 = vmul.f32 %v15228_v53, %v15228_v53 }
0x177c   : > { %3663 = vadd.xlane.f32.xlu0 %v3662_v62  ;;  %v3628_v28 = vpop.xlane.xlu0 %3627  ;;  %v11287_v62 = vld [vmem:[%s17324_s5 + $0x9] ss:$0 sm:$0xff] }
0x177d   : > { %v15239_v44 = vsub.f32 %v15196_v20, %v3641_v59  ;;  %v3642_v37 = vmul.f32 0.03125, %v3628_v28  ;;  %v3665_v0 = vsel %vm961_vm1, %v3655_v52, 0.0  ;;  %v3656_v2 = vmul.f32 %v15233_v56, %v15233_v56 }
0x177e   : > { %3666 = vadd.xlane.f32.xlu1 %v3665_v0  ;;  %v3631_v3 = vpop.xlane.xlu1 %3630 }
0x177f   : > { %v15245_v51 = vsub.f32 %v15204_v32, %v3642_v37  ;;  %v3643_v60 = vmul.f32 0.03125, %v3631_v3  ;;  %v3668_v50 = vsel %vm961_vm1, %v3656_v2, 0.0  ;;  %v3657_v7 = vmul.f32 %v15239_v44, %v15239_v44 }
0x1780   : > { %3669 = vadd.xlane.f32.xlu0 %v3668_v50  ;;  %v3634_v8 = vpop.xlane.xlu0 %3633 }
0x1781   : > { %v15251_v9 = vsub.f32 %v15212_v1, %v3643_v60  ;;  %v3644_v11 = vmul.f32 0.03125, %v3634_v8  ;;  %v3671_v12 = vsel %vm961_vm1, %v3657_v7, 0.0  ;;  %v3658_v14 = vmul.f32 %v15245_v51, %v15245_v51  ;;  %v11288_v7 = vld [vmem:[%s17324_s5 + $0xa] ss:$0 sm:$0xff] }
0x1782   : > { %3672 = vadd.xlane.f32.xlu1 %v3671_v12  ;;  %v3637_v6 = vpop.xlane.xlu1 %3636 }
0x1783   : > { %v15257_v54 = vsub.f32 %v15210_v38, %v3644_v11  ;;  %v3645_v15 = vmul.f32 0.03125, %v3637_v6  ;;  %v3674_v16 = vsel %vm961_vm1, %v3658_v14, 0.0  ;;  %v3659_v35 = vmul.f32 %v15251_v9, %v15251_v9 }
0x1784   : > { %3675 = vadd.xlane.f32.xlu0 %v3674_v16 }
0x1785   : > { %v15263_v47 = vsub.f32 %v15216_v39, %v3645_v15  ;;  %v3677_v18 = vsel %vm961_vm1, %v3659_v35, 0.0  ;;  %v3660_v19 = vmul.f32 %v15257_v54, %v15257_v54 }
0x1786   : > { %3678 = vadd.xlane.f32.xlu1 %v3677_v18 }
0x1787   : > { %v3680_v22 = vsel %vm961_vm1, %v3660_v19, 0.0  ;;  %v3661_v23 = vmul.f32 %v15263_v47, %v15263_v47 }
0x1788   : > { %3681 = vadd.xlane.f32.xlu0 %v3680_v22 }
0x1789   : > { %v3683_v57 = vsel %vm961_vm1, %v3661_v23, 0.0 }
0x178a   : > { %3684 = vadd.xlane.f32.xlu1 %v3683_v57 }
0x1809   : > { %v3664_v24 = vpop.xlane.xlu0 %3663 }
0x180a   : > { %v3686_v4 = vmul.f32 0.03125, %v3664_v24 }
0x180b   : > { %v3667_v58 = vpop.xlane.xlu1 %3666 }
0x180c   : > { %v3694_v29 = vadd.f32 1e-06, %v3686_v4  ;;  %v3687_v30 = vmul.f32 0.03125, %v3667_v58 }
0x180d   : > { %v3670_v31 = vpop.xlane.xlu0 %3669 }
0x180e   : > { %14033 = vrsqrt.f32 %v3694_v29  ;;  %v3695_v33 = vadd.f32 1e-06, %v3687_v30  ;;  %v3688_v34 = vmul.f32 0.03125, %v3670_v31 }
0x180f   : > { %v3673_v36 = vpop.xlane.xlu1 %3672 }
0x1810   : > { %14035 = vrsqrt.f32 %v3695_v33  ;;  %v3696_v5 = vadd.f32 1e-06, %v3688_v34  ;;  %v3689_v10 = vmul.f32 0.03125, %v3673_v36 }
0x1811   : > { %v3676_v13 = vpop.xlane.xlu0 %3675 }
0x1812   : > { %14037 = vrsqrt.f32 %v3696_v5  ;;  %v3697_v17 = vadd.f32 1e-06, %v3689_v10  ;;  %v3690_v40 = vmul.f32 0.03125, %v3676_v13  ;;  %v13716_v5 = vld [vmem:[%s17331_s0 + $0x10] sm:$0xff]   ;;  %v13717_v10 = vld [vmem:[%s17331_s0 + $0x18] sm:$0xff]   ;;  %v13718_v13 = vld [vmem:[%s17331_s0 + $0x20] sm:$0xff]  }
0x1813   : > { %v3679_v41 = vpop.xlane.xlu1 %3678 }
0x1814   : > { %14039 = vrsqrt.f32 %v3697_v17  ;;  %v3698_v42 = vadd.f32 1e-06, %v3690_v40  ;;  %v3691_v46 = vmul.f32 0.03125, %v3679_v41  ;;  %v13719_v17 = vld [vmem:[%s17331_s0 + $0x28] sm:$0xff]   ;;  %v13720_v40 = vld [vmem:[%s17331_s0 + $0x30] sm:$0xff]   ;;  %v13721_v41 = vld [vmem:[%s17331_s0 + $0x38] sm:$0xff]  }
0x1815   : > { %v3682_v48 = vpop.xlane.xlu0 %3681 }
0x1816   : > { %14041 = vrsqrt.f32 %v3698_v42  ;;  %v3699_v45 = vadd.f32 1e-06, %v3691_v46  ;;  %v3692_v26 = vmul.f32 0.03125, %v3682_v48  ;;  %v3773_v42 = vlaneseq  ;;  %v3750_v48 = vld [vmem:[%s17330_s28 + $0x10] sm:$0x1]  ;;  %s10898_s28 = sand.u32 1, %s14461_s9  }
0x1817   : > { %v3685_v55 = vpop.xlane.xlu1 %3684 }
0x1818   : > { %v14034_v59 = vpop.eup %14033  ;;  %14043 = vrsqrt.f32 %v3699_v45  ;;  %v3700_v52 = vadd.f32 1e-06, %v3692_v26  ;;  %v3693_v28 = vmul.f32 0.03125, %v3685_v55  ;;  %v3774_v46 = vshrl.u32 %v3773_v42, 7 }
0x1819   : > { %v3710_v37 = vmul.f32 %v14034_v59, %v15225_v43  ;;  %v3772_v45 = vunpack.c.l.bf16 %v3750_v48 }
0x181a   : > { %v14036_v0 = vpop.eup %14035  ;;  %14045 = vrsqrt.f32 %v3700_v52  ;;  %v3701_v2 = vadd.f32 1e-06, %v3693_v28  ;;  %v15323_v26 = vsub.s32 0, %v3774_v46 }
0x181b   : > { %v3711_v3 = vmul.f32 %v14036_v0, %v15228_v53  ;;  %v3724_v60 = vmul.f32 %v11287_v62, %v3710_v37 }
0x181c   : > { %v14038_v50 = vpop.eup %14037  ;;  %14047 = vrsqrt.f32 %v3701_v2  ;;  %v3776_v55 = vrot.slane %v3772_v45, %v15323_v26 }
0x181d   : > { %v3712_v8 = vmul.f32 %v14038_v50, %v15233_v56  ;;  %v3725_v11 = vmul.f32 %v11287_v62, %v3711_v3  ;;  %v3738_v43 = vadd.f32 %v11288_v7, %v3724_v60 }
0x181e   : > { %v14040_v12 = vpop.eup %14039 }
0x181f   : > { %v3726_v14 = vmul.f32 %v11287_v62, %v3712_v8  ;;  %v3713_v6 = vmul.f32 %v14040_v12, %v15239_v44  ;;  %v3739_v15 = vadd.f32 %v11288_v7, %v3725_v11 }
0x1820   : > { %v14042_v16 = vpop.eup %14041 }
0x1821   : > { %v3727_v35 = vmul.f32 %v11287_v62, %v3713_v6  ;;  %v3714_v53 = vmul.f32 %v14042_v16, %v15245_v51  ;;  %v3768_v18 = vpack.c.bf16 %v3739_v15, %v3738_v43  ;;  %v3740_v22 = vadd.f32 %v11288_v7, %v3726_v14 }
0x1822   : > { %v14044_v19 = vpop.eup %14043 }
0x1823   : > { %v3741_v23 = vadd.f32 %v11288_v7, %v3727_v35  ;;  %v3715_v57 = vmul.f32 %v14044_v19, %v15251_v9  ;;  %12897 = vmatprep.mubr.msk.bf16.mxu1 %vm961_vm1, %v3768_v18  ;;  %v3728_v56 = vmul.f32 %v11287_v62, %v3714_v53 }
0x1824   : > { %v14046_v61 = vpop.eup %14045 }
0x1825   : > { %v3716_v49 = vmul.f32 %v14046_v61, %v15257_v54  ;;  %v3769_v24 = vpack.c.bf16 %v3741_v23, %v3740_v22  ;;  %v3729_v44 = vmul.f32 %v11287_v62, %v3715_v57  ;;  %v3742_v51 = vadd.f32 %v11288_v7, %v3728_v56  ;;  %v13714_v54 = vld [vmem:[%s17331_s0] sm:$0xff]  }
0x1826   : > { %v14048_v4 = vpop.eup %14047  ;;  %12905 = vmatprep.subr.bf16.mxu0 %v13714_v54 }
0x1827   : > { %v3717_v58 = vmul.f32 %v14048_v4, %v15263_v47  ;;  %12898 = vmatmul.mubr.msk.bf16.vlgmr.msra.gmra.mrb[84].mxu1 %vm961_vm1, %v3769_v24  ;;  %v3743_v29 = vadd.f32 %v11288_v7, %v3729_v44  ;;  %v3730_v30 = vmul.f32 %v11287_v62, %v3716_v49  ;;  %12906 = vmatpush3.bf16.msra.mxu0 %v13714_v54  ;;  %v13715_v47 = vld [vmem:[%s17331_s0 + $0x8] sm:$0xff]  }
0x1828   : > { %12907 = vmatprep.subr.bf16.mxu0 %v13715_v47 }
0x1829   : > { %v3770_v31 = vpack.c.bf16 %v3743_v29, %v3742_v51  ;;  %v3731_v33 = vmul.f32 %v11287_v62, %v3717_v58  ;;  %v3744_v9 = vadd.f32 %v11288_v7, %v3730_v30 }
0x182b   : > { %12901 = vmatprep.mubr.msk.bf16.mxu1 %vm961_vm1, %v3770_v31  ;;  %v3745_v34 = vadd.f32 %v11288_v7, %v3731_v33  ;;  %12908 = vmatpush3.bf16.msra.mxu0 %v13715_v47 }
0x182c   : > { %12909 = vmatprep.subr.bf16.mxu0 %v13716_v5 }
0x182d   : > { %v3771_v36 = vpack.c.bf16 %v3745_v34, %v3744_v9 }
0x182f   : > { %12902 = vmatmul.mubr.msk.bf16.gmra.mrb[88].mxu1 %vm961_vm1, %v3771_v36  ;;  %12910 = vmatpush3.bf16.msra.mxu0 %v13716_v5 }
0x1830   : > { %12911 = vmatprep.subr.bf16.mxu0 %v13717_v10 }
0x1833   : > { %12912 = vmatpush3.bf16.msra.mxu0 %v13717_v10 }
0x1834   : > { %12913 = vmatprep.subr.bf16.mxu0 %v13718_v13 }
0x1837   : > { %12914 = vmatpush3.bf16.msra.mxu0 %v13718_v13 }
0x1838   : > { %12915 = vmatprep.subr.bf16.mxu0 %v13719_v17 }
0x183b   : > { %12916 = vmatpush3.bf16.msra.mxu0 %v13719_v17 }
0x183c   : > { %12917 = vmatprep.subr.bf16.mxu0 %v13720_v40 }
0x183f   : > { %12918 = vmatpush3.bf16.msra.mxu0 %v13720_v40 }
0x1840   : > { %12919 = vmatprep.subr.bf16.mxu0 %v13721_v41 }
0x1843   : > { %12920 = vmatpush3.bf16.msra.mxu0 %v13721_v41 }
0x18fa   : > { %v12899_v59 = vpop.f32.mrb[84].mxu1 }
0x18fb   : > { %v3844_v62 = vadd.f32 %v12899_v59, %v3776_v55  ;;  %v3835_v52 = vpop.f32.mrb[85].mxu1 }
0x18fc   : > { %v15326_v28 = vadd.f32 %v3835_v52, %v3776_v55  ;;  %v12900_v37 = vpop.f32.mrb[86].mxu1 }
0x18fd   : > { %v15328_v0 = vmul.f32 0.70710677, %v3844_v62  ;;  %v15330_v2 = vadd.f32 %v12900_v37, %v3776_v55  ;;  %v3838_v3 = vpop.f32.mrb[87].mxu1  ;;  %v15367_v13 = vmul.f32 0.5, %v3844_v62 }
0x18fe   : > { %v15333_v60 = vmul.f32 0.70710677, %v15326_v28  ;;  %v15335_v50 = vadd.f32 %v3838_v3, %v3776_v55 }
0x18ff   : > { %v3876_v7 = vand.u32 2147483647, %v15328_v0  ;;  %v15339_v8 = vmul.f32 0.70710677, %v15330_v2  ;;  %vm4028_vm7 = vcmp.ge.f32.partialorder %v15328_v0, 0.0 }
0x1900   : > { %v3874_v11 = vand.u32 2147483647, %v15333_v60  ;;  %v15343_v12 = vmul.f32 0.70710677, %v15335_v50  ;;  %vm4026_vm8 = vcmp.ge.f32.partialorder %v15333_v60, 0.0 }
0x1901   : > { %v3884_v14 = vmul.f32 0.3275911, %v3876_v7  ;;  %v3877_v6 = vand.u32 2147483647, %v15339_v8  ;;  %v3980_v51 = vsub.f32 0.0, %v3876_v7  ;;  %vm4029_vm9 = vcmp.ge.f32.partialorder %v15339_v8, 0.0 }
0x1902   : > { %v3882_v43 = vmul.f32 0.3275911, %v3874_v11  ;;  %v3875_v15 = vand.u32 2147483647, %v15343_v12  ;;  %v12903_v53 = vpop.f32.mrb[88].mxu1  ;;  %v3978_v31 = vsub.f32 0.0, %v3874_v11 }
0x1903   : > { %v3892_v16 = vadd.f32 1.0, %v3884_v14  ;;  %v3885_v35 = vmul.f32 0.3275911, %v3877_v6  ;;  %v3851_v22 = vpop.f32.mrb[89].mxu1  ;;  %v15347_v49 = vadd.f32 %v12903_v53, %v3776_v55  ;;  %v3981_v34 = vsub.f32 0.0, %v3877_v6 }
0x1904   : > { %v3890_v18 = vadd.f32 1.0, %v3882_v43  ;;  %v3883_v19 = vmul.f32 0.3275911, %v3875_v15  ;;  %v12904_v57 = vpop.f32.mrb[90].mxu1  ;;  %v15349_v24 = vadd.f32 %v3851_v22, %v3776_v55  ;;  %v3979_v36 = vsub.f32 0.0, %v3875_v15 }
0x1905   : > { %14049 = vrcp.f32 %v3892_v16  ;;  %v3893_v23 = vadd.f32 1.0, %v3885_v35  ;;  %v3854_v56 = vpop.f32.mrb[91].mxu1  ;;  %v15351_v44 = vadd.f32 %v12904_v57, %v3776_v55  ;;  %v15354_v4 = vmul.f32 0.70710677, %v15347_v49 }
0x1906   : > { %14051 = vrcp.f32 %v3890_v18  ;;  %v3891_v61 = vadd.f32 1.0, %v3883_v19  ;;  %v15357_v58 = vmul.f32 0.70710677, %v15349_v24  ;;  %v15362_v30 = vadd.f32 %v3854_v56, %v3776_v55 }
0x1907   : > { %14053 = vrcp.f32 %v3893_v23  ;;  %v15360_v29 = vmul.f32 0.70710677, %v15351_v44  ;;  %v3880_v33 = vand.u32 2147483647, %v15354_v4  ;;  %v3988_v10 = vmul.f32 %v3980_v51, %v3876_v7 }
0x1908   : > { %14055 = vrcp.f32 %v3891_v61  ;;  %v3878_v9 = vand.u32 2147483647, %v15357_v58  ;;  %v15370_v40 = vmul.f32 0.70710677, %v15362_v30  ;;  %v3986_v42 = vmul.f32 %v3978_v31, %v3874_v11 }
0x1909   : > { %v3881_v54 = vand.u32 2147483647, %v15360_v29  ;;  %v3888_v47 = vmul.f32 0.3275911, %v3880_v33  ;;  %v3984_v48 = vsub.f32 0.0, %v3880_v33  ;;  %v3989_v52 = vmul.f32 %v3981_v34, %v3877_v6 }
0x190a   : > { %v3886_v5 = vmul.f32 0.3275911, %v3878_v9  ;;  %v3987_v37 = vmul.f32 %v3979_v36, %v3875_v15  ;;  %v3879_v3 = vand.u32 2147483647, %v15370_v40  ;;  %v3982_v7 = vsub.f32 0.0, %v3878_v9 }
0x190b   : > { %v3889_v17 = vmul.f32 0.3275911, %v3881_v54  ;;  %v3896_v46 = vadd.f32 1.0, %v3888_v47  ;;  %v3998_v16 = vmul.f32 1.442695, %v3988_v10  ;;  %v3992_v19 = vmul.f32 %v3984_v48, %v3880_v33 }
0x190c   : > { %v3894_v45 = vadd.f32 1.0, %v3886_v5  ;;  %v3887_v11 = vmul.f32 0.3275911, %v3879_v3  ;;  %v3994_v18 = vmul.f32 1.442695, %v3986_v42  ;;  %v3985_v22 = vsub.f32 0.0, %v3881_v54 }
0x190d   : > { %14057 = vrcp.f32 %v3896_v46  ;;  %v3897_v14 = vadd.f32 1.0, %v3889_v17  ;;  %v4000_v23 = vmul.f32 1.442695, %v3989_v52  ;;  %v3996_v51 = vmul.f32 1.442695, %v3987_v37 }
0x190e   : > { %14059 = vrcp.f32 %v3894_v45  ;;  %v3895_v57 = vadd.f32 1.0, %v3887_v11  ;;  %v3990_v31 = vmul.f32 %v3982_v7, %v3878_v9  ;;  %v4006_v5 = vmul.f32 1.442695, %v3992_v19 }
0x190f   : > { %v15372_v41 = vpop.eup %14049  ;;  %14061 = vrcp.f32 %v3897_v14  ;;  %v3993_v10 = vmul.f32 %v3985_v22, %v3881_v54  ;;  %v3983_v45 = vsub.f32 0.0, %v3879_v3  ;;  %v15394_v7 = vmul.f32 0.5, %v15326_v28 }
0x1910   : > { %v15374_v55 = vpop.eup %14051  ;;  %v3908_v59 = vmul.f32 1.0614054, %v15372_v41  ;;  %14063 = vpow2.f32 %v3998_v16  ;;  %v4002_v9 = vmul.f32 1.442695, %v3990_v31  ;;  %v15408_v31 = vmul.f32 0.5, %v15330_v2 }
0x1911   : > { %v3906_v62 = vmul.f32 1.0614054, %v15374_v55  ;;  %v15379_v35 = vpop.eup %14053  ;;  %14065 = vrcp.f32 %v3895_v57  ;;  %v4008_v14 = vmul.f32 1.442695, %v3993_v10  ;;  %vm4027_vm10 = vcmp.ge.f32.partialorder %v15343_v12, 0.0 }
0x1912   : > { %v3916_v43 = vadd.f32 -1.4531521, %v3908_v59  ;;  %v3909_v15 = vmul.f32 1.0614054, %v15379_v35  ;;  %v15383_v56 = vpop.eup %14055  ;;  %14067 = vpow2.f32 %v3994_v18  ;;  %vm4032_vm11 = vcmp.ge.f32.partialorder %v15354_v4, 0.0 }
0x1913   : > { %v3914_v53 = vadd.f32 -1.4531521, %v3906_v62  ;;  %v3907_v47 = vmul.f32 1.0614054, %v15383_v56  ;;  %14069 = vpow2.f32 %v4000_v23  ;;  %vm4033_vm12 = vcmp.ge.f32.partialorder %v15360_v29, 0.0 }
0x1914   : > { %v3924_v6 = vmul.f32 %v15372_v41, %v3916_v43  ;;  %v3917_v36 = vadd.f32 -1.4531521, %v3909_v15  ;;  %14071 = vpow2.f32 %v3996_v51  ;;  %vm4030_vm13 = vcmp.ge.f32.partialorder %v15357_v58, 0.0 }
0x1915   : > { %v3922_v61 = vmul.f32 %v15374_v55, %v3914_v53  ;;  %v3915_v46 = vadd.f32 -1.4531521, %v3907_v47  ;;  %14073 = vpow2.f32 %v4006_v5  ;;  %vm4031_vm14 = vcmp.ge.f32.partialorder %v15370_v40, 0.0  ;;  %v13724_v40 = vld [vmem:[%s17332_s2 + $0x40] sm:$0xff]  }
0x1916   : > { %v3932_v34 = vadd.f32 1.4214138, %v3924_v6  ;;  %v3925_v42 = vmul.f32 %v15379_v35, %v3917_v36  ;;  %14075 = vpow2.f32 %v4002_v9  ;;  %v3991_v6 = vmul.f32 %v3983_v45, %v3879_v3 }
0x1917   : > { %v3930_v33 = vadd.f32 1.4214138, %v3922_v61  ;;  %v3923_v37 = vmul.f32 %v15383_v56, %v3915_v46  ;;  %v15391_v62 = vpop.eup %14057  ;;  %14077 = vpow2.f32 %v4008_v14  ;;  %v4054_v29 = vmul.f32 0.5, %v15349_v24  ;;  %v3767_v24 = vld [vmem:[%s17331_s0 + $0x40] sm:$0x1]  ;;  %s15769_s0 = scalar_lea.vmem [#allocation2], %s11073_s8 }
0x1918   : > { %v3940_v17 = vmul.f32 %v15372_v41, %v3932_v34  ;;  %v3933_v52 = vadd.f32 1.4214138, %v3925_v42  ;;  %v15396_v43 = vpop.eup %14059  ;;  %v3912_v18 = vmul.f32 1.0614054, %v15391_v62  ;;  %v4004_v46 = vmul.f32 1.442695, %v3991_v6 }
0x1919   : > { %v3938_v48 = vmul.f32 %v15374_v55, %v3930_v33  ;;  %v3931_v53 = vadd.f32 1.4214138, %v3923_v37  ;;  %v3910_v22 = vmul.f32 1.0614054, %v15396_v43  ;;  %v15404_v61 = vpop.eup %14061  ;;  %s17338_s8 = smov 96  }
0x191a   : > { %v3948_v59 = vadd.f32 -0.28449672, %v3940_v17  ;;  %v3941_v11 = vmul.f32 %v15379_v35, %v3933_v52  ;;  %v3920_v57 = vadd.f32 -1.4531521, %v3912_v18  ;;  %v14064_v36 = vpop.eup %14063  ;;  %v3913_v2 = vmul.f32 1.0614054, %v15404_v61 }
0x191b   : > { %v3946_v54 = vadd.f32 -0.28449672, %v3938_v48  ;;  %v3939_v23 = vmul.f32 %v15383_v56, %v3931_v53  ;;  %v3918_v34 = vadd.f32 -1.4531521, %v3910_v22  ;;  %v15414_v10 = vpop.eup %14065  ;;  %14079 = vpow2.f32 %v4004_v46 }
0x191c   : > { %v3956_v16 = vmul.f32 %v15372_v41, %v3948_v59  ;;  %v3949_v28 = vadd.f32 -0.28449672, %v3941_v11  ;;  %v3928_v5 = vmul.f32 %v15391_v62, %v3920_v57  ;;  %v14068_v48 = vpop.eup %14067  ;;  %v3921_v14 = vadd.f32 -1.4531521, %v3913_v2 }
0x191d   : > { %v3954_v19 = vmul.f32 %v15374_v55, %v3946_v54  ;;  %v3947_v33 = vadd.f32 -0.28449672, %v3939_v23  ;;  %v3926_v42 = vmul.f32 %v15396_v43, %v3918_v34  ;;  %v14070_v52 = vpop.eup %14069  ;;  %v4051_v46 = vmul.f32 0.5, %v15335_v50 }
0x191e   : > { %v3964_v15 = vadd.f32 0.2548296, %v3956_v16  ;;  %v3957_v3 = vmul.f32 %v15379_v35, %v3949_v28  ;;  %v3936_v59 = vadd.f32 1.4214138, %v3928_v5  ;;  %v3911_v16 = vmul.f32 1.0614054, %v15414_v10 }
0x191f   : > { %v3962_v51 = vadd.f32 0.2548296, %v3954_v19  ;;  %v3934_v54 = vadd.f32 1.4214138, %v3926_v42  ;;  %v3929_v28 = vmul.f32 %v15404_v61, %v3921_v14 }
0x1920   : > { %v3972_v47 = vmul.f32 %v15372_v41, %v3964_v15  ;;  %v3965_v45 = vadd.f32 0.2548296, %v3957_v3  ;;  %v3955_v41 = vmul.f32 %v15383_v56, %v3947_v33  ;;  %v3944_v19 = vmul.f32 %v15391_v62, %v3936_v59 }
0x1921   : > { %v3970_v17 = vmul.f32 %v15374_v55, %v3962_v51  ;;  %v14072_v55 = vpop.eup %14071  ;;  %v3942_v15 = vmul.f32 %v15396_v43, %v3934_v54  ;;  %v3919_v23 = vadd.f32 -1.4531521, %v3911_v16  ;;  %v3937_v5 = vadd.f32 1.4214138, %v3929_v28 }
0x1922   : > { %v4012_v9 = vmul.f32 %v14064_v36, %v3972_v47  ;;  %v3973_v53 = vmul.f32 %v15379_v35, %v3965_v45  ;;  %v3963_v18 = vadd.f32 0.2548296, %v3955_v41  ;;  %v14074_v22 = vpop.eup %14073  ;;  %v3952_v36 = vadd.f32 -0.28449672, %v3944_v19 }
0x1923   : > { %v4010_v37 = vmul.f32 %v14068_v48, %v3970_v17  ;;  %v14076_v47 = vpop.eup %14075  ;;  %v3950_v33 = vadd.f32 -0.28449672, %v3942_v15  ;;  %v3927_v35 = vmul.f32 %v15414_v10, %v3919_v23  ;;  %v3945_v41 = vmul.f32 %v15404_v61, %v3937_v5 }
0x1924   : > { %v4020_v11 = vsub.f32 1.0, %v4012_v9  ;;  %v4013_v51 = vmul.f32 %v14070_v52, %v3973_v53  ;;  %v3971_v34 = vmul.f32 %v15383_v56, %v3963_v18  ;;  %v3960_v48 = vmul.f32 %v15391_v62, %v3952_v36  ;;  %v14078_v9 = vpop.eup %14077 }
0x1925   : > { %v4018_v6 = vsub.f32 1.0, %v4010_v37  ;;  %v3958_v56 = vmul.f32 %v15396_v43, %v3950_v33  ;;  %v3953_v14 = vadd.f32 -0.28449672, %v3945_v41  ;;  %v3935_v16 = vadd.f32 1.4214138, %v3927_v35 }
0x1926   : > { %v4036_v57 = vsub.f32 0.0, %v4020_v11  ;;  %v4021_v42 = vsub.f32 1.0, %v4013_v51  ;;  %v4011_v2 = vmul.f32 %v14072_v55, %v3971_v34  ;;  %v3968_v54 = vadd.f32 0.2548296, %v3960_v48 }
0x1927   : > { %v4034_v3 = vsub.f32 0.0, %v4018_v6  ;;  %v3966_v0 = vadd.f32 0.2548296, %v3958_v56  ;;  %v3943_v15 = vmul.f32 %v15414_v10, %v3935_v16  ;;  %v4056_v41 = vmul.f32 0.5, %v15347_v49 }
0x1928   : > { %v4044_v17 = vsel %vm4028_vm7, %v4020_v11, %v4036_v57  ;;  %v4037_v52 = vsub.f32 0.0, %v4021_v42  ;;  %v4019_v37 = vsub.f32 1.0, %v4011_v2  ;;  %v3976_v53 = vmul.f32 %v15391_v62, %v3968_v54 }
0x1929   : > { %v4042_v45 = vsel %vm4026_vm8, %v4018_v6, %v4034_v3  ;;  %v4060_v59 = vadd.f32 1.0, %v4044_v17  ;;  %v3974_v19 = vmul.f32 %v15396_v43, %v3966_v0  ;;  %v3961_v6 = vmul.f32 %v15404_v61, %v3953_v14 }
0x192a   : > { %v4058_v55 = vadd.f32 1.0, %v4042_v45  ;;  %v4045_v11 = vsel %vm4029_vm9, %v4021_v42, %v4037_v52  ;;  %v4035_v60 = vsub.f32 0.0, %v4019_v37  ;;  %v4016_v57 = vmul.f32 %v14074_v22, %v3976_v53  ;;  %v14080_v22 = vpop.eup %14079 }
0x192b   : > { %v4061_v18 = vadd.f32 1.0, %v4045_v11  ;;  %v4068_v28 = vmul.f32 %v4060_v59, %v15367_v13  ;;  %v4014_v34 = vmul.f32 %v14076_v47, %v3974_v19  ;;  %v3969_v62 = vadd.f32 0.2548296, %v3961_v6 }
0x192c   : > { %v4043_v23 = vsel %vm4027_vm10, %v4019_v37, %v4035_v60  ;;  %v4024_v36 = vsub.f32 1.0, %v4016_v57  ;;  %v3951_v3 = vadd.f32 -0.28449672, %v3943_v15  ;;  %v4066_v43 = vmul.f32 %v4058_v55, %v15394_v7 }
0x192d   : > { %v4069_v8 = vmul.f32 %v4061_v18, %v15408_v31  ;;  %v4059_v51 = vadd.f32 1.0, %v4043_v23  ;;  %v3977_v35 = vmul.f32 %v15404_v61, %v3969_v62  ;;  %v4022_v17 = vsub.f32 1.0, %v4014_v34 }
0x192e   : > { %v4040_v13 = vsub.f32 0.0, %v4024_v36  ;;  %v3959_v12 = vmul.f32 %v15414_v10, %v3951_v3  ;;  %v4057_v59 = vmul.f32 0.5, %v15351_v44  ;;  %v4055_v49 = vmul.f32 0.5, %v15362_v30  ;;  %v13722_v44 = vld [vmem:[%s17332_s2] sm:$0xff]  }
0x192f   : > { %v4075_v33 = vpack.c.bf16 %v4069_v8, %v4068_v28  ;;  %v4067_v5 = vmul.f32 %v4059_v51, %v4051_v46  ;;  %v4017_v42 = vmul.f32 %v14078_v9, %v3977_v35  ;;  %v4038_v48 = vsub.f32 0.0, %v4022_v17  ;;  %12937 = vmatprep.mubr.msk.bf16.mxu1 %vm1236_vm3, %v13722_v44  ;;  %v13757_v44 = vld [vmem:[%s17332_s2 + $0x118] sm:$0xff]  }
0x1930   : > { %v3967_v31 = vadd.f32 0.2548296, %v3959_v12  ;;  %v4048_v47 = vsel %vm4032_vm11, %v4024_v36, %v4040_v13  ;;  %v4199_v30 = vunpack.c.l.bf16 %v3767_v24  ;;  %v13751_v24 = vld [vmem:[%s17332_s2 + $0xe8] sm:$0xff]   ;;  %vm8630_vm10 = vcmask 1043456  }
0x1931   : > { %v4074_v50 = vpack.c.bf16 %v4067_v5, %v4066_v43  ;;  %v4025_v2 = vsub.f32 1.0, %v4017_v42  ;;  %v4064_v56 = vadd.f32 1.0, %v4048_v47  ;;  %v4046_v4 = vsel %vm4030_vm13, %v4022_v17, %v4038_v48  ;;  %v13727_v47 = vld [vmem:[%s17332_s2 + $0x18] sm:$0xff]   ;;  %v13730_v48 = vld [vmem:[%s17332_s2 + $0x20] sm:$0xff]  }
0x1932   : > { %v3975_v7 = vmul.f32 %v15414_v10, %v3967_v31  ;;  %v4062_v10 = vadd.f32 1.0, %v4046_v4  ;;  %v4203_v6 = vrot.slane %v4199_v30, %v15323_v26  ;;  %v13737_v4 = vld [vmem:[%s17332_s2 + $0x98] sm:$0xff]   ;;  %v13754_v30 = vld [vmem:[%s17332_s2 + $0xf0] sm:$0xff]   ;;  %vm9078_vm11 = vcmask 27648  }
0x1933   : > { %12921 = vmatprep.mubr.bf16.mxu0 %v4074_v50  ;;  %v4041_v45 = vsub.f32 0.0, %v4025_v2  ;;  %v4072_v54 = vmul.f32 %v4064_v56, %v4056_v41  ;;  %v13733_v56 = vld [vmem:[%s17332_s2 + $0x88] sm:$0xff]   ;;  %v13736_v41 = vld [vmem:[%s17332_s2 + $0x90] sm:$0xff]  }
0x1934   : > { %12922 = vmatmul.mubr.bf16.vlgmr.msra.gmra.mrb[92].mxu0 %v4075_v33  ;;  %v4015_v61 = vmul.f32 %v14080_v22, %v3975_v7  ;;  %v4070_v58 = vmul.f32 %v4062_v10, %v4054_v29  ;;  %v13728_v22 = vld [vmem:[%s17332_s2 + $0x50] sm:$0xff]   ;;  %v13732_v7 = vld [vmem:[%s17332_s2 + $0x80] sm:$0xff]   ;;  %v13743_v10 = vld [vmem:[%s17332_s2 + $0x78] sm:$0xff]  }
0x1935   : > { %v4049_v9 = vsel %vm4033_vm12, %v4025_v2, %v4041_v45  ;;  %v13729_v2 = vld [vmem:[%s17332_s2 + $0x58] sm:$0xff]   ;;  %v13731_v45 = vld [vmem:[%s17332_s2 + $0x28] sm:$0xff]   ;;  %v13752_v29 = vld [vmem:[%s17332_s2 + $0x100] sm:$0xff]   ;;  %vm9488_vm12 = vcmask 785408  }
0x1936   : > { %v4065_v52 = vadd.f32 1.0, %v4049_v9  ;;  %v4023_v37 = vsub.f32 1.0, %v4015_v61  ;;  %v13734_v61 = vld [vmem:[%s17332_s2 + $0x30] sm:$0xff]   ;;  %v13735_v9 = vld [vmem:[%s17332_s2 + $0x38] sm:$0xff]  }
0x1938   : > { %v4073_v0 = vmul.f32 %v4065_v52, %v4057_v59  ;;  %v4039_v14 = vsub.f32 0.0, %v4023_v37  ;;  %v13738_v59 = vld [vmem:[%s17332_s2 + $0x60] sm:$0xff]  }
0x1939   : > { %v13740_v52 = vld [vmem:[%s17332_s2 + $0xc0] sm:$0xff]  }
0x193a   : > { %v4047_v16 = vsel %vm4031_vm14, %v4023_v37, %v4039_v14  ;;  %v4077_v55 = vpack.c.bf16 %v4073_v0, %v4072_v54  ;;  %v13739_v37 = vld [vmem:[%s17332_s2 + $0x68] sm:$0xff]   ;;  %v13742_v0 = vld [vmem:[%s17332_s2 + $0x70] sm:$0xff]  }
0x193b   : > { %v4063_v11 = vadd.f32 1.0, %v4047_v16  ;;  %v13741_v54 = vld [vmem:[%s17332_s2 + $0xc8] sm:$0xff]   ;;  %v13748_v14 = vld [vmem:[%s17332_s2 + $0xd0] sm:$0xff]   ;;  %v13749_v16 = vld [vmem:[%s17332_s2 + $0xd8] sm:$0xff]  }
0x193d   : > { %v4071_v60 = vmul.f32 %v4063_v11, %v4055_v49  ;;  %v13745_v49 = vld [vmem:[%s17332_s2 + $0xa8] sm:$0xff]  }
0x193e   : > { %v13753_v11 = vld [vmem:[%s17332_s2 + $0x108] sm:$0xff]  }
0x193f   : > { %v4076_v53 = vpack.c.bf16 %v4071_v60, %v4070_v58  ;;  %v13746_v58 = vld [vmem:[%s17332_s2 + $0xb0] sm:$0xff]  }
0x1940   : > { %v13756_v60 = vld [vmem:[%s17332_s2 + $0x110] sm:$0xff]  }
0x1941   : > { %12925 = vmatprep.mubr.bf16.mxu0 %v4076_v53  ;;  %v13747_v53 = vld [vmem:[%s17332_s2 + $0xb8] sm:$0xff]  }
0x1942   : > { %12926 = vmatmul.mubr.bf16.gmra.mrb[96].mxu0 %v4077_v55  ;;  %v13744_v55 = vld [vmem:[%s17332_s2 + $0xa0] sm:$0xff]  }
0x1943   : > { %12969 = vmatprep.mubr.msk.bf16.mxu0 %vm1236_vm3, %v13724_v40  ;;  %v13750_v40 = vld [vmem:[%s17332_s2 + $0xe0] sm:$0xff]  }
0x1a07   : > { %v12923_v18 = vpop.f32.mrb[92].mxu0 }
0x1a08   : > { %v4160_v19 = vpop.f32.mrb[93].mxu0  ;;  %v4193_v57 = vadd.f32 %v12923_v18, %v15190_v25  ;;  %v13755_v18 = vld [vmem:[%s17332_s2 + $0xf8] sm:$0xff]  }
0x1a09   : > { %v4191_v15 = vadd.f32 %v4160_v19, %v15186_v21  ;;  %v12924_v28 = vpop.f32.mrb[94].mxu0 }
0x1a0a   : > { %v4194_v23 = vadd.f32 %v12924_v28, %v15196_v20  ;;  %v4163_v46 = vpop.f32.mrb[95].mxu0  ;;  %v15481_v36 = vadd.f32 %v4203_v6, %v4193_v57 }
0x1a0b   : > { %v4192_v8 = vadd.f32 %v4163_v46, %v15192_v27  ;;  %v15475_v51 = vadd.f32 %v4203_v6, %v4191_v15 }
0x1a0c   : > { %v15477_v34 = vadd.f32 %v4203_v6, %v4194_v23 }
0x1a0d   : > { %v15479_v62 = vadd.f32 %v4203_v6, %v4192_v8 }
0x1a0e   : > { %v15489_v21 = vpack.c.bf16 %v15477_v34, %v15481_v36 }
0x1a0f   : > { %v15485_v3 = vpack.c.bf16 %v15479_v62, %v15475_v51 }
0x1a11   : > { %12929 = vmatprep.subr.bf16.mxu1 %v15485_v3  ;;  %12961 = vmatprep.subr.bf16.mxu0 %v15485_v3 }
0x1a12   : > { %12930 = vmatpush3.bf16.msra.mxu1 %v15485_v3  ;;  %12962 = vmatpush3.bf16.msra.mxu0 %v15485_v3 }
0x1a13   : > { %12931 = vmatprep.subr.bf16.mxu1 %v15489_v21  ;;  %12963 = vmatprep.subr.bf16.mxu0 %v15489_v21 }
0x1a15   : > { %v12927_v25 = vpop.f32.mrb[96].mxu0 }
0x1a16   : > { %12932 = vmatpush3.bf16.msra.mxu1 %v15489_v21  ;;  %12964 = vmatpush3.bf16.msra.mxu0 %v15489_v21  ;;  %v4176_v27 = vpop.f32.mrb[97].mxu0  ;;  %v4197_v35 = vadd.f32 %v12927_v25, %v15210_v38  ;;  %v13723_v38 = vld [vmem:[%s17332_s2 + $0x8] sm:$0xff]  }
0x1a17   : > { %v4195_v20 = vadd.f32 %v4176_v27, %v15204_v32  ;;  %v12928_v43 = vpop.f32.mrb[98].mxu0 }
0x1a18   : > { %v4198_v33 = vadd.f32 %v12928_v43, %v15216_v39  ;;  %v4179_v5 = vpop.f32.mrb[99].mxu0  ;;  %v15509_v50 = vadd.f32 %v4203_v6, %v4197_v35  ;;  %v13726_v39 = vld [vmem:[%s17332_s2 + $0x10] sm:$0xff]   ;;  %v11312_v35 = vld [vmem:[%s17324_s5 + $0xc] ss:$0 sm:$0xff] }
0x1a19   : > { %v4196_v13 = vadd.f32 %v4179_v5, %v15212_v1  ;;  %v15503_v17 = vadd.f32 %v4203_v6, %v4195_v20  ;;  %v13725_v1 = vld [vmem:[%s17332_s2 + $0x48] sm:$0xff]   ;;  %s17337_s2 = sld [smem:[#allocation25_spill]] }
0x1a1a   : > { %v15505_v12 = vadd.f32 %v4203_v6, %v4198_v33 }
0x1a1b   : > { %v15507_v42 = vadd.f32 %v4203_v6, %v4196_v13  ;;  %v11330_v13 = vld [vmem:[%s17324_s5 + $0xd] ss:$0 sm:$0xff] }
0x1a1c   : > { %v15517_v32 = vpack.c.bf16 %v15505_v12, %v15509_v50 }
0x1a1d   : > { %v15513_v31 = vpack.c.bf16 %v15507_v42, %v15503_v17 }
0x1a1f   : > { %12933 = vmatprep.subr.bf16.mxu1 %v15513_v31  ;;  %12965 = vmatprep.subr.bf16.mxu0 %v15513_v31 }
0x1a20   : > { %12934 = vmatpush3.bf16.msra.mxu1 %v15513_v31  ;;  %12966 = vmatpush3.bf16.msra.mxu0 %v15513_v31 }
0x1a21   : > { %12935 = vmatprep.subr.bf16.mxu1 %v15517_v32  ;;  %12967 = vmatprep.subr.bf16.mxu0 %v15517_v32 }
0x1a24   : > { %12936 = vmatpush3.bf16.msra.mxu1 %v15517_v32  ;;  %12968 = vmatpush3.bf16.msra.mxu0 %v15517_v32 }
0x1a25   : > { %12945 = vmatprep.subr.bf16.mxu1 %v15485_v3  ;;  %12993 = vmatprep.subr.bf16.mxu0 %v15485_v3 }
0x1a27   : > { %12938 = vmatmul.mubr.msk.bf16.vlgmr.msra.gmra.mrb[92].mxu1 %vm1236_vm3, %v13723_v38  ;;  %12970 = vmatmul.mubr.msk.bf16.vlgmr.msra.gmra.mrb[100].mxu0 %vm1236_vm3, %v13725_v1 }
0x1a28   : > { %12946 = vmatpush3.bf16.msra.mxu1 %v15485_v3  ;;  %12994 = vmatpush3.bf16.msra.mxu0 %v15485_v3 }
0x1a29   : > { %12947 = vmatprep.subr.bf16.mxu1 %v15489_v21  ;;  %12995 = vmatprep.subr.bf16.mxu0 %v15489_v21 }
0x1a2a   : > { %12941 = vmatprep.mubr.msk.bf16.mxu1 %vm1236_vm3, %v13726_v39  ;;  %12973 = vmatprep.mubr.msk.bf16.mxu0 %vm1236_vm3, %v13728_v22 }
0x1a2c   : > { %12948 = vmatpush3.bf16.msra.mxu1 %v15489_v21  ;;  %12996 = vmatpush3.bf16.msra.mxu0 %v15489_v21 }
0x1a2d   : > { %12949 = vmatprep.subr.bf16.mxu1 %v15513_v31  ;;  %12997 = vmatprep.subr.bf16.mxu0 %v15513_v31 }
0x1a2f   : > { %12942 = vmatmul.mubr.msk.bf16.gmra.mrb[96].mxu1 %vm1236_vm3, %v13727_v47  ;;  %12974 = vmatmul.mubr.msk.bf16.gmra.mrb[104].mxu0 %vm1236_vm3, %v13729_v2 }
0x1a30   : > { %12950 = vmatpush3.bf16.msra.mxu1 %v15513_v31  ;;  %12998 = vmatpush3.bf16.msra.mxu0 %v15513_v31 }
0x1a31   : > { %12951 = vmatprep.subr.bf16.mxu1 %v15517_v32  ;;  %12999 = vmatprep.subr.bf16.mxu0 %v15517_v32 }
0x1a32   : > { %12953 = vmatprep.mubr.msk.bf16.mxu1 %vm1236_vm3, %v13730_v48  ;;  %13001 = vmatprep.mubr.msk.bf16.mxu0 %vm1236_vm3, %v13732_v7 }
0x1a34   : > { %12952 = vmatpush3.bf16.msra.mxu1 %v15517_v32  ;;  %13000 = vmatpush3.bf16.msra.mxu0 %v15517_v32 }
0x1a35   : > { %12977 = vmatprep.subr.bf16.mxu1 %v15485_v3  ;;  %13025 = vmatprep.subr.bf16.mxu0 %v15485_v3 }
0x1a37   : > { %12954 = vmatmul.mubr.msk.bf16.vlgmr.msra.gmra.mrb[100].mxu1 %vm1236_vm3, %v13731_v45  ;;  %13002 = vmatmul.mubr.msk.bf16.vlgmr.msra.gmra.mrb[108].mxu0 %vm1236_vm3, %v13733_v56 }
0x1a38   : > { %12978 = vmatpush3.bf16.msra.mxu1 %v15485_v3  ;;  %13026 = vmatpush3.bf16.msra.mxu0 %v15485_v3 }
0x1a39   : > { %12979 = vmatprep.subr.bf16.mxu1 %v15489_v21  ;;  %13027 = vmatprep.subr.bf16.mxu0 %v15489_v21 }
0x1a3a   : > { %12957 = vmatprep.mubr.msk.bf16.mxu1 %vm1236_vm3, %v13734_v61  ;;  %13005 = vmatprep.mubr.msk.bf16.mxu0 %vm1236_vm3, %v13736_v41 }
0x1a3c   : > { %12980 = vmatpush3.bf16.msra.mxu1 %v15489_v21  ;;  %13028 = vmatpush3.bf16.msra.mxu0 %v15489_v21 }
0x1a3d   : > { %12981 = vmatprep.subr.bf16.mxu1 %v15513_v31  ;;  %13029 = vmatprep.subr.bf16.mxu0 %v15513_v31 }
0x1a3f   : > { %12958 = vmatmul.mubr.msk.bf16.gmra.mrb[104].mxu1 %vm1236_vm3, %v13735_v9  ;;  %13006 = vmatmul.mubr.msk.bf16.gmra.mrb[112].mxu0 %vm1236_vm3, %v13737_v4 }
0x1a40   : > { %12982 = vmatpush3.bf16.msra.mxu1 %v15513_v31  ;;  %13030 = vmatpush3.bf16.msra.mxu0 %v15513_v31 }
0x1a41   : > { %12983 = vmatprep.subr.bf16.mxu1 %v15517_v32  ;;  %13031 = vmatprep.subr.bf16.mxu0 %v15517_v32 }
0x1a42   : > { %12985 = vmatprep.mubr.msk.bf16.mxu1 %vm1236_vm3, %v13738_v59  ;;  %13033 = vmatprep.mubr.msk.bf16.mxu0 %vm1236_vm3, %v13740_v52 }
0x1a44   : > { %12984 = vmatpush3.bf16.msra.mxu1 %v15517_v32  ;;  %13032 = vmatpush3.bf16.msra.mxu0 %v15517_v32 }
0x1a45   : > { %13009 = vmatprep.subr.bf16.mxu1 %v15485_v3  ;;  %13057 = vmatprep.subr.bf16.mxu0 %v15485_v3 }
0x1a47   : > { %12986 = vmatmul.mubr.msk.bf16.vlgmr.msra.gmra.mrb[108].mxu1 %vm1236_vm3, %v13739_v37  ;;  %13034 = vmatmul.mubr.msk.bf16.vlgmr.msra.gmra.mrb[116].mxu0 %vm1236_vm3, %v13741_v54 }
0x1a48   : > { %13010 = vmatpush3.bf16.msra.mxu1 %v15485_v3  ;;  %13058 = vmatpush3.bf16.msra.mxu0 %v15485_v3 }
0x1a49   : > { %13011 = vmatprep.subr.bf16.mxu1 %v15489_v21  ;;  %13059 = vmatprep.subr.bf16.mxu0 %v15489_v21 }
0x1a4a   : > { %12989 = vmatprep.mubr.msk.bf16.mxu1 %vm1236_vm3, %v13742_v0  ;;  %13037 = vmatprep.mubr.msk.bf16.mxu0 %vm1236_vm3, %v13748_v14 }
0x1a4c   : > { %13012 = vmatpush3.bf16.msra.mxu1 %v15489_v21  ;;  %13060 = vmatpush3.bf16.msra.mxu0 %v15489_v21 }
0x1a4d   : > { %13013 = vmatprep.subr.bf16.mxu1 %v15513_v31  ;;  %13061 = vmatprep.subr.bf16.mxu0 %v15513_v31 }
0x1a4f   : > { %12990 = vmatmul.mubr.msk.bf16.gmra.mrb[112].mxu1 %vm1236_vm3, %v13743_v10  ;;  %13038 = vmatmul.mubr.msk.bf16.gmra.mrb[120].mxu0 %vm1236_vm3, %v13749_v16 }
0x1a50   : > { %13014 = vmatpush3.bf16.msra.mxu1 %v15513_v31  ;;  %13062 = vmatpush3.bf16.msra.mxu0 %v15513_v31 }
0x1a51   : > { %13015 = vmatprep.subr.bf16.mxu1 %v15517_v32  ;;  %13063 = vmatprep.subr.bf16.mxu0 %v15517_v32 }
0x1a52   : > { %13017 = vmatprep.mubr.msk.bf16.mxu1 %vm1236_vm3, %v13744_v55  ;;  %13065 = vmatprep.mubr.msk.bf16.mxu0 %vm1236_vm3, %v13752_v29 }
0x1a54   : > { %13016 = vmatpush3.bf16.msra.mxu1 %v15517_v32  ;;  %13064 = vmatpush3.bf16.msra.mxu0 %v15517_v32 }
0x1a55   : > { %13041 = vmatprep.subr.bf16.mxu1 %v15485_v3  ;;  %13085 = vmatprep.subr.bf16.mxu0 %v14289_v63 }
0x1a57   : > { %13018 = vmatmul.mubr.msk.bf16.vlgmr.msra.gmra.mrb[116].mxu1 %vm1236_vm3, %v13745_v49  ;;  %13066 = vmatmul.mubr.msk.bf16.vlgmr.msra.gmra.mrb[124].mxu0 %vm1236_vm3, %v13753_v11 }
0x1a58   : > { %13042 = vmatpush3.bf16.msra.mxu1 %v15485_v3  ;;  %13021 = vmatprep.mubr.msk.bf16.mxu1 %vm1236_vm3, %v13746_v58 }
0x1a59   : > { %13043 = vmatprep.subr.bf16.mxu1 %v15489_v21  ;;  %13069 = vmatprep.mubr.msk.bf16.mxu0 %vm1236_vm3, %v13756_v60 }
0x1a5c   : > { %13044 = vmatpush3.bf16.msra.mxu1 %v15489_v21 }
0x1a5d   : > { %13045 = vmatprep.subr.bf16.mxu1 %v15513_v31 }
0x1a5f   : > { %13022 = vmatmul.mubr.msk.bf16.gmra.mrb[120].mxu1 %vm1236_vm3, %v13747_v53  ;;  %13070 = vmatmul.mubr.msk.bf16.gmra.mrb[128].mxu0 %vm1236_vm3, %v13757_v44 }
0x1a60   : > { %13046 = vmatpush3.bf16.msra.mxu1 %v15513_v31  ;;  %13049 = vmatprep.mubr.msk.bf16.mxu1 %vm1236_vm3, %v13750_v40  ;;  %v11348_v31 = vld [vmem:[%s17324_s5 + $0xe] ss:$0 sm:$0xff] }
0x1a61   : > { %13047 = vmatprep.subr.bf16.mxu1 %v15517_v32  ;;  %13093 = vmatprep.mubr.msk.bf16.mxu0 %vm14290_vm2, %v14289_v63 }
0x1a64   : > { %13048 = vmatpush3.bf16.msra.mxu1 %v15517_v32 }
0x1a65   : > { %13073 = vmatprep.subr.bf16.mxu1 %v14289_v63 }
0x1a67   : > { %13050 = vmatmul.mubr.msk.bf16.vlgmr.msra.gmra.mrb[124].mxu1 %vm1236_vm3, %v13751_v24 }
0x1a68   : > { %13053 = vmatprep.mubr.msk.bf16.mxu1 %vm1236_vm3, %v13754_v30 }
0x1a6f   : > { %13054 = vmatmul.mubr.msk.bf16.gmra.mrb[128].mxu1 %vm1236_vm3, %v13755_v18 }
0x1a70   : > { %13081 = vmatprep.mubr.msk.bf16.mxu1 %vm14290_vm2, %v14289_v63 }
0x1afa   : > { %v12939_v19 = vpop.f32.mrb[92].mxu1  ;;  %v12971_v6 = vpop.f32.mrb[100].mxu0 }
0x1afb   : > { %v4290_v15 = vpop.f32.mrb[93].mxu1  ;;  %v4542_v28 = vpop.f32.mrb[101].mxu0  ;;  %v4331_v1 = vmul.f32 %v12939_v19, %v11312_v35  ;;  %v4583_v47 = vmul.f32 %v12971_v6, %v11348_v31 }
0x1afc   : > { %v12940_v23 = vpop.f32.mrb[94].mxu1  ;;  %v12972_v46 = vpop.f32.mrb[102].mxu0  ;;  %v4329_v48 = vmul.f32 %v11312_v35, %v4290_v15  ;;  %v4581_v56 = vmul.f32 %v11348_v31, %v4542_v28 }
0x1afd   : > { %v4293_v57 = vpop.f32.mrb[95].mxu1  ;;  %v4545_v8 = vpop.f32.mrb[103].mxu0  ;;  %v4332_v41 = vmul.f32 %v12940_v23, %v11312_v35  ;;  %v4584_v16 = vmul.f32 %v12972_v46, %v11348_v31 }
0x1afe   : > { %v4330_v37 = vmul.f32 %v11312_v35, %v4293_v57  ;;  %v4582_v49 = vmul.f32 %v11348_v31, %v4545_v8 }
0x1b02   : > { %v12943_v3 = vpop.f32.mrb[96].mxu1  ;;  %v12975_v21 = vpop.f32.mrb[104].mxu0 }
0x1b03   : > { %v4306_v25 = vpop.f32.mrb[97].mxu1  ;;  %v4558_v27 = vpop.f32.mrb[105].mxu0  ;;  %v4335_v44 = vmul.f32 %v12943_v3, %v11312_v35  ;;  %v4587_v30 = vmul.f32 %v12975_v21, %v11348_v31 }
0x1b04   : > { %v12944_v20 = vpop.f32.mrb[98].mxu1  ;;  %v12976_v43 = vpop.f32.mrb[106].mxu0  ;;  %v4333_v19 = vmul.f32 %v11312_v35, %v4306_v25  ;;  %v4585_v28 = vmul.f32 %v11348_v31, %v4558_v27  ;;  %v11366_v25 = vld [vmem:[%s17324_s5 + $0xf] ss:$0 sm:$0xff]  ;;  %v11384_v27 = vld [vmem:[%s17324_s5 + $0x10] ss:$0 sm:$0xff] }
0x1b05   : > { %v4309_v33 = vpop.f32.mrb[99].mxu1  ;;  %v4561_v5 = vpop.f32.mrb[107].mxu0  ;;  %v4336_v57 = vmul.f32 %v12944_v20, %v11312_v35  ;;  %v4588_v3 = vmul.f32 %v12976_v43, %v11348_v31 }
0x1b06   : > { %v4334_v8 = vmul.f32 %v11312_v35, %v4309_v33  ;;  %v4586_v21 = vmul.f32 %v11348_v31, %v4561_v5 }
0x1b0a   : > { %v12955_v32 = vpop.f32.mrb[100].mxu1  ;;  %v13003_v38 = vpop.f32.mrb[108].mxu0 }
0x1b0b   : > { %v4453_v39 = vmul.f32 %v12955_v32, %v11330_v13  ;;  %v4412_v22 = vpop.f32.mrb[101].mxu1  ;;  %v4802_v2 = vpop.f32.mrb[109].mxu0 }
0x1b0c   : > { %v4451_v7 = vmul.f32 %v11330_v13, %v4412_v22  ;;  %v12956_v45 = vpop.f32.mrb[102].mxu1  ;;  %v15734_v61 = vpop.f32.mrb[110].mxu0 }
0x1b0d   : > { %v4461_v9 = vadd.f32 %v4453_v39, %v4331_v1  ;;  %v4454_v4 = vmul.f32 %v12956_v45, %v11330_v13  ;;  %v4415_v59 = vpop.f32.mrb[103].mxu1  ;;  %v15736_v52 = vpop.f32.mrb[111].mxu0 }
0x1b0e   : > { %v4459_v54 = vadd.f32 %v4451_v7, %v4329_v48  ;;  %v4452_v0 = vmul.f32 %v11330_v13, %v4415_v59 }
0x1b0f   : > { %v4462_v14 = vadd.f32 %v4454_v4, %v4332_v41  ;;  %v4591_v10 = vadd.f32 %v4583_v47, %v4461_v9  ;;  %v4843_v4 = vmul.f32 %v13003_v38, %v11384_v27 }
0x1b10   : > { %v4460_v55 = vadd.f32 %v4452_v0, %v4330_v37  ;;  %v4589_v29 = vadd.f32 %v4581_v56, %v4459_v54  ;;  %v4841_v54 = vmul.f32 %v11384_v27, %v4802_v2 }
0x1b11   : > { %v4592_v11 = vadd.f32 %v4584_v16, %v4462_v14 }
0x1b12   : > { %v4590_v58 = vadd.f32 %v4582_v49, %v4460_v55  ;;  %v12959_v60 = vpop.f32.mrb[104].mxu1  ;;  %v13007_v53 = vpop.f32.mrb[112].mxu0 }
0x1b13   : > { %v4457_v40 = vmul.f32 %v12959_v60, %v11330_v13  ;;  %v4428_v24 = vpop.f32.mrb[105].mxu1  ;;  %v4818_v18 = vpop.f32.mrb[113].mxu0 }
0x1b14   : > { %v4455_v6 = vmul.f32 %v11330_v13, %v4428_v24  ;;  %v12960_v15 = vpop.f32.mrb[106].mxu1  ;;  %v13008_v23 = vpop.f32.mrb[114].mxu0 }
0x1b15   : > { %v4465_v32 = vadd.f32 %v4457_v40, %v4335_v44  ;;  %v4458_v46 = vmul.f32 %v12960_v15, %v11330_v13  ;;  %v4431_v1 = vpop.f32.mrb[107].mxu1  ;;  %v4821_v39 = vpop.f32.mrb[115].mxu0  ;;  %v4844_v40 = vmul.f32 %v15734_v61, %v11384_v27 }
0x1b16   : > { %v4463_v22 = vadd.f32 %v4455_v6, %v4333_v19  ;;  %v4456_v47 = vmul.f32 %v11330_v13, %v4431_v1  ;;  %v4842_v19 = vmul.f32 %v11384_v27, %v15736_v52 }
0x1b17   : > { %v4466_v48 = vadd.f32 %v4458_v46, %v4336_v57  ;;  %v4595_v7 = vadd.f32 %v4587_v30, %v4465_v32 }
0x1b18   : > { %v4464_v45 = vadd.f32 %v4456_v47, %v4334_v8  ;;  %v4593_v56 = vadd.f32 %v4585_v28, %v4463_v22 }
0x1b19   : > { %v4596_v20 = vadd.f32 %v4588_v3, %v4466_v48 }
0x1b1a   : > { %v4594_v41 = vadd.f32 %v4586_v21, %v4464_v45  ;;  %v12987_v9 = vpop.f32.mrb[108].mxu1  ;;  %v13035_v33 = vpop.f32.mrb[116].mxu0  ;;  %v4848_v45 = vmul.f32 %v13008_v23, %v11384_v27 }
0x1b1b   : > { %v4713_v35 = vmul.f32 %v12987_v9, %v11366_v25  ;;  %v4672_v13 = vpop.f32.mrb[109].mxu1  ;;  %v5062_v59 = vpop.f32.mrb[117].mxu0 }
0x1b1c   : > { %v4711_v43 = vmul.f32 %v11366_v25, %v4672_v13  ;;  %v12988_v37 = vpop.f32.mrb[110].mxu1  ;;  %v13036_v5 = vpop.f32.mrb[118].mxu0 }
0x1b1d   : > { %v4721_v31 = vadd.f32 %v4713_v35, %v4591_v10  ;;  %v4714_v0 = vmul.f32 %v12988_v37, %v11366_v25  ;;  %v4675_v14 = vpop.f32.mrb[111].mxu1  ;;  %v5065_v16 = vpop.f32.mrb[119].mxu0  ;;  %v4847_v10 = vmul.f32 %v13007_v53, %v11384_v27  ;;  %v4846_v35 = vmul.f32 %v11384_v27, %v4821_v39  ;;  %v11402_v53 = vld [vmem:[%s17324_s5 + $0x11] ss:$0 sm:$0xff] }
0x1b1e   : > { %v4719_v55 = vadd.f32 %v4711_v43, %v4589_v29  ;;  %v4712_v49 = vmul.f32 %v11366_v25, %v4675_v14  ;;  %v4845_v29 = vmul.f32 %v11384_v27, %v4818_v18  ;;  %v11420_v18 = vld [vmem:[%s17324_s5 + $0x12] ss:$0 sm:$0xff] }
0x1b1f   : > { %v4722_v60 = vadd.f32 %v4714_v0, %v4592_v11  ;;  %v4851_v44 = vadd.f32 %v4843_v4, %v4721_v31 }
0x1b20   : > { %v4720_v24 = vadd.f32 %v4712_v49, %v4590_v58  ;;  %v4849_v30 = vadd.f32 %v4841_v54, %v4719_v55  ;;  %v5101_v54 = vmul.f32 %v11420_v18, %v5062_v59 }
0x1b21   : > { %v4852_v38 = vadd.f32 %v4844_v40, %v4722_v60 }
0x1b22   : > { %v4850_v6 = vadd.f32 %v4842_v19, %v4720_v24  ;;  %v12991_v15 = vpop.f32.mrb[112].mxu1  ;;  %v13039_v28 = vpop.f32.mrb[120].mxu0  ;;  %v5104_v24 = vmul.f32 %v13036_v5, %v11420_v18 }
0x1b23   : > { %v4717_v2 = vmul.f32 %v12991_v15, %v11366_v25  ;;  %v4688_v57 = vpop.f32.mrb[113].mxu1  ;;  %v5078_v32 = vpop.f32.mrb[121].mxu0  ;;  %v5107_v59 = vmul.f32 %v13039_v28, %v11420_v18 }
0x1b24   : > { %v4715_v46 = vmul.f32 %v11366_v25, %v4688_v57  ;;  %v12992_v1 = vpop.f32.mrb[114].mxu1  ;;  %v13040_v8 = vpop.f32.mrb[122].mxu0 }
0x1b25   : > { %v4725_v11 = vadd.f32 %v4717_v2, %v4595_v7  ;;  %v4718_v22 = vmul.f32 %v12992_v1, %v11366_v25  ;;  %v4691_v47 = vpop.f32.mrb[115].mxu1  ;;  %v5081_v61 = vpop.f32.mrb[123].mxu0  ;;  %v5102_v2 = vmul.f32 %v11420_v18, %v5065_v16 }
0x1b26   : > { %v4723_v58 = vadd.f32 %v4715_v46, %v4593_v56  ;;  %v4716_v48 = vmul.f32 %v11366_v25, %v4691_v47  ;;  %v5105_v47 = vmul.f32 %v11420_v18, %v5078_v32  ;;  %v5106_v28 = vmul.f32 %v11420_v18, %v5081_v61  ;;  %v11438_v32 = vld [vmem:[%s17324_s5 + $0x13] ss:$0 sm:$0xff] }
0x1b27   : > { %v4726_v3 = vadd.f32 %v4718_v22, %v4596_v20  ;;  %v4855_v52 = vadd.f32 %v4847_v10, %v4725_v11  ;;  %v5103_v20 = vmul.f32 %v13035_v33, %v11420_v18 }
0x1b28   : > { %v4724_v21 = vadd.f32 %v4716_v48, %v4594_v41  ;;  %v4853_v9 = vadd.f32 %v4845_v29, %v4723_v58 }
0x1b29   : > { %v4856_v7 = vadd.f32 %v4848_v45, %v4726_v3 }
0x1b2a   : > { %v4854_v13 = vadd.f32 %v4846_v35, %v4724_v21  ;;  %v13019_v4 = vpop.f32.mrb[116].mxu1  ;;  %v13067_v43 = vpop.f32.mrb[124].mxu0  ;;  %v5108_v21 = vmul.f32 %v13040_v8, %v11420_v18 }
0x1b2b   : > { %v4973_v56 = vmul.f32 %v13019_v4, %v11402_v53  ;;  %v4932_v25 = vpop.f32.mrb[117].mxu1  ;;  %v5322_v37 = vpop.f32.mrb[125].mxu0 }
0x1b2c   : > { %v4971_v23 = vmul.f32 %v11402_v53, %v4932_v25  ;;  %v13020_v41 = vpop.f32.mrb[118].mxu1  ;;  %v13068_v39 = vpop.f32.mrb[126].mxu0 }
0x1b2d   : > { %v4981_v27 = vadd.f32 %v4973_v56, %v4851_v44  ;;  %v4974_v31 = vmul.f32 %v13020_v41, %v11402_v53  ;;  %v4935_v0 = vpop.f32.mrb[119].mxu1  ;;  %v5325_v14 = vpop.f32.mrb[127].mxu0 }
0x1b2e   : > { %v4979_v55 = vadd.f32 %v4971_v23, %v4849_v30  ;;  %v4972_v49 = vmul.f32 %v11402_v53, %v4935_v0 }
0x1b2f   : > { %v4982_v60 = vadd.f32 %v4974_v31, %v4852_v38  ;;  %v5111_v40 = vadd.f32 %v5103_v20, %v4981_v27  ;;  %v11458_v27 = vld [vmem:[%s17324_s5 + $0xb] ss:$0 sm:$0xff] }
0x1b30   : > { %v4980_v19 = vadd.f32 %v4972_v49, %v4850_v6  ;;  %v5109_v15 = vadd.f32 %v5101_v54, %v4979_v55 }
0x1b31   : > { %v5112_v57 = vadd.f32 %v5104_v24, %v4982_v60 }
0x1b32   : > { %v5110_v10 = vadd.f32 %v5102_v2, %v4980_v19  ;;  %v13023_v33 = vpop.f32.mrb[120].mxu1  ;;  %v13071_v46 = vpop.f32.mrb[128].mxu0 }
0x1b33   : > { %v4977_v1 = vmul.f32 %v13023_v33, %v11402_v53  ;;  %v4948_v29 = vpop.f32.mrb[121].mxu1  ;;  %v5338_v11 = vpop.f32.mrb[129].mxu0 }
0x1b34   : > { %v4975_v44 = vmul.f32 %v11402_v53, %v4948_v29  ;;  %v13024_v22 = vpop.f32.mrb[122].mxu1  ;;  %v15752_v58 = vpop.f32.mrb[130].mxu0 }
0x1b35   : > { %v4985_v30 = vadd.f32 %v4977_v1, %v4855_v52  ;;  %v4978_v38 = vmul.f32 %v13024_v22, %v11402_v53  ;;  %v4951_v5 = vpop.f32.mrb[123].mxu1  ;;  %v15754_v6 = vpop.f32.mrb[131].mxu0  ;;  %v11456_v52 = vld [vmem:[%s17324_s5 + $0x14] ss:$0 sm:$0xff]  ;;  %s17334_s5 = sld [smem:[#allocation24_spill]] }
0x1b36   : > { %v4983_v16 = vadd.f32 %v4975_v44, %v4853_v9  ;;  %v4976_v48 = vmul.f32 %v11402_v53, %v4951_v5  ;;  %v5363_v8 = vmul.f32 %v13067_v43, %v11456_v52  ;;  %v5361_v61 = vmul.f32 %v11456_v52, %v5322_v37 }
0x1b37   : > { %v4986_v3 = vadd.f32 %v4978_v38, %v4856_v7  ;;  %v5115_v45 = vadd.f32 %v5107_v59, %v4985_v30  ;;  %v5364_v49 = vmul.f32 %v13068_v39, %v11456_v52  ;;  %v5362_v19 = vmul.f32 %v11456_v52, %v5325_v14 }
0x1b38   : > { %v4984_v35 = vadd.f32 %v4976_v48, %v4854_v13  ;;  %v5113_v4 = vadd.f32 %v5105_v47, %v4983_v16  ;;  %v5367_v39 = vmul.f32 %v13071_v46, %v11456_v52  ;;  %v5365_v59 = vmul.f32 %v11456_v52, %v5338_v11 }
0x1b39   : > { %v5116_v56 = vadd.f32 %v5108_v21, %v4986_v3 }
0x1b3a   : > { %v5114_v25 = vadd.f32 %v5106_v28, %v4984_v35  ;;  %v13051_v20 = vpop.f32.mrb[124].mxu1  ;;  %v5366_v35 = vmul.f32 %v11456_v52, %v15754_v6 }
0x1b3b   : > { %v5233_v9 = vmul.f32 %v13051_v20, %v11438_v32  ;;  %v5192_v53 = vpop.f32.mrb[125].mxu1 }
0x1b3c   : > { %v5231_v7 = vmul.f32 %v11438_v32, %v5192_v53  ;;  %v13052_v13 = vpop.f32.mrb[126].mxu1  ;;  %v13760_v53 = vld [vmem:[%s17333_s3 + $0x10] sm:$0xff]  }
0x1b3d   : > { %v5241_v18 = vadd.f32 %v5233_v9, %v5111_v40  ;;  %v5234_v23 = vmul.f32 %v13052_v13, %v11438_v32  ;;  %v5195_v41 = vpop.f32.mrb[127].mxu1 }
0x1b3e   : > { %v5239_v54 = vadd.f32 %v5231_v7, %v5109_v15  ;;  %v5232_v31 = vmul.f32 %v11438_v32, %v5195_v41  ;;  %v13763_v41 = vld [vmem:[%s17334_s5] sm:$0xff]  }
0x1b3f   : > { %v5242_v0 = vadd.f32 %v5234_v23, %v5112_v57  ;;  %v5371_v55 = vadd.f32 %v5363_v8, %v5241_v18  ;;  %v13762_v8 = vld [vmem:[%s17334_s5 + $0x18] sm:$0xff]  }
0x1b40   : > { %v5240_v60 = vadd.f32 %v5232_v31, %v5110_v10  ;;  %v5369_v24 = vadd.f32 %v5361_v61, %v5239_v54 }
0x1b41   : > { %v5387_v43 = vadd.f32 %v11458_v27, %v5371_v55  ;;  %v5372_v2 = vadd.f32 %v5364_v49, %v5242_v0  ;;  %v13764_v49 = vld [vmem:[%s17334_s5 + $0x8] sm:$0xff]  }
0x1b42   : > { %v5385_v33 = vadd.f32 %v11458_v27, %v5369_v24  ;;  %v5370_v37 = vadd.f32 %v5362_v19, %v5240_v60  ;;  %v13055_v40 = vpop.f32.mrb[128].mxu1  ;;  %v13765_v60 = vld [vmem:[%s17334_s5 + $0x20] sm:$0xff]   ;;  %v13766_v24 = vld [vmem:[%s17334_s5 + $0x28] sm:$0xff]  }
0x1b43   : > { %5395 = vst.msk [vmem:[%s15769_s0 + $0x10] sm:$0xff] %vm961_vm1, %v5387_v43  ;;  %v5388_v15 = vadd.f32 %v11458_v27, %v5372_v2  ;;  %v5237_v57 = vmul.f32 %v13055_v40, %v11438_v32  ;;  %v5208_v1 = vpop.f32.mrb[129].mxu1  ;;  %v5403_v44 = vadd.f32 %v5387_v43, %v15481_v36  ;;  %v5368_v36 = vmul.f32 %v15752_v58, %v11456_v52  ;;  %v13767_v40 = vld [vmem:[%s17333_s3 + $0x18] sm:$0xff]  }
0x1b44   : > { %5393 = vst.msk [vmem:[%s15769_s0] sm:$0xff] %vm961_vm1, %v5385_v33  ;;  %v5386_v14 = vadd.f32 %v11458_v27, %v5370_v37  ;;  %v5235_v10 = vmul.f32 %v11438_v32, %v5208_v1  ;;  %v13056_v29 = vpop.f32.mrb[130].mxu1  ;;  %v5401_v5 = vadd.f32 %v5385_v33, %v15475_v51 }
0x1b45   : > { %5396 = vst.msk [vmem:[%s15769_s0 + $0x18] sm:$0xff] %vm961_vm1, %v5388_v15  ;;  %v5404_v22 = vadd.f32 %v5388_v15, %v15477_v34  ;;  %v5245_v47 = vadd.f32 %v5237_v57, %v5115_v45  ;;  %v5238_v30 = vmul.f32 %v13056_v29, %v11438_v32  ;;  %v5211_v38 = vpop.f32.mrb[131].mxu1  ;;  %v13768_v15 = vld [vmem:[%s17334_s5 + $0x30] sm:$0xff]   ;;  %v13769_v57 = vld [vmem:[%s17334_s5 + $0x38] sm:$0xff]  }
0x1b46   : > { %5394 = vst.msk [vmem:[%s15769_s0 + $0x8] sm:$0xff] %vm961_vm1, %v5386_v14  ;;  %v5402_v46 = vadd.f32 %v5386_v14, %v15479_v62  ;;  %v5243_v16 = vadd.f32 %v5235_v10, %v5113_v4  ;;  %v5236_v48 = vmul.f32 %v11438_v32, %v5211_v38 }
0x1b47   : > { %v5246_v3 = vadd.f32 %v5238_v30, %v5116_v56  ;;  %v5375_v11 = vadd.f32 %v5367_v39, %v5245_v47  ;;  %v15784_v21 = vpack.c.bf16 %v5404_v22, %v5403_v44 }
0x1b48   : > { %v5244_v34 = vadd.f32 %v5236_v48, %v5114_v25  ;;  %v5373_v45 = vadd.f32 %v5365_v59, %v5243_v16  ;;  %v15787_v51 = vpack.c.bf16 %v5402_v46, %v5401_v5 }
0x1b49   : > { %v5391_v28 = vadd.f32 %v11458_v27, %v5375_v11  ;;  %v5376_v62 = vadd.f32 %v5368_v36, %v5246_v3 }
0x1b4a   : > { %v5389_v4 = vadd.f32 %v11458_v27, %v5373_v45  ;;  %v5374_v20 = vadd.f32 %v5366_v35, %v5244_v34  ;;  %13074 = vmatpush3.bf16.msra.mxu1 %v15787_v51  ;;  %13086 = vmatpush3.bf16.msra.mxu0 %v15787_v51 }
0x1b4b   : > { %5399 = vst.msk [vmem:[%s15769_s0 + $0x30] sm:$0xff] %vm961_vm1, %v5391_v28  ;;  %v5392_v58 = vadd.f32 %v11458_v27, %v5376_v62  ;;  %13075 = vmatprep.subr.bf16.mxu1 %v14289_v63  ;;  %13087 = vmatprep.subr.bf16.mxu0 %v14289_v63  ;;  %v5407_v32 = vadd.f32 %v5391_v28, %v15509_v50 }
0x1b4c   : > { %5397 = vst.msk [vmem:[%s15769_s0 + $0x20] sm:$0xff] %vm961_vm1, %v5389_v4  ;;  %v5390_v6 = vadd.f32 %v11458_v27, %v5374_v20  ;;  %v5405_v56 = vadd.f32 %v5389_v4, %v15503_v17  ;;  %v13758_v17 = vld [vmem:[%s17333_s3 + $0x8] sm:$0xff]  }
0x1b4d   : > { %5400 = vst.msk [vmem:[%s15769_s0 + $0x38] sm:$0xff] %vm961_vm1, %v5392_v58  ;;  %v5408_v52 = vadd.f32 %v5392_v58, %v15505_v12  ;;  %v13759_v12 = vld [vmem:[%s17333_s3] sm:$0xff]  }
0x1b4e   : > { %5398 = vst.msk [vmem:[%s15769_s0 + $0x28] sm:$0xff] %vm961_vm1, %v5390_v6  ;;  %v5406_v25 = vadd.f32 %v5390_v6, %v15507_v42  ;;  %13076 = vmatpush3.bf16.msra.mxu1 %v15784_v21  ;;  %13088 = vmatpush3.bf16.msra.mxu0 %v15784_v21  ;;  %v13761_v42 = vld [vmem:[%s17334_s5 + $0x10] sm:$0xff]  }
0x1b4f   : > { %13077 = vmatprep.subr.bf16.mxu1 %v14289_v63  ;;  %13089 = vmatprep.subr.bf16.mxu0 %v14289_v63  ;;  %v15809_v9 = vpack.c.bf16 %v5408_v52, %v5407_v32 }
0x1b50   : > { %v15811_v50 = vpack.c.bf16 %v5406_v25, %v5405_v56 }
0x1b52   : > { %13078 = vmatpush3.bf16.msra.mxu1 %v15811_v50  ;;  %13090 = vmatpush3.bf16.msra.mxu0 %v15811_v50 }
0x1b53   : > { %13079 = vmatprep.subr.bf16.mxu1 %v14289_v63  ;;  %13091 = vmatprep.subr.bf16.mxu0 %v14289_v63 }
0x1b56   : > { %13080 = vmatpush3.bf16.msra.mxu1 %v15809_v9  ;;  %13092 = vmatpush3.bf16.msra.mxu0 %v15809_v9 }
0x1b57   : > { %13113 = vmatprep.subr.bf16.mxu0 %v14289_v63  ;;  %13097 = vmatprep.subr.bf16.mxu1 %v14289_v63 }
0x1b59   : > { %13094 = vmatmul.mubr.msk.bf16.vlgmr.msra.gmra.mrb[132].mxu0 %vm1236_vm3, %v13758_v17  ;;  %13082 = vmatmul.mubr.msk.bf16.vlgmr.msra.gmra.mrb[132].mxu1 %vm1236_vm3, %v13759_v12 }
0x1b5a   : > { %13114 = vmatpush3.bf16.msra.mxu0 %v15787_v51  ;;  %13121 = vmatprep.mubr.msk.bf16.mxu0 %vm14290_vm2, %v14289_v63 }
0x1b5b   : > { %13115 = vmatprep.subr.bf16.mxu0 %v14289_v63  ;;  %13098 = vmatpush3.bf16.msra.mxu1 %v13761_v42 }
0x1b5c   : > { %13099 = vmatprep.subr.bf16.mxu1 %v14289_v63  ;;  %13101 = vmatprep.mubr.msk.bf16.mxu1 %vm14290_vm2, %v14289_v63 }
0x1b5e   : > { %13116 = vmatpush3.bf16.msra.mxu0 %v15784_v21 }
0x1b5f   : > { %13117 = vmatprep.subr.bf16.mxu0 %v14289_v63  ;;  %13100 = vmatpush3.bf16.msra.mxu1 %v13762_v8 }
0x1b60   : > { %13105 = vmatprep.subr.bf16.mxu1 %v14289_v63 }
0x1b62   : > { %13118 = vmatpush3.bf16.msra.mxu0 %v15811_v50 }
0x1b63   : > { %13119 = vmatprep.subr.bf16.mxu0 %v14289_v63 }
0x1b66   : > { %13120 = vmatpush3.bf16.msra.mxu0 %v15809_v9 }
0x1b67   : > { %13145 = vmatprep.subr.bf16.mxu0 %v14289_v63 }
0x1b69   : > { %13122 = vmatmul.mubr.msk.bf16.vlgmr.msra.gmra.mrb[136].mxu0 %vm1236_vm3, %v13760_v53 }
0x1b6a   : > { %13149 = vmatprep.mubr.msk.bf16.mxu0 %vm14290_vm2, %v14289_v63  ;;  %13146 = vmatpush3.bf16.msra.mxu0 %v13768_v15 }
0x1b6b   : > { %13147 = vmatprep.subr.bf16.mxu0 %v14289_v63 }
0x1b6e   : > { %13148 = vmatpush3.bf16.msra.mxu0 %v13769_v57 }
0x1b6f   : > { %13153 = vmatprep.subr.bf16.mxu0 %v14289_v63 }
0x1c2c   : > { %v5514_v7 = vpop.f32.mrb[132].mxu0  ;;  %v5457_v13 = vpop.f32.mrb[132].mxu1 }
0x1c2d   : > { %v13095_v61 = vpop.f32.mrb[133].mxu0  ;;  %v13083_v18 = vpop.f32.mrb[133].mxu1 }
0x1c2e   : > { %v5517_v23 = vpop.f32.mrb[134].mxu0  ;;  %v5460_v54 = vpop.f32.mrb[134].mxu1 }
0x1c2f   : > { %v5526_v27 = vpack.c.bf16 %v5517_v23, %v5514_v7  ;;  %v13096_v31 = vpop.f32.mrb[135].mxu0  ;;  %v5468_v0 = vpack.c.bf16 %v5460_v54, %v5457_v13  ;;  %v13084_v55 = vpop.f32.mrb[135].mxu1 }
0x1c31   : > { %13102 = vmatmul.mubr.msk.bf16.vlgmr.msra.gmra.mrb[136].mxu1 %vm961_vm1, %v5526_v27 }
0x1c32   : > { %13106 = vmatpush3.bf16.msra.mxu1 %v13763_v41  ;;  %13109 = vmatprep.mubr.msk.bf16.mxu1 %vm14290_vm2, %v14289_v63 }
0x1c33   : > { %13107 = vmatprep.subr.bf16.mxu1 %v14289_v63 }
0x1c36   : > { %13108 = vmatpush3.bf16.msra.mxu1 %v13764_v49 }
0x1c37   : > { %13125 = vmatprep.subr.bf16.mxu1 %v14289_v63 }
0x1c39   : > { %13110 = vmatmul.mubr.msk.bf16.vlgmr.msra.gmra.mrb[140].mxu1 %vm961_vm1, %v5468_v0  ;;  %v11500_v0 = vld [vmem:[%s17255_s17 + $0x1] ss:$0 sm:$0xff] }
0x1c3a   : > { %13126 = vmatpush3.bf16.msra.mxu1 %v13765_v60  ;;  %13129 = vmatprep.mubr.msk.bf16.mxu1 %vm14290_vm2, %v14289_v63  ;;  %v11501_v60 = vld [vmem:[%s17255_s17 + $0x2] ss:$0 sm:$0xff] }
0x1c3b   : > { %13127 = vmatprep.subr.bf16.mxu1 %v14289_v63 }
0x1c3c   : > { %v5684_v19 = vpop.f32.mrb[136].mxu0 }
0x1c3d   : > { %v13123_v43 = vpop.f32.mrb[137].mxu0 }
0x1c3e   : > { %13128 = vmatpush3.bf16.msra.mxu1 %v13766_v24  ;;  %v5687_v2 = vpop.f32.mrb[138].mxu0 }
0x1c3f   : > { %v5696_v33 = vpack.c.bf16 %v5687_v2, %v5684_v19  ;;  %v13124_v37 = vpop.f32.mrb[139].mxu0  ;;  %13133 = vmatprep.subr.bf16.mxu1 %v14289_v63 }
0x1c41   : > { %13130 = vmatmul.mubr.msk.bf16.vlgmr.msra.gmra.mrb[144].mxu1 %vm961_vm1, %v5696_v33 }
0x1c42   : > { %13134 = vmatpush3.bf16.msra.mxu1 %v15787_v51  ;;  %13141 = vmatprep.mubr.msk.bf16.mxu1 %vm14290_vm2, %v14289_v63  ;;  %v11497_v51 = vld [vmem:[%s17255_s17] ss:$0 sm:$0xff] }
0x1c43   : > { %13135 = vmatprep.subr.bf16.mxu1 %v14289_v63 }
0x1c46   : > { %13136 = vmatpush3.bf16.msra.mxu1 %v15784_v21 }
0x1c47   : > { %13137 = vmatprep.subr.bf16.mxu1 %v14289_v63 }
0x1c4a   : > { %13138 = vmatpush3.bf16.msra.mxu1 %v15811_v50 }
0x1c4b   : > { %13139 = vmatprep.subr.bf16.mxu1 %v14289_v63 }
0x1c4e   : > { %13140 = vmatpush3.bf16.msra.mxu1 %v15809_v9 }
0x1c4f   : > { %13159 = vmatprep.subr.bf16.mxu1 %v14289_v63 }
0x1c51   : > { %13142 = vmatmul.mubr.msk.bf16.vlgmr.msra.gmra.mrb[148].mxu1 %vm1236_vm3, %v13767_v40 }
0x1c52   : > { %13161 = vmatprep.mubr.msk.bf16.mxu1 %vm14290_vm2, %v14289_v63 }
0x1d04   : > { %v5576_v1 = vpop.f32.mrb[136].mxu1 }
0x1d05   : > { %v13103_v39 = vpop.f32.mrb[137].mxu1 }
0x1d06   : > { %v5579_v14 = vpop.f32.mrb[138].mxu1 }
0x1d07   : > { %v13104_v10 = vpop.f32.mrb[139].mxu1 }
0x1d0c   : > { %v5632_v29 = vpop.f32.mrb[140].mxu1 }
0x1d0d   : > { %v5633_v59 = vadd.f32 %v5632_v29, %v5576_v1  ;;  %v13111_v44 = vpop.f32.mrb[141].mxu1 }
0x1d0e   : > { %v5635_v22 = vpop.f32.mrb[142].mxu1 }
0x1d0f   : > { %v5636_v47 = vadd.f32 %v5635_v22, %v5579_v14  ;;  %v13112_v30 = vpop.f32.mrb[143].mxu1 }
0x1d14   : > { %v5746_v38 = vpop.f32.mrb[144].mxu1 }
0x1d15   : > { %v5753_v5 = vadd.f32 %v5746_v38, %v5633_v59  ;;  %v13131_v46 = vpop.f32.mrb[145].mxu1 }
0x1d16   : > { %v5749_v16 = vpop.f32.mrb[146].mxu1 }
0x1d17   : > { %v5754_v48 = vadd.f32 %v5749_v16, %v5636_v47  ;;  %v13132_v3 = vpop.f32.mrb[147].mxu1 }
0x1d18   : > { %v11504_v3 = vld [vmem:[%s17255_s17 + $0x3] ss:$0 sm:$0xff] }
0x1d24   : > { %v5800_v11 = vpop.f32.mrb[148].mxu1 }
0x1d25   : > { %v13143_v36 = vpop.f32.mrb[149].mxu1 }
0x1d26   : > { %v5803_v21 = vpop.f32.mrb[150].mxu1 }
0x1d27   : > { %v5812_v34 = vpack.c.bf16 %v5803_v21, %v5800_v11  ;;  %v13144_v45 = vpop.f32.mrb[151].mxu1 }
0x1d28   : > { %v11505_v45 = vld [vmem:[%s17255_s17 + $0x4] ss:$0 sm:$0xff] }
0x1d29   : > { %13150 = vmatmul.mubr.msk.bf16.vlgmr.msra.gmra.mrb[140].mxu0 %vm961_vm1, %v5812_v34 }
0x1d2a   : > { %13155 = vmatprep.mubr.msk.bf16.mxu0 %vm14290_vm2, %v14289_v63 }
0x1dfc   : > { %v5862_v35 = vpop.f32.mrb[140].mxu0 }
0x1dfd   : > { %v5869_v28 = vadd.f32 %v5862_v35, %v5753_v5  ;;  %v13151_v62 = vpop.f32.mrb[141].mxu0 }
0x1dfe   : > { %v5865_v4 = vpop.f32.mrb[142].mxu0 }
0x1dff   : > { %v5870_v20 = vadd.f32 %v5865_v4, %v5754_v48  ;;  %v13152_v58 = vpop.f32.mrb[143].mxu0  ;;  %v5878_v6 = vadd.f32 %v11497_v51, %v5869_v28  ;;  %v11507_v4 = vld [vmem:[%s17335_s13 + $0x2] sm:$0x3] }
0x1e00   : > { %v13770_v58 = vld [vmem:[%s17336_s12 + $0x20] sm:$0xff]  }
0x1e01   : > { %v5884_v32 = vsel %vm1236_vm3, %v5878_v6, 0.0  ;;  %v5879_v52 = vadd.f32 %v11497_v51, %v5870_v20  ;;  %v5973_v20 = vld [vmem:[%s17335_s13] sm:$0x3] }
0x1e02   : > { %5885 = vadd.xlane.f32.xlu0 %v5884_v32  ;;  %v13771_v32 = vld [vmem:[%s17336_s12 + $0x28] sm:$0xff]  }
0x1e03   : > { %v5887_v56 = vsel %vm1236_vm3, %v5879_v52, 0.0 }
0x1e04   : > { %5888 = vadd.xlane.f32.xlu1 %v5887_v56  ;;  %v13773_v56 = vld [vmem:[%s17336_s12 + $0x30] sm:$0xff]  }
0x1e8f   : > { %v5886_v25 = vpop.xlane.xlu0 %5885 }
0x1e90   : > { %v5891_v9 = vmul.f32 0.015625, %v5886_v25  ;;  %v13775_v25 = vld [vmem:[%s17336_s12 + $0x38] sm:$0xff]  }
0x1e91   : > { %v5889_v50 = vpop.xlane.xlu1 %5888 }
0x1e92   : > { %v5893_v17 = vsub.f32 %v5878_v6, %v5891_v9  ;;  %v5892_v12 = vmul.f32 0.015625, %v5889_v50  ;;  %v13772_v6 = vld [vmem:[%s17336_s12] sm:$0xff]   ;;  %v13776_v9 = vld [vmem:[%s17336_s12 + $0x10] sm:$0xff]   ;;  %v13777_v50 = vld [vmem:[%s17336_s12 + $0x18] sm:$0xff]  }
0x1e94   : > { %v5894_v42 = vsub.f32 %v5879_v52, %v5892_v12  ;;  %v5895_v53 = vmul.f32 %v5893_v17, %v5893_v17  ;;  %v13774_v52 = vld [vmem:[%s17336_s12 + $0x8] sm:$0xff]  }
0x1e96   : > { %v5897_v8 = vsel %vm1236_vm3, %v5895_v53, 0.0  ;;  %v5896_v7 = vmul.f32 %v5894_v42, %v5894_v42 }
0x1e97   : > { %5898 = vadd.xlane.f32.xlu0 %v5897_v8 }
0x1e98   : > { %v5900_v13 = vsel %vm1236_vm3, %v5896_v7, 0.0 }
0x1e99   : > { %5901 = vadd.xlane.f32.xlu1 %v5900_v13  ;;  %v13778_v13 = vld [vmem:[%s17336_s12 + $0x40] sm:$0xff]  }
0x1f24   : > { %v5899_v61 = vpop.xlane.xlu0 %5898 }
0x1f25   : > { %v5903_v18 = vmul.f32 0.015625, %v5899_v61 }
0x1f26   : > { %v5902_v23 = vpop.xlane.xlu1 %5901 }
0x1f27   : > { %v5905_v41 = vadd.f32 1e-05, %v5903_v18  ;;  %v5904_v54 = vmul.f32 0.015625, %v5902_v23 }
0x1f29   : > { %14081 = vrsqrt.f32 %v5905_v41  ;;  %v5906_v27 = vadd.f32 1e-05, %v5904_v54  ;;  %v13779_v54 = vld [vmem:[%s17336_s12 + $0x48] sm:$0xff]  }
0x1f2b   : > { %14083 = vrsqrt.f32 %v5906_v27  ;;  %v11527_v27 = vld [vmem:[%s17335_s13 + $0x4] sm:$0x3] }
0x1f33   : > { %v14082_v31 = vpop.eup %14081 }
0x1f34   : > { %v5909_v55 = vmul.f32 %v14082_v31, %v5893_v17  ;;  %v11542_v31 = vld [vmem:[%s17335_s13 + $0x6] sm:$0x3] }
0x1f35   : > { %v14084_v49 = vpop.eup %14083 }
0x1f36   : > { %v5917_v24 = vmul.f32 %v11500_v0, %v5909_v55  ;;  %v5910_v19 = vmul.f32 %v14084_v49, %v5894_v42  ;;  %v13781_v55 = vld [vmem:[%s17336_s12 + $0x60] sm:$0xff]   ;;  %v13782_v49 = vld [vmem:[%s17336_s12 + $0x58] sm:$0xff]  }
0x1f38   : > { %v15918_v43 = vadd.f32 %v11501_v60, %v5917_v24  ;;  %v5918_v2 = vmul.f32 %v11500_v0, %v5910_v19  ;;  %v13780_v0 = vld [vmem:[%s17336_s12 + $0x50] sm:$0xff]   ;;  %v13787_v19 = vld [vmem:[%s17336_s12 + $0x78] sm:$0xff]  }
0x1f39   : > { %v13785_v24 = vld [vmem:[%s17336_s12 + $0x70] sm:$0xff]  }
0x1f3a   : > { %v5931_v33 = vsel %vm1236_vm3, %v15918_v43, 0.0  ;;  %v15922_v37 = vadd.f32 %v11501_v60, %v5918_v2  ;;  %v13783_v60 = vld [vmem:[%s17336_s12 + $0x68] sm:$0xff]   ;;  %s17341_s12 = smov 32  }
0x1f3b   : > { %5932 = vadd.xlane.f32.xlu0 %v5931_v33 }
0x1f3c   : > { %v5934_v40 = vsel %vm1236_vm3, %v15922_v37, 0.0 }
0x1f3d   : > { %5935 = vadd.xlane.f32.xlu1 %v5934_v40 }
0x1fc8   : > { %v5933_v15 = vpop.xlane.xlu0 %5932 }
0x1fc9   : > { %v5937_v57 = vmul.f32 0.015625, %v5933_v15 }
0x1fca   : > { %v5936_v1 = vpop.xlane.xlu1 %5935 }
0x1fcb   : > { %v5939_v39 = vsub.f32 %v15918_v43, %v5937_v57  ;;  %v5938_v14 = vmul.f32 0.015625, %v5936_v1 }
0x1fcd   : > { %v5940_v10 = vsub.f32 %v15922_v37, %v5938_v14  ;;  %v5941_v29 = vmul.f32 %v5939_v39, %v5939_v39 }
0x1fcf   : > { %v5943_v59 = vsel %vm1236_vm3, %v5941_v29, 0.0  ;;  %v5942_v44 = vmul.f32 %v5940_v10, %v5940_v10 }
0x1fd0   : > { %5944 = vadd.xlane.f32.xlu0 %v5943_v59  ;;  %v13784_v59 = vld [vmem:[%s17337_s2] sm:$0xff]  }
0x1fd1   : > { %v5946_v22 = vsel %vm1236_vm3, %v5942_v44, 0.0 }
0x1fd2   : > { %5947 = vadd.xlane.f32.xlu1 %v5946_v22 }
0x205d   : > { %v5945_v47 = vpop.xlane.xlu0 %5944 }
0x205e   : > { %v5949_v30 = vmul.f32 0.015625, %v5945_v47 }
0x205f   : > { %v5948_v38 = vpop.xlane.xlu1 %5947 }
0x2060   : > { %v5951_v5 = vadd.f32 1e-06, %v5949_v30  ;;  %v5950_v46 = vmul.f32 0.015625, %v5948_v38  ;;  %v13786_v38 = vld [vmem:[%s17337_s2 + $0x8] sm:$0xff]  }
0x2062   : > { %14085 = vrsqrt.f32 %v5951_v5  ;;  %v5952_v16 = vadd.f32 1e-06, %v5950_v46  ;;  %v13788_v46 = vld [vmem:[%s17337_s2 + $0x10] sm:$0xff]  }
0x2064   : > { %14087 = vrsqrt.f32 %v5952_v16 }
0x206c   : > { %v14086_v48 = vpop.eup %14085 }
0x206d   : > { %v5955_v11 = vmul.f32 %v14086_v48, %v5939_v39 }
0x206e   : > { %v14088_v36 = vpop.eup %14087 }
0x206f   : > { %v5963_v21 = vmul.f32 %v11504_v3, %v5955_v11  ;;  %v5956_v34 = vmul.f32 %v14088_v36, %v5940_v10  ;;  %v13789_v36 = vld [vmem:[%s17337_s2 + $0x18] sm:$0xff]  }
0x2071   : > { %v5964_v35 = vmul.f32 %v11504_v3, %v5956_v34  ;;  %v5971_v51 = vadd.f32 %v11505_v45, %v5963_v21 }
0x2073   : > { %v5972_v28 = vadd.f32 %v11505_v45, %v5964_v35 }
0x2075   : > { %v15936_v62 = vpack.c.bf16 %v5972_v28, %v5971_v51 }
0x2077   : > { %13154 = vmatpush3.bf16.msra.mxu0 %v15936_v62  ;;  %13160 = vmatpush3.bf16.msra.mxu1 %v15936_v62 }
0x2078   : > { %13165 = vmatprep.subr.bf16.mxu0 %v14289_v63  ;;  %13177 = vmatprep.subr.bf16.mxu1 %v14289_v63 }
0x207a   : > { %13162 = vmatmul.mubr.msk.bf16.vlgmr.msra.gmra.mrb[152].mxu1 %vm5975_vm15, %v11507_v4  ;;  %13156 = vmatmul.mubr.msk.bf16.vlgmr.msra.gmra.mrb[144].mxu0 %vm5975_vm15, %v5973_v20  ;;  %v11558_v4 = vld [vmem:[%s17255_s17 + $0x15] ss:$0 sm:$0xff] }
0x207b   : > { %13166 = vmatpush3.bf16.msra.mxu0 %v13770_v58  ;;  %13178 = vmatpush3.bf16.msra.mxu1 %v13772_v6 }
0x207c   : > { %13167 = vmatprep.subr.bf16.mxu0 %v14289_v63  ;;  %13179 = vmatprep.subr.bf16.mxu1 %v14289_v63 }
0x207d   : > { %13173 = vmatprep.mubr.msk.bf16.mxu0 %vm14290_vm2, %v14289_v63  ;;  %13185 = vmatprep.mubr.msk.bf16.mxu1 %vm14290_vm2, %v14289_v63 }
0x207f   : > { %13168 = vmatpush3.bf16.msra.mxu0 %v13771_v32  ;;  %13180 = vmatpush3.bf16.msra.mxu1 %v13774_v52 }
0x2080   : > { %13169 = vmatprep.subr.bf16.mxu0 %v14289_v63  ;;  %13181 = vmatprep.subr.bf16.mxu1 %v14289_v63 }
0x2083   : > { %13170 = vmatpush3.bf16.msra.mxu0 %v13773_v56  ;;  %13182 = vmatpush3.bf16.msra.mxu1 %v13776_v9  ;;  %v11564_v56 = vld [vmem:[%s17255_s17 + $0x5] ss:$0 sm:$0xff] }
0x2084   : > { %13171 = vmatprep.subr.bf16.mxu0 %v14289_v63  ;;  %13183 = vmatprep.subr.bf16.mxu1 %v14289_v63 }
0x2087   : > { %13172 = vmatpush3.bf16.msra.mxu0 %v13775_v25  ;;  %13184 = vmatpush3.bf16.msra.mxu1 %v13777_v50 }
0x2088   : > { %13189 = vmatprep.subr.bf16.mxu0 %v14289_v63  ;;  %13195 = vmatprep.subr.bf16.mxu1 %v14289_v63 }
0x214d   : > { %v6067_v17 = vpop.f32.mrb[152].mxu1  ;;  %v6013_v12 = vpop.f32.mrb[144].mxu0 }
0x214e   : > { %v6082_v42 = vpack.c.bf16 %v6067_v17, %v6067_v17  ;;  %v13163_v53 = vpop.f32.mrb[153].mxu1  ;;  %v6027_v8 = vpack.c.bf16 %v6013_v12, %v6013_v12  ;;  %v13157_v7 = vpop.f32.mrb[145].mxu0 }
0x214f   : > { %v6070_v61 = vpop.f32.mrb[154].mxu1  ;;  %v6016_v18 = vpop.f32.mrb[146].mxu0 }
0x2150   : > { %13174 = vmatmul.mubr.msk.bf16.vlgmr.msra.gmra.mrb[148].mxu0 %vm1236_vm3, %v6082_v42  ;;  %v13164_v23 = vpop.f32.mrb[155].mxu1  ;;  %13186 = vmatmul.mubr.msk.bf16.vlgmr.msra.gmra.mrb[156].mxu1 %vm1236_vm3, %v6027_v8  ;;  %v13158_v41 = vpop.f32.mrb[147].mxu0 }
0x2151   : > { %13190 = vmatpush3.bf16.msra.mxu0 %v15936_v62  ;;  %13191 = vmatprep.mubr.msk.bf16.mxu0 %vm14290_vm2, %v14289_v63  ;;  %v13790_v23 = vld [vmem:[%s17337_s2 + $0x20] sm:$0xff]  }
0x2152   : > { %13207 = vmatprep.subr.bf16.mxu0 %v14289_v63  ;;  %13196 = vmatpush3.bf16.msra.mxu1 %v13778_v13  ;;  %v13791_v41 = vld [vmem:[%s17337_s2 + $0x40] sm:$0xff]  }
0x2153   : > { %13197 = vmatprep.subr.bf16.mxu1 %v14289_v63  ;;  %13203 = vmatprep.mubr.msk.bf16.mxu1 %vm14290_vm2, %v14289_v63 }
0x2156   : > { %13198 = vmatpush3.bf16.msra.mxu1 %v13779_v54  ;;  %v13792_v54 = vld [vmem:[%s17337_s2 + $0x28] sm:$0xff]  }
0x2157   : > { %13199 = vmatprep.subr.bf16.mxu1 %v14289_v63 }
0x2158   : > { %13192 = vmatmul.mubr.msk.bf16.vlgmr.msra.gmra.mrb[152].mxu0 %vm5975_vm15, %v11527_v27  ;;  %v13793_v27 = vld [vmem:[%s17337_s2 + $0x48] sm:$0xff]  }
0x2159   : > { %13208 = vmatpush3.bf16.msra.mxu0 %v15936_v62  ;;  %13209 = vmatprep.mubr.msk.bf16.mxu0 %vm14290_vm2, %v14289_v63 }
0x215a   : > { %13213 = vmatprep.subr.bf16.mxu0 %v14289_v63  ;;  %13200 = vmatpush3.bf16.msra.mxu1 %v13780_v0  ;;  %v13795_v0 = vld [vmem:[%s17337_s2 + $0x50] sm:$0xff]  }
0x215b   : > { %13201 = vmatprep.subr.bf16.mxu1 %v14289_v63 }
0x215e   : > { %13202 = vmatpush3.bf16.msra.mxu1 %v13782_v49  ;;  %v13797_v49 = vld [vmem:[%s17337_s2 + $0x58] sm:$0xff]  }
0x215f   : > { %13225 = vmatprep.subr.bf16.mxu1 %v14289_v63 }
0x2160   : > { %13210 = vmatmul.mubr.msk.bf16.vlgmr.msra.gmra.mrb[156].mxu0 %vm5975_vm15, %v11542_v31  ;;  %v13794_v31 = vld [vmem:[%s17337_s2 + $0x30] sm:$0xff]  }
0x2161   : > { %13221 = vmatprep.mubr.msk.bf16.mxu0 %vm14290_vm2, %v14289_v63  ;;  %13214 = vmatpush3.bf16.msra.mxu0 %v13781_v55  ;;  %v13796_v55 = vld [vmem:[%s17337_s2 + $0x38] sm:$0xff]  }
0x2162   : > { %13215 = vmatprep.subr.bf16.mxu0 %v14289_v63 }
0x2165   : > { %13216 = vmatpush3.bf16.msra.mxu0 %v13783_v60 }
0x2166   : > { %13217 = vmatprep.subr.bf16.mxu0 %v14289_v63 }
0x2169   : > { %13218 = vmatpush3.bf16.msra.mxu0 %v13785_v24 }
0x216a   : > { %13219 = vmatprep.subr.bf16.mxu0 %v14289_v63 }
0x216d   : > { %13220 = vmatpush3.bf16.msra.mxu0 %v13787_v19 }
0x216e   : > { %13237 = vmatprep.subr.bf16.mxu0 %v14289_v63 }
0x2223   : > { %v6144_v2 = vpop.f32.mrb[148].mxu0  ;;  %v6211_v33 = vpop.f32.mrb[156].mxu1 }
0x2224   : > { %v13175_v40 = vpop.f32.mrb[149].mxu0  ;;  %v6212_v15 = vadd.f32 %v6211_v33, %v6144_v2  ;;  %v13187_v57 = vpop.f32.mrb[157].mxu1  ;;  %v11561_v33 = vld [vmem:[%s17255_s17 + $0x16] ss:$0 sm:$0xff] }
0x2225   : > { %v6147_v1 = vpop.f32.mrb[150].mxu0  ;;  %v6214_v39 = vpop.f32.mrb[158].mxu1 }
0x2226   : > { %v13176_v14 = vpop.f32.mrb[151].mxu0  ;;  %v13188_v10 = vpop.f32.mrb[159].mxu1 }
0x2227   : > { %v11579_v14 = vld [vmem:[%s17255_s17 + $0x6] ss:$0 sm:$0xff]  ;;  %v11594_v10 = vld [vmem:[%s17255_s17 + $0x7] ss:$0 sm:$0xff] }
0x222b   : > { %v6256_v29 = vpop.f32.mrb[152].mxu0 }
0x222c   : > { %v6271_v44 = vpack.c.bf16 %v6256_v29, %v6256_v29  ;;  %v13193_v22 = vpop.f32.mrb[153].mxu0 }
0x222d   : > { %v6259_v47 = vpop.f32.mrb[154].mxu0 }
0x222e   : > { %13204 = vmatmul.mubr.msk.bf16.vlgmr.msra.gmra.mrb[160].mxu1 %vm1236_vm3, %v6271_v44  ;;  %v13194_v30 = vpop.f32.mrb[155].mxu0 }
0x222f   : > { %13226 = vmatpush3.bf16.msra.mxu1 %v13784_v59  ;;  %13233 = vmatprep.mubr.msk.bf16.mxu1 %vm14290_vm2, %v14289_v63 }
0x2230   : > { %13227 = vmatprep.subr.bf16.mxu1 %v14289_v63 }
0x2233   : > { %13228 = vmatpush3.bf16.msra.mxu1 %v13786_v38  ;;  %v6379_v5 = vpop.f32.mrb[156].mxu0 }
0x2234   : > { %v6394_v16 = vpack.c.bf16 %v6379_v5, %v6379_v5  ;;  %v13211_v48 = vpop.f32.mrb[157].mxu0  ;;  %13229 = vmatprep.subr.bf16.mxu1 %v14289_v63 }
0x2235   : > { %v6382_v3 = vpop.f32.mrb[158].mxu0 }
0x2236   : > { %13222 = vmatmul.mubr.msk.bf16.vlgmr.msra.gmra.mrb[160].mxu0 %vm1236_vm3, %v6394_v16  ;;  %v13212_v11 = vpop.f32.mrb[159].mxu0 }
0x2237   : > { %13230 = vmatpush3.bf16.msra.mxu1 %v13788_v46  ;;  %13245 = vmatprep.mubr.msk.bf16.mxu0 %vm14290_vm2, %v14289_v63 }
0x2238   : > { %13231 = vmatprep.subr.bf16.mxu1 %v14289_v63  ;;  %13238 = vmatpush3.bf16.msra.mxu0 %v13790_v23 }
0x2239   : > { %13239 = vmatprep.subr.bf16.mxu0 %v14289_v63 }
0x223b   : > { %13232 = vmatpush3.bf16.msra.mxu1 %v13789_v36 }
0x223c   : > { %13249 = vmatprep.subr.bf16.mxu1 %v14289_v63  ;;  %13240 = vmatpush3.bf16.msra.mxu0 %v13792_v54 }
0x223d   : > { %13241 = vmatprep.subr.bf16.mxu0 %v14289_v63 }
0x223e   : > { %13234 = vmatmul.mubr.msk.bf16.vlgmr.msra.gmra.mrb[164].mxu1 %vm1236_vm3, %v15936_v62 }
0x223f   : > { %13257 = vmatprep.mubr.msk.bf16.mxu1 %vm14290_vm2, %v14289_v63  ;;  %13250 = vmatpush3.bf16.msra.mxu1 %v13791_v41 }
0x2240   : > { %13251 = vmatprep.subr.bf16.mxu1 %v14289_v63  ;;  %13242 = vmatpush3.bf16.msra.mxu0 %v13794_v31 }
0x2241   : > { %13243 = vmatprep.subr.bf16.mxu0 %v14289_v63 }
0x2243   : > { %13252 = vmatpush3.bf16.msra.mxu1 %v13793_v27 }
0x2244   : > { %13253 = vmatprep.subr.bf16.mxu1 %v14289_v63  ;;  %13244 = vmatpush3.bf16.msra.mxu0 %v13796_v55 }
0x2245   : > { %13261 = vmatprep.subr.bf16.mxu0 %v14289_v63 }
0x2247   : > { %13254 = vmatpush3.bf16.msra.mxu1 %v13795_v0 }
0x2248   : > { %13255 = vmatprep.subr.bf16.mxu1 %v14289_v63 }
0x224b   : > { %13256 = vmatpush3.bf16.msra.mxu1 %v13797_v49 }
0x224c   : > { %13267 = vmatprep.subr.bf16.mxu1 %v14289_v63 }
0x2301   : > { %v6333_v21 = vpop.f32.mrb[160].mxu1 }
0x2302   : > { %v6339_v34 = vadd.f32 %v6333_v21, %v6212_v15  ;;  %v13205_v45 = vpop.f32.mrb[161].mxu1  ;;  %v11562_v15 = vld [vmem:[%s17255_s17 + $0x17] ss:$0 sm:$0xff] }
0x2303   : > { %v6336_v35 = vpop.f32.mrb[162].mxu1 }
0x2304   : > { %v13206_v51 = vpop.f32.mrb[163].mxu1 }
0x2309   : > { %v6456_v28 = vpop.f32.mrb[160].mxu0 }
0x230a   : > { %v6462_v20 = vadd.f32 %v6456_v28, %v6339_v34  ;;  %v13223_v58 = vpop.f32.mrb[161].mxu0 }
0x230b   : > { %v6459_v6 = vpop.f32.mrb[162].mxu0 }
0x230c   : > { %v13224_v32 = vpop.f32.mrb[163].mxu0  ;;  %v6471_v52 = vadd.f32 %v11558_v4, %v6462_v20 }
0x230e   : > { %v6477_v62 = vsel %vm6476_vm0, %v6471_v52, 0.0 }
0x230f   : > { %6478 = vadd.xlane.f32.xlu0 %v6477_v62 }
0x2311   : > { %v6581_v25 = vpop.f32.mrb[164].mxu1 }
0x2312   : > { %v13235_v9 = vpop.f32.mrb[165].mxu1  ;;  %v6582_v17 = vadd.f32 %v11564_v56, %v6581_v25 }
0x2313   : > { %v6584_v50 = vpop.f32.mrb[166].mxu1 }
0x2314   : > { %v6585_v12 = vadd.f32 %v11564_v56, %v6584_v50  ;;  %v13236_v42 = vpop.f32.mrb[167].mxu1 }
0x2316   : > { %v16073_v53 = vpack.c.bf16 %v6585_v12, %v6582_v17 }
0x239c   : > { %v6479_v8 = vpop.xlane.xlu0 %6478 }
0x239d   : > { %v6480_v7 = vmul.f32 0.015625, %v6479_v8 }
0x239f   : > { %v6481_v13 = vsub.f32 %v6471_v52, %v6480_v7 }
0x23a1   : > { %v6482_v61 = vmul.f32 %v6481_v13, %v6481_v13 }
0x23a3   : > { %v6483_v18 = vsel %vm6476_vm0, %v6482_v61, 0.0 }
0x23a4   : > { %6484 = vadd.xlane.f32.xlu1 %v6483_v18 }
0x23b5   : > { %6877 = vrot.lane.b32.xlu1 %v16073_v53, %s17292_s7  ;;  %s11074_s7 = sshll.u32 %s15763_s29, 4 }
0x23b6   : > { %s16425_s5 = scalar_lea.vmem [#allocation4], %s11074_s7  ;;  %s17298_s7 = smov 64  }
0x2431   : > { %v6485_v60 = vpop.xlane.xlu1 %6484 }
0x2432   : > { %v6486_v24 = vmul.f32 0.015625, %v6485_v60 }
0x2434   : > { %v6487_v19 = vadd.f32 1e-05, %v6486_v24 }
0x2435   : > { %v6878_v45 = vpop.permute.xlu1 %6877 }
0x2436   : > { %14089 = vrsqrt.f32 %v6487_v19 }
0x2440   : > { %v14090_v2 = vpop.eup %14089 }
0x2441   : > { %v6489_v40 = vmul.f32 %v14090_v2, %v6481_v13 }
0x2443   : > { %v6496_v57 = vmul.f32 %v11561_v33, %v6489_v40 }
0x2445   : > { %v6503_v1 = vadd.f32 %v11562_v15, %v6496_v57 }
0x2447   : > { %v6597_v39 = vpack.c.bf16 %v6503_v1, %v6503_v1 }
0x2449   : > { %13246 = vmatmul.mubr.msk.bf16.vlgmr.msra.gmra.mrb[164].mxu0 %vm1236_vm3, %v6597_v39  ;;  %13258 = vmatmul.mubr.msk.bf16.vlgmr.msra.gmra.mrb[168].mxu1 %vm1236_vm3, %v6597_v39 }
0x244a   : > { %13263 = vmatprep.mubr.msk.bf16.mxu0 %vm14290_vm2, %v14289_v63  ;;  %13269 = vmatprep.mubr.msk.bf16.mxu1 %vm14290_vm2, %v14289_v63 }
0x251c   : > { %v6667_v29 = vpop.f32.mrb[164].mxu0  ;;  %v6748_v59 = vpop.f32.mrb[168].mxu1 }
0x251d   : > { %v6668_v44 = vadd.f32 %v11579_v14, %v6667_v29  ;;  %v6749_v22 = vadd.f32 %v11594_v10, %v6748_v59  ;;  %v13247_v47 = vpop.f32.mrb[165].mxu0  ;;  %v13259_v30 = vpop.f32.mrb[169].mxu1 }
0x251e   : > { %v6670_v38 = vpop.f32.mrb[166].mxu0  ;;  %v6751_v5 = vpop.f32.mrb[170].mxu1 }
0x251f   : > { %v6755_v46 = vpack.c.bf16 %v6668_v44, %v6668_v44  ;;  %v16128_v16 = vpack.c.bf16 %v6749_v22, %v6749_v22  ;;  %v13248_v48 = vpop.f32.mrb[167].mxu0  ;;  %v13260_v3 = vpop.f32.mrb[171].mxu1 }
0x2520   : > { %v13799_v48 = vld [vmem:[%s17337_s2 + $0x68] sm:$0xff]   ;;  %v13800_v3 = vld [vmem:[%s17337_s2 + $0x70] sm:$0xff]  }
0x2521   : > { %v6760_v11 = vsel %vm961_vm1, %v6755_v46, 0  ;;  %v6833_v36 = vsel %vm3419_vm5, %v16128_v16, 0  ;;  %6880 = vrot.lane.b32.xlu0 %v6755_v46, %s17338_s8 }
0x2522   : > { %13262 = vmatpush3.bf16.xpose.msra.mxu0 %v6760_v11  ;;  %13268 = vmatpush3.bf16.msra.mxu1 %v6833_v36 }
0x2523   : > { %13273 = vmatprep.subr.bf16.mxu0 %v14289_v63  ;;  %13279 = vmatprep.subr.bf16.mxu1 %v14289_v63 }
0x2529   : > { %13264 = vmatmul.mubr.msk.bf16.vlgmr.msra.gmra.mrb[168].mxu0 %vm961_vm1, %v16073_v53 }
0x252a   : > { %13275 = vmatprep.mubr.msk.bf16.mxu0 %vm14290_vm2, %v14289_v63 }
0x2593   : > { %v6881_v21 = vpop.permute.xlu0 %6880 }
0x2594   : > { %v6886_v34 = vsel %vm961_vm1, %v6881_v21, 0 }
0x2595   : > { %13274 = vmatpush3.bf16.xpose.msra.mxu0 %v6886_v34 }
0x2596   : > { %13285 = vmatprep.subr.bf16.mxu0 %v14289_v63 }
0x259c   : > { %13276 = vmatmul.mubr.msk.bf16.vlgmr.msra.gmra.mrb[172].mxu0 %vm961_vm1, %v6878_v45  ;;  %v13801_v45 = vld [vmem:[%s17337_s2 + $0x78] sm:$0xff]  }
0x259d   : > { %13293 = vmatprep.mubr.msk.bf16.mxu0 %vm14290_vm2, %v14289_v63 }
0x25fc   : > { %v6796_v35 = vpop.f32.mrb[168].mxu0 }
0x25fd   : > { %v6803_v51 = vmul.f32 0.17677669, %v6796_v35  ;;  %v13265_v28 = vpop.f32.mrb[169].mxu0 }
0x25fe   : > { %v6799_v4 = vpop.f32.mrb[170].mxu0 }
0x25ff   : > { %v6804_v20 = vmul.f32 0.17677669, %v6799_v4  ;;  %v13266_v58 = vpop.f32.mrb[171].mxu0  ;;  %v6805_v6 = vsel %vm3313_vm6, %v6803_v51, -inf }
0x2600   : > { %6806 = vmax.xlane.f32.xlu1 %v6805_v6 }
0x2601   : > { %v6808_v32 = vsel %vm3313_vm6, %v6804_v20, -inf }
0x2602   : > { %6809 = vmax.xlane.f32.xlu0 %v6808_v32 }
0x266f   : > { %v6922_v52 = vpop.f32.mrb[172].mxu0 }
0x2670   : > { %v6929_v62 = vmul.f32 0.17677669, %v6922_v52  ;;  %v13277_v56 = vpop.f32.mrb[173].mxu0 }
0x2671   : > { %v6925_v25 = vpop.f32.mrb[174].mxu0 }
0x2672   : > { %v6930_v9 = vmul.f32 0.17677669, %v6925_v25  ;;  %v13278_v50 = vpop.f32.mrb[175].mxu0  ;;  %v6931_v17 = vsel %vm3313_vm6, %v6929_v62, -inf }
0x2673   : > { %6932 = vmax.xlane.f32.xlu0 %v6931_v17 }
0x2674   : > { %v6934_v12 = vsel %vm3313_vm6, %v6930_v9, -inf }
0x2675   : > { %6935 = vmax.xlane.f32.xlu1 %v6934_v12 }
0x268d   : > { %v6807_v42 = vpop.xlane.xlu1 %6806 }
0x268e   : > { %v6811_v53 = vsub.f32 %v6803_v51, %v6807_v42 }
0x268f   : > { %v6810_v8 = vpop.xlane.xlu0 %6809 }
0x2690   : > { %v6813_v7 = vmul.f32 1.442695, %v6811_v53  ;;  %v6812_v13 = vsub.f32 %v6804_v20, %v6810_v8 }
0x2692   : > { %14091 = vpow2.f32 %v6813_v7  ;;  %v6815_v61 = vmul.f32 1.442695, %v6812_v13 }
0x2694   : > { %14093 = vpow2.f32 %v6815_v61 }
0x269c   : > { %v14092_v18 = vpop.eup %14091 }
0x269d   : > { %v6817_v23 = vsel %vm3313_vm6, %v14092_v18, 0.0 }
0x269e   : > { %v14094_v41 = vpop.eup %14093  ;;  %6818 = vadd.xlane.f32.xlu0 %v6817_v23 }
0x269f   : > { %v6820_v54 = vsel %vm3313_vm6, %v14094_v41, 0.0 }
0x26a0   : > { %6821 = vadd.xlane.f32.xlu1 %v6820_v54 }
0x2700   : > { %v6933_v27 = vpop.xlane.xlu0 %6932 }
0x2701   : > { %v6937_v31 = vsub.f32 %v6929_v62, %v6933_v27 }
0x2702   : > { %v6936_v0 = vpop.xlane.xlu1 %6935 }
0x2703   : > { %v6939_v55 = vmul.f32 1.442695, %v6937_v31  ;;  %v6938_v49 = vsub.f32 %v6930_v9, %v6936_v0  ;;  %v11618_v9 = vld [vmem:[%s17255_s17 + $0x8] ss:$0 sm:$0xff] }
0x2705   : > { %14095 = vpow2.f32 %v6939_v55  ;;  %v6941_v60 = vmul.f32 1.442695, %v6938_v49  ;;  %v13804_v49 = vld [vmem:[%s17339_s14 + $0x4] ss:$8 sps:$4 sm:$0xff]  }
0x2707   : > { %14097 = vpow2.f32 %v6941_v60  ;;  %v13802_v60 = vld [vmem:[%s17339_s14] ss:$8 sps:$4 sm:$0xff]  }
0x270f   : > { %v14096_v24 = vpop.eup %14095 }
0x2710   : > { %v6943_v19 = vsel %vm3313_vm6, %v14096_v24, 0.0 }
0x2711   : > { %v14098_v2 = vpop.eup %14097  ;;  %6944 = vadd.xlane.f32.xlu0 %v6943_v19  ;;  %v13805_v19 = vld [vmem:[%s17339_s14 + $0x10] ss:$8 sps:$4 sm:$0xff]  }
0x2712   : > { %v6946_v33 = vsel %vm3313_vm6, %v14098_v2, 0.0 }
0x2713   : > { %6947 = vadd.xlane.f32.xlu1 %v6946_v33  ;;  %v13808_v33 = vld [vmem:[%s17339_s14 + $0x20] ss:$8 sps:$4 sm:$0xff]  }
0x2727   : > { %6955 = vrot.lane.b32.xlu0 %v16128_v16, %s17338_s8  ;;  %v13798_v16 = vld [vmem:[%s17337_s2 + $0x60] sm:$0xff]   ;;  %s11975_s2 = sshll.u32 %s14461_s9, 8 }
0x2728   : > { %13286 = vmatpush3.bf16.msra.mxu0 %v13798_v16 }
0x2729   : > { %13287 = vmatprep.subr.bf16.mxu0 %v14289_v63 }
0x272b   : > { %v6819_v40 = vpop.xlane.xlu0 %6818 }
0x272c   : > { %14099 = vrcp.f32 %v6819_v40  ;;  %13288 = vmatpush3.bf16.msra.mxu0 %v13799_v48  ;;  %v13811_v40 = vld [vmem:[%s17339_s14 + $0x30] ss:$8 sps:$4 sm:$0xff]  }
0x272d   : > { %v6822_v15 = vpop.xlane.xlu1 %6821  ;;  %13289 = vmatprep.subr.bf16.mxu0 %v14289_v63 }
0x272e   : > { %14101 = vrcp.f32 %v6822_v15  ;;  %v13813_v15 = vld [vmem:[%s17339_s14 + $0x34] ss:$8 sps:$4 sm:$0xff]  }
0x2730   : > { %13290 = vmatpush3.bf16.msra.mxu0 %v13800_v3 }
0x2731   : > { %13291 = vmatprep.subr.bf16.mxu0 %v14289_v63 }
0x2734   : > { %13292 = vmatpush3.bf16.msra.mxu0 %v13801_v45  ;;  %v13817_v45 = vld [vmem:[%s17340_s15 + $0x8] sm:$0xff]  }
0x2736   : > { %v14100_v57 = vpop.eup %14099 }
0x2737   : > { %v6825_v39 = vmul.f32 %v14100_v57, %v14092_v18  ;;  %v14293_v57 = vmov 0  }
0x2738   : > { %v14102_v1 = vpop.eup %14101 }
0x2739   : > { %v6826_v14 = vmul.f32 %v14102_v1, %v14094_v41 }
0x273b   : > { %v6827_v10 = vpack.c.bf16 %v6826_v14, %v6825_v39 }
0x273d   : > { %13270 = vmatmul.mubr.msk.bf16.vlgmr.msra.gmra.mrb[172].mxu1 %vm3313_vm6, %v6827_v10 }
0x273e   : > { %13281 = vmatprep.mubr.msk.bf16.mxu1 %vm14290_vm2, %v14289_v63 }
0x279e   : > { %v6945_v29 = vpop.xlane.xlu0 %6944 }
0x279f   : > { %14103 = vrcp.f32 %v6945_v29 }
0x27a0   : > { %v6948_v59 = vpop.xlane.xlu1 %6947 }
0x27a1   : > { %14105 = vrcp.f32 %v6948_v59 }
0x27a2   : > { %v6956_v44 = vpop.permute.xlu0 %6955 }
0x27a3   : > { %v6961_v22 = vsel %vm3419_vm5, %v6956_v44, 0 }
0x27a4   : > { %13280 = vmatpush3.bf16.msra.mxu1 %v6961_v22  ;;  %v11621_v22 = vld [vmem:[%s17255_s17 + $0x9] ss:$0 sm:$0xff] }
0x27a5   : > { %7246 = vmatprep.subr.bf16.mxu1 %v13804_v49 }
0x27a9   : > { %v14104_v47 = vpop.eup %14103 }
0x27aa   : > { %v6951_v38 = vmul.f32 %v14104_v47, %v14096_v24  ;;  %v13807_v24 = vld [vmem:[%s17339_s14 + $0x14] ss:$8 sps:$4 sm:$0xff]  }
0x27ab   : > { %v14106_v30 = vpop.eup %14105 }
0x27ac   : > { %v6952_v5 = vmul.f32 %v14106_v30, %v14098_v2  ;;  %v13810_v2 = vld [vmem:[%s17339_s14 + $0x24] ss:$8 sps:$4 sm:$0xff]  }
0x27ae   : > { %v6953_v46 = vpack.c.bf16 %v6952_v5, %v6951_v38 }
0x27b0   : > { %13282 = vmatmul.mubr.msk.bf16.vlgmr.msra.gmra.mrb[176].mxu1 %vm3313_vm6, %v6953_v46  ;;  %v11622_v46 = vld [vmem:[%s17255_s17 + $0xa] ss:$0 sm:$0xff] }
0x27b1   : > { %7247 = vmatpush1.bf16.msra.mxu1 %v13802_v60  ;;  %7278 = vmatprep.mubr.bf16.mxu1 %v14293_v57 }
0x27b2   : > { %7248 = vmatprep.subr.bf16.mxu1 %v13807_v24 }
0x27b5   : > { %7249 = vmatpush1.bf16.msra.mxu1 %v13805_v19 }
0x27b6   : > { %7250 = vmatprep.subr.bf16.mxu1 %v13810_v2 }
0x27b9   : > { %7251 = vmatpush1.bf16.msra.mxu1 %v13808_v33 }
0x27ba   : > { %7252 = vmatprep.subr.bf16.mxu1 %v13813_v15 }
0x27bd   : > { %7253 = vmatpush1.bf16.msra.mxu1 %v13811_v40 }
0x27be   : > { %13297 = vmatprep.subr.bf16.mxu1 %v14289_v63 }
0x2810   : > { %v6869_v11 = vpop.f32.mrb[172].mxu1 }
0x2811   : > { %v13271_v36 = vpop.f32.mrb[173].mxu1 }
0x2812   : > { %v6872_v21 = vpop.f32.mrb[174].mxu1  ;;  %v13814_v36 = vld [vmem:[%s17340_s15 + $0x40] sm:$0xff]  }
0x2813   : > { %v13272_v34 = vpop.f32.mrb[175].mxu1  ;;  %12317 = vmatprep.subr.bf16.mxu0 %v13814_v36 }
0x2814   : > { %v13816_v34 = vld [vmem:[%s17340_s15 + $0x48] sm:$0xff]  }
0x2883   : > { %v6997_v35 = vpop.f32.mrb[176].mxu1 }
0x2884   : > { %v13283_v51 = vpop.f32.mrb[177].mxu1 }
0x2885   : > { %v7000_v28 = vpop.f32.mrb[178].mxu1  ;;  %v13819_v51 = vld [vmem:[%s17340_s15 + $0x10] sm:$0xff]  }
0x2886   : > { %v13664_v4 = vpack.i.bf16 %v7000_v28, %v6997_v35  ;;  %v13284_v20 = vpop.f32.mrb[179].mxu1  ;;  %v13818_v35 = vld [vmem:[%s17340_s15 + $0x50] sm:$0xff]   ;;  %v13820_v28 = vld [vmem:[%s17340_s15 + $0x58] sm:$0xff]  }
0x2887   : > { %v13822_v20 = vld [vmem:[%s17340_s15 + $0x60] sm:$0xff]  }
0x2888   : > { %13665 = vrot.lane.b32.xlu1 %v13664_v4, %s17294_s10  ;;  %v13821_v4 = vld [vmem:[%s17340_s15 + $0x18] sm:$0xff]   ;;  %s10933_s10 = sshll.u32 %s16425_s5, 4  ;;  %s17099_s10 = int_to_ptr.vmem [resolvable:$true] %s10933_s10 }
0x28fa   : > { %v13666_v58 = vpop.permute.xlu1 %13665 }
0x28fb   : > { %v13668_v6 = vunpack.i.h.bf16 %v13666_v58  ;;  %v13667_v32 = vunpack.i.l.bf16 %v13666_v58  ;;  %v13823_v58 = vld [vmem:[%s17340_s15 + $0x20] sm:$0xff]  }
0x28fd   : > { %v7013_v52 = vsel %vm961_vm1, %v6872_v21, %v13668_v6  ;;  %v7012_v62 = vsel %vm961_vm1, %v6869_v11, %v13667_v32  ;;  %v13815_v21 = vld [vmem:[%s17340_s15] sm:$0xff]   ;;  %v13824_v6 = vld [vmem:[%s17340_s15 + $0x68] sm:$0xff]  }
0x28fe   : > { %v7023_v56 = vpack.c.bf16 %v7013_v52, %v7012_v62  ;;  %v13825_v32 = vld [vmem:[%s17340_s15 + $0x28] sm:$0xff]   ;;  %v13826_v52 = vld [vmem:[%s17340_s15 + $0x70] sm:$0xff]  }
0x28ff   : > { %v13827_v62 = vld [vmem:[%s17340_s15 + $0x30] sm:$0xff]  }
0x2900   : > { %13294 = vmatmul.mubr.msk.bf16.vlgmr.msra.gmra.mrb[176].mxu0 %vm1236_vm3, %v7023_v56  ;;  %v13828_v56 = vld [vmem:[%s17340_s15 + $0x78] sm:$0xff]  }
0x2901   : > { %12318 = vmatpush3.bf16.msra.mxu0 %v13815_v21 }
0x2902   : > { %12319 = vmatprep.subr.bf16.mxu0 %v13816_v34 }
0x2905   : > { %12320 = vmatpush3.bf16.msra.mxu0 %v13817_v45 }
0x2906   : > { %12321 = vmatprep.subr.bf16.mxu0 %v13818_v35 }
0x2909   : > { %12322 = vmatpush3.bf16.msra.mxu0 %v13819_v51 }
0x290a   : > { %12323 = vmatprep.subr.bf16.mxu0 %v13820_v28 }
0x290d   : > { %12324 = vmatpush3.bf16.msra.mxu0 %v13821_v4 }
0x290e   : > { %12325 = vmatprep.subr.bf16.mxu0 %v13822_v20 }
0x2911   : > { %12326 = vmatpush3.bf16.msra.mxu0 %v13823_v58 }
0x2912   : > { %12327 = vmatprep.subr.bf16.mxu0 %v13824_v6 }
0x2915   : > { %12328 = vmatpush3.bf16.msra.mxu0 %v13825_v32 }
0x2916   : > { %12329 = vmatprep.subr.bf16.mxu0 %v13826_v52 }
0x2919   : > { %12330 = vmatpush3.bf16.msra.mxu0 %v13827_v62 }
0x291a   : > { %12331 = vmatprep.subr.bf16.mxu0 %v13828_v56 }
0x29d3   : > { %v7085_v25 = vpop.f32.mrb[176].mxu0 }
0x29d4   : > { %v7092_v50 = vadd.f32 %v7085_v25, %v15918_v43  ;;  %v13295_v17 = vpop.f32.mrb[177].mxu0  ;;  %v13829_v25 = vld [vmem:[%s17340_s15 + $0x38] sm:$0xff]  }
0x29d5   : > { %v7088_v12 = vpop.f32.mrb[178].mxu0  ;;  %12332 = vmatpush3.bf16.msra.mxu0 %v13829_v25 }
0x29d6   : > { %v16183_v42 = vadd.f32 %v11618_v9, %v7092_v50  ;;  %v7093_v53 = vadd.f32 %v7088_v12, %v15922_v37  ;;  %v13296_v8 = vpop.f32.mrb[179].mxu0  ;;  %13321 = vmatprep.subr.bf16.mxu0 %v14289_v63 }
0x29d8   : > { %v16186_v7 = vadd.f32 %v11618_v9, %v7093_v53  ;;  %v7108_v13 = vsel %vm1236_vm3, %v16183_v42, 0.0  ;;  %v7158_v9 = vld [vmem:[%s17339_s14 + $0x40] sm:$0x11]  ;;  %s17101_s14 = scalar_lea.sflag [#allocation5], %s10898_s28 }
0x29d9   : > { %7109 = vadd.xlane.f32.xlu1 %v7108_v13  ;;  %v7193_v50 = vunpack.c.l.bf16 %v7158_v9  ;;  %v7194_v17 = vunpack.c.h.bf16 %v7158_v9 }
0x29da   : > { %v7111_v61 = vsel %vm1236_vm3, %v16186_v7, 0.0 }
0x29db   : > { %7112 = vadd.xlane.f32.xlu0 %v7111_v61  ;;  %v7198_v12 = vrot.slane %v7193_v50, %v15323_v26  ;;  %v7202_v53 = vrot.slane %v7194_v17, %v15323_v26 }
0x2a66   : > { %v7110_v18 = vpop.xlane.xlu1 %7109 }
0x2a67   : > { %v7114_v23 = vmul.f32 0.015625, %v7110_v18 }
0x2a68   : > { %v7113_v43 = vpop.xlane.xlu0 %7112 }
0x2a69   : > { %v7116_v41 = vsub.f32 %v16183_v42, %v7114_v23  ;;  %v7115_v54 = vmul.f32 0.015625, %v7113_v43 }
0x2a6b   : > { %v7117_v27 = vsub.f32 %v16186_v7, %v7115_v54  ;;  %v7118_v37 = vmul.f32 %v7116_v41, %v7116_v41 }
0x2a6d   : > { %v7120_v31 = vsel %vm1236_vm3, %v7118_v37, 0.0  ;;  %v7119_v0 = vmul.f32 %v7117_v27, %v7117_v27 }
0x2a6e   : > { %7121 = vadd.xlane.f32.xlu0 %v7120_v31 }
0x2a6f   : > { %v7123_v55 = vsel %vm1236_vm3, %v7119_v0, 0.0 }
0x2a70   : > { %7124 = vadd.xlane.f32.xlu1 %v7123_v55 }
0x2afb   : > { %v7122_v1 = vpop.xlane.xlu0 %7121 }
0x2afc   : > { %v7126_v39 = vmul.f32 0.015625, %v7122_v1 }
0x2afd   : > { %v7125_v14 = vpop.xlane.xlu1 %7124 }
0x2afe   : > { %v7128_v10 = vadd.f32 1e-06, %v7126_v39  ;;  %v7127_v29 = vmul.f32 0.015625, %v7125_v14 }
0x2b00   : > { %14107 = vrsqrt.f32 %v7128_v10  ;;  %v7129_v59 = vadd.f32 1e-06, %v7127_v29 }
0x2b02   : > { %14109 = vrsqrt.f32 %v7129_v59 }
0x2b0a   : > { %v14108_v44 = vpop.eup %14107 }
0x2b0b   : > { %v7132_v47 = vmul.f32 %v14108_v44, %v7116_v41 }
0x2b0c   : > { %v14110_v30 = vpop.eup %14109 }
0x2b0d   : > { %v7140_v38 = vmul.f32 %v11621_v22, %v7132_v47  ;;  %v7133_v5 = vmul.f32 %v14110_v30, %v7117_v27 }
0x2b0f   : > { %v7141_v16 = vmul.f32 %v11621_v22, %v7133_v5  ;;  %v7148_v48 = vadd.f32 %v11622_v46, %v7140_v38 }
0x2b11   : > { %v7149_v3 = vadd.f32 %v11622_v46, %v7141_v16 }
0x2b13   : > { %v7192_v11 = vpack.c.bf16 %v7149_v3, %v7148_v48 }
0x2b15   : > { %11631 = vmatmul.mubr.msk.bf16.vlgmr.msra.gmra.mrb[180].mxu1 %vm1236_vm3, %v7192_v11 }
0x2b16   : > { %13299 = vmatprep.mubr.msk.bf16.mxu1 %vm14290_vm2, %v14289_v63 }
0x2be8   : > { %v7280_v8 = vpop.f32.mrb[180].mxu1 }
0x2be9   : > { %v16285_v13 = vadd.f32 %v7280_v8, %v7198_v12  ;;  %v7282_v61 = vpop.f32.mrb[181].mxu1 }
0x2bea   : > { %v16287_v18 = vadd.f32 %v7282_v61, %v7202_v53  ;;  %v7284_v23 = vpop.f32.mrb[182].mxu1 }
0x2beb   : > { %v16290_v43 = vmul.f32 0.70710677, %v16285_v13  ;;  %v16292_v41 = vadd.f32 %v7284_v23, %v7198_v12  ;;  %v7286_v54 = vpop.f32.mrb[183].mxu1 }
0x2bec   : > { %v16295_v27 = vmul.f32 0.70710677, %v16287_v18  ;;  %v16297_v37 = vadd.f32 %v7286_v54, %v7202_v53 }
0x2bed   : > { %v7293_v31 = vand.u32 2147483647, %v16290_v43  ;;  %v16301_v0 = vmul.f32 0.70710677, %v16292_v41  ;;  %vm7369_vm4 = vcmp.ge.f32.partialorder %v16290_v43, 0.0 }
0x2bee   : > { %v7294_v55 = vand.u32 2147483647, %v16295_v27  ;;  %v16305_v49 = vmul.f32 0.70710677, %v16297_v37  ;;  %vm7370_vm7 = vcmp.ge.f32.partialorder %v16295_v27, 0.0 }
0x2bef   : > { %v7297_v60 = vmul.f32 0.3275911, %v7293_v31  ;;  %v7295_v24 = vand.u32 2147483647, %v16301_v0  ;;  %v7345_v10 = vsub.f32 0.0, %v7293_v31  ;;  %vm7371_vm8 = vcmp.ge.f32.partialorder %v16301_v0, 0.0 }
0x2bf0   : > { %v7298_v19 = vmul.f32 0.3275911, %v7294_v55  ;;  %v7296_v2 = vand.u32 2147483647, %v16305_v49  ;;  %v7346_v29 = vsub.f32 0.0, %v7294_v55  ;;  %vm7372_vm9 = vcmp.ge.f32.partialorder %v16305_v49, 0.0 }
0x2bf1   : > { %v7301_v33 = vadd.f32 1.0, %v7297_v60  ;;  %v7299_v40 = vmul.f32 0.3275911, %v7295_v24  ;;  %v7349_v44 = vmul.f32 %v7345_v10, %v7293_v31  ;;  %v7347_v22 = vsub.f32 0.0, %v7295_v24 }
0x2bf2   : > { %v7302_v15 = vadd.f32 1.0, %v7298_v19  ;;  %v7300_v1 = vmul.f32 0.3275911, %v7296_v2  ;;  %v7350_v38 = vmul.f32 %v7346_v29, %v7294_v55  ;;  %v7348_v46 = vsub.f32 0.0, %v7296_v2 }
0x2bf3   : > { %14111 = vrcp.f32 %v7301_v33  ;;  %v7303_v39 = vadd.f32 1.0, %v7299_v40  ;;  %v7353_v3 = vmul.f32 1.442695, %v7349_v44  ;;  %v7351_v36 = vmul.f32 %v7347_v22, %v7295_v24 }
0x2bf4   : > { %14113 = vrcp.f32 %v7302_v15  ;;  %v7304_v14 = vadd.f32 1.0, %v7300_v1  ;;  %v7355_v34 = vmul.f32 1.442695, %v7350_v38  ;;  %v7352_v28 = vmul.f32 %v7348_v46, %v7296_v2 }
0x2bf5   : > { %14115 = vrcp.f32 %v7303_v39  ;;  %v7357_v32 = vmul.f32 1.442695, %v7351_v36 }
0x2bf6   : > { %14117 = vrcp.f32 %v7304_v14  ;;  %v7359_v9 = vmul.f32 1.442695, %v7352_v28 }
0x2bf7   : > { %14119 = vpow2.f32 %v7353_v3 }
0x2bf8   : > { %14121 = vpow2.f32 %v7355_v34 }
0x2bf9   : > { %14123 = vpow2.f32 %v7357_v32 }
0x2bfa   : > { %14125 = vpow2.f32 %v7359_v9 }
0x2bfd   : > { %v14112_v59 = vpop.eup %14111 }
0x2bfe   : > { %v14114_v47 = vpop.eup %14113  ;;  %v7309_v30 = vmul.f32 1.0614054, %v14112_v59 }
0x2bff   : > { %v7310_v5 = vmul.f32 1.0614054, %v14114_v47  ;;  %v14116_v48 = vpop.eup %14115 }
0x2c00   : > { %v7313_v16 = vadd.f32 -1.4531521, %v7309_v30  ;;  %v7311_v45 = vmul.f32 1.0614054, %v14116_v48  ;;  %v14118_v35 = vpop.eup %14117 }
0x2c01   : > { %v7314_v11 = vadd.f32 -1.4531521, %v7310_v5  ;;  %v7312_v58 = vmul.f32 1.0614054, %v14118_v35  ;;  %v14120_v40 = vpop.eup %14119 }
0x2c02   : > { %v7317_v21 = vmul.f32 %v14112_v59, %v7313_v16  ;;  %v7315_v20 = vadd.f32 -1.4531521, %v7311_v45  ;;  %v14122_v1 = vpop.eup %14121 }
0x2c03   : > { %v7318_v51 = vmul.f32 %v14114_v47, %v7314_v11  ;;  %v7316_v56 = vadd.f32 -1.4531521, %v7312_v58  ;;  %v14124_v38 = vpop.eup %14123  ;;  %v7383_v58 = vmul.f32 0.5, %v16292_v41  ;;  %v7191_v41 = vld [vmem:[%s17340_s15 + $0x80] sm:$0x1] }
0x2c04   : > { %v7321_v4 = vadd.f32 1.4214138, %v7317_v21  ;;  %v7319_v62 = vmul.f32 %v14116_v48, %v7315_v20  ;;  %v14126_v11 = vpop.eup %14125  ;;  %v7534_v49 = vunpack.c.l.bf16 %v7191_v41  ;;  %v11675_v41 = vld [vmem:[%s17255_s17 + $0x10] ss:$0 sm:$0xff] }
0x2c05   : > { %v7322_v6 = vadd.f32 1.4214138, %v7318_v51  ;;  %v7320_v12 = vmul.f32 %v14118_v35, %v7316_v56 }
0x2c06   : > { %v7325_v52 = vmul.f32 %v14112_v59, %v7321_v4  ;;  %v7323_v17 = vadd.f32 1.4214138, %v7319_v62  ;;  %v7384_v62 = vmul.f32 0.5, %v16297_v37 }
0x2c07   : > { %v7326_v25 = vmul.f32 %v14114_v47, %v7322_v6  ;;  %v7324_v23 = vadd.f32 1.4214138, %v7320_v12  ;;  %v7382_v6 = vmul.f32 0.5, %v16287_v18 }
0x2c08   : > { %v7329_v50 = vadd.f32 -0.28449672, %v7325_v52  ;;  %v7327_v61 = vmul.f32 %v14116_v48, %v7323_v17 }
0x2c09   : > { %v7330_v53 = vadd.f32 -0.28449672, %v7326_v25  ;;  %v7328_v60 = vmul.f32 %v14118_v35, %v7324_v23 }
0x2c0a   : > { %v7333_v8 = vmul.f32 %v14112_v59, %v7329_v50  ;;  %v7331_v55 = vadd.f32 -0.28449672, %v7327_v61 }
0x2c0b   : > { %v7334_v54 = vmul.f32 %v14114_v47, %v7330_v53  ;;  %v7332_v33 = vadd.f32 -0.28449672, %v7328_v60  ;;  %v13830_v60 = vld [vmem:[%s17254_s16] sm:$0xff]  }
0x2c0c   : > { %v7337_v31 = vadd.f32 0.2548296, %v7333_v8  ;;  %v7335_v2 = vmul.f32 %v14116_v48, %v7331_v55  ;;  %v7538_v8 = vrot.slane %v7534_v49, %v15323_v26 }
0x2c0d   : > { %v7338_v24 = vadd.f32 0.2548296, %v7334_v54  ;;  %v7336_v10 = vmul.f32 %v14118_v35, %v7332_v33  ;;  %v13835_v33 = vld [vmem:[%s17254_s16 + $0x18] sm:$0xff]  }
0x2c0e   : > { %v7341_v19 = vmul.f32 %v14112_v59, %v7337_v31  ;;  %v7339_v14 = vadd.f32 0.2548296, %v7335_v2  ;;  %v13838_v2 = vld [vmem:[%s17254_s16 + $0x40] sm:$0xff]  }
0x2c0f   : > { %v7342_v15 = vmul.f32 %v14114_v47, %v7338_v24  ;;  %v7340_v30 = vadd.f32 0.2548296, %v7336_v10  ;;  %v13833_v24 = vld [vmem:[%s17254_s16 + $0x30] sm:$0xff]  }
0x2c10   : > { %v7361_v39 = vmul.f32 %v14120_v40, %v7341_v19  ;;  %v7343_v22 = vmul.f32 %v14116_v48, %v7339_v14  ;;  %v7381_v48 = vmul.f32 0.5, %v16285_v13  ;;  %v13834_v19 = vld [vmem:[%s17254_s16 + $0x10] sm:$0xff]   ;;  %v13836_v40 = vld [vmem:[%s17254_s16 + $0x28] sm:$0xff]  }
0x2c11   : > { %v7362_v29 = vmul.f32 %v14122_v1, %v7342_v15  ;;  %v7344_v3 = vmul.f32 %v14118_v35, %v7340_v30  ;;  %v13837_v15 = vld [vmem:[%s17254_s16 + $0x38] sm:$0xff]  }
0x2c12   : > { %v7365_v44 = vsub.f32 1.0, %v7361_v39  ;;  %v7363_v16 = vmul.f32 %v14124_v38, %v7343_v22  ;;  %v11651_v38 = vld [vmem:[%s17255_s17 + $0xc] ss:$0 sm:$0xff] }
0x2c13   : > { %v7366_v5 = vsub.f32 1.0, %v7362_v29  ;;  %v7364_v47 = vmul.f32 %v14126_v11, %v7344_v3 }
0x2c14   : > { %v7373_v46 = vsub.f32 0.0, %v7365_v44  ;;  %v7367_v21 = vsub.f32 1.0, %v7363_v16 }
0x2c15   : > { %v7374_v59 = vsub.f32 0.0, %v7366_v5  ;;  %v7368_v51 = vsub.f32 1.0, %v7364_v47 }
0x2c16   : > { %v7377_v36 = vsel %vm7369_vm4, %v7365_v44, %v7373_v46  ;;  %v7375_v45 = vsub.f32 0.0, %v7367_v21 }
0x2c17   : > { %v7378_v34 = vsel %vm7370_vm7, %v7366_v5, %v7374_v59  ;;  %v7385_v28 = vadd.f32 1.0, %v7377_v36  ;;  %v7376_v20 = vsub.f32 0.0, %v7368_v51  ;;  %v11657_v5 = vld [vmem:[%s17255_s17 + $0xd] ss:$0 sm:$0xff] }
0x2c18   : > { %v7379_v4 = vsel %vm7371_vm8, %v7367_v21, %v7375_v45  ;;  %v7386_v35 = vadd.f32 1.0, %v7378_v34 }
0x2c19   : > { %v7387_v43 = vadd.f32 1.0, %v7379_v4  ;;  %v7380_v32 = vsel %vm7372_vm9, %v7368_v51, %v7376_v20  ;;  %v7389_v27 = vmul.f32 %v7385_v28, %v7381_v48  ;;  %v11663_v20 = vld [vmem:[%s17255_s17 + $0xe] ss:$0 sm:$0xff] }
0x2c1a   : > { %v7388_v56 = vadd.f32 1.0, %v7380_v32  ;;  %v7390_v25 = vmul.f32 %v7386_v35, %v7382_v6 }
0x2c1b   : > { %v7391_v52 = vmul.f32 %v7387_v43, %v7383_v58 }
0x2c1c   : > { %v7392_v9 = vmul.f32 %v7388_v56, %v7384_v62 }
0x2c1d   : > { %v7393_v0 = vpack.c.bf16 %v7391_v52, %v7389_v27 }
0x2c1e   : > { %v7394_v13 = vpack.c.bf16 %v7392_v9, %v7390_v25 }
0x2c20   : > { %7523 = vmatprep.mubr.bf16.mxu0 %v7394_v13  ;;  %v11669_v13 = vld [vmem:[%s17255_s17 + $0xf] ss:$0 sm:$0xff] }
0x2c21   : > { %7524 = vmatmul.mubr.bf16.vlgmr.msra.gmra.mrb[180].mxu0 %v7393_v0 }
0x2c22   : > { %13323 = vmatprep.mubr.msk.bf16.mxu0 %vm14290_vm2, %v14289_v63 }
0x2cf4   : > { %v12333_v18 = vpop.f32.mrb[180].mxu0 }
0x2cf5   : > { %v12334_v50 = vpop.f32.mrb[181].mxu0 }
0x2cf6   : > { %v12335_v17 = vadd.f32 %v12334_v50, %v12333_v18  ;;  %v12336_v12 = vpop.f32.mrb[182].mxu0 }
0x2cf7   : > { %v12337_v37 = vpop.f32.mrb[183].mxu0 }
0x2cf8   : > { %v7532_v53 = vadd.f32 %v12335_v17, %v16183_v42  ;;  %v12338_v61 = vadd.f32 %v12337_v37, %v12336_v12  ;;  %v13831_v42 = vld [vmem:[%s17254_s16 + $0x20] sm:$0xff]  }
0x2cfa   : > { %v7533_v23 = vadd.f32 %v12338_v61, %v16186_v7  ;;  %v16325_v54 = vadd.f32 %v7538_v8, %v7532_v53  ;;  %v13832_v7 = vld [vmem:[%s17254_s16 + $0x8] sm:$0xff]  }
0x2cfc   : > { %v16327_v31 = vadd.f32 %v7538_v8, %v7533_v23 }
0x2cfe   : > { %v7543_v55 = vpack.c.bf16 %v16327_v31, %v16325_v54 }
0x2d00   : > { %13298 = vmatpush3.bf16.msra.mxu1 %v7543_v55  ;;  %13322 = vmatpush3.bf16.msra.mxu0 %v7543_v55 }
0x2d01   : > { %13303 = vmatprep.subr.bf16.mxu1 %v14289_v63  ;;  %13333 = vmatprep.subr.bf16.mxu0 %v14289_v63 }
0x2d03   : > { %13300 = vmatmul.mubr.msk.bf16.vlgmr.msra.gmra.mrb[184].mxu1 %vm5975_vm15, %v13830_v60  ;;  %13324 = vmatmul.mubr.msk.bf16.vlgmr.msra.gmra.mrb[184].mxu0 %vm5975_vm15, %v13831_v42  ;;  %v11681_v60 = vld [vmem:[%s17255_s17 + $0x11] ss:$0 sm:$0xff]  ;;  %v11687_v42 = vld [vmem:[%s17255_s17 + $0x12] ss:$0 sm:$0xff] }
0x2d04   : > { %13304 = vmatpush3.bf16.msra.mxu1 %v7543_v55  ;;  %13334 = vmatpush3.bf16.msra.mxu0 %v7543_v55 }
0x2d05   : > { %13305 = vmatprep.mubr.msk.bf16.mxu1 %vm14290_vm2, %v14289_v63  ;;  %13309 = vmatprep.subr.bf16.mxu1 %v14289_v63 }
0x2d06   : > { %13335 = vmatprep.mubr.msk.bf16.mxu0 %vm14290_vm2, %v14289_v63  ;;  %13345 = vmatprep.subr.bf16.mxu0 %v14289_v63 }
0x2d0b   : > { %13306 = vmatmul.mubr.msk.bf16.vlgmr.msra.gmra.mrb[188].mxu1 %vm5975_vm15, %v13832_v7  ;;  %13336 = vmatmul.mubr.msk.bf16.vlgmr.msra.gmra.mrb[188].mxu0 %vm5975_vm15, %v13833_v24 }
0x2d0c   : > { %13310 = vmatpush3.bf16.msra.mxu1 %v7543_v55  ;;  %13346 = vmatpush3.bf16.msra.mxu0 %v7543_v55 }
0x2d0d   : > { %13311 = vmatprep.mubr.msk.bf16.mxu1 %vm14290_vm2, %v14289_v63  ;;  %13315 = vmatprep.subr.bf16.mxu1 %v14289_v63 }
0x2d0e   : > { %13347 = vmatprep.mubr.msk.bf16.mxu0 %vm14290_vm2, %v14289_v63  ;;  %13357 = vmatprep.subr.bf16.mxu0 %v14289_v63 }
0x2d13   : > { %13312 = vmatmul.mubr.msk.bf16.vlgmr.msra.gmra.mrb[192].mxu1 %vm5975_vm15, %v13834_v19  ;;  %13348 = vmatmul.mubr.msk.bf16.vlgmr.msra.gmra.mrb[192].mxu0 %vm5975_vm15, %v13838_v2 }
0x2d14   : > { %13316 = vmatpush3.bf16.msra.mxu1 %v7543_v55  ;;  %13317 = vmatprep.mubr.msk.bf16.mxu1 %vm14290_vm2, %v14289_v63 }
0x2d15   : > { %13327 = vmatprep.subr.bf16.mxu1 %v14289_v63  ;;  %13359 = vmatprep.mubr.msk.bf16.mxu0 %vm14290_vm2, %v14289_v63 }
0x2d1b   : > { %13318 = vmatmul.mubr.msk.bf16.vlgmr.msra.gmra.mrb[196].mxu1 %vm5975_vm15, %v13835_v33 }
0x2d1c   : > { %13328 = vmatpush3.bf16.msra.mxu1 %v7543_v55  ;;  %13329 = vmatprep.mubr.msk.bf16.mxu1 %vm14290_vm2, %v14289_v63 }
0x2d1d   : > { %13339 = vmatprep.subr.bf16.mxu1 %v14289_v63 }
0x2d23   : > { %13330 = vmatmul.mubr.msk.bf16.vlgmr.msra.gmra.mrb[200].mxu1 %vm5975_vm15, %v13836_v40 }
0x2d24   : > { %13340 = vmatpush3.bf16.msra.mxu1 %v7543_v55  ;;  %13341 = vmatprep.mubr.msk.bf16.mxu1 %vm14290_vm2, %v14289_v63 }
0x2d25   : > { %13351 = vmatprep.subr.bf16.mxu1 %v14289_v63 }
0x2d2b   : > { %13342 = vmatmul.mubr.msk.bf16.vlgmr.msra.gmra.mrb[204].mxu1 %vm5975_vm15, %v13837_v15 }
0x2d2c   : > { %13353 = vmatprep.mubr.msk.bf16.mxu1 %vm14290_vm2, %v14289_v63 }
0x2dd6   : > { %v7586_v1 = vpop.f32.mrb[184].mxu1  ;;  %v7840_v39 = vpop.f32.mrb[184].mxu0 }
0x2dd7   : > { %v13301_v14 = vpop.f32.mrb[185].mxu1  ;;  %v13325_v10 = vpop.f32.mrb[185].mxu0  ;;  %v7601_v3 = vmul.f32 %v11651_v38, %v7586_v1  ;;  %v7855_v17 = vmul.f32 %v11675_v41, %v7840_v39 }
0x2dd8   : > { %v7589_v29 = vpop.f32.mrb[186].mxu1  ;;  %v7843_v44 = vpop.f32.mrb[186].mxu0 }
0x2dd9   : > { %v13302_v22 = vpop.f32.mrb[187].mxu1  ;;  %v13326_v30 = vpop.f32.mrb[187].mxu0  ;;  %v7602_v34 = vmul.f32 %v11651_v38, %v7589_v29  ;;  %v7856_v55 = vmul.f32 %v11675_v41, %v7843_v44  ;;  %v11693_v44 = vld [vmem:[%s17255_s17 + $0x13] ss:$0 sm:$0xff] }
0x2dda   : > { %v11699_v22 = vld [vmem:[%s17255_s17 + $0x14] ss:$0 sm:$0xff] }
0x2dde   : > { %v7648_v46 = vpop.f32.mrb[188].mxu1  ;;  %v7968_v16 = vpop.f32.mrb[188].mxu0 }
0x2ddf   : > { %v7663_v11 = vmul.f32 %v11657_v5, %v7648_v46  ;;  %v13307_v59 = vpop.f32.mrb[189].mxu1  ;;  %v13337_v36 = vpop.f32.mrb[189].mxu0  ;;  %v7983_v33 = vmul.f32 %v11687_v42, %v7968_v16 }
0x2de0   : > { %v7651_v21 = vpop.f32.mrb[190].mxu1  ;;  %v7971_v47 = vpop.f32.mrb[190].mxu0 }
0x2de1   : > { %v7665_v45 = vadd.f32 %v7663_v11, %v7601_v3  ;;  %v7664_v51 = vmul.f32 %v11657_v5, %v7651_v21  ;;  %v13308_v28 = vpop.f32.mrb[191].mxu1  ;;  %v13338_v48 = vpop.f32.mrb[191].mxu0  ;;  %v7984_v29 = vmul.f32 %v11687_v42, %v7971_v47  ;;  %v11701_v21 = vld [vmem:[%s17255_s17 + $0xb] ss:$0 sm:$0xff] }
0x2de2   : > { %v13852_v42 = vld [vmem:[%s17257_s19 + $0x68] sm:$0xff]  }
0x2de3   : > { %v7666_v4 = vadd.f32 %v7664_v51, %v7602_v34 }
0x2de6   : > { %v7712_v35 = vpop.f32.mrb[192].mxu1  ;;  %v8096_v58 = vpop.f32.mrb[192].mxu0 }
0x2de7   : > { %v7727_v43 = vmul.f32 %v11663_v20, %v7712_v35  ;;  %v13313_v6 = vpop.f32.mrb[193].mxu1  ;;  %v13349_v32 = vpop.f32.mrb[193].mxu0  ;;  %v8111_v16 = vmul.f32 %v11699_v22, %v8096_v58  ;;  %v11703_v58 = vld [vmem:[%s17256_s18 + $0x2] sm:$0x3] }
0x2de8   : > { %v7715_v27 = vpop.f32.mrb[194].mxu1  ;;  %v8099_v52 = vpop.f32.mrb[194].mxu0  ;;  %v13839_v6 = vld [vmem:[%s17257_s19 + $0x20] sm:$0xff]   ;;  %v13843_v32 = vld [vmem:[%s17257_s19 + $0x8] sm:$0xff]  }
0x2de9   : > { %v7729_v62 = vadd.f32 %v7727_v43, %v7665_v45  ;;  %v7728_v56 = vmul.f32 %v11663_v20, %v7715_v27  ;;  %v13314_v25 = vpop.f32.mrb[195].mxu1  ;;  %v13350_v0 = vpop.f32.mrb[195].mxu0  ;;  %v8112_v45 = vmul.f32 %v11699_v22, %v8099_v52  ;;  %v8129_v43 = vld [vmem:[%s17256_s18] sm:$0x3]  ;;  %v13842_v27 = vld [vmem:[%s17257_s19 + $0x30] sm:$0xff]   ;;  %v13844_v52 = vld [vmem:[%s17257_s19 + $0x38] sm:$0xff]  }
0x2deb   : > { %v7730_v9 = vadd.f32 %v7728_v56, %v7666_v4  ;;  %v13846_v56 = vld [vmem:[%s17257_s19 + $0x18] sm:$0xff]  }
0x2dee   : > { %v7776_v18 = vpop.f32.mrb[196].mxu1 }
0x2def   : > { %v7791_v49 = vmul.f32 %v11669_v13, %v7776_v18  ;;  %v13319_v50 = vpop.f32.mrb[197].mxu1 }
0x2df0   : > { %v7779_v12 = vpop.f32.mrb[198].mxu1 }
0x2df1   : > { %v7793_v37 = vadd.f32 %v7791_v49, %v7729_v62  ;;  %v7792_v53 = vmul.f32 %v11669_v13, %v7779_v12  ;;  %v13320_v8 = vpop.f32.mrb[199].mxu1  ;;  %v13845_v62 = vld [vmem:[%s17257_s19 + $0x10] sm:$0xff]   ;;  %v13847_v49 = vld [vmem:[%s17257_s19 + $0x40] sm:$0xff]  }
0x2df2   : > { %v11723_v8 = vld [vmem:[%s17256_s18 + $0x4] sm:$0x3] }
0x2df3   : > { %v7794_v61 = vadd.f32 %v7792_v53, %v7730_v9  ;;  %v7857_v23 = vadd.f32 %v7855_v17, %v7793_v37  ;;  %v13848_v53 = vld [vmem:[%s17257_s19 + $0x48] sm:$0xff]  }
0x2df5   : > { %v7858_v7 = vadd.f32 %v7856_v55, %v7794_v61  ;;  %v11738_v61 = vld [vmem:[%s17256_s18 + $0x6] sm:$0x3] }
0x2df6   : > { %v7904_v24 = vpop.f32.mrb[200].mxu1  ;;  %v13850_v55 = vld [vmem:[%s17257_s19 + $0x60] sm:$0xff]  }
0x2df7   : > { %v7919_v19 = vmul.f32 %v11681_v60, %v7904_v24  ;;  %v13331_v2 = vpop.f32.mrb[201].mxu1  ;;  %v13854_v24 = vld [vmem:[%s17257_s19 + $0x78] sm:$0xff]  }
0x2df8   : > { %v7907_v40 = vpop.f32.mrb[202].mxu1 }
0x2df9   : > { %v7921_v15 = vadd.f32 %v7919_v19, %v7857_v23  ;;  %v7920_v1 = vmul.f32 %v11681_v60, %v7907_v40  ;;  %v13332_v39 = vpop.f32.mrb[203].mxu1  ;;  %v13849_v23 = vld [vmem:[%s17257_s19 + $0x50] sm:$0xff]   ;;  %v13851_v60 = vld [vmem:[%s17257_s19 + $0x58] sm:$0xff]  }
0x2dfb   : > { %v7922_v14 = vadd.f32 %v7920_v1, %v7858_v7  ;;  %v7985_v10 = vadd.f32 %v7983_v33, %v7921_v15  ;;  %v13853_v7 = vld [vmem:[%s17257_s19 + $0x70] sm:$0xff]  }
0x2dfd   : > { %v7986_v30 = vadd.f32 %v7984_v29, %v7922_v14 }
0x2dfe   : > { %v8032_v38 = vpop.f32.mrb[204].mxu1 }
0x2dff   : > { %v8047_v5 = vmul.f32 %v11693_v44, %v8032_v38  ;;  %v13343_v46 = vpop.f32.mrb[205].mxu1 }
0x2e00   : > { %v8035_v3 = vpop.f32.mrb[206].mxu1 }
0x2e01   : > { %v8049_v11 = vadd.f32 %v8047_v5, %v7985_v10  ;;  %v8048_v59 = vmul.f32 %v11693_v44, %v8035_v3  ;;  %v13344_v36 = vpop.f32.mrb[207].mxu1 }
0x2e03   : > { %v8050_v47 = vadd.f32 %v8048_v59, %v7986_v30  ;;  %v8113_v34 = vadd.f32 %v8111_v16, %v8049_v11 }
0x2e05   : > { %v8123_v51 = vadd.f32 %v11701_v21, %v8113_v34  ;;  %v8114_v28 = vadd.f32 %v8112_v45, %v8050_v47 }
0x2e07   : > { %8125 = vst.msk [vmem:[%s16425_s5] sm:$0xff] %vm1236_vm3, %v8123_v51  ;;  %v8124_v48 = vadd.f32 %v11701_v21, %v8114_v28  ;;  %v8127_v4 = vadd.f32 %v8123_v51, %v16325_v54  ;;  %v13841_v54 = vld [vmem:[%s17257_s19] sm:$0xff]  }
0x2e08   : > { %v11753_v51 = vld [vmem:[%s17262_s24] ss:$0 sm:$0xff] }
0x2e09   : > { %8126 = vst.msk [vmem:[%s16425_s5 + $0x8] sm:$0xff] %vm1236_vm3, %v8124_v48  ;;  %v8128_v20 = vadd.f32 %v8124_v48, %v16327_v31  ;;  %v13840_v31 = vld [vmem:[%s17257_s19 + $0x28] sm:$0xff]  }
0x2e0b   : > { %v8130_v35 = vpack.c.bf16 %v8128_v20, %v8127_v4 }
0x2e0d   : > { %13352 = vmatpush3.bf16.msra.mxu1 %v8130_v35  ;;  %13358 = vmatpush3.bf16.msra.mxu0 %v8130_v35 }
0x2e0e   : > { %13363 = vmatprep.subr.bf16.mxu1 %v14289_v63  ;;  %13375 = vmatprep.subr.bf16.mxu0 %v14289_v63 }
0x2e10   : > { %13360 = vmatmul.mubr.msk.bf16.vlgmr.msra.gmra.mrb[196].mxu0 %vm5975_vm15, %v11703_v58  ;;  %13354 = vmatmul.mubr.msk.bf16.vlgmr.msra.gmra.mrb[208].mxu1 %vm5975_vm15, %v8129_v43 }
0x2e11   : > { %13364 = vmatpush3.bf16.msra.mxu1 %v13839_v6  ;;  %13376 = vmatpush3.bf16.msra.mxu0 %v13841_v54 }
0x2e12   : > { %13365 = vmatprep.subr.bf16.mxu1 %v14289_v63  ;;  %13377 = vmatprep.subr.bf16.mxu0 %v14289_v63 }
0x2e13   : > { %13371 = vmatprep.mubr.msk.bf16.mxu1 %vm14290_vm2, %v14289_v63  ;;  %13383 = vmatprep.mubr.msk.bf16.mxu0 %vm14290_vm2, %v14289_v63 }
0x2e15   : > { %13366 = vmatpush3.bf16.msra.mxu1 %v13840_v31  ;;  %13378 = vmatpush3.bf16.msra.mxu0 %v13843_v32 }
0x2e16   : > { %13367 = vmatprep.subr.bf16.mxu1 %v14289_v63  ;;  %13379 = vmatprep.subr.bf16.mxu0 %v14289_v63 }
0x2e19   : > { %13368 = vmatpush3.bf16.msra.mxu1 %v13842_v27  ;;  %13380 = vmatpush3.bf16.msra.mxu0 %v13845_v62 }
0x2e1a   : > { %13369 = vmatprep.subr.bf16.mxu1 %v14289_v63  ;;  %13381 = vmatprep.subr.bf16.mxu0 %v14289_v63 }
0x2e1d   : > { %13370 = vmatpush3.bf16.msra.mxu1 %v13844_v52  ;;  %13382 = vmatpush3.bf16.msra.mxu0 %v13846_v56 }
0x2e1e   : > { %13387 = vmatprep.subr.bf16.mxu1 %v14289_v63  ;;  %13393 = vmatprep.subr.bf16.mxu0 %v14289_v63 }
0x2ee3   : > { %v8222_v25 = vpop.f32.mrb[196].mxu0  ;;  %v8168_v0 = vpop.f32.mrb[208].mxu1 }
0x2ee4   : > { %v8237_v9 = vpack.c.bf16 %v8222_v25, %v8222_v25  ;;  %v13361_v13 = vpop.f32.mrb[197].mxu0  ;;  %v8182_v41 = vpack.c.bf16 %v8168_v0, %v8168_v0  ;;  %v13355_v18 = vpop.f32.mrb[209].mxu1  ;;  %v11756_v25 = vld [vmem:[%s17262_s24 + $0x1] ss:$0 sm:$0xff] }
0x2ee5   : > { %v8225_v50 = vpop.f32.mrb[198].mxu0  ;;  %v8171_v17 = vpop.f32.mrb[210].mxu1 }
0x2ee6   : > { %13372 = vmatmul.mubr.msk.bf16.vlgmr.msra.gmra.mrb[212].mxu1 %vm1236_vm3, %v8237_v9  ;;  %v13362_v12 = vpop.f32.mrb[199].mxu0  ;;  %13384 = vmatmul.mubr.msk.bf16.vlgmr.msra.gmra.mrb[200].mxu0 %vm1236_vm3, %v8182_v41  ;;  %v13356_v37 = vpop.f32.mrb[211].mxu1  ;;  %v11757_v9 = vld [vmem:[%s17262_s24 + $0x2] ss:$0 sm:$0xff]  ;;  %v13857_v17 = vld [vmem:[%s17258_s20 + $0x8] sm:$0xff]  }
0x2ee7   : > { %13388 = vmatpush3.bf16.msra.mxu1 %v8130_v35  ;;  %13389 = vmatprep.mubr.msk.bf16.mxu1 %vm14290_vm2, %v14289_v63  ;;  %v13856_v50 = vld [vmem:[%s17258_s20 + $0x40] sm:$0xff]   ;;  %v13858_v12 = vld [vmem:[%s17258_s20 + $0x48] sm:$0xff]   ;;  %v13859_v37 = vld [vmem:[%s17258_s20 + $0x10] sm:$0xff]  }
0x2ee8   : > { %13405 = vmatprep.subr.bf16.mxu1 %v14289_v63  ;;  %13394 = vmatpush3.bf16.msra.mxu0 %v13847_v49  ;;  %v13855_v49 = vld [vmem:[%s17258_s20] sm:$0xff]  }
0x2ee9   : > { %13395 = vmatprep.subr.bf16.mxu0 %v14289_v63  ;;  %13401 = vmatprep.mubr.msk.bf16.mxu0 %vm14290_vm2, %v14289_v63 }
0x2eec   : > { %13396 = vmatpush3.bf16.msra.mxu0 %v13848_v53 }
0x2eed   : > { %13397 = vmatprep.subr.bf16.mxu0 %v14289_v63 }
0x2eee   : > { %13390 = vmatmul.mubr.msk.bf16.vlgmr.msra.gmra.mrb[216].mxu1 %vm5975_vm15, %v11723_v8 }
0x2eef   : > { %13406 = vmatpush3.bf16.msra.mxu1 %v8130_v35  ;;  %13407 = vmatprep.mubr.msk.bf16.mxu1 %vm14290_vm2, %v14289_v63 }
0x2ef0   : > { %13411 = vmatprep.subr.bf16.mxu1 %v14289_v63  ;;  %13398 = vmatpush3.bf16.msra.mxu0 %v13849_v23 }
0x2ef1   : > { %13399 = vmatprep.subr.bf16.mxu0 %v14289_v63 }
0x2ef4   : > { %13400 = vmatpush3.bf16.msra.mxu0 %v13851_v60  ;;  %v13860_v60 = vld [vmem:[%s17258_s20 + $0x50] sm:$0xff]  }
0x2ef5   : > { %13423 = vmatprep.subr.bf16.mxu0 %v14289_v63 }
0x2ef6   : > { %13408 = vmatmul.mubr.msk.bf16.vlgmr.msra.gmra.mrb[220].mxu1 %vm5975_vm15, %v11738_v61 }
0x2ef7   : > { %13419 = vmatprep.mubr.msk.bf16.mxu1 %vm14290_vm2, %v14289_v63  ;;  %13412 = vmatpush3.bf16.msra.mxu1 %v13850_v55 }
0x2ef8   : > { %13413 = vmatprep.subr.bf16.mxu1 %v14289_v63 }
0x2efb   : > { %13414 = vmatpush3.bf16.msra.mxu1 %v13852_v42  ;;  %v13861_v42 = vld [vmem:[%s17258_s20 + $0x18] sm:$0xff]  }
0x2efc   : > { %13415 = vmatprep.subr.bf16.mxu1 %v14289_v63 }
0x2eff   : > { %13416 = vmatpush3.bf16.msra.mxu1 %v13853_v7  ;;  %v13862_v7 = vld [vmem:[%s17258_s20 + $0x58] sm:$0xff]  }
0x2f00   : > { %13417 = vmatprep.subr.bf16.mxu1 %v14289_v63 }
0x2f03   : > { %13418 = vmatpush3.bf16.msra.mxu1 %v13854_v24  ;;  %v13863_v24 = vld [vmem:[%s17258_s20 + $0x20] sm:$0xff]  }
0x2f04   : > { %13443 = vmatprep.subr.bf16.mxu1 %v14289_v63 }
0x2fb9   : > { %v8299_v19 = vpop.f32.mrb[212].mxu1  ;;  %v8366_v2 = vpop.f32.mrb[200].mxu0 }
0x2fba   : > { %v13373_v33 = vpop.f32.mrb[213].mxu1  ;;  %v8367_v40 = vadd.f32 %v8366_v2, %v8299_v19  ;;  %v13385_v15 = vpop.f32.mrb[201].mxu0  ;;  %v13864_v19 = vld [vmem:[%s17258_s20 + $0x60] sm:$0xff]   ;;  %v13865_v2 = vld [vmem:[%s17258_s20 + $0x28] sm:$0xff]  }
0x2fbb   : > { %v8302_v1 = vpop.f32.mrb[214].mxu1  ;;  %v8369_v39 = vpop.f32.mrb[202].mxu0  ;;  %v13866_v33 = vld [vmem:[%s17258_s20 + $0x68] sm:$0xff]   ;;  %v13868_v15 = vld [vmem:[%s17258_s20 + $0x70] sm:$0xff]  }
0x2fbc   : > { %v13374_v14 = vpop.f32.mrb[215].mxu1  ;;  %v13386_v10 = vpop.f32.mrb[203].mxu0  ;;  %v13869_v1 = vld [vmem:[%s17258_s20 + $0x38] sm:$0xff]  }
0x2fbd   : > { %v13870_v39 = vld [vmem:[%s17258_s20 + $0x78] sm:$0xff]  }
0x2fc1   : > { %v8411_v29 = vpop.f32.mrb[216].mxu1 }
0x2fc2   : > { %v8426_v44 = vpack.c.bf16 %v8411_v29, %v8411_v29  ;;  %v13391_v22 = vpop.f32.mrb[217].mxu1 }
0x2fc3   : > { %v8414_v30 = vpop.f32.mrb[218].mxu1  ;;  %v11760_v22 = vld [vmem:[%s17262_s24 + $0x3] ss:$0 sm:$0xff] }
0x2fc4   : > { %13402 = vmatmul.mubr.msk.bf16.vlgmr.msra.gmra.mrb[204].mxu0 %vm1236_vm3, %v8426_v44  ;;  %v13392_v38 = vpop.f32.mrb[219].mxu1 }
0x2fc5   : > { %13439 = vmatprep.mubr.msk.bf16.mxu0 %vm14290_vm2, %v14289_v63  ;;  %13424 = vmatpush3.bf16.msra.mxu0 %v13855_v49  ;;  %v11761_v38 = vld [vmem:[%s17262_s24 + $0x4] ss:$0 sm:$0xff] }
0x2fc6   : > { %13425 = vmatprep.subr.bf16.mxu0 %v14289_v63 }
0x2fc9   : > { %v8534_v5 = vpop.f32.mrb[220].mxu1  ;;  %13426 = vmatpush3.bf16.msra.mxu0 %v13857_v17 }
0x2fca   : > { %v8549_v46 = vpack.c.bf16 %v8534_v5, %v8534_v5  ;;  %v13409_v16 = vpop.f32.mrb[221].mxu1  ;;  %13427 = vmatprep.subr.bf16.mxu0 %v14289_v63 }
0x2fcb   : > { %v8537_v3 = vpop.f32.mrb[222].mxu1  ;;  %v13871_v16 = vld [vmem:[%s17258_s20 + $0x80] sm:$0xff]  }
0x2fcc   : > { %13420 = vmatmul.mubr.msk.bf16.vlgmr.msra.gmra.mrb[224].mxu1 %vm1236_vm3, %v8549_v46  ;;  %v13410_v11 = vpop.f32.mrb[223].mxu1 }
0x2fcd   : > { %13459 = vmatprep.mubr.msk.bf16.mxu1 %vm14290_vm2, %v14289_v63  ;;  %13444 = vmatpush3.bf16.msra.mxu1 %v13856_v50  ;;  %v13872_v11 = vld [vmem:[%s17258_s20 + $0x88] sm:$0xff]  }
0x2fce   : > { %13445 = vmatprep.subr.bf16.mxu1 %v14289_v63  ;;  %13428 = vmatpush3.bf16.msra.mxu0 %v13859_v37 }
0x2fcf   : > { %13429 = vmatprep.subr.bf16.mxu0 %v14289_v63 }
0x2fd1   : > { %13446 = vmatpush3.bf16.msra.mxu1 %v13858_v12 }
0x2fd2   : > { %13447 = vmatprep.subr.bf16.mxu1 %v14289_v63  ;;  %13430 = vmatpush3.bf16.msra.mxu0 %v13861_v42 }
0x2fd3   : > { %13431 = vmatprep.subr.bf16.mxu0 %v14289_v63 }
0x2fd5   : > { %13448 = vmatpush3.bf16.msra.mxu1 %v13860_v60 }
0x2fd6   : > { %13449 = vmatprep.subr.bf16.mxu1 %v14289_v63  ;;  %13432 = vmatpush3.bf16.msra.mxu0 %v13863_v24 }
0x2fd7   : > { %13433 = vmatprep.subr.bf16.mxu0 %v14289_v63 }
0x2fd9   : > { %13450 = vmatpush3.bf16.msra.mxu1 %v13862_v7 }
0x2fda   : > { %13451 = vmatprep.subr.bf16.mxu1 %v14289_v63  ;;  %13434 = vmatpush3.bf16.msra.mxu0 %v13865_v2 }
0x2fdb   : > { %13435 = vmatprep.subr.bf16.mxu0 %v14289_v63 }
0x2fdd   : > { %13452 = vmatpush3.bf16.msra.mxu1 %v13864_v19 }
0x2fde   : > { %13453 = vmatprep.subr.bf16.mxu1 %v14289_v63 }
0x2fe1   : > { %13454 = vmatpush3.bf16.msra.mxu1 %v13866_v33 }
0x2fe2   : > { %13455 = vmatprep.subr.bf16.mxu1 %v14289_v63 }
0x2fe5   : > { %13456 = vmatpush3.bf16.msra.mxu1 %v13868_v15 }
0x2fe6   : > { %13457 = vmatprep.subr.bf16.mxu1 %v14289_v63 }
0x2fe9   : > { %13458 = vmatpush3.bf16.msra.mxu1 %v13870_v39 }
0x2fea   : > { %13483 = vmatprep.subr.bf16.mxu1 %v14289_v63 }
0x3097   : > { %v8488_v59 = vpop.f32.mrb[204].mxu0 }
0x3098   : > { %v8494_v36 = vadd.f32 %v8488_v59, %v8367_v40  ;;  %v13403_v21 = vpop.f32.mrb[205].mxu0  ;;  %v13867_v40 = vld [vmem:[%s17258_s20 + $0x30] sm:$0xff]  }
0x3099   : > { %v8491_v47 = vpop.f32.mrb[206].mxu0  ;;  %13436 = vmatpush3.bf16.msra.mxu0 %v13867_v40  ;;  %v13873_v59 = vld [vmem:[%s17258_s20 + $0x90] sm:$0xff]   ;;  %v13875_v21 = vld [vmem:[%s17258_s20 + $0xa0] sm:$0xff]  }
0x309a   : > { %v13404_v34 = vpop.f32.mrb[207].mxu0  ;;  %13437 = vmatprep.subr.bf16.mxu0 %v14289_v63  ;;  %v13876_v47 = vld [vmem:[%s17258_s20 + $0xa8] sm:$0xff]  }
0x309b   : > { %v13877_v34 = vld [vmem:[%s17258_s20 + $0xb0] sm:$0xff]  }
0x309d   : > { %13438 = vmatpush3.bf16.msra.mxu0 %v13869_v1 }
0x309e   : > { %13463 = vmatprep.subr.bf16.mxu0 %v14289_v63 }
0x309f   : > { %v8611_v45 = vpop.f32.mrb[224].mxu1 }
0x30a0   : > { %v8617_v28 = vadd.f32 %v8611_v45, %v8494_v36  ;;  %v13421_v48 = vpop.f32.mrb[225].mxu1  ;;  %v13874_v36 = vld [vmem:[%s17258_s20 + $0x98] sm:$0xff]  }
0x30a1   : > { %v8614_v4 = vpop.f32.mrb[226].mxu1  ;;  %v13878_v45 = vld [vmem:[%s17258_s20 + $0xb8] sm:$0xff]  }
0x30a2   : > { %v13422_v20 = vpop.f32.mrb[227].mxu1  ;;  %v8625_v35 = vadd.f32 %v11753_v51, %v8617_v28  ;;  %v11789_v51 = vld [vmem:[%s17262_s24 + $0x6] ss:$0 sm:$0xff] }
0x30a4   : > { %v8631_v58 = vsel %vm8630_vm10, %v8625_v35, 0.0 }
0x30a5   : > { %8632 = vadd.xlane.f32.xlu0 %v8631_v58 }
0x3132   : > { %v8633_v43 = vpop.xlane.xlu0 %8632 }
0x3133   : > { %v8635_v6 = vmul.f32 0.0078125, %v8633_v43 }
0x3135   : > { %v8636_v54 = vsub.f32 %v8625_v35, %v8635_v6 }
0x3137   : > { %v8637_v31 = vmul.f32 %v8636_v54, %v8636_v54 }
0x3139   : > { %v8638_v32 = vsel %vm8630_vm10, %v8637_v31, 0.0 }
0x313a   : > { %8639 = vadd.xlane.f32.xlu1 %v8638_v32  ;;  %v11763_v32 = vld [vmem:[%s17262_s24 + $0x5] ss:$0 sm:$0xff] }
0x31c7   : > { %v8640_v27 = vpop.xlane.xlu1 %8639 }
0x31c8   : > { %v8641_v52 = vmul.f32 0.0078125, %v8640_v27 }
0x31ca   : > { %v8642_v62 = vadd.f32 1e-05, %v8641_v52 }
0x31cc   : > { %14127 = vrsqrt.f32 %v8642_v62 }
0x31d6   : > { %v14128_v56 = vpop.eup %14127 }
0x31d7   : > { %v8644_v0 = vmul.f32 %v14128_v56, %v8636_v54  ;;  %v11815_v56 = vld [vmem:[%s17262_s24 + $0x7] ss:$0 sm:$0xff] }
0x31d9   : > { %v8651_v13 = vmul.f32 %v11756_v25, %v8644_v0 }
0x31db   : > { %v16548_v41 = vadd.f32 %v11757_v9, %v8651_v13 }
0x31dd   : > { %v8663_v18 = vsel %vm8630_vm10, %v16548_v41, 0.0 }
0x31de   : > { %8664 = vadd.xlane.f32.xlu0 %v8663_v18 }
0x326b   : > { %v8665_v53 = vpop.xlane.xlu0 %8664 }
0x326c   : > { %v8666_v8 = vmul.f32 0.0078125, %v8665_v53 }
0x326e   : > { %v8667_v61 = vsub.f32 %v16548_v41, %v8666_v8 }
0x3270   : > { %v8668_v23 = vmul.f32 %v8667_v61, %v8667_v61 }
0x3272   : > { %v8669_v55 = vsel %vm8630_vm10, %v8668_v23, 0.0 }
0x3273   : > { %8670 = vadd.xlane.f32.xlu1 %v8669_v55 }
0x3300   : > { %v8671_v14 = vpop.xlane.xlu1 %8670 }
0x3301   : > { %v8672_v10 = vmul.f32 0.0078125, %v8671_v14 }
0x3303   : > { %v8673_v29 = vadd.f32 1e-06, %v8672_v10 }
0x3305   : > { %14129 = vrsqrt.f32 %v8673_v29 }
0x330f   : > { %v14130_v44 = vpop.eup %14129 }
0x3310   : > { %v8675_v30 = vmul.f32 %v14130_v44, %v8667_v61 }
0x3312   : > { %v8682_v5 = vmul.f32 %v11760_v22, %v8675_v30 }
0x3314   : > { %v8689_v46 = vadd.f32 %v11761_v38, %v8682_v5 }
0x3316   : > { %v8706_v3 = vpack.c.bf16 %v8689_v46, %v8689_v46 }
0x3318   : > { %13440 = vmatmul.mubr.bf16.vlgmr.msra.gmra.mrb[208].mxu0 %v8706_v3  ;;  %13460 = vmatmul.mubr.bf16.vlgmr.msra.gmra.mrb[228].mxu1 %v8706_v3 }
0x3319   : > { %13464 = vmatpush3.bf16.msra.mxu0 %v13871_v16  ;;  %13479 = vmatprep.mubr.msk.bf16.mxu0 %vm14290_vm2, %v14289_v63 }
0x331a   : > { %13465 = vmatprep.subr.bf16.mxu0 %v14289_v63  ;;  %13485 = vmatprep.mubr.msk.bf16.mxu1 %vm14290_vm2, %v14289_v63 }
0x331d   : > { %13466 = vmatpush3.bf16.msra.mxu0 %v13872_v11 }
0x331e   : > { %13467 = vmatprep.subr.bf16.mxu0 %v14289_v63 }
0x3321   : > { %13468 = vmatpush3.bf16.msra.mxu0 %v13873_v59 }
0x3322   : > { %13469 = vmatprep.subr.bf16.mxu0 %v14289_v63 }
0x3325   : > { %13470 = vmatpush3.bf16.msra.mxu0 %v13874_v36 }
0x3326   : > { %13471 = vmatprep.subr.bf16.mxu0 %v14289_v63 }
0x3329   : > { %13472 = vmatpush3.bf16.msra.mxu0 %v13875_v21 }
0x332a   : > { %13473 = vmatprep.subr.bf16.mxu0 %v14289_v63 }
0x332d   : > { %13474 = vmatpush3.bf16.msra.mxu0 %v13876_v47 }
0x332e   : > { %13475 = vmatprep.subr.bf16.mxu0 %v14289_v63 }
0x3331   : > { %13476 = vmatpush3.bf16.msra.mxu0 %v13877_v34 }
0x3332   : > { %13477 = vmatprep.subr.bf16.mxu0 %v14289_v63 }
0x3335   : > { %13478 = vmatpush3.bf16.msra.mxu0 %v13878_v45 }
0x3336   : > { %13501 = vmatprep.subr.bf16.mxu0 %v14289_v63 }
0x3338   : > { %13480 = vmatmul.mubr.bf16.vlgmr.msra.gmra.mrb[212].mxu0 %v8706_v3 }
0x3339   : > { %13503 = vmatprep.mubr.msk.bf16.mxu0 %vm14290_vm2, %v14289_v63 }
0x33eb   : > { %v8797_v28 = vpop.f32.mrb[208].mxu0  ;;  %v8910_v48 = vpop.f32.mrb[228].mxu1 }
0x33ec   : > { %v8911_v4 = vadd.f32 %v11789_v51, %v8910_v48  ;;  %v13441_v20 = vpop.f32.mrb[209].mxu0  ;;  %v13461_v35 = vpop.f32.mrb[229].mxu1  ;;  %v8798_v52 = vadd.f32 %v11763_v32, %v8797_v28 }
0x33ed   : > { %v8800_v58 = vpop.f32.mrb[210].mxu0  ;;  %v8913_v43 = vpop.f32.mrb[230].mxu1 }
0x33ee   : > { %v9030_v6 = vpack.c.bf16 %v8911_v4, %v8911_v4  ;;  %v13442_v54 = vpop.f32.mrb[211].mxu0  ;;  %v13462_v31 = vpop.f32.mrb[231].mxu1  ;;  %v9029_v62 = vpack.c.bf16 %v8798_v52, %v8798_v52 }
0x33f0   : > { %v9035_v27 = vsel %vm961_vm1, %v9030_v6, 0 }
0x33f1   : > { %13484 = vmatpush3.bf16.xpose.msra.mxu1 %v9035_v27 }
0x33f2   : > { %13489 = vmatprep.subr.bf16.mxu1 %v14289_v63 }
0x33f8   : > { %13486 = vmatmul.mubr.msk.bf16.vlgmr.msra.gmra.mrb[232].mxu1 %vm961_vm1, %v9029_v62 }
0x33f9   : > { %13491 = vmatprep.mubr.msk.bf16.mxu1 %vm14290_vm2, %v14289_v63 }
0x340b   : > { %v9023_v25 = vpop.f32.mrb[212].mxu0 }
0x340c   : > { %v9024_v0 = vadd.f32 %v11815_v56, %v9023_v25  ;;  %v13481_v9 = vpop.f32.mrb[213].mxu0 }
0x340d   : > { %v9026_v13 = vpop.f32.mrb[214].mxu0 }
0x340e   : > { %v16676_v18 = vpack.c.bf16 %v9024_v0, %v9024_v0  ;;  %v13482_v49 = vpop.f32.mrb[215].mxu0 }
0x3410   : > { %v9096_v50 = vsel %vm3419_vm5, %v16676_v18, 0 }
0x3411   : > { %13490 = vmatpush3.bf16.msra.mxu1 %v9096_v50 }
0x3412   : > { %13495 = vmatprep.subr.bf16.mxu1 %v14289_v63 }
0x34cb   : > { %v9071_v17 = vpop.f32.mrb[232].mxu1 }
0x34cc   : > { %v9077_v12 = vmul.f32 0.17677669, %v9071_v17  ;;  %v13487_v37 = vpop.f32.mrb[233].mxu1 }
0x34cd   : > { %v9074_v53 = vpop.f32.mrb[234].mxu1 }
0x34ce   : > { %v13488_v8 = vpop.f32.mrb[235].mxu1  ;;  %v9079_v61 = vsel %vm9078_vm11, %v9077_v12, -inf }
0x34cf   : > { %9080 = vmax.xlane.f32.xlu0 %v9079_v61 }
0x34e5   : > { %9142 = vrot.lane.b32.xlu0 %v9030_v6, %s17338_s8 }
0x34e9   : > { %9365 = vrot.lane.b32.xlu0 %v9030_v6, %s17341_s12 }
0x355c   : > { %v9081_v23 = vpop.xlane.xlu0 %9080 }
0x355d   : > { %v9082_v55 = vsub.f32 %v9077_v12, %v9081_v23 }
0x355f   : > { %v9083_v60 = vmul.f32 1.442695, %v9082_v55 }
0x3560   : > { %v9143_v33 = vpop.permute.xlu0 %9142 }
0x3561   : > { %14131 = vpow2.f32 %v9083_v60  ;;  %v9148_v1 = vsel %vm961_vm1, %v9143_v33, 0 }
0x3564   : > { %v9366_v10 = vpop.permute.xlu0 %9365 }
0x3565   : > { %v9371_v44 = vsel %vm961_vm1, %v9366_v10, 0  ;;  %v13880_v10 = vld [vmem:[%s17258_s20 + $0xc8] sm:$0xff]  }
0x356b   : > { %v14132_v42 = vpop.eup %14131 }
0x356c   : > { %v9085_v7 = vsel %vm9078_vm11, %v14132_v42, 0.0 }
0x356d   : > { %9086 = vadd.xlane.f32.xlu1 %v9085_v7 }
0x357e   : > { %9139 = vrot.lane.b32.xlu1 %v9029_v62, %s17338_s8 }
0x3582   : > { %9254 = vrot.lane.b32.xlu1 %v9030_v6, %s17298_s7 }
0x3586   : > { %9252 = vrot.lane.b32.xlu1 %v9029_v62, %s17298_s7 }
0x358a   : > { %9363 = vrot.lane.b32.xlu1 %v9029_v62, %s17341_s12 }
0x35fa   : > { %v9087_v24 = vpop.xlane.xlu1 %9086 }
0x35fb   : > { %14133 = vrcp.f32 %v9087_v24 }
0x35fe   : > { %v9140_v15 = vpop.permute.xlu1 %9139 }
0x3602   : > { %v9255_v39 = vpop.permute.xlu1 %9254 }
0x3603   : > { %v9260_v14 = vsel %vm961_vm1, %v9255_v39, 0 }
0x3605   : > { %v14134_v19 = vpop.eup %14133 }
0x3606   : > { %v9089_v2 = vmul.f32 %v14134_v19, %v14132_v42  ;;  %v9253_v29 = vpop.permute.xlu1 %9252 }
0x3608   : > { %v9090_v40 = vpack.c.bf16 %v9089_v2, %v9089_v2 }
0x360a   : > { %13492 = vmatmul.mubr.msk.bf16.vlgmr.msra.gmra.mrb[236].mxu1 %vm3313_vm6, %v9090_v40  ;;  %v9364_v22 = vpop.permute.xlu1 %9363 }
0x360b   : > { %13496 = vmatpush3.bf16.xpose.msra.mxu1 %v9148_v1  ;;  %13497 = vmatprep.mubr.msk.bf16.mxu1 %vm14290_vm2, %v14289_v63 }
0x360c   : > { %13507 = vmatprep.subr.bf16.mxu1 %v14289_v63 }
0x3612   : > { %13498 = vmatmul.mubr.msk.bf16.vlgmr.msra.gmra.mrb[240].mxu1 %vm961_vm1, %v9140_v15 }
0x3613   : > { %13508 = vmatpush3.bf16.xpose.msra.mxu1 %v9260_v14  ;;  %13509 = vmatprep.mubr.msk.bf16.mxu1 %vm14290_vm2, %v14289_v63  ;;  %v13879_v14 = vld [vmem:[%s17258_s20 + $0xc0] sm:$0xff]  }
0x3614   : > { %13519 = vmatprep.subr.bf16.mxu1 %v14289_v63 }
0x361a   : > { %13510 = vmatmul.mubr.msk.bf16.vlgmr.msra.gmra.mrb[244].mxu1 %vm961_vm1, %v9253_v29  ;;  %v13881_v29 = vld [vmem:[%s17258_s20 + $0xd0] sm:$0xff]  }
0x361b   : > { %13520 = vmatpush3.bf16.xpose.msra.mxu1 %v9371_v44  ;;  %13521 = vmatprep.mubr.msk.bf16.mxu1 %vm14290_vm2, %v14289_v63  ;;  %v13882_v44 = vld [vmem:[%s17258_s20 + $0xd8] sm:$0xff]  }
0x361c   : > { %13531 = vmatprep.subr.bf16.mxu1 %v14289_v63 }
0x3622   : > { %13522 = vmatmul.mubr.msk.bf16.vlgmr.msra.gmra.mrb[248].mxu1 %vm961_vm1, %v9364_v22  ;;  %v13883_v22 = vld [vmem:[%s17258_s20 + $0xe0] sm:$0xff]  }
0x3623   : > { %13547 = vmatprep.mubr.msk.bf16.mxu1 %vm14290_vm2, %v14289_v63  ;;  %13532 = vmatpush3.bf16.msra.mxu1 %v13879_v14  ;;  %v13917_v14 = vld [vmem:[%s17259_s21 + $0xa0] ss:$16 sps:$4 sm:$0xff]  }
0x3624   : > { %13533 = vmatprep.subr.bf16.mxu1 %v14289_v63 }
0x3627   : > { %13534 = vmatpush3.bf16.msra.mxu1 %v13880_v10  ;;  %v13920_v10 = vld [vmem:[%s17259_s21 + $0xa8] ss:$16 sps:$4 sm:$0xff]  }
0x3628   : > { %13535 = vmatprep.subr.bf16.mxu1 %v14289_v63 }
0x362b   : > { %13536 = vmatpush3.bf16.msra.mxu1 %v13881_v29  ;;  %v13925_v29 = vld [vmem:[%s17259_s21 + $0xc4] ss:$16 sps:$4 sm:$0xff]  }
0x362c   : > { %13537 = vmatprep.subr.bf16.mxu1 %v14289_v63 }
0x362f   : > { %13538 = vmatpush3.bf16.msra.mxu1 %v13882_v44  ;;  %v13928_v44 = vld [vmem:[%s17259_s21 + $0xcc] ss:$16 sps:$4 sm:$0xff]  }
0x3630   : > { %13539 = vmatprep.subr.bf16.mxu1 %v14289_v63 }
0x3633   : > { %13540 = vmatpush3.bf16.msra.mxu1 %v13883_v22  ;;  %v13923_v22 = vld [vmem:[%s17259_s21 + $0xc0] ss:$16 sps:$4 sm:$0xff]  }
0x3634   : > { %13541 = vmatprep.subr.bf16.mxu1 %v14289_v63 }
0x36dd   : > { %v16707_v30 = vpop.f32.mrb[236].mxu1 }
0x36de   : > { %v13493_v38 = vpop.f32.mrb[237].mxu1 }
0x36df   : > { %v9135_v5 = vpop.f32.mrb[238].mxu1  ;;  %v13884_v38 = vld [vmem:[%s17258_s20 + $0xe8] sm:$0xff]  }
0x36e0   : > { %v13494_v46 = vpop.f32.mrb[239].mxu1  ;;  %13542 = vmatpush3.bf16.msra.mxu1 %v13884_v38  ;;  %v13885_v5 = vld [vmem:[%s17258_s20 + $0xf0] sm:$0xff]   ;;  %v13926_v38 = vld [vmem:[%s17259_s21 + $0xc8] ss:$16 sps:$4 sm:$0xff]  }
0x36e1   : > { %13543 = vmatprep.subr.bf16.mxu1 %v14289_v63 }
0x36e4   : > { %13544 = vmatpush3.bf16.msra.mxu1 %v13885_v5  ;;  %v13931_v5 = vld [vmem:[%s17259_s21 + $0xe4] ss:$16 sps:$4 sm:$0xff]  }
0x36e5   : > { %v9184_v16 = vpop.f32.mrb[240].mxu1  ;;  %13545 = vmatprep.subr.bf16.mxu1 %v14289_v63 }
0x36e6   : > { %v9190_v3 = vmul.f32 0.17677669, %v9184_v16  ;;  %v13499_v11 = vpop.f32.mrb[241].mxu1 }
0x36e7   : > { %v9187_v59 = vpop.f32.mrb[242].mxu1 }
0x36e8   : > { %v13500_v36 = vpop.f32.mrb[243].mxu1  ;;  %v9191_v21 = vsel %vm9078_vm11, %v9190_v3, -inf  ;;  %v13886_v59 = vld [vmem:[%s17258_s20 + $0xf8] sm:$0xff]  }
0x36e9   : > { %9192 = vmax.xlane.f32.xlu0 %v9191_v21  ;;  %13546 = vmatpush3.bf16.msra.mxu1 %v13886_v59 }
0x36ed   : > { %v9296_v47 = vpop.f32.mrb[244].mxu1 }
0x36ee   : > { %v9302_v34 = vmul.f32 0.17677669, %v9296_v47  ;;  %v13511_v45 = vpop.f32.mrb[245].mxu1 }
0x36ef   : > { %v9299_v51 = vpop.f32.mrb[246].mxu1 }
0x36f0   : > { %v13512_v28 = vpop.f32.mrb[247].mxu1  ;;  %v9303_v48 = vsel %vm9078_vm11, %v9302_v34, -inf }
0x36f1   : > { %9304 = vmax.xlane.f32.xlu1 %v9303_v48 }
0x36f5   : > { %v9407_v4 = vpop.f32.mrb[248].mxu1 }
0x36f6   : > { %v9413_v20 = vmul.f32 0.17677669, %v9407_v4  ;;  %v13523_v35 = vpop.f32.mrb[249].mxu1 }
0x36f7   : > { %v9410_v58 = vpop.f32.mrb[250].mxu1 }
0x36f8   : > { %v13524_v43 = vpop.f32.mrb[251].mxu1  ;;  %v9414_v6 = vsel %vm9078_vm11, %v9413_v20, -inf }
0x36f9   : > { %9415 = vmax.xlane.f32.xlu0 %v9414_v6 }
0x3702   : > { %9315 = vrot.lane.b32.xlu1 %v16676_v18, %s17298_s7 }
0x3776   : > { %v9193_v54 = vpop.xlane.xlu0 %9192 }
0x3777   : > { %v9194_v31 = vsub.f32 %v9190_v3, %v9193_v54 }
0x3779   : > { %v9195_v32 = vmul.f32 1.442695, %v9194_v31 }
0x377b   : > { %14135 = vpow2.f32 %v9195_v32  ;;  %v11857_v32 = vld [vmem:[%s17262_s24 + $0x8] ss:$0 sm:$0xff] }
0x377e   : > { %v9305_v27 = vpop.xlane.xlu1 %9304 }
0x377f   : > { %v9306_v52 = vsub.f32 %v9302_v34, %v9305_v27 }
0x3781   : > { %v9307_v62 = vmul.f32 1.442695, %v9306_v52 }
0x3782   : > { %v9316_v61 = vpop.permute.xlu1 %9315 }
0x3783   : > { %14137 = vpow2.f32 %v9307_v62  ;;  %v9321_v24 = vsel %vm3419_vm5, %v9316_v61, 0 }
0x3785   : > { %v14136_v56 = vpop.eup %14135 }
0x3786   : > { %v9416_v25 = vpop.xlane.xlu0 %9415  ;;  %v9197_v0 = vsel %vm9078_vm11, %v14136_v56, 0.0 }
0x3787   : > { %v9417_v9 = vsub.f32 %v9413_v20, %v9416_v25  ;;  %9198 = vadd.xlane.f32.xlu0 %v9197_v0  ;;  %v13889_v0 = vld [vmem:[%s17259_s21 + $0x4] ss:$16 sps:$4 sm:$0xff]  }
0x3789   : > { %v9418_v13 = vmul.f32 1.442695, %v9417_v9  ;;  %v13892_v9 = vld [vmem:[%s17259_s21 + $0xc] ss:$16 sps:$4 sm:$0xff]  }
0x378a   : > { %9958 = vmatprep.subr.bf16.mxu1 %v13892_v9  ;;  %v13952_v9 = vld [vmem:[%s17260_s22 + $0xe0] sm:$0xff]  }
0x378b   : > { %14139 = vpow2.f32 %v9418_v13  ;;  %v13895_v13 = vld [vmem:[%s17259_s21 + $0x24] ss:$16 sps:$4 sm:$0xff]  }
0x378d   : > { %v14138_v49 = vpop.eup %14137 }
0x378e   : > { %v9309_v50 = vsel %vm9078_vm11, %v14138_v49, 0.0 }
0x378f   : > { %9310 = vadd.xlane.f32.xlu0 %v9309_v50  ;;  %v13893_v50 = vld [vmem:[%s17259_s21 + $0x20] ss:$16 sps:$4 sm:$0xff]  }
0x3795   : > { %v14140_v17 = vpop.eup %14139 }
0x3796   : > { %v9420_v12 = vsel %vm9078_vm11, %v14140_v17, 0.0 }
0x3797   : > { %9421 = vadd.xlane.f32.xlu1 %v9420_v12  ;;  %v13901_v12 = vld [vmem:[%s17259_s21 + $0x44] ss:$16 sps:$4 sm:$0xff]  }
0x37a5   : > { %9204 = vrot.lane.b32.xlu0 %v16676_v18, %s17338_s8 }
0x37a8   : > { %9426 = vrot.lane.b32.xlu1 %v16676_v18, %s17341_s12 }
0x3814   : > { %v9199_v37 = vpop.xlane.xlu0 %9198 }
0x3815   : > { %14141 = vrcp.f32 %v9199_v37  ;;  %v13904_v37 = vld [vmem:[%s17259_s21 + $0x4c] ss:$16 sps:$4 sm:$0xff]  }
0x381c   : > { %v9311_v53 = vpop.xlane.xlu0 %9310 }
0x381d   : > { %14143 = vrcp.f32 %v9311_v53  ;;  %v13899_v53 = vld [vmem:[%s17259_s21 + $0x40] ss:$16 sps:$4 sm:$0xff]  }
0x381f   : > { %v14142_v8 = vpop.eup %14141 }
0x3820   : > { %v9201_v23 = vmul.f32 %v14142_v8, %v14136_v56  ;;  %v9205_v55 = vpop.permute.xlu0 %9204  ;;  %v13902_v8 = vld [vmem:[%s17259_s21 + $0x48] ss:$16 sps:$4 sm:$0xff]  }
0x3821   : > { %v9210_v60 = vsel %vm3419_vm5, %v9205_v55, 0 }
0x3822   : > { %13502 = vmatpush3.bf16.msra.mxu0 %v9210_v60  ;;  %v9202_v42 = vpack.c.bf16 %v9201_v23, %v9201_v23 }
0x3823   : > { %13513 = vmatprep.subr.bf16.mxu0 %v14289_v63 }
0x3824   : > { %v9422_v7 = vpop.xlane.xlu1 %9421 }
0x3825   : > { %14145 = vrcp.f32 %v9422_v7  ;;  %13504 = vmatmul.mubr.msk.bf16.vlgmr.msra.gmra.mrb[216].mxu0 %vm3313_vm6, %v9202_v42  ;;  %v13907_v7 = vld [vmem:[%s17259_s21 + $0x64] ss:$16 sps:$4 sm:$0xff]  }
0x3826   : > { %13514 = vmatpush3.bf16.msra.mxu0 %v9321_v24  ;;  %13515 = vmatprep.mubr.msk.bf16.mxu0 %vm14290_vm2, %v14289_v63  ;;  %v13910_v24 = vld [vmem:[%s17259_s21 + $0x6c] ss:$16 sps:$4 sm:$0xff]  }
0x3827   : > { %v14144_v18 = vpop.eup %14143  ;;  %13525 = vmatprep.subr.bf16.mxu0 %v14289_v63 }
0x3828   : > { %v9313_v19 = vmul.f32 %v14144_v18, %v14138_v49  ;;  %v9427_v2 = vpop.permute.xlu1 %9426  ;;  %v13898_v49 = vld [vmem:[%s17259_s21 + $0x2c] ss:$16 sps:$4 sm:$0xff]   ;;  %v13905_v18 = vld [vmem:[%s17259_s21 + $0x60] ss:$16 sps:$4 sm:$0xff]  }
0x3829   : > { %v9432_v40 = vsel %vm3419_vm5, %v9427_v2, 0  ;;  %v13913_v2 = vld [vmem:[%s17259_s21 + $0x84] ss:$16 sps:$4 sm:$0xff]  }
0x382a   : > { %v9314_v33 = vpack.c.bf16 %v9313_v19, %v9313_v19  ;;  %v13908_v19 = vld [vmem:[%s17259_s21 + $0x68] ss:$16 sps:$4 sm:$0xff]  }
0x382d   : > { %13516 = vmatmul.mubr.msk.bf16.vlgmr.msra.gmra.mrb[220].mxu0 %vm3313_vm6, %v9314_v33  ;;  %v13916_v33 = vld [vmem:[%s17259_s21 + $0x8c] ss:$16 sps:$4 sm:$0xff]  }
0x382e   : > { %13526 = vmatpush3.bf16.msra.mxu0 %v9432_v40  ;;  %13527 = vmatprep.mubr.msk.bf16.mxu0 %vm14290_vm2, %v14289_v63  ;;  %v13911_v40 = vld [vmem:[%s17259_s21 + $0x80] ss:$16 sps:$4 sm:$0xff]  }
0x382f   : > { %v14146_v15 = vpop.eup %14145  ;;  %9917 = vmatprep.subr.bf16.mxu0 %v13889_v0  ;;  %v13950_v0 = vld [vmem:[%s17260_s22 + $0x98] sm:$0xff]  }
0x3830   : > { %v9424_v1 = vmul.f32 %v14146_v15, %v14140_v17  ;;  %v13896_v17 = vld [vmem:[%s17259_s21 + $0x28] ss:$16 sps:$4 sm:$0xff]  }
0x3831   : > { %v13914_v15 = vld [vmem:[%s17259_s21 + $0x88] ss:$16 sps:$4 sm:$0xff]  }
0x3832   : > { %v9425_v39 = vpack.c.bf16 %v9424_v1, %v9424_v1  ;;  %v13919_v1 = vld [vmem:[%s17259_s21 + $0xa4] ss:$16 sps:$4 sm:$0xff]  }
0x3835   : > { %13528 = vmatmul.mubr.msk.bf16.vlgmr.msra.gmra.mrb[224].mxu0 %vm3313_vm6, %v9425_v39  ;;  %v13922_v39 = vld [vmem:[%s17259_s21 + $0xac] ss:$16 sps:$4 sm:$0xff]  }
0x3836   : > { %9949 = vmatprep.mubr.bf16.mxu0 %v14293_v57 }
0x38f8   : > { %v9246_v46 = vpop.f32.mrb[216].mxu0 }
0x38f9   : > { %9475 = vrot.lane.b32.xlu1 %v9246_v46, %s17341_s12  ;;  %v13505_v16 = vpop.f32.mrb[217].mxu0  ;;  %v13934_v46 = vld [vmem:[%s17259_s21 + $0xec] ss:$16 sps:$4 sm:$0xff]   ;;  %s14165_s12 = scalar_lea.vmem %s17099_s10, 256 }
0x38fa   : > { %v9249_v3 = vpop.f32.mrb[218].mxu0  ;;  %v13929_v16 = vld [vmem:[%s17259_s21 + $0xe0] ss:$16 sps:$4 sm:$0xff]   ;;  %p14166_p11 = scmp.ne.s32.totalorder %s17099_s10, %s14165_s12 }
0x38fb   : > { %v13506_v11 = vpop.f32.mrb[219].mxu0  ;;  %v13932_v3 = vld [vmem:[%s17259_s21 + $0xe8] ss:$16 sps:$4 sm:$0xff]  }
0x38fc   : > { %p14167_p12 = pnand %p14166_p11, %p14480_p5 }
0x38fe   : > { %p14168_p13 = pneg %p14167_p12 }
0x3900   : > { %v9357_v36 = vpop.f32.mrb[220].mxu0 }
0x3901   : > { %9479 = vrot.lane.b32.xlu0 %v9357_v36, %s17342_s11  ;;  %v13517_v21 = vpop.f32.mrb[221].mxu0  ;;  %s17097_s11 = scalar_lea.hbm %s17264_s26, %s11975_s2 }
0x3902   : > { %v9360_v47 = vpop.f32.mrb[222].mxu0 }
0x3903   : > { %v13518_v34 = vpop.f32.mrb[223].mxu0  ;;  %v11860_v47 = vld [vmem:[%s17262_s24 + $0x9] ss:$0 sm:$0xff] }
0x3908   : > { %v9468_v45 = vpop.f32.mrb[224].mxu0 }
0x3909   : > { %9483 = vrot.lane.b32.xlu1 %v9468_v45, %s17338_s8  ;;  %v13529_v51 = vpop.f32.mrb[225].mxu0  ;;  %v11861_v45 = vld [vmem:[%s17262_s24 + $0xa] ss:$0 sm:$0xff]  ;;  %s14295_s8 = smov [#allocation4]  }
0x390a   : > { %v9471_v28 = vpop.f32.mrb[226].mxu0  ;;  %s14169_s7 = sshll.u32 %s14295_s8, 4  ;;  %s14170_s7 = int_to_ptr.vmem [resolvable:$false] %s14169_s7 }
0x390b   : > { %v13530_v48 = vpop.f32.mrb[227].mxu0  ;;  %s14171_s5 = scalar_lea.vmem %s14170_s7, 512  ;;  %p14172_p0 = scmp.lt.s32.totalorder %s17099_s10, %s14170_s7 }
0x390c   : > { %p14173_p1 = scmp.lt.s32.totalorder %s14171_s5, %s14165_s12 }
0x390e   : > { %p14174_p2 = por %p14173_p1, %p14172_p0 }
0x3910   : > { %p14175_p3 = pnand %p14174_p2, %p14168_p13 }
0x396b   : > { %v9476_v4 = vpop.permute.xlu1 %9475 }
0x396c   : > { %v9486_v35 = vsel %vm961_vm1, %v16707_v30, %v9476_v4  ;;  %v13935_v4 = vld [vmem:[%s17260_s22 + $0x40] sm:$0xff]  }
0x3973   : > { %v9480_v20 = vpop.permute.xlu0 %9479 }
0x3974   : > { %v9487_v58 = vsel %vm1236_vm3, %v9486_v35, %v9480_v20  ;;  %v13936_v20 = vld [vmem:[%s17260_s22 + $0xc0] sm:$0xff]  }
0x3975   : > { %v13937_v35 = vld [vmem:[%s17260_s22] sm:$0xff]  }
0x397b   : > { %v9484_v43 = vpop.permute.xlu1 %9483 }
0x397c   : > { %v9489_v6 = vsel %vm9488_vm12, %v9487_v58, %v9484_v43  ;;  %v13938_v58 = vld [vmem:[%s17260_s22 + $0x80] sm:$0xff]   ;;  %v13939_v43 = vld [vmem:[%s17260_s22 + $0x48] sm:$0xff]  }
0x397d   : > { %v9507_v54 = vpack.c.bf16 %v9489_v6, %v9489_v6  ;;  %v13940_v6 = vld [vmem:[%s17260_s22 + $0xc8] sm:$0xff]  }
0x397f   : > { %13548 = vmatmul.mubr.bf16.vlgmr.msra.gmra.mrb[252].mxu1 %v9507_v54  ;;  %v13941_v54 = vld [vmem:[%s17260_s22 + $0x8] sm:$0xff]  }
0x3980   : > { %9990 = vmatprep.mubr.bf16.mxu1 %v14293_v57  ;;  %v13887_v57 = vld [vmem:[%s17259_s21] ss:$16 sps:$4 sm:$0xff]  }
0x3981   : > { %9918 = vmatpush1.bf16.msra.mxu0 %v13887_v57  ;;  %v13949_v57 = vld [vmem:[%s17260_s22 + $0x18] sm:$0xff]  }
0x3982   : > { %9919 = vmatprep.subr.bf16.mxu0 %v13895_v13  ;;  %v13953_v13 = vld [vmem:[%s17260_s22 + $0x20] sm:$0xff]  }
0x3985   : > { %9920 = vmatpush1.bf16.msra.mxu0 %v13893_v50  ;;  %v13955_v50 = vld [vmem:[%s17260_s22 + $0x68] sm:$0xff]  }
0x3986   : > { %9921 = vmatprep.subr.bf16.mxu0 %v13901_v12  ;;  %v13957_v12 = vld [vmem:[%s17260_s22 + $0x28] sm:$0xff]  }
0x3989   : > { %9922 = vmatpush1.bf16.msra.mxu0 %v13899_v53  ;;  %v13959_v53 = vld [vmem:[%s17260_s22 + $0x70] sm:$0xff]  }
0x398a   : > { %9923 = vmatprep.subr.bf16.mxu0 %v13907_v7  ;;  %v13966_v7 = vld [vmem:[%s17260_s22 + $0xb8] sm:$0xff]  }
0x398d   : > { %9924 = vmatpush1.bf16.msra.mxu0 %v13905_v18  ;;  %v9670_v18 = vld [vmem:[%s17259_s21 + $0x108] sm:$0x11] }
0x398e   : > { %9925 = vmatprep.subr.bf16.mxu0 %v13913_v2  ;;  %v9739_v2 = vunpack.c.l.bf16 %v9670_v18 }
0x3991   : > { %9926 = vmatpush1.bf16.msra.mxu0 %v13911_v40  ;;  %v9740_v40 = vunpack.c.h.bf16 %v9670_v18 }
0x3992   : > { %9927 = vmatprep.subr.bf16.mxu0 %v13919_v1  ;;  %v9752_v1 = vrot.slane %v9739_v2, %v15323_v26 }
0x3995   : > { %9928 = vmatpush1.bf16.msra.mxu0 %v13917_v14  ;;  %v9756_v14 = vrot.slane %v9740_v40, %v15323_v26 }
0x3996   : > { %9929 = vmatprep.subr.bf16.mxu0 %v13925_v29 }
0x3999   : > { %9930 = vmatpush1.bf16.msra.mxu0 %v13923_v22 }
0x399a   : > { %9931 = vmatprep.subr.bf16.mxu0 %v13931_v5 }
0x399d   : > { %9932 = vmatpush1.bf16.msra.mxu0 %v13929_v16 }
0x399e   : > { %12437 = vmatprep.subr.bf16.mxu0 %v13935_v4 }
0x3a52   : > { %v9590_v31 = vpop.f32.mrb[252].mxu1 }
0x3a53   : > { %v9596_v27 = vadd.f32 %v9590_v31, %v16548_v41  ;;  %v13549_v52 = vpop.f32.mrb[253].mxu1  ;;  %v13890_v41 = vld [vmem:[%s17259_s21 + $0x8] ss:$16 sps:$4 sm:$0xff]  }
0x3a54   : > { %v9593_v62 = vpop.f32.mrb[254].mxu1  ;;  %9959 = vmatpush1.bf16.msra.mxu1 %v13890_v41  ;;  %v13942_v31 = vld [vmem:[%s17260_s22 + $0x88] sm:$0xff]   ;;  %v13945_v52 = vld [vmem:[%s17260_s22 + $0x10] sm:$0xff]   ;;  %v13951_v41 = vld [vmem:[%s17260_s22 + $0x60] sm:$0xff]  }
0x3a55   : > { %v16776_v56 = vadd.f32 %v11857_v32, %v9596_v27  ;;  %v13550_v30 = vpop.f32.mrb[255].mxu1  ;;  %9960 = vmatprep.subr.bf16.mxu1 %v13898_v49  ;;  %v13943_v32 = vld [vmem:[%s17260_s22 + $0x50] sm:$0xff]   ;;  %v13954_v49 = vld [vmem:[%s17260_s22 + $0xa0] sm:$0xff]  }
0x3a56   : > { %v13944_v27 = vld [vmem:[%s17260_s22 + $0xd0] sm:$0xff]   ;;  %v13947_v30 = vld [vmem:[%s17260_s22 + $0x58] sm:$0xff]  }
0x3a57   : > { %v9610_v25 = vsel %vm8630_vm10, %v16776_v56, 0.0  ;;  %v13946_v62 = vld [vmem:[%s17260_s22 + $0x90] sm:$0xff]  }
0x3a58   : > { %9611 = vadd.xlane.f32.xlu0 %v9610_v25  ;;  %9961 = vmatpush1.bf16.msra.mxu1 %v13896_v17  ;;  %v13948_v25 = vld [vmem:[%s17260_s22 + $0xd8] sm:$0xff]   ;;  %v13956_v17 = vld [vmem:[%s17260_s22 + $0xe8] sm:$0xff]  }
0x3a59   : > { %9962 = vmatprep.subr.bf16.mxu1 %v13904_v37  ;;  %v13958_v37 = vld [vmem:[%s17260_s22 + $0xa8] sm:$0xff]  }
0x3a5c   : > { %9963 = vmatpush1.bf16.msra.mxu1 %v13902_v8  ;;  %v13960_v8 = vld [vmem:[%s17260_s22 + $0xf0] sm:$0xff]  }
0x3a5d   : > { %9964 = vmatprep.subr.bf16.mxu1 %v13910_v24  ;;  %v9669_v24 = vld [vmem:[%s17259_s21 + $0x100] sm:$0x11] }
0x3a60   : > { %9965 = vmatpush1.bf16.msra.mxu1 %v13908_v19  ;;  %v9737_v19 = vunpack.c.l.bf16 %v9669_v24 }
0x3a61   : > { %9966 = vmatprep.subr.bf16.mxu1 %v13916_v33  ;;  %v9738_v33 = vunpack.c.h.bf16 %v9669_v24 }
0x3a64   : > { %9967 = vmatpush1.bf16.msra.mxu1 %v13914_v15  ;;  %v9744_v15 = vrot.slane %v9737_v19, %v15323_v26 }
0x3a65   : > { %9968 = vmatprep.subr.bf16.mxu1 %v13922_v39  ;;  %v9748_v39 = vrot.slane %v9738_v33, %v15323_v26 }
0x3a68   : > { %9969 = vmatpush1.bf16.msra.mxu1 %v13920_v10 }
0x3a69   : > { %9970 = vmatprep.subr.bf16.mxu1 %v13928_v44 }
0x3a6c   : > { %9971 = vmatpush1.bf16.msra.mxu1 %v13926_v38 }
0x3a6d   : > { %9972 = vmatprep.subr.bf16.mxu1 %v13934_v46 }
0x3a70   : > { %9973 = vmatpush1.bf16.msra.mxu1 %v13932_v3 }
0x3a71   : > { %12459 = vmatprep.subr.bf16.mxu1 %v13936_v20 }
0x3ae5   : > { %v9612_v61 = vpop.xlane.xlu0 %9611 }
0x3ae6   : > { %v9613_v23 = vmul.f32 0.0078125, %v9612_v61  ;;  %v13961_v61 = vld [vmem:[%s17260_s22 + $0x30] sm:$0xff]  }
0x3ae8   : > { %v9614_v55 = vsub.f32 %v16776_v56, %v9613_v23  ;;  %v13962_v23 = vld [vmem:[%s17260_s22 + $0xb0] sm:$0xff]  }
0x3aea   : > { %v9615_v60 = vmul.f32 %v9614_v55, %v9614_v55 }
0x3aec   : > { %v9616_v42 = vsel %vm8630_vm10, %v9615_v60, 0.0  ;;  %v13964_v60 = vld [vmem:[%s17260_s22 + $0xf8] sm:$0xff]  }
0x3aed   : > { %9617 = vadd.xlane.f32.xlu1 %v9616_v42  ;;  %v13965_v42 = vld [vmem:[%s17260_s22 + $0x38] sm:$0xff]  }
0x3b7a   : > { %v9618_v11 = vpop.xlane.xlu1 %9617 }
0x3b7b   : > { %v9619_v59 = vmul.f32 0.0078125, %v9618_v11 }
0x3b7d   : > { %v9620_v36 = vadd.f32 1e-06, %v9619_v59 }
0x3b7f   : > { %14147 = vrsqrt.f32 %v9620_v36 }
0x3b89   : > { %v14148_v21 = vpop.eup %14147 }
0x3b8a   : > { %v9622_v34 = vmul.f32 %v14148_v21, %v9614_v55  ;;  %v13963_v55 = vld [vmem:[%s17260_s22 + $0x78] sm:$0xff]  }
0x3b8c   : > { %v9629_v51 = vmul.f32 %v11860_v47, %v9622_v34 }
0x3b8e   : > { %v9636_v28 = vadd.f32 %v11861_v45, %v9629_v51 }
0x3b90   : > { %v9736_v48 = vpack.c.bf16 %v9636_v28, %v9636_v28 }
0x3b92   : > { %9950 = vmatmul.mubr.bf16.vlgmr.msra.gmra.mrb[228].mxu0 %v9736_v48  ;;  %9991 = vmatmul.mubr.bf16.vlgmr.msra.gmra.mrb[0].mxu1 %v9736_v48 }
0x3b93   : > { %12438 = vmatpush3.bf16.msra.mxu0 %v13937_v35  ;;  %12460 = vmatpush3.bf16.msra.mxu1 %v13938_v58 }
0x3b94   : > { %12439 = vmatprep.subr.bf16.mxu0 %v13939_v43  ;;  %12461 = vmatprep.subr.bf16.mxu1 %v13940_v6 }
0x3b97   : > { %12440 = vmatpush3.bf16.msra.mxu0 %v13941_v54  ;;  %12462 = vmatpush3.bf16.msra.mxu1 %v13942_v31 }
0x3b98   : > { %12441 = vmatprep.subr.bf16.mxu0 %v13943_v32  ;;  %12463 = vmatprep.subr.bf16.mxu1 %v13944_v27 }
0x3b9b   : > { %12442 = vmatpush3.bf16.msra.mxu0 %v13945_v52  ;;  %12464 = vmatpush3.bf16.msra.mxu1 %v13946_v62 }
0x3b9c   : > { %12443 = vmatprep.subr.bf16.mxu0 %v13947_v30  ;;  %12465 = vmatprep.subr.bf16.mxu1 %v13948_v25 }
0x3b9f   : > { %12444 = vmatpush3.bf16.msra.mxu0 %v13949_v57  ;;  %12466 = vmatpush3.bf16.msra.mxu1 %v13950_v0 }
0x3ba0   : > { %12445 = vmatprep.subr.bf16.mxu0 %v13951_v41  ;;  %12467 = vmatprep.subr.bf16.mxu1 %v13952_v9 }
0x3ba3   : > { %12446 = vmatpush3.bf16.msra.mxu0 %v13953_v13  ;;  %12468 = vmatpush3.bf16.msra.mxu1 %v13954_v49 }
0x3ba4   : > { %12447 = vmatprep.subr.bf16.mxu0 %v13955_v50  ;;  %12469 = vmatprep.subr.bf16.mxu1 %v13956_v17 }
0x3ba7   : > { %12448 = vmatpush3.bf16.msra.mxu0 %v13957_v12  ;;  %12470 = vmatpush3.bf16.msra.mxu1 %v13958_v37 }
0x3ba8   : > { %12449 = vmatprep.subr.bf16.mxu0 %v13959_v53  ;;  %12471 = vmatprep.subr.bf16.mxu1 %v13960_v8 }
0x3bab   : > { %12450 = vmatpush3.bf16.msra.mxu0 %v13961_v61  ;;  %12472 = vmatpush3.bf16.msra.mxu1 %v13962_v23 }
0x3bac   : > { %12451 = vmatprep.subr.bf16.mxu0 %v13963_v55  ;;  %12473 = vmatprep.subr.bf16.mxu1 %v13964_v60 }
0x3baf   : > { %12452 = vmatpush3.bf16.msra.mxu0 %v13965_v42  ;;  %12474 = vmatpush3.bf16.msra.mxu1 %v13966_v7 }
0x3bb0   : > { %13551 = vmatprep.subr.bf16.mxu0 %v14289_v63  ;;  %13575 = vmatprep.subr.bf16.mxu1 %v14289_v63 }
0x3c65   : > { %v9951_v10 = vpop.f32.mrb[228].mxu0  ;;  %v9992_v29 = vpop.f32.mrb[0].mxu1 }
0x3c66   : > { %v16992_v44 = vadd.f32 %v9951_v10, %v9744_v15  ;;  %v16994_v22 = vadd.f32 %v9992_v29, %v9752_v1  ;;  %v9953_v38 = vpop.f32.mrb[229].mxu0  ;;  %v9994_v5 = vpop.f32.mrb[1].mxu1 }
0x3c67   : > { %v16996_v46 = vadd.f32 %v9953_v38, %v9748_v39  ;;  %v16998_v16 = vadd.f32 %v9994_v5, %v9756_v14  ;;  %v9955_v3 = vpop.f32.mrb[230].mxu0  ;;  %v9996_v11 = vpop.f32.mrb[2].mxu1 }
0x3c68   : > { %v17001_v59 = vmul.f32 0.70710677, %v16992_v44  ;;  %v17004_v36 = vmul.f32 0.70710677, %v16994_v22  ;;  %v9956_v6 = vpop.f32.mrb[231].mxu0  ;;  %v9997_v54 = vpop.f32.mrb[3].mxu1 }
0x3c69   : > { %v17007_v21 = vmul.f32 0.70710677, %v16996_v46  ;;  %v17010_v47 = vmul.f32 0.70710677, %v16998_v16 }
0x3c6a   : > { %v10003_v34 = vand.u32 2147483647, %v17001_v59  ;;  %v10005_v45 = vand.u32 2147483647, %v17004_v36  ;;  %vm10079_vm1 = vcmp.ge.f32.partialorder %v17001_v59, 0.0  ;;  %vm10081_vm3 = vcmp.ge.f32.partialorder %v17004_v36, 0.0 }
0x3c6b   : > { %v10004_v51 = vand.u32 2147483647, %v17007_v21  ;;  %v10006_v28 = vand.u32 2147483647, %v17010_v47  ;;  %vm10080_vm13 = vcmp.ge.f32.partialorder %v17007_v21, 0.0  ;;  %vm10082_vm14 = vcmp.ge.f32.partialorder %v17010_v47, 0.0 }
0x3c6c   : > { %v10007_v48 = vmul.f32 0.3275911, %v10003_v34  ;;  %v10009_v4 = vmul.f32 0.3275911, %v10005_v45  ;;  %v10055_v27 = vsub.f32 0.0, %v10003_v34  ;;  %v10057_v52 = vsub.f32 0.0, %v10005_v45 }
0x3c6d   : > { %v10008_v20 = vmul.f32 0.3275911, %v10004_v51  ;;  %v10010_v43 = vmul.f32 0.3275911, %v10006_v28  ;;  %v10056_v25 = vsub.f32 0.0, %v10004_v51  ;;  %v10058_v13 = vsub.f32 0.0, %v10006_v28 }
0x3c6e   : > { %v10011_v35 = vadd.f32 1.0, %v10007_v48  ;;  %v10013_v58 = vadd.f32 1.0, %v10009_v4  ;;  %v10059_v30 = vmul.f32 %v10055_v27, %v10003_v34  ;;  %v10061_v41 = vmul.f32 %v10057_v52, %v10005_v45 }
0x3c6f   : > { %v10012_v31 = vadd.f32 1.0, %v10008_v20  ;;  %v10014_v32 = vadd.f32 1.0, %v10010_v43  ;;  %v10060_v37 = vmul.f32 %v10056_v25, %v10004_v51  ;;  %v10062_v60 = vmul.f32 %v10058_v13, %v10006_v28 }
0x3c70   : > { %14149 = vrcp.f32 %v10011_v35  ;;  %v10063_v17 = vmul.f32 1.442695, %v10059_v30  ;;  %v10067_v8 = vmul.f32 1.442695, %v10061_v41  ;;  %v10093_v36 = vmul.f32 0.5, %v16994_v22 }
0x3c71   : > { %14151 = vrcp.f32 %v10013_v58  ;;  %v10065_v19 = vmul.f32 1.442695, %v10060_v37  ;;  %v10069_v1 = vmul.f32 1.442695, %v10062_v60  ;;  %v9735_v22 = vld [vmem:[%s17260_s22 + $0x100] sm:$0x1] }
0x3c72   : > { %14153 = vrcp.f32 %v10012_v31 }
0x3c73   : > { %14155 = vrcp.f32 %v10014_v32 }
0x3c74   : > { %14157 = vpow2.f32 %v10063_v17 }
0x3c75   : > { %14159 = vpow2.f32 %v10067_v8 }
0x3c76   : > { %14161 = vpow2.f32 %v10065_v19 }
0x3c77   : > { %14163 = vpow2.f32 %v10069_v1 }
0x3c7a   : > { %v14150_v62 = vpop.eup %14149 }
0x3c7b   : > { %v14152_v57 = vpop.eup %14151  ;;  %v10019_v0 = vmul.f32 1.0614054, %v14150_v62 }
0x3c7c   : > { %v10021_v9 = vmul.f32 1.0614054, %v14152_v57  ;;  %v14154_v50 = vpop.eup %14153 }
0x3c7d   : > { %v10023_v49 = vadd.f32 -1.4531521, %v10019_v0  ;;  %v10020_v61 = vmul.f32 1.0614054, %v14154_v50  ;;  %v14156_v23 = vpop.eup %14155 }
0x3c7e   : > { %v10025_v12 = vadd.f32 -1.4531521, %v10021_v9  ;;  %v10022_v24 = vmul.f32 1.0614054, %v14156_v23  ;;  %v14158_v35 = vpop.eup %14157 }
0x3c7f   : > { %v10027_v53 = vmul.f32 %v14150_v62, %v10023_v49  ;;  %v10024_v7 = vadd.f32 -1.4531521, %v10020_v61  ;;  %v14160_v43 = vpop.eup %14159 }
0x3c80   : > { %v10029_v55 = vmul.f32 %v14152_v57, %v10025_v12  ;;  %v10026_v40 = vadd.f32 -1.4531521, %v10022_v24  ;;  %v14162_v25 = vpop.eup %14161 }
0x3c81   : > { %v10031_v42 = vadd.f32 1.4214138, %v10027_v53  ;;  %v10028_v33 = vmul.f32 %v14154_v50, %v10024_v7  ;;  %v14164_v49 = vpop.eup %14163 }
0x3c82   : > { %v10033_v18 = vadd.f32 1.4214138, %v10029_v55  ;;  %v10030_v10 = vmul.f32 %v14156_v23, %v10026_v40 }
0x3c83   : > { %v10035_v2 = vmul.f32 %v14150_v62, %v10031_v42  ;;  %v10032_v14 = vadd.f32 1.4214138, %v10028_v33  ;;  %v10092_v42 = vmul.f32 0.5, %v16996_v46 }
0x3c84   : > { %v10037_v15 = vmul.f32 %v14152_v57, %v10033_v18  ;;  %v10034_v3 = vadd.f32 1.4214138, %v10030_v10  ;;  %v10094_v18 = vmul.f32 0.5, %v16998_v16 }
0x3c85   : > { %v10039_v39 = vadd.f32 -0.28449672, %v10035_v2  ;;  %v10036_v5 = vmul.f32 %v14154_v50, %v10032_v14  ;;  %v10380_v14 = vunpack.c.l.bf16 %v9735_v22 }
0x3c86   : > { %v10041_v29 = vadd.f32 -0.28449672, %v10037_v15  ;;  %v10038_v51 = vmul.f32 %v14156_v23, %v10034_v3 }
0x3c87   : > { %v10043_v38 = vmul.f32 %v14150_v62, %v10039_v39  ;;  %v10040_v45 = vadd.f32 -0.28449672, %v10036_v5 }
0x3c88   : > { %v10045_v11 = vmul.f32 %v14152_v57, %v10041_v29  ;;  %v10042_v20 = vadd.f32 -0.28449672, %v10038_v51 }
0x3c89   : > { %v10047_v34 = vadd.f32 0.2548296, %v10043_v38  ;;  %v10044_v4 = vmul.f32 %v14154_v50, %v10040_v45  ;;  %v10384_v45 = vrot.slane %v10380_v14, %v15323_v26  ;;  %v11929_v26 = vld [vmem:[%s17261_s23 + $0x2] sm:$0x3] }
0x3c8a   : > { %v10049_v28 = vadd.f32 0.2548296, %v10045_v11  ;;  %v10046_v31 = vmul.f32 %v14156_v23, %v10042_v20  ;;  %v10386_v20 = vld [vmem:[%s17261_s23] sm:$0x3] }
0x3c8b   : > { %v10051_v48 = vmul.f32 %v14150_v62, %v10047_v34  ;;  %v10048_v54 = vadd.f32 0.2548296, %v10044_v4 }
0x3c8c   : > { %v10053_v58 = vmul.f32 %v14152_v57, %v10049_v28  ;;  %v10050_v30 = vadd.f32 0.2548296, %v10046_v31  ;;  %v11953_v31 = vld [vmem:[%s17261_s23 + $0xe] sm:$0x3] }
0x3c8d   : > { %v10071_v6 = vmul.f32 %v14158_v35, %v10051_v48  ;;  %v10052_v52 = vmul.f32 %v14154_v50, %v10048_v54  ;;  %v10091_v50 = vmul.f32 0.5, %v16992_v44  ;;  %v11941_v35 = vld [vmem:[%s17261_s23 + $0x8] sm:$0x3]  ;;  %v11945_v54 = vld [vmem:[%s17261_s23 + $0xa] sm:$0x3] }
0x3c8e   : > { %v10073_v32 = vmul.f32 %v14160_v43, %v10053_v58  ;;  %v10054_v13 = vmul.f32 %v14156_v23, %v10050_v30  ;;  %v11933_v58 = vld [vmem:[%s17261_s23 + $0x4] sm:$0x3]  ;;  %v11957_v43 = vld [vmem:[%s17261_s23 + $0x10] sm:$0x3] }
0x3c8f   : > { %v10075_v27 = vsub.f32 1.0, %v10071_v6  ;;  %v10072_v9 = vmul.f32 %v14162_v25, %v10052_v52  ;;  %v11937_v6 = vld [vmem:[%s17261_s23 + $0x6] sm:$0x3] }
0x3c90   : > { %v10077_v0 = vsub.f32 1.0, %v10073_v32  ;;  %v10074_v12 = vmul.f32 %v14164_v49, %v10054_v13 }
0x3c91   : > { %v10083_v41 = vsub.f32 0.0, %v10075_v27  ;;  %v10076_v57 = vsub.f32 1.0, %v10072_v9 }
0x3c92   : > { %v10085_v62 = vsub.f32 0.0, %v10077_v0  ;;  %v10078_v61 = vsub.f32 1.0, %v10074_v12 }
0x3c93   : > { %v10087_v17 = vsel %vm10079_vm1, %v10075_v27, %v10083_v41  ;;  %v10084_v8 = vsub.f32 0.0, %v10076_v57 }
0x3c94   : > { %v10089_v37 = vsel %vm10081_vm3, %v10077_v0, %v10085_v62  ;;  %v10095_v53 = vadd.f32 1.0, %v10087_v17  ;;  %v10086_v23 = vsub.f32 0.0, %v10078_v61 }
0x3c95   : > { %v10097_v55 = vadd.f32 1.0, %v10089_v37  ;;  %v10088_v60 = vsel %vm10080_vm13, %v10076_v57, %v10084_v8 }
0x3c96   : > { %v10096_v59 = vadd.f32 1.0, %v10088_v60  ;;  %v10099_v7 = vmul.f32 %v10095_v53, %v10091_v50  ;;  %v10090_v24 = vsel %vm10082_vm14, %v10078_v61, %v10086_v23 }
0x3c97   : > { %v10098_v2 = vadd.f32 1.0, %v10090_v24  ;;  %v10101_v33 = vmul.f32 %v10097_v55, %v10093_v36 }
0x3c98   : > { %v10100_v19 = vmul.f32 %v10096_v59, %v10092_v42  ;;  %v10103_v44 = vpack.c.bf16 %v10099_v7, %v10099_v7 }
0x3c99   : > { %v10102_v40 = vmul.f32 %v10098_v2, %v10094_v18  ;;  %v10105_v1 = vpack.c.bf16 %v10101_v33, %v10101_v33 }
0x3c9a   : > { %v10104_v21 = vpack.c.bf16 %v10100_v19, %v10100_v19 }
0x3c9b   : > { %v10106_v15 = vpack.c.bf16 %v10102_v40, %v10102_v40 }
0x3c9c   : > { %10331 = vmatprep.mubr.bf16.mxu0 %v10104_v21 }
0x3c9d   : > { %10332 = vmatmul.mubr.bf16.vlgmr.msra.gmra.mrb[232].mxu0 %v10103_v44  ;;  %10371 = vmatprep.mubr.bf16.mxu1 %v10106_v15 }
0x3c9e   : > { %13553 = vmatprep.mubr.msk.bf16.mxu0 %vm14290_vm2, %v14289_v63  ;;  %10372 = vmatmul.mubr.bf16.vlgmr.msra.gmra.mrb[4].mxu1 %v10105_v1 }
0x3c9f   : > { %13577 = vmatprep.mubr.msk.bf16.mxu1 %vm14290_vm2, %v14289_v63 }
0x3d70   : > { %v12453_v46 = vpop.f32.mrb[232].mxu0 }
0x3d71   : > { %v12454_v16 = vpop.f32.mrb[233].mxu0  ;;  %v12475_v47 = vpop.f32.mrb[4].mxu1 }
0x3d72   : > { %v12455_v39 = vadd.f32 %v12454_v16, %v12453_v46  ;;  %v12456_v10 = vpop.f32.mrb[234].mxu0  ;;  %v12476_v29 = vpop.f32.mrb[5].mxu1 }
0x3d73   : > { %v12457_v38 = vpop.f32.mrb[235].mxu0  ;;  %v12477_v5 = vadd.f32 %v12476_v29, %v12475_v47  ;;  %v12478_v3 = vpop.f32.mrb[6].mxu1 }
0x3d74   : > { %v12479_v11 = vpop.f32.mrb[7].mxu1 }
0x3d75   : > { %v10374_v34 = vadd.f32 %v12477_v5, %v12455_v39 }
0x3d77   : > { %v10379_v51 = vadd.f32 %v10374_v34, %v16776_v56  ;;  %v11949_v56 = vld [vmem:[%s17261_s23 + $0xc] sm:$0x3] }
0x3d79   : > { %v10385_v28 = vadd.f32 %v10384_v45, %v10379_v51 }
0x3d7b   : > { %v10387_v48 = vpack.c.bf16 %v10385_v28, %v10385_v28 }
0x3d7d   : > { %v10392_v4 = vsel %vm3419_vm5, %v10387_v48, 0 }
0x3d7e   : > { %13552 = vmatpush3.bf16.msra.mxu0 %v10392_v4  ;;  %13576 = vmatpush3.bf16.msra.mxu1 %v10392_v4 }
0x3d7f   : > { %13557 = vmatprep.subr.bf16.mxu0 %v14289_v63  ;;  %13587 = vmatprep.subr.bf16.mxu1 %v14289_v63 }
0x3d81   : > { %13554 = vmatmul.mubr.msk.bf16.vlgmr.msra.gmra.mrb[236].mxu0 %vm3313_vm6, %v10386_v20  ;;  %13578 = vmatmul.mubr.msk.bf16.vlgmr.msra.gmra.mrb[8].mxu1 %vm3313_vm6, %v11941_v35 }
0x3d82   : > { %13558 = vmatpush3.bf16.msra.mxu0 %v10392_v4  ;;  %13588 = vmatpush3.bf16.msra.mxu1 %v10392_v4 }
0x3d83   : > { %13559 = vmatprep.mubr.msk.bf16.mxu0 %vm14290_vm2, %v14289_v63  ;;  %13563 = vmatprep.subr.bf16.mxu0 %v14289_v63 }
0x3d84   : > { %13589 = vmatprep.mubr.msk.bf16.mxu1 %vm14290_vm2, %v14289_v63  ;;  %13599 = vmatprep.subr.bf16.mxu1 %v14289_v63 }
0x3d89   : > { %13560 = vmatmul.mubr.msk.bf16.vlgmr.msra.gmra.mrb[240].mxu0 %vm3313_vm6, %v11929_v26  ;;  %13590 = vmatmul.mubr.msk.bf16.vlgmr.msra.gmra.mrb[12].mxu1 %vm3313_vm6, %v11949_v56 }
0x3d8a   : > { %13564 = vmatpush3.bf16.msra.mxu0 %v10392_v4  ;;  %13600 = vmatpush3.bf16.msra.mxu1 %v10392_v4 }
0x3d8b   : > { %13565 = vmatprep.mubr.msk.bf16.mxu0 %vm14290_vm2, %v14289_v63  ;;  %13569 = vmatprep.subr.bf16.mxu0 %v14289_v63 }
0x3d8c   : > { %13601 = vmatprep.mubr.msk.bf16.mxu1 %vm14290_vm2, %v14289_v63 }
0x3d91   : > { %13566 = vmatmul.mubr.msk.bf16.vlgmr.msra.gmra.mrb[244].mxu0 %vm3313_vm6, %v11933_v58  ;;  %13602 = vmatmul.mubr.msk.bf16.vlgmr.msra.gmra.mrb[16].mxu1 %vm3313_vm6, %v11957_v43 }
0x3d92   : > { %13570 = vmatpush3.bf16.msra.mxu0 %v10392_v4  ;;  %13571 = vmatprep.mubr.msk.bf16.mxu0 %vm14290_vm2, %v14289_v63 }
0x3d93   : > { %13581 = vmatprep.subr.bf16.mxu0 %v14289_v63 }
0x3d99   : > { %13572 = vmatmul.mubr.msk.bf16.vlgmr.msra.gmra.mrb[248].mxu0 %vm3313_vm6, %v11937_v6 }
0x3d9a   : > { %13582 = vmatpush3.bf16.msra.mxu0 %v10392_v4  ;;  %13583 = vmatprep.mubr.msk.bf16.mxu0 %vm14290_vm2, %v14289_v63 }
0x3d9b   : > { %13593 = vmatprep.subr.bf16.mxu0 %v14289_v63 }
0x3da1   : > { %13584 = vmatmul.mubr.msk.bf16.vlgmr.msra.gmra.mrb[252].mxu0 %vm3313_vm6, %v11945_v54 }
0x3da2   : > { %13594 = vmatpush3.bf16.msra.mxu0 %v10392_v4  ;;  %13595 = vmatprep.mubr.msk.bf16.mxu0 %vm14290_vm2, %v14289_v63 }
0x3da9   : > { %13596 = vmatmul.mubr.msk.bf16.vlgmr.msra.gmra.mrb[0].mxu0 %vm3313_vm6, %v11953_v31 }
0x3daa   : > { %14178 = shalt.err (!%p14175_p3)
}
0x3dab   : > { %s14179_s13 = scalar_lea.hbm %s17097_s11, 256  ;;  %s14183_s3 = scalar_lea.hbm %s17264_s26, 512 }
0x3dac   : > { %p14180_p4 = scmp.ne.s32.totalorder %s17097_s11, %s14179_s13  ;;  %p14184_p9 = scmp.lt.u32.totalorder %s17097_s11, %s17264_s26 }
0x3dad   : > { %p14185_p10 = scmp.lt.u32.totalorder %s14183_s3, %s14179_s13  ;;  %p14187_p12 = scmp.lt.u32.totalorder %s14179_s13, %s17097_s11 }
0x3dae   : > { %p14181_p7 = pnand %p14180_p4, %p14480_p5 }
0x3daf   : > { %p14186_p11 = por %p14185_p10, %p14184_p9 }
0x3db0   : > { %p14182_p8 = pneg %p14181_p7 }
0x3db1   : > { %p14188_p13 = por %p14187_p12, %p14186_p11 }
0x3db3   : > { %p14189_p0 = pnand %p14188_p13, %p14182_p8 }
0x3db5   : > { %14192 = shalt.err (!%p14189_p0)
}
0x3db6   : > { %s14296_s12 = smov 128   ;;  %s14297_s7 = smov 8  }
0x3db7   : > { %13608 = dma.vmem_to_hbm [thread:$0]  (%p14480_p5), %s17099_s10, 256, %s17097_s11, %s17101_s14, %s14296_s12, %s14296_s12, %s14297_s7  }
0x3db8   : > { %s11974_s5 = sshll.u32 %s14461_s9, 10  ;;  %s10917_s13 = sshll.u32 %s15769_s0, 4  ;;  %s17135_s13 = int_to_ptr.vmem [resolvable:$true] %s10917_s13 }
0x3db9   : > { %s17133_s3 = scalar_lea.hbm %s17263_s25, %s11974_s5  ;;  %s10894_s6 = scalar_lea.sflag [#allocation3], %s15763_s29 }
0x3dba   : > { %s14193_s8 = scalar_lea.vmem %s17135_s13, 1024  ;;  %s14298_s15 = smov [#allocation2]  }
0x3dbb   : > { %p14194_p1 = scmp.ne.s32.totalorder %s17135_s13, %s14193_s8  ;;  %s14197_s10 = sshll.u32 %s14298_s15, 4  ;;  %s14198_s10 = int_to_ptr.vmem [resolvable:$false] %s14197_s10 }
0x3dbc   : > { %s14199_s0 = scalar_lea.vmem %s14198_s10, 2048  ;;  %p14200_p4 = scmp.lt.s32.totalorder %s17135_s13, %s14198_s10 }
0x3dbd   : > { %p14195_p2 = pnand %p14194_p1, %p14480_p5  ;;  %p14201_p7 = scmp.lt.s32.totalorder %s14199_s0, %s14193_s8 }
0x3dbf   : > { %p14196_p3 = pneg %p14195_p2  ;;  %p14202_p8 = por %p14201_p7, %p14200_p4 }
0x3dc1   : > { %p14203_p9 = pnand %p14202_p8, %p14196_p3 }
0x3dc3   : > { %14206 = shalt.err (!%p14203_p9)
}
0x3dc4   : > { %s14207_s11 = scalar_lea.hbm %s17133_s3, 1024  ;;  %s14211_s15 = scalar_lea.hbm %s17263_s25, 2048 }
0x3dc5   : > { %p14208_p10 = scmp.ne.s32.totalorder %s17133_s3, %s14207_s11  ;;  %p14212_p13 = scmp.lt.u32.totalorder %s17133_s3, %s17263_s25 }
0x3dc6   : > { %p14213_p0 = scmp.lt.u32.totalorder %s14211_s15, %s14207_s11  ;;  %p14215_p2 = scmp.lt.u32.totalorder %s14207_s11, %s17133_s3 }
0x3dc7   : > { %p14209_p11 = pnand %p14208_p10, %p14480_p5 }
0x3dc8   : > { %p14214_p1 = por %p14213_p0, %p14212_p13 }
0x3dc9   : > { %p14210_p12 = pneg %p14209_p11 }
0x3dca   : > { %p14216_p3 = por %p14215_p2, %p14214_p1 }
0x3dcc   : > { %p14217_p4 = pnand %p14216_p3, %p14210_p12 }
0x3dce   : > { %14220 = shalt.err (!%p14217_p4)
}
0x3dcf   : > { %13607 = dma.vmem_to_hbm [thread:$0]  (%p14480_p5), %s17135_s13, 1024, %s17133_s3, %s10894_s6, %s14296_s12, %s14296_s12, %s14297_s7  }
0x3dd0   : > { %v11928_v9 = vld [vmem:[%s17262_s24 + $0xc] ss:$0 sm:$0xff]  ;;  %v11932_v13 = vld [vmem:[%s17262_s24 + $0xd] ss:$0 sm:$0xff]  ;;  %v11936_v60 = vld [vmem:[%s17262_s24 + $0xe] ss:$0 sm:$0xff] }
0x3dd1   : > { %v11940_v21 = vld [vmem:[%s17262_s24 + $0xf] ss:$0 sm:$0xff]  ;;  %v11944_v40 = vld [vmem:[%s17262_s24 + $0x10] ss:$0 sm:$0xff]  ;;  %v11948_v14 = vld [vmem:[%s17262_s24 + $0x11] ss:$0 sm:$0xff] }
0x3dd2   : > { %v11952_v10 = vld [vmem:[%s17262_s24 + $0x12] ss:$0 sm:$0xff]  ;;  %v11956_v28 = vld [vmem:[%s17262_s24 + $0x13] ss:$0 sm:$0xff]  ;;  %v11960_v48 = vld [vmem:[%s17262_s24 + $0x14] ss:$0 sm:$0xff] }
0x3dd3   : > { %s11075_s7 = sshll.u32 %s15763_s29, 2  ;;  %v11962_v6 = vld [vmem:[%s17262_s24 + $0xb] ss:$0 sm:$0xff]  ;;  %s11970_s6 = sshll.u32 %s14461_s9, 6 }
0x3dd4   : > { %s829_s28 = scalar_lea.vmem [#allocation6], %s11075_s7  ;;  %s17199_s29 = scalar_lea.hbm %s17265_s27, %s11970_s6 }
0x3dd5   : > { %s10949_s15 = sshll.u32 %s829_s28, 4  ;;  %s14299_s0 = smov [#allocation6]   ;;  %s10950_s15 = int_to_ptr.vmem [resolvable:$true] %s10949_s15 }
0x3dd6   : > { %s14221_s8 = scalar_lea.vmem %s10950_s15, 64  ;;  %s14225_s11 = sshll.u32 %s14299_s0, 4  ;;  %s14226_s11 = int_to_ptr.vmem [resolvable:$false] %s14225_s11 }
0x3dd7   : > { %p14222_p7 = scmp.ne.s32.totalorder %s10950_s15, %s14221_s8  ;;  %s14227_s9 = scalar_lea.vmem %s14226_s11, 128 }
0x3dd8   : > { %p14228_p10 = scmp.lt.s32.totalorder %s10950_s15, %s14226_s11  ;;  %p14229_p11 = scmp.lt.s32.totalorder %s14227_s9, %s14221_s8 }
0x3dd9   : > { %p14223_p8 = pnand %p14222_p7, %p14480_p5 }
0x3dda   : > { %p14230_p12 = por %p14229_p11, %p14228_p10 }
0x3ddb   : > { %p14224_p9 = pneg %p14223_p8 }
0x3ddd   : > { %p14231_p13 = pnand %p14230_p12, %p14224_p9 }
0x3e54   : > { %v10428_v63 = vpop.f32.mrb[236].mxu0  ;;  %v10647_v32 = vpop.f32.mrb[8].mxu1 }
0x3e55   : > { %v13555_v27 = vpop.f32.mrb[237].mxu0  ;;  %v13579_v52 = vpop.f32.mrb[9].mxu1  ;;  %v10442_v17 = vmul.f32 %v11928_v9, %v10428_v63  ;;  %v10661_v1 = vmul.f32 %v11944_v40, %v10647_v32 }
0x3e56   : > { %v10431_v30 = vpop.f32.mrb[238].mxu0  ;;  %v10650_v25 = vpop.f32.mrb[10].mxu1 }
0x3e57   : > { %v13556_v0 = vpop.f32.mrb[239].mxu0  ;;  %v13580_v41 = vpop.f32.mrb[11].mxu1 }
0x3e5c   : > { %v10482_v49 = vpop.f32.mrb[240].mxu0  ;;  %v10757_v62 = vpop.f32.mrb[12].mxu1 }
0x3e5d   : > { %v10496_v57 = vmul.f32 %v11932_v13, %v10482_v49  ;;  %v13561_v12 = vpop.f32.mrb[241].mxu0  ;;  %v13591_v37 = vpop.f32.mrb[13].mxu1  ;;  %v10771_v5 = vmul.f32 %v11952_v10, %v10757_v62 }
0x3e5e   : > { %v10485_v53 = vpop.f32.mrb[242].mxu0  ;;  %v10760_v8 = vpop.f32.mrb[14].mxu1 }
0x3e5f   : > { %v10497_v61 = vadd.f32 %v10496_v57, %v10442_v17  ;;  %v13562_v50 = vpop.f32.mrb[243].mxu0  ;;  %v13592_v55 = vpop.f32.mrb[15].mxu1 }
0x3e64   : > { %v10537_v23 = vpop.f32.mrb[244].mxu0  ;;  %v10867_v42 = vpop.f32.mrb[16].mxu1 }
0x3e65   : > { %v10551_v59 = vmul.f32 %v11936_v60, %v10537_v23  ;;  %v13567_v7 = vpop.f32.mrb[245].mxu0  ;;  %v13603_v36 = vpop.f32.mrb[17].mxu1  ;;  %v10881_v35 = vmul.f32 %v11960_v48, %v10867_v42 }
0x3e66   : > { %v10540_v24 = vpop.f32.mrb[246].mxu0  ;;  %v10870_v18 = vpop.f32.mrb[18].mxu1 }
0x3e67   : > { %v10552_v19 = vadd.f32 %v10551_v59, %v10497_v61  ;;  %v13568_v2 = vpop.f32.mrb[247].mxu0  ;;  %v13604_v33 = vpop.f32.mrb[19].mxu1 }
0x3e6c   : > { %v10592_v44 = vpop.f32.mrb[248].mxu0 }
0x3e6d   : > { %v10606_v15 = vmul.f32 %v11940_v21, %v10592_v44  ;;  %v13573_v22 = vpop.f32.mrb[249].mxu0 }
0x3e6e   : > { %v10595_v46 = vpop.f32.mrb[250].mxu0 }
0x3e6f   : > { %v10607_v16 = vadd.f32 %v10606_v15, %v10552_v19  ;;  %v13574_v47 = vpop.f32.mrb[251].mxu0 }
0x3e71   : > { %v10662_v39 = vadd.f32 %v10661_v1, %v10607_v16 }
0x3e74   : > { %v10702_v29 = vpop.f32.mrb[252].mxu0 }
0x3e75   : > { %v10716_v38 = vmul.f32 %v11948_v14, %v10702_v29  ;;  %v13585_v3 = vpop.f32.mrb[253].mxu0 }
0x3e76   : > { %v10705_v11 = vpop.f32.mrb[254].mxu0 }
0x3e77   : > { %v10717_v34 = vadd.f32 %v10716_v38, %v10662_v39  ;;  %v13586_v45 = vpop.f32.mrb[255].mxu0 }
0x3e79   : > { %v10772_v51 = vadd.f32 %v10771_v5, %v10717_v34 }
0x3e7c   : > { %v10812_v4 = vpop.f32.mrb[0].mxu0 }
0x3e7d   : > { %v10826_v20 = vmul.f32 %v11956_v28, %v10812_v4  ;;  %v13597_v26 = vpop.f32.mrb[1].mxu0 }
0x3e7e   : > { %v10815_v56 = vpop.f32.mrb[2].mxu0 }
0x3e7f   : > { %v10827_v58 = vadd.f32 %v10826_v20, %v10772_v51  ;;  %v13598_v43 = vpop.f32.mrb[3].mxu0 }
0x3e81   : > { %v10882_v54 = vadd.f32 %v10881_v35, %v10827_v58 }
0x3e83   : > { %v10891_v31 = vadd.f32 %v11962_v6, %v10882_v54 }
0x3e85   : > { %10892 = vst [vmem:[%s829_s28] sm:$0xf] %v10891_v31 }
0x3e86   : > { %14234 = shalt.err (!%p14231_p13)
}
0x3e87   : > { %s14235_s5 = scalar_lea.hbm %s17199_s29, 64  ;;  %s14239_s13 = scalar_lea.hbm %s17265_s27, 128 }
0x3e88   : > { %p14236_p0 = scmp.ne.s32.totalorder %s17199_s29, %s14235_s5  ;;  %p14240_p3 = scmp.lt.u32.totalorder %s17199_s29, %s17265_s27 }
0x3e89   : > { %p14241_p4 = scmp.lt.u32.totalorder %s14239_s13, %s14235_s5  ;;  %p14243_p8 = scmp.lt.u32.totalorder %s14235_s5, %s17199_s29 }
0x3e8a   : > { %p14237_p1 = pnand %p14236_p0, %p14480_p5 }
0x3e8b   : > { %p14242_p7 = por %p14241_p4, %p14240_p3 }
0x3e8c   : > { %p14238_p2 = pneg %p14237_p1 }
0x3e8d   : > { %p14244_p9 = por %p14243_p8, %p14242_p7 }
0x3e8f   : > { %p14245_p10 = pnand %p14244_p9, %p14238_p2 }
0x3e91   : > { %14248 = shalt.err (!%p14245_p10)
}
0x3e92   : > { %13609 = dma.vmem_to_hbm [thread:$0]  (%p14480_p5), %s10950_s15, 64, %s17199_s29, %s17101_s14  }
0x3e93 PF: > { %s17343_s28 = sld [smem:[#allocation9_spill]]  ;;  %p13623_p11 = scmp.ge.s32.totalorder %s14287_s30, 2 }
0x3e95   : > { %p13614_p12 = pnand %p13623_p11, %p14484_p6 }
0x3e99   : > { %s10961_s10 = sand.u32 1, %s17343_s28  }
0x3e9a   : > { %s10962_s8 = scalar_lea.sflag [#allocation3], %s10961_s10 }
0x3e9b   : > { %14266 = dma.done.wait (!%p13614_p12), %s10962_s8, 1024  }
0x3e9c   : > { %14268 = vsyncadd (!%p13614_p12), %s10962_s8, 4294966272  ;;  %s17345_s0 = sadd.s32 4294967294, %s14287_s30  }
0x3e9d   : > { %s10970_s11 = sand.u32 1, %s17345_s0  }
0x3e9e   : > { %s10971_s9 = scalar_lea.sflag [#allocation5], %s10970_s11 }
0x3e9f   : > { %14270 = dma.done.wait (!%p13614_p12), %s10971_s9, 320  }
0x3ea0   : > { %14272 = vsyncadd (!%p13614_p12), %s10971_s9, 4294966976  ;;  %s17346_s30 = sld [smem:[#allocation11_spill]]  ;;  %s17347_s1 = sld [smem:[#allocation10_spill]] }
0x3ea1   : > { %s17348_s8 = sld [smem:[#allocation12_spill]]  ;;  %s17349_s7 = smov %s14279_s4 }
0x3ea6   : > { %p41_p5 = scmp.ge.s32.totalorder %s17346_s30, 4   ;;  %s17350_s4 = smov %s17347_s1 }
0x3ea8   :  { %43 = sbr.rel (!%p41_p5) target bundleno = 22 (0x16), region = 334 }
0x3eaf   :  { %10985 = vsyncpa [#allocation3], 1 }
0x3eb0   :  { %10987 = vsyncpa [#allocation3 + $0x1], 1 }
0x3eb1   :  { %10988 = vsyncpa [#allocation5], 1 }
0x3eb2   :  { %10990 = vsyncpa [#allocation5 + $0x1], 1 }

</bundles_post_ra>
